<compile_context>
chip_gen: v7x
topology: tpu7x:2x2x1
jax: 0.10.0
libtpu: 0.0.40
codegen_flags: <defaults>
</compile_context>

<pallas_src>
import jax
import jax.numpy as jnp
from jax.experimental import pallas as pl
from jax.experimental.pallas import tpu as pltpu


# ---------------------------------------------------------------------------
# Symbolic 3x3 helpers.  Matrices are length-9 Python lists (row-major); each
# entry is either a jnp array of shape [s_tile, 128] or a Python float
# (structural 0 / 1).  Multiplies/adds fold the constants at trace time, so
# the kernel only emits the VPU ops that are actually needed.
# ---------------------------------------------------------------------------
def _is_const(v):
    return isinstance(v, (int, float))


def _mul(a, b):
    if _is_const(a):
        if a == 0.0:
            return 0.0
        if a == 1.0:
            return b
    if _is_const(b):
        if b == 0.0:
            return 0.0
        if b == 1.0:
            return a
    return a * b


def _add(a, b):
    if _is_const(a) and a == 0.0:
        return b
    if _is_const(b) and b == 0.0:
        return a
    return a + b


def _axis_rot(c, s, axis):
    if axis == "x":
        return [1.0, 0.0, 0.0,
                0.0, c, -s,
                0.0, s, c]
    if axis == "y":
        return [c, 0.0, s,
                0.0, 1.0, 0.0,
                -s, 0.0, c]
    if axis == "z":
        return [c, -s, 0.0,
                s, c, 0.0,
                0.0, 0.0, 1.0]
    raise ValueError(f"unknown axis {axis!r}")


def _mm3(a, b):
    out = []
    for i in range(3):
        for j in range(3):
            acc = 0.0
            for k in range(3):
                acc = _add(acc, _mul(a[3 * i + k], b[3 * k + j]))
            out.append(acc)
    return out


def _mv3(m, v):
    return [
        _add(_add(_mul(m[3 * i + 0], v[0]), _mul(m[3 * i + 1], v[1])),
             _mul(m[3 * i + 2], v[2]))
        for i in range(3)
    ]


# ---------------------------------------------------------------------------
# Kernel factory: tree topology, joint axis and euler order are baked in.
# Input  ref: [7,  N, s_tile, 128]  -- (x, r0, r1, r2, x0, x1, x2) planes
# Output ref: [15, N, s_tile, 128]  -- (pos[3], gpos[3], rot[9] row-major)
# ---------------------------------------------------------------------------
def _make_fk_kernel(axis, order, parent_list):
    num_nodes = len(parent_list)

    def fk_kernel(in_ref, out_ref):
        s_tile = in_ref.shape[2]
        slab_shape = (s_tile, 128)
        # Hoisted structural constants (reused for every 0/1 store).
        zero_slab = jnp.zeros(slab_shape, jnp.float32)
        one_slab = jnp.ones(slab_shape, jnp.float32)

        def as_arr(v):
            if _is_const(v):
                if v == 0.0:
                    return zero_slab
                if v == 1.0:
                    return one_slab
                return jnp.full(slab_shape, v, jnp.float32)
            return v

        rot_state = [None] * num_nodes
        pos_state = [None] * num_nodes
        gpos_state = [None] * num_nodes

        # Fully unrolled static walk — the scheduler sees the whole DAG and can
        # interleave independent subtrees; parent state stays in registers
        # (exactly 1 vreg per value at s_tile == 8).
        for n in range(num_nodes):
            xa = in_ref[0, n, :, :]
            e0 = in_ref[1, n, :, :]
            e1 = in_ref[2, n, :, :]
            e2 = in_ref[3, n, :, :]

            joint = _axis_rot(jnp.cos(xa), jnp.sin(xa), axis)
            r_a = _axis_rot(jnp.cos(e2), jnp.sin(e2), order[2])
            r_b = _axis_rot(jnp.cos(e1), jnp.sin(e1), order[1])
            r_c = _axis_rot(jnp.cos(e0), jnp.sin(e0), order[0])
            local = _mm3(_mm3(_mm3(r_a, r_b), r_c), joint)

            xyz_n = [in_ref[4, n, :, :], in_ref[5, n, :, :], in_ref[6, n, :, :]]

            p = parent_list[n]
            if p == -1:
                pos_n = [0.0, 0.0, 0.0]
                gpos_n = xyz_n
                rot_n = local
            else:
                pr = rot_state[p]
                rotated = _mv3(pr, xyz_n)
                pos_n = [_add(rotated[i], pos_state[p][i]) for i in range(3)]
                gpos_n = [_add(rotated[i], gpos_state[p][i]) for i in range(3)]
                rot_n = _mm3(pr, local)

            for i in range(3):
                out_ref[i, n, :, :] = as_arr(pos_n[i])
                out_ref[3 + i, n, :, :] = as_arr(gpos_n[i])
            for k in range(9):
                out_ref[6 + k, n, :, :] = as_arr(rot_n[k])

            rot_state[n] = rot_n
            pos_state[n] = pos_n
            gpos_state[n] = gpos_n

    return fk_kernel


# ---------------------------------------------------------------------------
# Wrapper: layout plumbing in plain JAX, hot path inside the kernel.
# ---------------------------------------------------------------------------
def forward_kinematics_urdf(x, parent, offset, num_graphs, axis="z", order="xyz"):
    G = int(num_graphs)
    x = jnp.asarray(x, jnp.float32).reshape(G, -1)            # [G, N]
    N = x.shape[1]

    # Topology is taken from graph 0 (exactly as the PyTorch module does) and
    # consumed on the host -> baked statically into the kernel.  This host
    # read means the wrapper is not jittable over `parent` (the torch module
    # also iterates the parent table in Python).
    parent_row = jnp.asarray(parent).reshape(G, -1)[0]
    parent_list = [int(p) for p in jax.device_get(parent_row)]
    for n, p in enumerate(parent_list):
        if not (-1 <= p < n):
            raise ValueError(
                "parent table must be topologically ordered (parent index < node index)")

    offset = jnp.asarray(offset, jnp.float32).reshape(G, N, 6)
    xyz = offset[:, :, :3]                                    # [G, N, 3]
    rpy = offset[:, :, 3:]                                    # [G, N, 3]

    # One stacked, lane-dense input array: [7, N, G]
    planes = jnp.stack(
        [x.T,
         rpy[..., 0].T, rpy[..., 1].T, rpy[..., 2].T,
         xyz[..., 0].T, xyz[..., 1].T, xyz[..., 2].T],
        axis=0)

    # Pad the graph axis to full (sublane, lane) slabs.
    Gp = ((G + 127) // 128) * 128
    S_total = Gp // 128
    if S_total <= 8:
        s_tile = S_total          # single grid step; block == full slab axis
        S_pad = S_total
    else:
        s_tile = 8                # 1024 lanes per step -> 1 vreg per value
        S_pad = ((S_total + 7) // 8) * 8
    Gp_pad = S_pad * 128

    if Gp_pad != G:
        planes = jnp.pad(planes, ((0, 0), (0, 0), (0, Gp_pad - G)))
    planes = planes.reshape(7, N, S_pad, 128)

    grid = (S_pad // s_tile,)

    # Explicit, conservative scoped-VMEM limit (double-buffered in + out block).
    step_bytes = (7 + 15) * N * s_tile * 128 * 4 * 2
    vmem_limit = int(min(max(step_bytes + (4 << 20), 16 << 20), 48 << 20))

    kernel = _make_fk_kernel(axis, order, parent_list)
    in_spec = pl.BlockSpec((7, N, s_tile, 128), lambda g: (0, 0, g, 0))
    out_spec = pl.BlockSpec((15, N, s_tile, 128), lambda g: (0, 0, g, 0))

    out = pl.pallas_call(
        kernel,
        out_shape=jax.ShapeDtypeStruct((15, N, S_pad, 128), jnp.float32),
        grid=grid,
        in_specs=[in_spec],
        out_specs=out_spec,
        compiler_params=pltpu.CompilerParams(
            dimension_semantics=("parallel",),
            vmem_limit_bytes=vmem_limit),
    )(planes)

    # Un-pad and reorder to the PyTorch convention.
    # TODO(synk): if the downstream consumer accepts component-major [C, N, G]
    # outputs, drop these transposes to avoid re-streaming the outputs via HBM.
    out = out.reshape(15, N, Gp_pad)[..., :G]                  # [15, N, G]
    pos, gpos, rot = out[0:3], out[3:6], out[6:15]
    positions = jnp.transpose(pos, (2, 1, 0)).reshape(-1, 3)           # [G*N, 3]
    global_positions = jnp.transpose(gpos, (2, 1, 0)).reshape(-1, 3)   # [G*N, 3]
    rot_matrices = jnp.transpose(rot, (2, 1, 0)).reshape(-1, 3, 3)     # [G*N, 3, 3]
    return positions, rot_matrices, global_positions


# ---------------------------------------------------------------------------
# Pure-JAX reference (mirrors the PyTorch module) for verification.
# ---------------------------------------------------------------------------
def _rot_from_axis_ref(euler, axis):
    c, s = jnp.cos(euler), jnp.sin(euler)
    z, o = jnp.zeros_like(c), jnp.ones_like(c)
    if axis == "x":
        rows = [[o, z, z], [z, c, -s], [z, s, c]]
    elif axis == "y":
        rows = [[c, z, s], [z, o, z], [-s, z, c]]
    else:
        rows = [[c, -s, z], [s, c, z], [z, z, o]]
    return jnp.stack([jnp.stack(r, axis=-1) for r in rows], axis=-2)


def _reference_fk(x, parent, offset, num_graphs, axis="z", order="xyz"):
    G = int(num_graphs)
    x = jnp.asarray(x, jnp.float32).reshape(G, -1)
    N = x.shape[1]
    parent = jnp.asarray(parent).reshape(G, -1)[0]
    offset = jnp.asarray(offset, jnp.float32).reshape(G, N, 6)
    xyz, rpy = offset[..., :3], offset[..., 3:]
    t = _rot_from_axis_ref(x, axis)                                  # [G,N,3,3]
    rpy_t = _rot_from_axis_ref(rpy[..., 2], order[2]) @ _rot_from_axis_ref(rpy[..., 1], order[1])
    rpy_t = rpy_t @ _rot_from_axis_ref(rpy[..., 0], order[0])
    parent_list = [int(p) for p in jax.device_get(parent)]
    positions, gpos, rots = [None] * N, [None] * N, [None] * N
    for n in range(N):
        p = parent_list[n]
        local = rpy_t[:, n] @ t[:, n]
        if p == -1:
            positions[n] = jnp.zeros((G, 3), jnp.float32)
            gpos[n] = xyz[:, n]
            rots[n] = local
        else:
            rotated = (rots[p] @ xyz[:, n, :, None])[..., 0]
            positions[n] = rotated + positions[p]
            gpos[n] = rotated + gpos[p]
            rots[n] = rots[p] @ local
    positions = jnp.stack(positions, axis=1).reshape(-1, 3)
    gpos = jnp.stack(gpos, axis=1).reshape(-1, 3)
    rots = jnp.stack(rots, axis=1).reshape(-1, 3, 3)
    return positions, rots, gpos


if __name__ == "__main__":
    key = jax.random.PRNGKey(0)
    num_graphs, num_nodes = 2, 8
    k1, k2 = jax.random.split(key)

    x = jax.random.normal(k1, (num_graphs * num_nodes, 1), dtype=jnp.float32)
    offset = 0.5 * jax.random.normal(k2, (num_graphs * num_nodes, 6), dtype=jnp.float32)
    # kinematic tree (topologically ordered): node 0 is the root (-1)
    parent_single = jnp.array([-1, 0, 1, 1, 3, 0, 5, 2], dtype=jnp.int32)
    parent = jnp.tile(parent_single, num_graphs)  # [G*N]

    pos, rot, gpos = forward_kinematics_urdf(x, parent, offset, num_graphs,
                                             axis="z", order="xyz")
    jax.block_until_ready((pos, rot, gpos))

    pos_r, rot_r, gpos_r = _reference_fk(x, parent, offset, num_graphs)
    assert pos.shape == (num_graphs * num_nodes, 3)
    assert rot.shape == (num_graphs * num_nodes, 3, 3)
    assert gpos.shape == (num_graphs * num_nodes, 3)
    assert jnp.allclose(pos, pos_r, atol=1e-4), "positions mismatch"
    assert jnp.allclose(rot, rot_r, atol=1e-4), "rot_matrices mismatch"
    assert jnp.allclose(gpos, gpos_r, atol=1e-4), "global_positions mismatch"

    print("KERNEL_OK")
</pallas_src>

<mosaic_0001>
module attributes {stable_mosaic.version = 11 : i64} {
  func.func @fk_kernel(%arg0: i32, %arg1: memref<7x8x1x128xf32, #tpu.memory_space<vmem>>, %arg2: memref<15x8x1x128xf32, #tpu.memory_space<vmem>>) attributes {dimension_semantics = [#tpu.dimension_semantics<parallel>], iteration_bounds = array<i64: 1>, scalar_prefetch = 0 : i64, scratch_operands = 0 : i64, tpu.core_type = #tpu.core_type<tc>, window_params = [{transform_indices = @transform_0, window_bounds = array<i64: 7, 8, 1, 128>}, {transform_indices = @transform_1, window_bounds = array<i64: 15, 8, 1, 128>}]} {
    %cst = arith.constant 0.000000e+00 : f32
    %0 = vector.broadcast %cst : f32 to vector<1x128xf32>
    %c0 = arith.constant 0 : index
    %c0_0 = arith.constant 0 : index
    %c0_1 = arith.constant 0 : index
    %c0_2 = arith.constant 0 : index
    %1 = vector.load %arg1[%c0, %c0_0, %c0_1, %c0_2] : memref<7x8x1x128xf32, #tpu.memory_space<vmem>>, vector<1x1x1x128xf32>
    %2 = vector.shape_cast %1 : vector<1x1x1x128xf32> to vector<1x128xf32>
    %c1 = arith.constant 1 : index
    %c0_3 = arith.constant 0 : index
    %c0_4 = arith.constant 0 : index
    %c0_5 = arith.constant 0 : index
    %3 = vector.load %arg1[%c1, %c0_3, %c0_4, %c0_5] : memref<7x8x1x128xf32, #tpu.memory_space<vmem>>, vector<1x1x1x128xf32>
    %4 = vector.shape_cast %3 : vector<1x1x1x128xf32> to vector<1x128xf32>
    %c2 = arith.constant 2 : index
    %c0_6 = arith.constant 0 : index
    %c0_7 = arith.constant 0 : index
    %c0_8 = arith.constant 0 : index
    %5 = vector.load %arg1[%c2, %c0_6, %c0_7, %c0_8] : memref<7x8x1x128xf32, #tpu.memory_space<vmem>>, vector<1x1x1x128xf32>
    %6 = vector.shape_cast %5 : vector<1x1x1x128xf32> to vector<1x128xf32>
    %c3 = arith.constant 3 : index
    %c0_9 = arith.constant 0 : index
    %c0_10 = arith.constant 0 : index
    %c0_11 = arith.constant 0 : index
    %7 = vector.load %arg1[%c3, %c0_9, %c0_10, %c0_11] : memref<7x8x1x128xf32, #tpu.memory_space<vmem>>, vector<1x1x1x128xf32>
    %8 = vector.shape_cast %7 : vector<1x1x1x128xf32> to vector<1x128xf32>
    %9 = math.cos %2 : vector<1x128xf32>
    %10 = math.sin %2 : vector<1x128xf32>
    %cst_12 = arith.constant 0.000000e+00 : f32
    %11 = vector.broadcast %cst_12 : f32 to vector<1x128xf32>
    %12 = arith.subf %11, %10 : vector<1x128xf32>
    %13 = math.cos %8 : vector<1x128xf32>
    %14 = math.sin %8 : vector<1x128xf32>
    %cst_13 = arith.constant 0.000000e+00 : f32
    %15 = vector.broadcast %cst_13 : f32 to vector<1x128xf32>
    %16 = arith.subf %15, %14 : vector<1x128xf32>
    %17 = math.cos %6 : vector<1x128xf32>
    %18 = math.sin %6 : vector<1x128xf32>
    %cst_14 = arith.constant 0.000000e+00 : f32
    %19 = vector.broadcast %cst_14 : f32 to vector<1x128xf32>
    %20 = arith.subf %19, %18 : vector<1x128xf32>
    %21 = math.cos %4 : vector<1x128xf32>
    %22 = math.sin %4 : vector<1x128xf32>
    %cst_15 = arith.constant 0.000000e+00 : f32
    %23 = vector.broadcast %cst_15 : f32 to vector<1x128xf32>
    %24 = arith.subf %23, %22 : vector<1x128xf32>
    %25 = arith.mulf %13, %17 : vector<1x128xf32>
    %26 = arith.mulf %13, %18 : vector<1x128xf32>
    %27 = arith.mulf %14, %17 : vector<1x128xf32>
    %28 = arith.mulf %14, %18 : vector<1x128xf32>
    %29 = arith.mulf %16, %21 : vector<1x128xf32>
    %30 = arith.mulf %26, %22 : vector<1x128xf32>
    %31 = arith.addf %29, %30 : vector<1x128xf32>
    %32 = arith.mulf %16, %24 : vector<1x128xf32>
    %33 = arith.mulf %26, %21 : vector<1x128xf32>
    %34 = arith.addf %32, %33 : vector<1x128xf32>
    %35 = arith.mulf %13, %21 : vector<1x128xf32>
    %36 = arith.mulf %28, %22 : vector<1x128xf32>
    %37 = arith.addf %35, %36 : vector<1x128xf32>
    %38 = arith.mulf %13, %24 : vector<1x128xf32>
    %39 = arith.mulf %28, %21 : vector<1x128xf32>
    %40 = arith.addf %38, %39 : vector<1x128xf32>
    %41 = arith.mulf %17, %22 : vector<1x128xf32>
    %42 = arith.mulf %17, %21 : vector<1x128xf32>
    %43 = arith.mulf %25, %9 : vector<1x128xf32>
    %44 = arith.mulf %31, %10 : vector<1x128xf32>
    %45 = arith.addf %43, %44 : vector<1x128xf32>
    %46 = arith.mulf %25, %12 : vector<1x128xf32>
    %47 = arith.mulf %31, %9 : vector<1x128xf32>
    %48 = arith.addf %46, %47 : vector<1x128xf32>
    %49 = arith.mulf %27, %9 : vector<1x128xf32>
    %50 = arith.mulf %37, %10 : vector<1x128xf32>
    %51 = arith.addf %49, %50 : vector<1x128xf32>
    %52 = arith.mulf %27, %12 : vector<1x128xf32>
    %53 = arith.mulf %37, %9 : vector<1x128xf32>
    %54 = arith.addf %52, %53 : vector<1x128xf32>
    %55 = arith.mulf %20, %9 : vector<1x128xf32>
    %56 = arith.mulf %41, %10 : vector<1x128xf32>
    %57 = arith.addf %55, %56 : vector<1x128xf32>
    %58 = arith.mulf %20, %12 : vector<1x128xf32>
    %59 = arith.mulf %41, %9 : vector<1x128xf32>
    %60 = arith.addf %58, %59 : vector<1x128xf32>
    %c4 = arith.constant 4 : index
    %c0_16 = arith.constant 0 : index
    %c0_17 = arith.constant 0 : index
    %c0_18 = arith.constant 0 : index
    %61 = vector.load %arg1[%c4, %c0_16, %c0_17, %c0_18] : memref<7x8x1x128xf32, #tpu.memory_space<vmem>>, vector<1x1x1x128xf32>
    %62 = vector.shape_cast %61 : vector<1x1x1x128xf32> to vector<1x128xf32>
    %c5 = arith.constant 5 : index
    %c0_19 = arith.constant 0 : index
    %c0_20 = arith.constant 0 : index
    %c0_21 = arith.constant 0 : index
    %63 = vector.load %arg1[%c5, %c0_19, %c0_20, %c0_21] : memref<7x8x1x128xf32, #tpu.memory_space<vmem>>, vector<1x1x1x128xf32>
    %64 = vector.shape_cast %63 : vector<1x1x1x128xf32> to vector<1x128xf32>
    %c6 = arith.constant 6 : index
    %c0_22 = arith.constant 0 : index
    %c0_23 = arith.constant 0 : index
    %c0_24 = arith.constant 0 : index
    %65 = vector.load %arg1[%c6, %c0_22, %c0_23, %c0_24] : memref<7x8x1x128xf32, #tpu.memory_space<vmem>>, vector<1x1x1x128xf32>
    %66 = vector.shape_cast %65 : vector<1x1x1x128xf32> to vector<1x128xf32>
    %c0_25 = arith.constant 0 : index
    %c0_26 = arith.constant 0 : index
    %c0_27 = arith.constant 0 : index
    %c0_28 = arith.constant 0 : index
    %67 = vector.load %arg2[%c0_25, %c0_26, %c0_27, %c0_28] : memref<15x8x1x128xf32, #tpu.memory_space<vmem>>, vector<1x1x1x128xf32>
    %68 = vector.shape_cast %67 : vector<1x1x1x128xf32> to vector<1x128xf32>
    %69 = vector.shape_cast %0 : vector<1x128xf32> to vector<1x1x1x128xf32>
    tpu.vector_store %arg2[%c0_25, %c0_26, %c0_27, %c0_28], %69 {strides = array<i32>} : memref<15x8x1x128xf32, #tpu.memory_space<vmem>>, vector<1x1x1x128xf32>,
    %c3_29 = arith.constant 3 : index
    %c0_30 = arith.constant 0 : index
    %c0_31 = arith.constant 0 : index
    %c0_32 = arith.constant 0 : index
    %70 = vector.load %arg2[%c3_29, %c0_30, %c0_31, %c0_32] : memref<15x8x1x128xf32, #tpu.memory_space<vmem>>, vector<1x1x1x128xf32>
    %71 = vector.shape_cast %70 : vector<1x1x1x128xf32> to vector<1x128xf32>
    %72 = vector.shape_cast %62 : vector<1x128xf32> to vector<1x1x1x128xf32>
    tpu.vector_store %arg2[%c3_29, %c0_30, %c0_31, %c0_32], %72 {strides = array<i32>} : memref<15x8x1x128xf32, #tpu.memory_space<vmem>>, vector<1x1x1x128xf32>,
    %c1_33 = arith.constant 1 : index
    %c0_34 = arith.constant 0 : index
    %c0_35 = arith.constant 0 : index
    %c0_36 = arith.constant 0 : index
    %73 = vector.load %arg2[%c1_33, %c0_34, %c0_35, %c0_36] : memref<15x8x1x128xf32, #tpu.memory_space<vmem>>, vector<1x1x1x128xf32>
    %74 = vector.shape_cast %73 : vector<1x1x1x128xf32> to vector<1x128xf32>
    %75 = vector.shape_cast %0 : vector<1x128xf32> to vector<1x1x1x128xf32>
    tpu.vector_store %arg2[%c1_33, %c0_34, %c0_35, %c0_36], %75 {strides = array<i32>} : memref<15x8x1x128xf32, #tpu.memory_space<vmem>>, vector<1x1x1x128xf32>,
    %c4_37 = arith.constant 4 : index
    %c0_38 = arith.constant 0 : index
    %c0_39 = arith.constant 0 : index
    %c0_40 = arith.constant 0 : index
    %76 = vector.load %arg2[%c4_37, %c0_38, %c0_39, %c0_40] : memref<15x8x1x128xf32, #tpu.memory_space<vmem>>, vector<1x1x1x128xf32>
    %77 = vector.shape_cast %76 : vector<1x1x1x128xf32> to vector<1x128xf32>
    %78 = vector.shape_cast %64 : vector<1x128xf32> to vector<1x1x1x128xf32>
    tpu.vector_store %arg2[%c4_37, %c0_38, %c0_39, %c0_40], %78 {strides = array<i32>} : memref<15x8x1x128xf32, #tpu.memory_space<vmem>>, vector<1x1x1x128xf32>,
    %c2_41 = arith.constant 2 : index
    %c0_42 = arith.constant 0 : index
    %c0_43 = arith.constant 0 : index
    %c0_44 = arith.constant 0 : index
    %79 = vector.load %arg2[%c2_41, %c0_42, %c0_43, %c0_44] : memref<15x8x1x128xf32, #tpu.memory_space<vmem>>, vector<1x1x1x128xf32>
    %80 = vector.shape_cast %79 : vector<1x1x1x128xf32> to vector<1x128xf32>
    %81 = vector.shape_cast %0 : vector<1x128xf32> to vector<1x1x1x128xf32>
    tpu.vector_store %arg2[%c2_41, %c0_42, %c0_43, %c0_44], %81 {strides = array<i32>} : memref<15x8x1x128xf32, #tpu.memory_space<vmem>>, vector<1x1x1x128xf32>,
    %c5_45 = arith.constant 5 : index
    %c0_46 = arith.constant 0 : index
    %c0_47 = arith.constant 0 : index
    %c0_48 = arith.constant 0 : index
    %82 = vector.load %arg2[%c5_45, %c0_46, %c0_47, %c0_48] : memref<15x8x1x128xf32, #tpu.memory_space<vmem>>, vector<1x1x1x128xf32>
    %83 = vector.shape_cast %82 : vector<1x1x1x128xf32> to vector<1x128xf32>
    %84 = vector.shape_cast %66 : vector<1x128xf32> to vector<1x1x1x128xf32>
    tpu.vector_store %arg2[%c5_45, %c0_46, %c0_47, %c0_48], %84 {strides = array<i32>} : memref<15x8x1x128xf32, #tpu.memory_space<vmem>>, vector<1x1x1x128xf32>,
    %c6_49 = arith.constant 6 : index
    %c0_50 = arith.constant 0 : index
    %c0_51 = arith.constant 0 : index
    %c0_52 = arith.constant 0 : index
    %85 = vector.load %arg2[%c6_49, %c0_50, %c0_51, %c0_52] : memref<15x8x1x128xf32, #tpu.memory_space<vmem>>, vector<1x1x1x128xf32>
    %86 = vector.shape_cast %85 : vector<1x1x1x128xf32> to vector<1x128xf32>
    %87 = vector.shape_cast %45 : vector<1x128xf32> to vector<1x1x1x128xf32>
    tpu.vector_store %arg2[%c6_49, %c0_50, %c0_51, %c0_52], %87 {strides = array<i32>} : memref<15x8x1x128xf32, #tpu.memory_space<vmem>>, vector<1x1x1x128xf32>,
    %c7 = arith.constant 7 : index
    %c0_53 = arith.constant 0 : index
    %c0_54 = arith.constant 0 : index
    %c0_55 = arith.constant 0 : index
    %88 = vector.load %arg2[%c7, %c0_53, %c0_54, %c0_55] : memref<15x8x1x128xf32, #tpu.memory_space<vmem>>, vector<1x1x1x128xf32>
    %89 = vector.shape_cast %88 : vector<1x1x1x128xf32> to vector<1x128xf32>
    %90 = vector.shape_cast %48 : vector<1x128xf32> to vector<1x1x1x128xf32>
    tpu.vector_store %arg2[%c7, %c0_53, %c0_54, %c0_55], %90 {strides = array<i32>} : memref<15x8x1x128xf32, #tpu.memory_space<vmem>>, vector<1x1x1x128xf32>,
    %c8 = arith.constant 8 : index
    %c0_56 = arith.constant 0 : index
    %c0_57 = arith.constant 0 : index
    %c0_58 = arith.constant 0 : index
    %91 = vector.load %arg2[%c8, %c0_56, %c0_57, %c0_58] : memref<15x8x1x128xf32, #tpu.memory_space<vmem>>, vector<1x1x1x128xf32>
    %92 = vector.shape_cast %91 : vector<1x1x1x128xf32> to vector<1x128xf32>
    %93 = vector.shape_cast %34 : vector<1x128xf32> to vector<1x1x1x128xf32>
    tpu.vector_store %arg2[%c8, %c0_56, %c0_57, %c0_58], %93 {strides = array<i32>} : memref<15x8x1x128xf32, #tpu.memory_space<vmem>>, vector<1x1x1x128xf32>,
    %c9 = arith.constant 9 : index
    %c0_59 = arith.constant 0 : index
    %c0_60 = arith.constant 0 : index
    %c0_61 = arith.constant 0 : index
    %94 = vector.load %arg2[%c9, %c0_59, %c0_60, %c0_61] : memref<15x8x1x128xf32, #tpu.memory_space<vmem>>, vector<1x1x1x128xf32>
    %95 = vector.shape_cast %94 : vector<1x1x1x128xf32> to vector<1x128xf32>
    %96 = vector.shape_cast %51 : vector<1x128xf32> to vector<1x1x1x128xf32>
    tpu.vector_store %arg2[%c9, %c0_59, %c0_60, %c0_61], %96 {strides = array<i32>} : memref<15x8x1x128xf32, #tpu.memory_space<vmem>>, vector<1x1x1x128xf32>,
    %c10 = arith.constant 10 : index
    %c0_62 = arith.constant 0 : index
    %c0_63 = arith.constant 0 : index
    %c0_64 = arith.constant 0 : index
    %97 = vector.load %arg2[%c10, %c0_62, %c0_63, %c0_64] : memref<15x8x1x128xf32, #tpu.memory_space<vmem>>, vector<1x1x1x128xf32>
    %98 = vector.shape_cast %97 : vector<1x1x1x128xf32> to vector<1x128xf32>
    %99 = vector.shape_cast %54 : vector<1x128xf32> to vector<1x1x1x128xf32>
    tpu.vector_store %arg2[%c10, %c0_62, %c0_63, %c0_64], %99 {strides = array<i32>} : memref<15x8x1x128xf32, #tpu.memory_space<vmem>>, vector<1x1x1x128xf32>,
    %c11 = arith.constant 11 : index
    %c0_65 = arith.constant 0 : index
    %c0_66 = arith.constant 0 : index
    %c0_67 = arith.constant 0 : index
    %100 = vector.load %arg2[%c11, %c0_65, %c0_66, %c0_67] : memref<15x8x1x128xf32, #tpu.memory_space<vmem>>, vector<1x1x1x128xf32>
    %101 = vector.shape_cast %100 : vector<1x1x1x128xf32> to vector<1x128xf32>
    %102 = vector.shape_cast %40 : vector<1x128xf32> to vector<1x1x1x128xf32>
    tpu.vector_store %arg2[%c11, %c0_65, %c0_66, %c0_67], %102 {strides = array<i32>} : memref<15x8x1x128xf32, #tpu.memory_space<vmem>>, vector<1x1x1x128xf32>,
    %c12 = arith.constant 12 : index
    %c0_68 = arith.constant 0 : index
    %c0_69 = arith.constant 0 : index
    %c0_70 = arith.constant 0 : index
    %103 = vector.load %arg2[%c12, %c0_68, %c0_69, %c0_70] : memref<15x8x1x128xf32, #tpu.memory_space<vmem>>, vector<1x1x1x128xf32>
    %104 = vector.shape_cast %103 : vector<1x1x1x128xf32> to vector<1x128xf32>
    %105 = vector.shape_cast %57 : vector<1x128xf32> to vector<1x1x1x128xf32>
    tpu.vector_store %arg2[%c12, %c0_68, %c0_69, %c0_70], %105 {strides = array<i32>} : memref<15x8x1x128xf32, #tpu.memory_space<vmem>>, vector<1x1x1x128xf32>,
    %c13 = arith.constant 13 : index
    %c0_71 = arith.constant 0 : index
    %c0_72 = arith.constant 0 : index
    %c0_73 = arith.constant 0 : index
    %106 = vector.load %arg2[%c13, %c0_71, %c0_72, %c0_73] : memref<15x8x1x128xf32, #tpu.memory_space<vmem>>, vector<1x1x1x128xf32>
    %107 = vector.shape_cast %106 : vector<1x1x1x128xf32> to vector<1x128xf32>
    %108 = vector.shape_cast %60 : vector<1x128xf32> to vector<1x1x1x128xf32>
    tpu.vector_store %arg2[%c13, %c0_71, %c0_72, %c0_73], %108 {strides = array<i32>} : memref<15x8x1x128xf32, #tpu.memory_space<vmem>>, vector<1x1x1x128xf32>,
    %c14 = arith.constant 14 : index
    %c0_74 = arith.constant 0 : index
    %c0_75 = arith.constant 0 : index
    %c0_76 = arith.constant 0 : index
    %109 = vector.load %arg2[%c14, %c0_74, %c0_75, %c0_76] : memref<15x8x1x128xf32, #tpu.memory_space<vmem>>, vector<1x1x1x128xf32>
    %110 = vector.shape_cast %109 : vector<1x1x1x128xf32> to vector<1x128xf32>
    %111 = vector.shape_cast %42 : vector<1x128xf32> to vector<1x1x1x128xf32>
    tpu.vector_store %arg2[%c14, %c0_74, %c0_75, %c0_76], %111 {strides = array<i32>} : memref<15x8x1x128xf32, #tpu.memory_space<vmem>>, vector<1x1x1x128xf32>,
    %c0_77 = arith.constant 0 : index
    %c1_78 = arith.constant 1 : index
    %c0_79 = arith.constant 0 : index
    %c0_80 = arith.constant 0 : index
    %112 = vector.load %arg1[%c0_77, %c1_78, %c0_79, %c0_80] : memref<7x8x1x128xf32, #tpu.memory_space<vmem>>, vector<1x1x1x128xf32>
    %113 = vector.shape_cast %112 : vector<1x1x1x128xf32> to vector<1x128xf32>
    %c1_81 = arith.constant 1 : index
    %c1_82 = arith.constant 1 : index
    %c0_83 = arith.constant 0 : index
    %c0_84 = arith.constant 0 : index
    %114 = vector.load %arg1[%c1_81, %c1_82, %c0_83, %c0_84] : memref<7x8x1x128xf32, #tpu.memory_space<vmem>>, vector<1x1x1x128xf32>
    %115 = vector.shape_cast %114 : vector<1x1x1x128xf32> to vector<1x128xf32>
    %c2_85 = arith.constant 2 : index
    %c1_86 = arith.constant 1 : index
    %c0_87 = arith.constant 0 : index
    %c0_88 = arith.constant 0 : index
    %116 = vector.load %arg1[%c2_85, %c1_86, %c0_87, %c0_88] : memref<7x8x1x128xf32, #tpu.memory_space<vmem>>, vector<1x1x1x128xf32>
    %117 = vector.shape_cast %116 : vector<1x1x1x128xf32> to vector<1x128xf32>
    %c3_89 = arith.constant 3 : index
    %c1_90 = arith.constant 1 : index
    %c0_91 = arith.constant 0 : index
    %c0_92 = arith.constant 0 : index
    %118 = vector.load %arg1[%c3_89, %c1_90, %c0_91, %c0_92] : memref<7x8x1x128xf32, #tpu.memory_space<vmem>>, vector<1x1x1x128xf32>
    %119 = vector.shape_cast %118 : vector<1x1x1x128xf32> to vector<1x128xf32>
    %120 = math.cos %113 : vector<1x128xf32>
    %121 = math.sin %113 : vector<1x128xf32>
    %cst_93 = arith.constant 0.000000e+00 : f32
    %122 = vector.broadcast %cst_93 : f32 to vector<1x128xf32>
    %123 = arith.subf %122, %121 : vector<1x128xf32>
    %124 = math.cos %119 : vector<1x128xf32>
    %125 = math.sin %119 : vector<1x128xf32>
    %cst_94 = arith.constant 0.000000e+00 : f32
    %126 = vector.broadcast %cst_94 : f32 to vector<1x128xf32>
    %127 = arith.subf %126, %125 : vector<1x128xf32>
    %128 = math.cos %117 : vector<1x128xf32>
    %129 = math.sin %117 : vector<1x128xf32>
    %cst_95 = arith.constant 0.000000e+00 : f32
    %130 = vector.broadcast %cst_95 : f32 to vector<1x128xf32>
    %131 = arith.subf %130, %129 : vector<1x128xf32>
    %132 = math.cos %115 : vector<1x128xf32>
    %133 = math.sin %115 : vector<1x128xf32>
    %cst_96 = arith.constant 0.000000e+00 : f32
    %134 = vector.broadcast %cst_96 : f32 to vector<1x128xf32>
    %135 = arith.subf %134, %133 : vector<1x128xf32>
    %136 = arith.mulf %124, %128 : vector<1x128xf32>
    %137 = arith.mulf %124, %129 : vector<1x128xf32>
    %138 = arith.mulf %125, %128 : vector<1x128xf32>
    %139 = arith.mulf %125, %129 : vector<1x128xf32>
    %140 = arith.mulf %127, %132 : vector<1x128xf32>
    %141 = arith.mulf %137, %133 : vector<1x128xf32>
    %142 = arith.addf %140, %141 : vector<1x128xf32>
    %143 = arith.mulf %127, %135 : vector<1x128xf32>
    %144 = arith.mulf %137, %132 : vector<1x128xf32>
    %145 = arith.addf %143, %144 : vector<1x128xf32>
    %146 = arith.mulf %124, %132 : vector<1x128xf32>
    %147 = arith.mulf %139, %133 : vector<1x128xf32>
    %148 = arith.addf %146, %147 : vector<1x128xf32>
    %149 = arith.mulf %124, %135 : vector<1x128xf32>
    %150 = arith.mulf %139, %132 : vector<1x128xf32>
    %151 = arith.addf %149, %150 : vector<1x128xf32>
    %152 = arith.mulf %128, %133 : vector<1x128xf32>
    %153 = arith.mulf %128, %132 : vector<1x128xf32>
    %154 = arith.mulf %136, %120 : vector<1x128xf32>
    %155 = arith.mulf %142, %121 : vector<1x128xf32>
    %156 = arith.addf %154, %155 : vector<1x128xf32>
    %157 = arith.mulf %136, %123 : vector<1x128xf32>
    %158 = arith.mulf %142, %120 : vector<1x128xf32>
    %159 = arith.addf %157, %158 : vector<1x128xf32>
    %160 = arith.mulf %138, %120 : vector<1x128xf32>
    %161 = arith.mulf %148, %121 : vector<1x128xf32>
    %162 = arith.addf %160, %161 : vector<1x128xf32>
    %163 = arith.mulf %138, %123 : vector<1x128xf32>
    %164 = arith.mulf %148, %120 : vector<1x128xf32>
    %165 = arith.addf %163, %164 : vector<1x128xf32>
    %166 = arith.mulf %131, %120 : vector<1x128xf32>
    %167 = arith.mulf %152, %121 : vector<1x128xf32>
    %168 = arith.addf %166, %167 : vector<1x128xf32>
    %169 = arith.mulf %131, %123 : vector<1x128xf32>
    %170 = arith.mulf %152, %120 : vector<1x128xf32>
    %171 = arith.addf %169, %170 : vector<1x128xf32>
    %c4_97 = arith.constant 4 : index
    %c1_98 = arith.constant 1 : index
    %c0_99 = arith.constant 0 : index
    %c0_100 = arith.constant 0 : index
    %172 = vector.load %arg1[%c4_97, %c1_98, %c0_99, %c0_100] : memref<7x8x1x128xf32, #tpu.memory_space<vmem>>, vector<1x1x1x128xf32>
    %173 = vector.shape_cast %172 : vector<1x1x1x128xf32> to vector<1x128xf32>
    %c5_101 = arith.constant 5 : index
    %c1_102 = arith.constant 1 : index
    %c0_103 = arith.constant 0 : index
    %c0_104 = arith.constant 0 : index
    %174 = vector.load %arg1[%c5_101, %c1_102, %c0_103, %c0_104] : memref<7x8x1x128xf32, #tpu.memory_space<vmem>>, vector<1x1x1x128xf32>
    %175 = vector.shape_cast %174 : vector<1x1x1x128xf32> to vector<1x128xf32>
    %c6_105 = arith.constant 6 : index
    %c1_106 = arith.constant 1 : index
    %c0_107 = arith.constant 0 : index
    %c0_108 = arith.constant 0 : index
    %176 = vector.load %arg1[%c6_105, %c1_106, %c0_107, %c0_108] : memref<7x8x1x128xf32, #tpu.memory_space<vmem>>, vector<1x1x1x128xf32>
    %177 = vector.shape_cast %176 : vector<1x1x1x128xf32> to vector<1x128xf32>
    %178 = arith.mulf %45, %173 : vector<1x128xf32>
    %179 = arith.mulf %48, %175 : vector<1x128xf32>
    %180 = arith.addf %178, %179 : vector<1x128xf32>
    %181 = arith.mulf %34, %177 : vector<1x128xf32>
    %182 = arith.addf %180, %181 : vector<1x128xf32>
    %183 = arith.mulf %51, %173 : vector<1x128xf32>
    %184 = arith.mulf %54, %175 : vector<1x128xf32>
    %185 = arith.addf %183, %184 : vector<1x128xf32>
    %186 = arith.mulf %40, %177 : vector<1x128xf32>
    %187 = arith.addf %185, %186 : vector<1x128xf32>
    %188 = arith.mulf %57, %173 : vector<1x128xf32>
    %189 = arith.mulf %60, %175 : vector<1x128xf32>
    %190 = arith.addf %188, %189 : vector<1x128xf32>
    %191 = arith.mulf %42, %177 : vector<1x128xf32>
    %192 = arith.addf %190, %191 : vector<1x128xf32>
    %193 = arith.addf %182, %62 : vector<1x128xf32>
    %194 = arith.addf %187, %64 : vector<1x128xf32>
    %195 = arith.addf %192, %66 : vector<1x128xf32>
    %196 = arith.mulf %45, %156 : vector<1x128xf32>
    %197 = arith.mulf %48, %162 : vector<1x128xf32>
    %198 = arith.addf %196, %197 : vector<1x128xf32>
    %199 = arith.mulf %34, %168 : vector<1x128xf32>
    %200 = arith.addf %198, %199 : vector<1x128xf32>
    %201 = arith.mulf %45, %159 : vector<1x128xf32>
    %202 = arith.mulf %48, %165 : vector<1x128xf32>
    %203 = arith.addf %201, %202 : vector<1x128xf32>
    %204 = arith.mulf %34, %171 : vector<1x128xf32>
    %205 = arith.addf %203, %204 : vector<1x128xf32>
    %206 = arith.mulf %45, %145 : vector<1x128xf32>
    %207 = arith.mulf %48, %151 : vector<1x128xf32>
    %208 = arith.addf %206, %207 : vector<1x128xf32>
    %209 = arith.mulf %34, %153 : vector<1x128xf32>
    %210 = arith.addf %208, %209 : vector<1x128xf32>
    %211 = arith.mulf %51, %156 : vector<1x128xf32>
    %212 = arith.mulf %54, %162 : vector<1x128xf32>
    %213 = arith.addf %211, %212 : vector<1x128xf32>
    %214 = arith.mulf %40, %168 : vector<1x128xf32>
    %215 = arith.addf %213, %214 : vector<1x128xf32>
    %216 = arith.mulf %51, %159 : vector<1x128xf32>
    %217 = arith.mulf %54, %165 : vector<1x128xf32>
    %218 = arith.addf %216, %217 : vector<1x128xf32>
    %219 = arith.mulf %40, %171 : vector<1x128xf32>
    %220 = arith.addf %218, %219 : vector<1x128xf32>
    %221 = arith.mulf %51, %145 : vector<1x128xf32>
    %222 = arith.mulf %54, %151 : vector<1x128xf32>
    %223 = arith.addf %221, %222 : vector<1x128xf32>
    %224 = arith.mulf %40, %153 : vector<1x128xf32>
    %225 = arith.addf %223, %224 : vector<1x128xf32>
    %226 = arith.mulf %57, %156 : vector<1x128xf32>
    %227 = arith.mulf %60, %162 : vector<1x128xf32>
    %228 = arith.addf %226, %227 : vector<1x128xf32>
    %229 = arith.mulf %42, %168 : vector<1x128xf32>
    %230 = arith.addf %228, %229 : vector<1x128xf32>
    %231 = arith.mulf %57, %159 : vector<1x128xf32>
    %232 = arith.mulf %60, %165 : vector<1x128xf32>
    %233 = arith.addf %231, %232 : vector<1x128xf32>
    %234 = arith.mulf %42, %171 : vector<1x128xf32>
    %235 = arith.addf %233, %234 : vector<1x128xf32>
    %236 = arith.mulf %57, %145 : vector<1x128xf32>
    %237 = arith.mulf %60, %151 : vector<1x128xf32>
    %238 = arith.addf %236, %237 : vector<1x128xf32>
    %239 = arith.mulf %42, %153 : vector<1x128xf32>
    %240 = arith.addf %238, %239 : vector<1x128xf32>
    %c0_109 = arith.constant 0 : index
    %c1_110 = arith.constant 1 : index
    %c0_111 = arith.constant 0 : index
    %c0_112 = arith.constant 0 : index
    %241 = vector.load %arg2[%c0_109, %c1_110, %c0_111, %c0_112] : memref<15x8x1x128xf32, #tpu.memory_space<vmem>>, vector<1x1x1x128xf32>
    %242 = vector.shape_cast %241 : vector<1x1x1x128xf32> to vector<1x128xf32>
    %243 = vector.shape_cast %182 : vector<1x128xf32> to vector<1x1x1x128xf32>
    tpu.vector_store %arg2[%c0_109, %c1_110, %c0_111, %c0_112], %243 {strides = array<i32>} : memref<15x8x1x128xf32, #tpu.memory_space<vmem>>, vector<1x1x1x128xf32>,
    %c3_113 = arith.constant 3 : index
    %c1_114 = arith.constant 1 : index
    %c0_115 = arith.constant 0 : index
    %c0_116 = arith.constant 0 : index
    %244 = vector.load %arg2[%c3_113, %c1_114, %c0_115, %c0_116] : memref<15x8x1x128xf32, #tpu.memory_space<vmem>>, vector<1x1x1x128xf32>
    %245 = vector.shape_cast %244 : vector<1x1x1x128xf32> to vector<1x128xf32>
    %246 = vector.shape_cast %193 : vector<1x128xf32> to vector<1x1x1x128xf32>
    tpu.vector_store %arg2[%c3_113, %c1_114, %c0_115, %c0_116], %246 {strides = array<i32>} : memref<15x8x1x128xf32, #tpu.memory_space<vmem>>, vector<1x1x1x128xf32>,
    %c1_117 = arith.constant 1 : index
    %c1_118 = arith.constant 1 : index
    %c0_119 = arith.constant 0 : index
    %c0_120 = arith.constant 0 : index
    %247 = vector.load %arg2[%c1_117, %c1_118, %c0_119, %c0_120] : memref<15x8x1x128xf32, #tpu.memory_space<vmem>>, vector<1x1x1x128xf32>
    %248 = vector.shape_cast %247 : vector<1x1x1x128xf32> to vector<1x128xf32>
    %249 = vector.shape_cast %187 : vector<1x128xf32> to vector<1x1x1x128xf32>
    tpu.vector_store %arg2[%c1_117, %c1_118, %c0_119, %c0_120], %249 {strides = array<i32>} : memref<15x8x1x128xf32, #tpu.memory_space<vmem>>, vector<1x1x1x128xf32>,
    %c4_121 = arith.constant 4 : index
    %c1_122 = arith.constant 1 : index
    %c0_123 = arith.constant 0 : index
    %c0_124 = arith.constant 0 : index
    %250 = vector.load %arg2[%c4_121, %c1_122, %c0_123, %c0_124] : memref<15x8x1x128xf32, #tpu.memory_space<vmem>>, vector<1x1x1x128xf32>
    %251 = vector.shape_cast %250 : vector<1x1x1x128xf32> to vector<1x128xf32>
    %252 = vector.shape_cast %194 : vector<1x128xf32> to vector<1x1x1x128xf32>
    tpu.vector_store %arg2[%c4_121, %c1_122, %c0_123, %c0_124], %252 {strides = array<i32>} : memref<15x8x1x128xf32, #tpu.memory_space<vmem>>, vector<1x1x1x128xf32>,
    %c2_125 = arith.constant 2 : index
    %c1_126 = arith.constant 1 : index
    %c0_127 = arith.constant 0 : index
    %c0_128 = arith.constant 0 : index
    %253 = vector.load %arg2[%c2_125, %c1_126, %c0_127, %c0_128] : memref<15x8x1x128xf32, #tpu.memory_space<vmem>>, vector<1x1x1x128xf32>
    %254 = vector.shape_cast %253 : vector<1x1x1x128xf32> to vector<1x128xf32>
    %255 = vector.shape_cast %192 : vector<1x128xf32> to vector<1x1x1x128xf32>
    tpu.vector_store %arg2[%c2_125, %c1_126, %c0_127, %c0_128], %255 {strides = array<i32>} : memref<15x8x1x128xf32, #tpu.memory_space<vmem>>, vector<1x1x1x128xf32>,
    %c5_129 = arith.constant 5 : index
    %c1_130 = arith.constant 1 : index
    %c0_131 = arith.constant 0 : index
    %c0_132 = arith.constant 0 : index
    %256 = vector.load %arg2[%c5_129, %c1_130, %c0_131, %c0_132] : memref<15x8x1x128xf32, #tpu.memory_space<vmem>>, vector<1x1x1x128xf32>
    %257 = vector.shape_cast %256 : vector<1x1x1x128xf32> to vector<1x128xf32>
    %258 = vector.shape_cast %195 : vector<1x128xf32> to vector<1x1x1x128xf32>
    tpu.vector_store %arg2[%c5_129, %c1_130, %c0_131, %c0_132], %258 {strides = array<i32>} : memref<15x8x1x128xf32, #tpu.memory_space<vmem>>, vector<1x1x1x128xf32>,
    %c6_133 = arith.constant 6 : index
    %c1_134 = arith.constant 1 : index
    %c0_135 = arith.constant 0 : index
    %c0_136 = arith.constant 0 : index
    %259 = vector.load %arg2[%c6_133, %c1_134, %c0_135, %c0_136] : memref<15x8x1x128xf32, #tpu.memory_space<vmem>>, vector<1x1x1x128xf32>
    %260 = vector.shape_cast %259 : vector<1x1x1x128xf32> to vector<1x128xf32>
    %261 = vector.shape_cast %200 : vector<1x128xf32> to vector<1x1x1x128xf32>
    tpu.vector_store %arg2[%c6_133, %c1_134, %c0_135, %c0_136], %261 {strides = array<i32>} : memref<15x8x1x128xf32, #tpu.memory_space<vmem>>, vector<1x1x1x128xf32>,
    %c7_137 = arith.constant 7 : index
    %c1_138 = arith.constant 1 : index
    %c0_139 = arith.constant 0 : index
    %c0_140 = arith.constant 0 : index
    %262 = vector.load %arg2[%c7_137, %c1_138, %c0_139, %c0_140] : memref<15x8x1x128xf32, #tpu.memory_space<vmem>>, vector<1x1x1x128xf32>
    %263 = vector.shape_cast %262 : vector<1x1x1x128xf32> to vector<1x128xf32>
    %264 = vector.shape_cast %205 : vector<1x128xf32> to vector<1x1x1x128xf32>
    tpu.vector_store %arg2[%c7_137, %c1_138, %c0_139, %c0_140], %264 {strides = array<i32>} : memref<15x8x1x128xf32, #tpu.memory_space<vmem>>, vector<1x1x1x128xf32>,
    %c8_141 = arith.constant 8 : index
    %c1_142 = arith.constant 1 : index
    %c0_143 = arith.constant 0 : index
    %c0_144 = arith.constant 0 : index
    %265 = vector.load %arg2[%c8_141, %c1_142, %c0_143, %c0_144] : memref<15x8x1x128xf32, #tpu.memory_space<vmem>>, vector<1x1x1x128xf32>
    %266 = vector.shape_cast %265 : vector<1x1x1x128xf32> to vector<1x128xf32>
    %267 = vector.shape_cast %210 : vector<1x128xf32> to vector<1x1x1x128xf32>
    tpu.vector_store %arg2[%c8_141, %c1_142, %c0_143, %c0_144], %267 {strides = array<i32>} : memref<15x8x1x128xf32, #tpu.memory_space<vmem>>, vector<1x1x1x128xf32>,
    %c9_145 = arith.constant 9 : index
    %c1_146 = arith.constant 1 : index
    %c0_147 = arith.constant 0 : index
    %c0_148 = arith.constant 0 : index
    %268 = vector.load %arg2[%c9_145, %c1_146, %c0_147, %c0_148] : memref<15x8x1x128xf32, #tpu.memory_space<vmem>>, vector<1x1x1x128xf32>
    %269 = vector.shape_cast %268 : vector<1x1x1x128xf32> to vector<1x128xf32>
    %270 = vector.shape_cast %215 : vector<1x128xf32> to vector<1x1x1x128xf32>
    tpu.vector_store %arg2[%c9_145, %c1_146, %c0_147, %c0_148], %270 {strides = array<i32>} : memref<15x8x1x128xf32, #tpu.memory_space<vmem>>, vector<1x1x1x128xf32>,
    %c10_149 = arith.constant 10 : index
    %c1_150 = arith.constant 1 : index
    %c0_151 = arith.constant 0 : index
    %c0_152 = arith.constant 0 : index
    %271 = vector.load %arg2[%c10_149, %c1_150, %c0_151, %c0_152] : memref<15x8x1x128xf32, #tpu.memory_space<vmem>>, vector<1x1x1x128xf32>
    %272 = vector.shape_cast %271 : vector<1x1x1x128xf32> to vector<1x128xf32>
    %273 = vector.shape_cast %220 : vector<1x128xf32> to vector<1x1x1x128xf32>
    tpu.vector_store %arg2[%c10_149, %c1_150, %c0_151, %c0_152], %273 {strides = array<i32>} : memref<15x8x1x128xf32, #tpu.memory_space<vmem>>, vector<1x1x1x128xf32>,
    %c11_153 = arith.constant 11 : index
    %c1_154 = arith.constant 1 : index
    %c0_155 = arith.constant 0 : index
    %c0_156 = arith.constant 0 : index
    %274 = vector.load %arg2[%c11_153, %c1_154, %c0_155, %c0_156] : memref<15x8x1x128xf32, #tpu.memory_space<vmem>>, vector<1x1x1x128xf32>
    %275 = vector.shape_cast %274 : vector<1x1x1x128xf32> to vector<1x128xf32>
    %276 = vector.shape_cast %225 : vector<1x128xf32> to vector<1x1x1x128xf32>
    tpu.vector_store %arg2[%c11_153, %c1_154, %c0_155, %c0_156], %276 {strides = array<i32>} : memref<15x8x1x128xf32, #tpu.memory_space<vmem>>, vector<1x1x1x128xf32>,
    %c12_157 = arith.constant 12 : index
    %c1_158 = arith.constant 1 : index
    %c0_159 = arith.constant 0 : index
    %c0_160 = arith.constant 0 : index
    %277 = vector.load %arg2[%c12_157, %c1_158, %c0_159, %c0_160] : memref<15x8x1x128xf32, #tpu.memory_space<vmem>>, vector<1x1x1x128xf32>
    %278 = vector.shape_cast %277 : vector<1x1x1x128xf32> to vector<1x128xf32>
    %279 = vector.shape_cast %230 : vector<1x128xf32> to vector<1x1x1x128xf32>
    tpu.vector_store %arg2[%c12_157, %c1_158, %c0_159, %c0_160], %279 {strides = array<i32>} : memref<15x8x1x128xf32, #tpu.memory_space<vmem>>, vector<1x1x1x128xf32>,
    %c13_161 = arith.constant 13 : index
    %c1_162 = arith.constant 1 : index
    %c0_163 = arith.constant 0 : index
    %c0_164 = arith.constant 0 : index
    %280 = vector.load %arg2[%c13_161, %c1_162, %c0_163, %c0_164] : memref<15x8x1x128xf32, #tpu.memory_space<vmem>>, vector<1x1x1x128xf32>
    %281 = vector.shape_cast %280 : vector<1x1x1x128xf32> to vector<1x128xf32>
    %282 = vector.shape_cast %235 : vector<1x128xf32> to vector<1x1x1x128xf32>
    tpu.vector_store %arg2[%c13_161, %c1_162, %c0_163, %c0_164], %282 {strides = array<i32>} : memref<15x8x1x128xf32, #tpu.memory_space<vmem>>, vector<1x1x1x128xf32>,
    %c14_165 = arith.constant 14 : index
    %c1_166 = arith.constant 1 : index
    %c0_167 = arith.constant 0 : index
    %c0_168 = arith.constant 0 : index
    %283 = vector.load %arg2[%c14_165, %c1_166, %c0_167, %c0_168] : memref<15x8x1x128xf32, #tpu.memory_space<vmem>>, vector<1x1x1x128xf32>
    %284 = vector.shape_cast %283 : vector<1x1x1x128xf32> to vector<1x128xf32>
    %285 = vector.shape_cast %240 : vector<1x128xf32> to vector<1x1x1x128xf32>
    tpu.vector_store %arg2[%c14_165, %c1_166, %c0_167, %c0_168], %285 {strides = array<i32>} : memref<15x8x1x128xf32, #tpu.memory_space<vmem>>, vector<1x1x1x128xf32>,
    %c0_169 = arith.constant 0 : index
    %c2_170 = arith.constant 2 : index
    %c0_171 = arith.constant 0 : index
    %c0_172 = arith.constant 0 : index
    %286 = vector.load %arg1[%c0_169, %c2_170, %c0_171, %c0_172] : memref<7x8x1x128xf32, #tpu.memory_space<vmem>>, vector<1x1x1x128xf32>
    %287 = vector.shape_cast %286 : vector<1x1x1x128xf32> to vector<1x128xf32>
    %c1_173 = arith.constant 1 : index
    %c2_174 = arith.constant 2 : index
    %c0_175 = arith.constant 0 : index
    %c0_176 = arith.constant 0 : index
    %288 = vector.load %arg1[%c1_173, %c2_174, %c0_175, %c0_176] : memref<7x8x1x128xf32, #tpu.memory_space<vmem>>, vector<1x1x1x128xf32>
    %289 = vector.shape_cast %288 : vector<1x1x1x128xf32> to vector<1x128xf32>
    %c2_177 = arith.constant 2 : index
    %c2_178 = arith.constant 2 : index
    %c0_179 = arith.constant 0 : index
    %c0_180 = arith.constant 0 : index
    %290 = vector.load %arg1[%c2_177, %c2_178, %c0_179, %c0_180] : memref<7x8x1x128xf32, #tpu.memory_space<vmem>>, vector<1x1x1x128xf32>
    %291 = vector.shape_cast %290 : vector<1x1x1x128xf32> to vector<1x128xf32>
    %c3_181 = arith.constant 3 : index
    %c2_182 = arith.constant 2 : index
    %c0_183 = arith.constant 0 : index
    %c0_184 = arith.constant 0 : index
    %292 = vector.load %arg1[%c3_181, %c2_182, %c0_183, %c0_184] : memref<7x8x1x128xf32, #tpu.memory_space<vmem>>, vector<1x1x1x128xf32>
    %293 = vector.shape_cast %292 : vector<1x1x1x128xf32> to vector<1x128xf32>
    %294 = math.cos %287 : vector<1x128xf32>
    %295 = math.sin %287 : vector<1x128xf32>
    %cst_185 = arith.constant 0.000000e+00 : f32
    %296 = vector.broadcast %cst_185 : f32 to vector<1x128xf32>
    %297 = arith.subf %296, %295 : vector<1x128xf32>
    %298 = math.cos %293 : vector<1x128xf32>
    %299 = math.sin %293 : vector<1x128xf32>
    %cst_186 = arith.constant 0.000000e+00 : f32
    %300 = vector.broadcast %cst_186 : f32 to vector<1x128xf32>
    %301 = arith.subf %300, %299 : vector<1x128xf32>
    %302 = math.cos %291 : vector<1x128xf32>
    %303 = math.sin %291 : vector<1x128xf32>
    %cst_187 = arith.constant 0.000000e+00 : f32
    %304 = vector.broadcast %cst_187 : f32 to vector<1x128xf32>
    %305 = arith.subf %304, %303 : vector<1x128xf32>
    %306 = math.cos %289 : vector<1x128xf32>
    %307 = math.sin %289 : vector<1x128xf32>
    %cst_188 = arith.constant 0.000000e+00 : f32
    %308 = vector.broadcast %cst_188 : f32 to vector<1x128xf32>
    %309 = arith.subf %308, %307 : vector<1x128xf32>
    %310 = arith.mulf %298, %302 : vector<1x128xf32>
    %311 = arith.mulf %298, %303 : vector<1x128xf32>
    %312 = arith.mulf %299, %302 : vector<1x128xf32>
    %313 = arith.mulf %299, %303 : vector<1x128xf32>
    %314 = arith.mulf %301, %306 : vector<1x128xf32>
    %315 = arith.mulf %311, %307 : vector<1x128xf32>
    %316 = arith.addf %314, %315 : vector<1x128xf32>
    %317 = arith.mulf %301, %309 : vector<1x128xf32>
    %318 = arith.mulf %311, %306 : vector<1x128xf32>
    %319 = arith.addf %317, %318 : vector<1x128xf32>
    %320 = arith.mulf %298, %306 : vector<1x128xf32>
    %321 = arith.mulf %313, %307 : vector<1x128xf32>
    %322 = arith.addf %320, %321 : vector<1x128xf32>
    %323 = arith.mulf %298, %309 : vector<1x128xf32>
    %324 = arith.mulf %313, %306 : vector<1x128xf32>
    %325 = arith.addf %323, %324 : vector<1x128xf32>
    %326 = arith.mulf %302, %307 : vector<1x128xf32>
    %327 = arith.mulf %302, %306 : vector<1x128xf32>
    %328 = arith.mulf %310, %294 : vector<1x128xf32>
    %329 = arith.mulf %316, %295 : vector<1x128xf32>
    %330 = arith.addf %328, %329 : vector<1x128xf32>
    %331 = arith.mulf %310, %297 : vector<1x128xf32>
    %332 = arith.mulf %316, %294 : vector<1x128xf32>
    %333 = arith.addf %331, %332 : vector<1x128xf32>
    %334 = arith.mulf %312, %294 : vector<1x128xf32>
    %335 = arith.mulf %322, %295 : vector<1x128xf32>
    %336 = arith.addf %334, %335 : vector<1x128xf32>
    %337 = arith.mulf %312, %297 : vector<1x128xf32>
    %338 = arith.mulf %322, %294 : vector<1x128xf32>
    %339 = arith.addf %337, %338 : vector<1x128xf32>
    %340 = arith.mulf %305, %294 : vector<1x128xf32>
    %341 = arith.mulf %326, %295 : vector<1x128xf32>
    %342 = arith.addf %340, %341 : vector<1x128xf32>
    %343 = arith.mulf %305, %297 : vector<1x128xf32>
    %344 = arith.mulf %326, %294 : vector<1x128xf32>
    %345 = arith.addf %343, %344 : vector<1x128xf32>
    %c4_189 = arith.constant 4 : index
    %c2_190 = arith.constant 2 : index
    %c0_191 = arith.constant 0 : index
    %c0_192 = arith.constant 0 : index
    %346 = vector.load %arg1[%c4_189, %c2_190, %c0_191, %c0_192] : memref<7x8x1x128xf32, #tpu.memory_space<vmem>>, vector<1x1x1x128xf32>
    %347 = vector.shape_cast %346 : vector<1x1x1x128xf32> to vector<1x128xf32>
    %c5_193 = arith.constant 5 : index
    %c2_194 = arith.constant 2 : index
    %c0_195 = arith.constant 0 : index
    %c0_196 = arith.constant 0 : index
    %348 = vector.load %arg1[%c5_193, %c2_194, %c0_195, %c0_196] : memref<7x8x1x128xf32, #tpu.memory_space<vmem>>, vector<1x1x1x128xf32>
    %349 = vector.shape_cast %348 : vector<1x1x1x128xf32> to vector<1x128xf32>
    %c6_197 = arith.constant 6 : index
    %c2_198 = arith.constant 2 : index
    %c0_199 = arith.constant 0 : index
    %c0_200 = arith.constant 0 : index
    %350 = vector.load %arg1[%c6_197, %c2_198, %c0_199, %c0_200] : memref<7x8x1x128xf32, #tpu.memory_space<vmem>>, vector<1x1x1x128xf32>
    %351 = vector.shape_cast %350 : vector<1x1x1x128xf32> to vector<1x128xf32>
    %352 = arith.mulf %200, %347 : vector<1x128xf32>
    %353 = arith.mulf %205, %349 : vector<1x128xf32>
    %354 = arith.addf %352, %353 : vector<1x128xf32>
    %355 = arith.mulf %210, %351 : vector<1x128xf32>
    %356 = arith.addf %354, %355 : vector<1x128xf32>
    %357 = arith.mulf %215, %347 : vector<1x128xf32>
    %358 = arith.mulf %220, %349 : vector<1x128xf32>
    %359 = arith.addf %357, %358 : vector<1x128xf32>
    %360 = arith.mulf %225, %351 : vector<1x128xf32>
    %361 = arith.addf %359, %360 : vector<1x128xf32>
    %362 = arith.mulf %230, %347 : vector<1x128xf32>
    %363 = arith.mulf %235, %349 : vector<1x128xf32>
    %364 = arith.addf %362, %363 : vector<1x128xf32>
    %365 = arith.mulf %240, %351 : vector<1x128xf32>
    %366 = arith.addf %364, %365 : vector<1x128xf32>
    %367 = arith.addf %356, %182 : vector<1x128xf32>
    %368 = arith.addf %361, %187 : vector<1x128xf32>
    %369 = arith.addf %366, %192 : vector<1x128xf32>
    %370 = arith.addf %356, %193 : vector<1x128xf32>
    %371 = arith.addf %361, %194 : vector<1x128xf32>
    %372 = arith.addf %366, %195 : vector<1x128xf32>
    %373 = arith.mulf %200, %330 : vector<1x128xf32>
    %374 = arith.mulf %205, %336 : vector<1x128xf32>
    %375 = arith.addf %373, %374 : vector<1x128xf32>
    %376 = arith.mulf %210, %342 : vector<1x128xf32>
    %377 = arith.addf %375, %376 : vector<1x128xf32>
    %378 = arith.mulf %200, %333 : vector<1x128xf32>
    %379 = arith.mulf %205, %339 : vector<1x128xf32>
    %380 = arith.addf %378, %379 : vector<1x128xf32>
    %381 = arith.mulf %210, %345 : vector<1x128xf32>
    %382 = arith.addf %380, %381 : vector<1x128xf32>
    %383 = arith.mulf %200, %319 : vector<1x128xf32>
    %384 = arith.mulf %205, %325 : vector<1x128xf32>
    %385 = arith.addf %383, %384 : vector<1x128xf32>
    %386 = arith.mulf %210, %327 : vector<1x128xf32>
    %387 = arith.addf %385, %386 : vector<1x128xf32>
    %388 = arith.mulf %215, %330 : vector<1x128xf32>
    %389 = arith.mulf %220, %336 : vector<1x128xf32>
    %390 = arith.addf %388, %389 : vector<1x128xf32>
    %391 = arith.mulf %225, %342 : vector<1x128xf32>
    %392 = arith.addf %390, %391 : vector<1x128xf32>
    %393 = arith.mulf %215, %333 : vector<1x128xf32>
    %394 = arith.mulf %220, %339 : vector<1x128xf32>
    %395 = arith.addf %393, %394 : vector<1x128xf32>
    %396 = arith.mulf %225, %345 : vector<1x128xf32>
    %397 = arith.addf %395, %396 : vector<1x128xf32>
    %398 = arith.mulf %215, %319 : vector<1x128xf32>
    %399 = arith.mulf %220, %325 : vector<1x128xf32>
    %400 = arith.addf %398, %399 : vector<1x128xf32>
    %401 = arith.mulf %225, %327 : vector<1x128xf32>
    %402 = arith.addf %400, %401 : vector<1x128xf32>
    %403 = arith.mulf %230, %330 : vector<1x128xf32>
    %404 = arith.mulf %235, %336 : vector<1x128xf32>
    %405 = arith.addf %403, %404 : vector<1x128xf32>
    %406 = arith.mulf %240, %342 : vector<1x128xf32>
    %407 = arith.addf %405, %406 : vector<1x128xf32>
    %408 = arith.mulf %230, %333 : vector<1x128xf32>
    %409 = arith.mulf %235, %339 : vector<1x128xf32>
    %410 = arith.addf %408, %409 : vector<1x128xf32>
    %411 = arith.mulf %240, %345 : vector<1x128xf32>
    %412 = arith.addf %410, %411 : vector<1x128xf32>
    %413 = arith.mulf %230, %319 : vector<1x128xf32>
    %414 = arith.mulf %235, %325 : vector<1x128xf32>
    %415 = arith.addf %413, %414 : vector<1x128xf32>
    %416 = arith.mulf %240, %327 : vector<1x128xf32>
    %417 = arith.addf %415, %416 : vector<1x128xf32>
    %c0_201 = arith.constant 0 : index
    %c2_202 = arith.constant 2 : index
    %c0_203 = arith.constant 0 : index
    %c0_204 = arith.constant 0 : index
    %418 = vector.load %arg2[%c0_201, %c2_202, %c0_203, %c0_204] : memref<15x8x1x128xf32, #tpu.memory_space<vmem>>, vector<1x1x1x128xf32>
    %419 = vector.shape_cast %418 : vector<1x1x1x128xf32> to vector<1x128xf32>
    %420 = vector.shape_cast %367 : vector<1x128xf32> to vector<1x1x1x128xf32>
    tpu.vector_store %arg2[%c0_201, %c2_202, %c0_203, %c0_204], %420 {strides = array<i32>} : memref<15x8x1x128xf32, #tpu.memory_space<vmem>>, vector<1x1x1x128xf32>,
    %c3_205 = arith.constant 3 : index
    %c2_206 = arith.constant 2 : index
    %c0_207 = arith.constant 0 : index
    %c0_208 = arith.constant 0 : index
    %421 = vector.load %arg2[%c3_205, %c2_206, %c0_207, %c0_208] : memref<15x8x1x128xf32, #tpu.memory_space<vmem>>, vector<1x1x1x128xf32>
    %422 = vector.shape_cast %421 : vector<1x1x1x128xf32> to vector<1x128xf32>
    %423 = vector.shape_cast %370 : vector<1x128xf32> to vector<1x1x1x128xf32>
    tpu.vector_store %arg2[%c3_205, %c2_206, %c0_207, %c0_208], %423 {strides = array<i32>} : memref<15x8x1x128xf32, #tpu.memory_space<vmem>>, vector<1x1x1x128xf32>,
    %c1_209 = arith.constant 1 : index
    %c2_210 = arith.constant 2 : index
    %c0_211 = arith.constant 0 : index
    %c0_212 = arith.constant 0 : index
    %424 = vector.load %arg2[%c1_209, %c2_210, %c0_211, %c0_212] : memref<15x8x1x128xf32, #tpu.memory_space<vmem>>, vector<1x1x1x128xf32>
    %425 = vector.shape_cast %424 : vector<1x1x1x128xf32> to vector<1x128xf32>
    %426 = vector.shape_cast %368 : vector<1x128xf32> to vector<1x1x1x128xf32>
    tpu.vector_store %arg2[%c1_209, %c2_210, %c0_211, %c0_212], %426 {strides = array<i32>} : memref<15x8x1x128xf32, #tpu.memory_space<vmem>>, vector<1x1x1x128xf32>,
    %c4_213 = arith.constant 4 : index
    %c2_214 = arith.constant 2 : index
    %c0_215 = arith.constant 0 : index
    %c0_216 = arith.constant 0 : index
    %427 = vector.load %arg2[%c4_213, %c2_214, %c0_215, %c0_216] : memref<15x8x1x128xf32, #tpu.memory_space<vmem>>, vector<1x1x1x128xf32>
    %428 = vector.shape_cast %427 : vector<1x1x1x128xf32> to vector<1x128xf32>
    %429 = vector.shape_cast %371 : vector<1x128xf32> to vector<1x1x1x128xf32>
    tpu.vector_store %arg2[%c4_213, %c2_214, %c0_215, %c0_216], %429 {strides = array<i32>} : memref<15x8x1x128xf32, #tpu.memory_space<vmem>>, vector<1x1x1x128xf32>,
    %c2_217 = arith.constant 2 : index
    %c2_218 = arith.constant 2 : index
    %c0_219 = arith.constant 0 : index
    %c0_220 = arith.constant 0 : index
    %430 = vector.load %arg2[%c2_217, %c2_218, %c0_219, %c0_220] : memref<15x8x1x128xf32, #tpu.memory_space<vmem>>, vector<1x1x1x128xf32>
    %431 = vector.shape_cast %430 : vector<1x1x1x128xf32> to vector<1x128xf32>
    %432 = vector.shape_cast %369 : vector<1x128xf32> to vector<1x1x1x128xf32>
    tpu.vector_store %arg2[%c2_217, %c2_218, %c0_219, %c0_220], %432 {strides = array<i32>} : memref<15x8x1x128xf32, #tpu.memory_space<vmem>>, vector<1x1x1x128xf32>,
    %c5_221 = arith.constant 5 : index
    %c2_222 = arith.constant 2 : index
    %c0_223 = arith.constant 0 : index
    %c0_224 = arith.constant 0 : index
    %433 = vector.load %arg2[%c5_221, %c2_222, %c0_223, %c0_224] : memref<15x8x1x128xf32, #tpu.memory_space<vmem>>, vector<1x1x1x128xf32>
    %434 = vector.shape_cast %433 : vector<1x1x1x128xf32> to vector<1x128xf32>
    %435 = vector.shape_cast %372 : vector<1x128xf32> to vector<1x1x1x128xf32>
    tpu.vector_store %arg2[%c5_221, %c2_222, %c0_223, %c0_224], %435 {strides = array<i32>} : memref<15x8x1x128xf32, #tpu.memory_space<vmem>>, vector<1x1x1x128xf32>,
    %c6_225 = arith.constant 6 : index
    %c2_226 = arith.constant 2 : index
    %c0_227 = arith.constant 0 : index
    %c0_228 = arith.constant 0 : index
    %436 = vector.load %arg2[%c6_225, %c2_226, %c0_227, %c0_228] : memref<15x8x1x128xf32, #tpu.memory_space<vmem>>, vector<1x1x1x128xf32>
    %437 = vector.shape_cast %436 : vector<1x1x1x128xf32> to vector<1x128xf32>
    %438 = vector.shape_cast %377 : vector<1x128xf32> to vector<1x1x1x128xf32>
    tpu.vector_store %arg2[%c6_225, %c2_226, %c0_227, %c0_228], %438 {strides = array<i32>} : memref<15x8x1x128xf32, #tpu.memory_space<vmem>>, vector<1x1x1x128xf32>,
    %c7_229 = arith.constant 7 : index
    %c2_230 = arith.constant 2 : index
    %c0_231 = arith.constant 0 : index
    %c0_232 = arith.constant 0 : index
    %439 = vector.load %arg2[%c7_229, %c2_230, %c0_231, %c0_232] : memref<15x8x1x128xf32, #tpu.memory_space<vmem>>, vector<1x1x1x128xf32>
    %440 = vector.shape_cast %439 : vector<1x1x1x128xf32> to vector<1x128xf32>
    %441 = vector.shape_cast %382 : vector<1x128xf32> to vector<1x1x1x128xf32>
    tpu.vector_store %arg2[%c7_229, %c2_230, %c0_231, %c0_232], %441 {strides = array<i32>} : memref<15x8x1x128xf32, #tpu.memory_space<vmem>>, vector<1x1x1x128xf32>,
    %c8_233 = arith.constant 8 : index
    %c2_234 = arith.constant 2 : index
    %c0_235 = arith.constant 0 : index
    %c0_236 = arith.constant 0 : index
    %442 = vector.load %arg2[%c8_233, %c2_234, %c0_235, %c0_236] : memref<15x8x1x128xf32, #tpu.memory_space<vmem>>, vector<1x1x1x128xf32>
    %443 = vector.shape_cast %442 : vector<1x1x1x128xf32> to vector<1x128xf32>
    %444 = vector.shape_cast %387 : vector<1x128xf32> to vector<1x1x1x128xf32>
    tpu.vector_store %arg2[%c8_233, %c2_234, %c0_235, %c0_236], %444 {strides = array<i32>} : memref<15x8x1x128xf32, #tpu.memory_space<vmem>>, vector<1x1x1x128xf32>,
    %c9_237 = arith.constant 9 : index
    %c2_238 = arith.constant 2 : index
    %c0_239 = arith.constant 0 : index
    %c0_240 = arith.constant 0 : index
    %445 = vector.load %arg2[%c9_237, %c2_238, %c0_239, %c0_240] : memref<15x8x1x128xf32, #tpu.memory_space<vmem>>, vector<1x1x1x128xf32>
    %446 = vector.shape_cast %445 : vector<1x1x1x128xf32> to vector<1x128xf32>
    %447 = vector.shape_cast %392 : vector<1x128xf32> to vector<1x1x1x128xf32>
    tpu.vector_store %arg2[%c9_237, %c2_238, %c0_239, %c0_240], %447 {strides = array<i32>} : memref<15x8x1x128xf32, #tpu.memory_space<vmem>>, vector<1x1x1x128xf32>,
    %c10_241 = arith.constant 10 : index
    %c2_242 = arith.constant 2 : index
    %c0_243 = arith.constant 0 : index
    %c0_244 = arith.constant 0 : index
    %448 = vector.load %arg2[%c10_241, %c2_242, %c0_243, %c0_244] : memref<15x8x1x128xf32, #tpu.memory_space<vmem>>, vector<1x1x1x128xf32>
    %449 = vector.shape_cast %448 : vector<1x1x1x128xf32> to vector<1x128xf32>
    %450 = vector.shape_cast %397 : vector<1x128xf32> to vector<1x1x1x128xf32>
    tpu.vector_store %arg2[%c10_241, %c2_242, %c0_243, %c0_244], %450 {strides = array<i32>} : memref<15x8x1x128xf32, #tpu.memory_space<vmem>>, vector<1x1x1x128xf32>,
    %c11_245 = arith.constant 11 : index
    %c2_246 = arith.constant 2 : index
    %c0_247 = arith.constant 0 : index
    %c0_248 = arith.constant 0 : index
    %451 = vector.load %arg2[%c11_245, %c2_246, %c0_247, %c0_248] : memref<15x8x1x128xf32, #tpu.memory_space<vmem>>, vector<1x1x1x128xf32>
    %452 = vector.shape_cast %451 : vector<1x1x1x128xf32> to vector<1x128xf32>
    %453 = vector.shape_cast %402 : vector<1x128xf32> to vector<1x1x1x128xf32>
    tpu.vector_store %arg2[%c11_245, %c2_246, %c0_247, %c0_248], %453 {strides = array<i32>} : memref<15x8x1x128xf32, #tpu.memory_space<vmem>>, vector<1x1x1x128xf32>,
    %c12_249 = arith.constant 12 : index
    %c2_250 = arith.constant 2 : index
    %c0_251 = arith.constant 0 : index
    %c0_252 = arith.constant 0 : index
    %454 = vector.load %arg2[%c12_249, %c2_250, %c0_251, %c0_252] : memref<15x8x1x128xf32, #tpu.memory_space<vmem>>, vector<1x1x1x128xf32>
    %455 = vector.shape_cast %454 : vector<1x1x1x128xf32> to vector<1x128xf32>
    %456 = vector.shape_cast %407 : vector<1x128xf32> to vector<1x1x1x128xf32>
    tpu.vector_store %arg2[%c12_249, %c2_250, %c0_251, %c0_252], %456 {strides = array<i32>} : memref<15x8x1x128xf32, #tpu.memory_space<vmem>>, vector<1x1x1x128xf32>,
    %c13_253 = arith.constant 13 : index
    %c2_254 = arith.constant 2 : index
    %c0_255 = arith.constant 0 : index
    %c0_256 = arith.constant 0 : index
    %457 = vector.load %arg2[%c13_253, %c2_254, %c0_255, %c0_256] : memref<15x8x1x128xf32, #tpu.memory_space<vmem>>, vector<1x1x1x128xf32>
    %458 = vector.shape_cast %457 : vector<1x1x1x128xf32> to vector<1x128xf32>
    %459 = vector.shape_cast %412 : vector<1x128xf32> to vector<1x1x1x128xf32>
    tpu.vector_store %arg2[%c13_253, %c2_254, %c0_255, %c0_256], %459 {strides = array<i32>} : memref<15x8x1x128xf32, #tpu.memory_space<vmem>>, vector<1x1x1x128xf32>,
    %c14_257 = arith.constant 14 : index
    %c2_258 = arith.constant 2 : index
    %c0_259 = arith.constant 0 : index
    %c0_260 = arith.constant 0 : index
    %460 = vector.load %arg2[%c14_257, %c2_258, %c0_259, %c0_260] : memref<15x8x1x128xf32, #tpu.memory_space<vmem>>, vector<1x1x1x128xf32>
    %461 = vector.shape_cast %460 : vector<1x1x1x128xf32> to vector<1x128xf32>
    %462 = vector.shape_cast %417 : vector<1x128xf32> to vector<1x1x1x128xf32>
    tpu.vector_store %arg2[%c14_257, %c2_258, %c0_259, %c0_260], %462 {strides = array<i32>} : memref<15x8x1x128xf32, #tpu.memory_space<vmem>>, vector<1x1x1x128xf32>,
    %c0_261 = arith.constant 0 : index
    %c3_262 = arith.constant 3 : index
    %c0_263 = arith.constant 0 : index
    %c0_264 = arith.constant 0 : index
    %463 = vector.load %arg1[%c0_261, %c3_262, %c0_263, %c0_264] : memref<7x8x1x128xf32, #tpu.memory_space<vmem>>, vector<1x1x1x128xf32>
    %464 = vector.shape_cast %463 : vector<1x1x1x128xf32> to vector<1x128xf32>
    %c1_265 = arith.constant 1 : index
    %c3_266 = arith.constant 3 : index
    %c0_267 = arith.constant 0 : index
    %c0_268 = arith.constant 0 : index
    %465 = vector.load %arg1[%c1_265, %c3_266, %c0_267, %c0_268] : memref<7x8x1x128xf32, #tpu.memory_space<vmem>>, vector<1x1x1x128xf32>
    %466 = vector.shape_cast %465 : vector<1x1x1x128xf32> to vector<1x128xf32>
    %c2_269 = arith.constant 2 : index
    %c3_270 = arith.constant 3 : index
    %c0_271 = arith.constant 0 : index
    %c0_272 = arith.constant 0 : index
    %467 = vector.load %arg1[%c2_269, %c3_270, %c0_271, %c0_272] : memref<7x8x1x128xf32, #tpu.memory_space<vmem>>, vector<1x1x1x128xf32>
    %468 = vector.shape_cast %467 : vector<1x1x1x128xf32> to vector<1x128xf32>
    %c3_273 = arith.constant 3 : index
    %c3_274 = arith.constant 3 : index
    %c0_275 = arith.constant 0 : index
    %c0_276 = arith.constant 0 : index
    %469 = vector.load %arg1[%c3_273, %c3_274, %c0_275, %c0_276] : memref<7x8x1x128xf32, #tpu.memory_space<vmem>>, vector<1x1x1x128xf32>
    %470 = vector.shape_cast %469 : vector<1x1x1x128xf32> to vector<1x128xf32>
    %471 = math.cos %464 : vector<1x128xf32>
    %472 = math.sin %464 : vector<1x128xf32>
    %cst_277 = arith.constant 0.000000e+00 : f32
    %473 = vector.broadcast %cst_277 : f32 to vector<1x128xf32>
    %474 = arith.subf %473, %472 : vector<1x128xf32>
    %475 = math.cos %470 : vector<1x128xf32>
    %476 = math.sin %470 : vector<1x128xf32>
    %cst_278 = arith.constant 0.000000e+00 : f32
    %477 = vector.broadcast %cst_278 : f32 to vector<1x128xf32>
    %478 = arith.subf %477, %476 : vector<1x128xf32>
    %479 = math.cos %468 : vector<1x128xf32>
    %480 = math.sin %468 : vector<1x128xf32>
    %cst_279 = arith.constant 0.000000e+00 : f32
    %481 = vector.broadcast %cst_279 : f32 to vector<1x128xf32>
    %482 = arith.subf %481, %480 : vector<1x128xf32>
    %483 = math.cos %466 : vector<1x128xf32>
    %484 = math.sin %466 : vector<1x128xf32>
    %cst_280 = arith.constant 0.000000e+00 : f32
    %485 = vector.broadcast %cst_280 : f32 to vector<1x128xf32>
    %486 = arith.subf %485, %484 : vector<1x128xf32>
    %487 = arith.mulf %475, %479 : vector<1x128xf32>
    %488 = arith.mulf %475, %480 : vector<1x128xf32>
    %489 = arith.mulf %476, %479 : vector<1x128xf32>
    %490 = arith.mulf %476, %480 : vector<1x128xf32>
    %491 = arith.mulf %478, %483 : vector<1x128xf32>
    %492 = arith.mulf %488, %484 : vector<1x128xf32>
    %493 = arith.addf %491, %492 : vector<1x128xf32>
    %494 = arith.mulf %478, %486 : vector<1x128xf32>
    %495 = arith.mulf %488, %483 : vector<1x128xf32>
    %496 = arith.addf %494, %495 : vector<1x128xf32>
    %497 = arith.mulf %475, %483 : vector<1x128xf32>
    %498 = arith.mulf %490, %484 : vector<1x128xf32>
    %499 = arith.addf %497, %498 : vector<1x128xf32>
    %500 = arith.mulf %475, %486 : vector<1x128xf32>
    %501 = arith.mulf %490, %483 : vector<1x128xf32>
    %502 = arith.addf %500, %501 : vector<1x128xf32>
    %503 = arith.mulf %479, %484 : vector<1x128xf32>
    %504 = arith.mulf %479, %483 : vector<1x128xf32>
    %505 = arith.mulf %487, %471 : vector<1x128xf32>
    %506 = arith.mulf %493, %472 : vector<1x128xf32>
    %507 = arith.addf %505, %506 : vector<1x128xf32>
    %508 = arith.mulf %487, %474 : vector<1x128xf32>
    %509 = arith.mulf %493, %471 : vector<1x128xf32>
    %510 = arith.addf %508, %509 : vector<1x128xf32>
    %511 = arith.mulf %489, %471 : vector<1x128xf32>
    %512 = arith.mulf %499, %472 : vector<1x128xf32>
    %513 = arith.addf %511, %512 : vector<1x128xf32>
    %514 = arith.mulf %489, %474 : vector<1x128xf32>
    %515 = arith.mulf %499, %471 : vector<1x128xf32>
    %516 = arith.addf %514, %515 : vector<1x128xf32>
    %517 = arith.mulf %482, %471 : vector<1x128xf32>
    %518 = arith.mulf %503, %472 : vector<1x128xf32>
    %519 = arith.addf %517, %518 : vector<1x128xf32>
    %520 = arith.mulf %482, %474 : vector<1x128xf32>
    %521 = arith.mulf %503, %471 : vector<1x128xf32>
    %522 = arith.addf %520, %521 : vector<1x128xf32>
    %c4_281 = arith.constant 4 : index
    %c3_282 = arith.constant 3 : index
    %c0_283 = arith.constant 0 : index
    %c0_284 = arith.constant 0 : index
    %523 = vector.load %arg1[%c4_281, %c3_282, %c0_283, %c0_284] : memref<7x8x1x128xf32, #tpu.memory_space<vmem>>, vector<1x1x1x128xf32>
    %524 = vector.shape_cast %523 : vector<1x1x1x128xf32> to vector<1x128xf32>
    %c5_285 = arith.constant 5 : index
    %c3_286 = arith.constant 3 : index
    %c0_287 = arith.constant 0 : index
    %c0_288 = arith.constant 0 : index
    %525 = vector.load %arg1[%c5_285, %c3_286, %c0_287, %c0_288] : memref<7x8x1x128xf32, #tpu.memory_space<vmem>>, vector<1x1x1x128xf32>
    %526 = vector.shape_cast %525 : vector<1x1x1x128xf32> to vector<1x128xf32>
    %c6_289 = arith.constant 6 : index
    %c3_290 = arith.constant 3 : index
    %c0_291 = arith.constant 0 : index
    %c0_292 = arith.constant 0 : index
    %527 = vector.load %arg1[%c6_289, %c3_290, %c0_291, %c0_292] : memref<7x8x1x128xf32, #tpu.memory_space<vmem>>, vector<1x1x1x128xf32>
    %528 = vector.shape_cast %527 : vector<1x1x1x128xf32> to vector<1x128xf32>
    %529 = arith.mulf %200, %524 : vector<1x128xf32>
    %530 = arith.mulf %205, %526 : vector<1x128xf32>
    %531 = arith.addf %529, %530 : vector<1x128xf32>
    %532 = arith.mulf %210, %528 : vector<1x128xf32>
    %533 = arith.addf %531, %532 : vector<1x128xf32>
    %534 = arith.mulf %215, %524 : vector<1x128xf32>
    %535 = arith.mulf %220, %526 : vector<1x128xf32>
    %536 = arith.addf %534, %535 : vector<1x128xf32>
    %537 = arith.mulf %225, %528 : vector<1x128xf32>
    %538 = arith.addf %536, %537 : vector<1x128xf32>
    %539 = arith.mulf %230, %524 : vector<1x128xf32>
    %540 = arith.mulf %235, %526 : vector<1x128xf32>
    %541 = arith.addf %539, %540 : vector<1x128xf32>
    %542 = arith.mulf %240, %528 : vector<1x128xf32>
    %543 = arith.addf %541, %542 : vector<1x128xf32>
    %544 = arith.addf %533, %182 : vector<1x128xf32>
    %545 = arith.addf %538, %187 : vector<1x128xf32>
    %546 = arith.addf %543, %192 : vector<1x128xf32>
    %547 = arith.addf %533, %193 : vector<1x128xf32>
    %548 = arith.addf %538, %194 : vector<1x128xf32>
    %549 = arith.addf %543, %195 : vector<1x128xf32>
    %550 = arith.mulf %200, %507 : vector<1x128xf32>
    %551 = arith.mulf %205, %513 : vector<1x128xf32>
    %552 = arith.addf %550, %551 : vector<1x128xf32>
    %553 = arith.mulf %210, %519 : vector<1x128xf32>
    %554 = arith.addf %552, %553 : vector<1x128xf32>
    %555 = arith.mulf %200, %510 : vector<1x128xf32>
    %556 = arith.mulf %205, %516 : vector<1x128xf32>
    %557 = arith.addf %555, %556 : vector<1x128xf32>
    %558 = arith.mulf %210, %522 : vector<1x128xf32>
    %559 = arith.addf %557, %558 : vector<1x128xf32>
    %560 = arith.mulf %200, %496 : vector<1x128xf32>
    %561 = arith.mulf %205, %502 : vector<1x128xf32>
    %562 = arith.addf %560, %561 : vector<1x128xf32>
    %563 = arith.mulf %210, %504 : vector<1x128xf32>
    %564 = arith.addf %562, %563 : vector<1x128xf32>
    %565 = arith.mulf %215, %507 : vector<1x128xf32>
    %566 = arith.mulf %220, %513 : vector<1x128xf32>
    %567 = arith.addf %565, %566 : vector<1x128xf32>
    %568 = arith.mulf %225, %519 : vector<1x128xf32>
    %569 = arith.addf %567, %568 : vector<1x128xf32>
    %570 = arith.mulf %215, %510 : vector<1x128xf32>
    %571 = arith.mulf %220, %516 : vector<1x128xf32>
    %572 = arith.addf %570, %571 : vector<1x128xf32>
    %573 = arith.mulf %225, %522 : vector<1x128xf32>
    %574 = arith.addf %572, %573 : vector<1x128xf32>
    %575 = arith.mulf %215, %496 : vector<1x128xf32>
    %576 = arith.mulf %220, %502 : vector<1x128xf32>
    %577 = arith.addf %575, %576 : vector<1x128xf32>
    %578 = arith.mulf %225, %504 : vector<1x128xf32>
    %579 = arith.addf %577, %578 : vector<1x128xf32>
    %580 = arith.mulf %230, %507 : vector<1x128xf32>
    %581 = arith.mulf %235, %513 : vector<1x128xf32>
    %582 = arith.addf %580, %581 : vector<1x128xf32>
    %583 = arith.mulf %240, %519 : vector<1x128xf32>
    %584 = arith.addf %582, %583 : vector<1x128xf32>
    %585 = arith.mulf %230, %510 : vector<1x128xf32>
    %586 = arith.mulf %235, %516 : vector<1x128xf32>
    %587 = arith.addf %585, %586 : vector<1x128xf32>
    %588 = arith.mulf %240, %522 : vector<1x128xf32>
    %589 = arith.addf %587, %588 : vector<1x128xf32>
    %590 = arith.mulf %230, %496 : vector<1x128xf32>
    %591 = arith.mulf %235, %502 : vector<1x128xf32>
    %592 = arith.addf %590, %591 : vector<1x128xf32>
    %593 = arith.mulf %240, %504 : vector<1x128xf32>
    %594 = arith.addf %592, %593 : vector<1x128xf32>
    %c0_293 = arith.constant 0 : index
    %c3_294 = arith.constant 3 : index
    %c0_295 = arith.constant 0 : index
    %c0_296 = arith.constant 0 : index
    %595 = vector.load %arg2[%c0_293, %c3_294, %c0_295, %c0_296] : memref<15x8x1x128xf32, #tpu.memory_space<vmem>>, vector<1x1x1x128xf32>
    %596 = vector.shape_cast %595 : vector<1x1x1x128xf32> to vector<1x128xf32>
    %597 = vector.shape_cast %544 : vector<1x128xf32> to vector<1x1x1x128xf32>
    tpu.vector_store %arg2[%c0_293, %c3_294, %c0_295, %c0_296], %597 {strides = array<i32>} : memref<15x8x1x128xf32, #tpu.memory_space<vmem>>, vector<1x1x1x128xf32>,
    %c3_297 = arith.constant 3 : index
    %c3_298 = arith.constant 3 : index
    %c0_299 = arith.constant 0 : index
    %c0_300 = arith.constant 0 : index
    %598 = vector.load %arg2[%c3_297, %c3_298, %c0_299, %c0_300] : memref<15x8x1x128xf32, #tpu.memory_space<vmem>>, vector<1x1x1x128xf32>
    %599 = vector.shape_cast %598 : vector<1x1x1x128xf32> to vector<1x128xf32>
    %600 = vector.shape_cast %547 : vector<1x128xf32> to vector<1x1x1x128xf32>
    tpu.vector_store %arg2[%c3_297, %c3_298, %c0_299, %c0_300], %600 {strides = array<i32>} : memref<15x8x1x128xf32, #tpu.memory_space<vmem>>, vector<1x1x1x128xf32>,
    %c1_301 = arith.constant 1 : index
    %c3_302 = arith.constant 3 : index
    %c0_303 = arith.constant 0 : index
    %c0_304 = arith.constant 0 : index
    %601 = vector.load %arg2[%c1_301, %c3_302, %c0_303, %c0_304] : memref<15x8x1x128xf32, #tpu.memory_space<vmem>>, vector<1x1x1x128xf32>
    %602 = vector.shape_cast %601 : vector<1x1x1x128xf32> to vector<1x128xf32>
    %603 = vector.shape_cast %545 : vector<1x128xf32> to vector<1x1x1x128xf32>
    tpu.vector_store %arg2[%c1_301, %c3_302, %c0_303, %c0_304], %603 {strides = array<i32>} : memref<15x8x1x128xf32, #tpu.memory_space<vmem>>, vector<1x1x1x128xf32>,
    %c4_305 = arith.constant 4 : index
    %c3_306 = arith.constant 3 : index
    %c0_307 = arith.constant 0 : index
    %c0_308 = arith.constant 0 : index
    %604 = vector.load %arg2[%c4_305, %c3_306, %c0_307, %c0_308] : memref<15x8x1x128xf32, #tpu.memory_space<vmem>>, vector<1x1x1x128xf32>
    %605 = vector.shape_cast %604 : vector<1x1x1x128xf32> to vector<1x128xf32>
    %606 = vector.shape_cast %548 : vector<1x128xf32> to vector<1x1x1x128xf32>
    tpu.vector_store %arg2[%c4_305, %c3_306, %c0_307, %c0_308], %606 {strides = array<i32>} : memref<15x8x1x128xf32, #tpu.memory_space<vmem>>, vector<1x1x1x128xf32>,
    %c2_309 = arith.constant 2 : index
    %c3_310 = arith.constant 3 : index
    %c0_311 = arith.constant 0 : index
    %c0_312 = arith.constant 0 : index
    %607 = vector.load %arg2[%c2_309, %c3_310, %c0_311, %c0_312] : memref<15x8x1x128xf32, #tpu.memory_space<vmem>>, vector<1x1x1x128xf32>
    %608 = vector.shape_cast %607 : vector<1x1x1x128xf32> to vector<1x128xf32>
    %609 = vector.shape_cast %546 : vector<1x128xf32> to vector<1x1x1x128xf32>
    tpu.vector_store %arg2[%c2_309, %c3_310, %c0_311, %c0_312], %609 {strides = array<i32>} : memref<15x8x1x128xf32, #tpu.memory_space<vmem>>, vector<1x1x1x128xf32>,
    %c5_313 = arith.constant 5 : index
    %c3_314 = arith.constant 3 : index
    %c0_315 = arith.constant 0 : index
    %c0_316 = arith.constant 0 : index
    %610 = vector.load %arg2[%c5_313, %c3_314, %c0_315, %c0_316] : memref<15x8x1x128xf32, #tpu.memory_space<vmem>>, vector<1x1x1x128xf32>
    %611 = vector.shape_cast %610 : vector<1x1x1x128xf32> to vector<1x128xf32>
    %612 = vector.shape_cast %549 : vector<1x128xf32> to vector<1x1x1x128xf32>
    tpu.vector_store %arg2[%c5_313, %c3_314, %c0_315, %c0_316], %612 {strides = array<i32>} : memref<15x8x1x128xf32, #tpu.memory_space<vmem>>, vector<1x1x1x128xf32>,
    %c6_317 = arith.constant 6 : index
    %c3_318 = arith.constant 3 : index
    %c0_319 = arith.constant 0 : index
    %c0_320 = arith.constant 0 : index
    %613 = vector.load %arg2[%c6_317, %c3_318, %c0_319, %c0_320] : memref<15x8x1x128xf32, #tpu.memory_space<vmem>>, vector<1x1x1x128xf32>
    %614 = vector.shape_cast %613 : vector<1x1x1x128xf32> to vector<1x128xf32>
    %615 = vector.shape_cast %554 : vector<1x128xf32> to vector<1x1x1x128xf32>
    tpu.vector_store %arg2[%c6_317, %c3_318, %c0_319, %c0_320], %615 {strides = array<i32>} : memref<15x8x1x128xf32, #tpu.memory_space<vmem>>, vector<1x1x1x128xf32>,
    %c7_321 = arith.constant 7 : index
    %c3_322 = arith.constant 3 : index
    %c0_323 = arith.constant 0 : index
    %c0_324 = arith.constant 0 : index
    %616 = vector.load %arg2[%c7_321, %c3_322, %c0_323, %c0_324] : memref<15x8x1x128xf32, #tpu.memory_space<vmem>>, vector<1x1x1x128xf32>
    %617 = vector.shape_cast %616 : vector<1x1x1x128xf32> to vector<1x128xf32>
    %618 = vector.shape_cast %559 : vector<1x128xf32> to vector<1x1x1x128xf32>
    tpu.vector_store %arg2[%c7_321, %c3_322, %c0_323, %c0_324], %618 {strides = array<i32>} : memref<15x8x1x128xf32, #tpu.memory_space<vmem>>, vector<1x1x1x128xf32>,
    %c8_325 = arith.constant 8 : index
    %c3_326 = arith.constant 3 : index
    %c0_327 = arith.constant 0 : index
    %c0_328 = arith.constant 0 : index
    %619 = vector.load %arg2[%c8_325, %c3_326, %c0_327, %c0_328] : memref<15x8x1x128xf32, #tpu.memory_space<vmem>>, vector<1x1x1x128xf32>
    %620 = vector.shape_cast %619 : vector<1x1x1x128xf32> to vector<1x128xf32>
    %621 = vector.shape_cast %564 : vector<1x128xf32> to vector<1x1x1x128xf32>
    tpu.vector_store %arg2[%c8_325, %c3_326, %c0_327, %c0_328], %621 {strides = array<i32>} : memref<15x8x1x128xf32, #tpu.memory_space<vmem>>, vector<1x1x1x128xf32>,
    %c9_329 = arith.constant 9 : index
    %c3_330 = arith.constant 3 : index
    %c0_331 = arith.constant 0 : index
    %c0_332 = arith.constant 0 : index
    %622 = vector.load %arg2[%c9_329, %c3_330, %c0_331, %c0_332] : memref<15x8x1x128xf32, #tpu.memory_space<vmem>>, vector<1x1x1x128xf32>
    %623 = vector.shape_cast %622 : vector<1x1x1x128xf32> to vector<1x128xf32>
    %624 = vector.shape_cast %569 : vector<1x128xf32> to vector<1x1x1x128xf32>
    tpu.vector_store %arg2[%c9_329, %c3_330, %c0_331, %c0_332], %624 {strides = array<i32>} : memref<15x8x1x128xf32, #tpu.memory_space<vmem>>, vector<1x1x1x128xf32>,
    %c10_333 = arith.constant 10 : index
    %c3_334 = arith.constant 3 : index
    %c0_335 = arith.constant 0 : index
    %c0_336 = arith.constant 0 : index
    %625 = vector.load %arg2[%c10_333, %c3_334, %c0_335, %c0_336] : memref<15x8x1x128xf32, #tpu.memory_space<vmem>>, vector<1x1x1x128xf32>
    %626 = vector.shape_cast %625 : vector<1x1x1x128xf32> to vector<1x128xf32>
    %627 = vector.shape_cast %574 : vector<1x128xf32> to vector<1x1x1x128xf32>
    tpu.vector_store %arg2[%c10_333, %c3_334, %c0_335, %c0_336], %627 {strides = array<i32>} : memref<15x8x1x128xf32, #tpu.memory_space<vmem>>, vector<1x1x1x128xf32>,
    %c11_337 = arith.constant 11 : index
    %c3_338 = arith.constant 3 : index
    %c0_339 = arith.constant 0 : index
    %c0_340 = arith.constant 0 : index
    %628 = vector.load %arg2[%c11_337, %c3_338, %c0_339, %c0_340] : memref<15x8x1x128xf32, #tpu.memory_space<vmem>>, vector<1x1x1x128xf32>
    %629 = vector.shape_cast %628 : vector<1x1x1x128xf32> to vector<1x128xf32>
    %630 = vector.shape_cast %579 : vector<1x128xf32> to vector<1x1x1x128xf32>
    tpu.vector_store %arg2[%c11_337, %c3_338, %c0_339, %c0_340], %630 {strides = array<i32>} : memref<15x8x1x128xf32, #tpu.memory_space<vmem>>, vector<1x1x1x128xf32>,
    %c12_341 = arith.constant 12 : index
    %c3_342 = arith.constant 3 : index
    %c0_343 = arith.constant 0 : index
    %c0_344 = arith.constant 0 : index
    %631 = vector.load %arg2[%c12_341, %c3_342, %c0_343, %c0_344] : memref<15x8x1x128xf32, #tpu.memory_space<vmem>>, vector<1x1x1x128xf32>
    %632 = vector.shape_cast %631 : vector<1x1x1x128xf32> to vector<1x128xf32>
    %633 = vector.shape_cast %584 : vector<1x128xf32> to vector<1x1x1x128xf32>
    tpu.vector_store %arg2[%c12_341, %c3_342, %c0_343, %c0_344], %633 {strides = array<i32>} : memref<15x8x1x128xf32, #tpu.memory_space<vmem>>, vector<1x1x1x128xf32>,
    %c13_345 = arith.constant 13 : index
    %c3_346 = arith.constant 3 : index
    %c0_347 = arith.constant 0 : index
    %c0_348 = arith.constant 0 : index
    %634 = vector.load %arg2[%c13_345, %c3_346, %c0_347, %c0_348] : memref<15x8x1x128xf32, #tpu.memory_space<vmem>>, vector<1x1x1x128xf32>
    %635 = vector.shape_cast %634 : vector<1x1x1x128xf32> to vector<1x128xf32>
    %636 = vector.shape_cast %589 : vector<1x128xf32> to vector<1x1x1x128xf32>
    tpu.vector_store %arg2[%c13_345, %c3_346, %c0_347, %c0_348], %636 {strides = array<i32>} : memref<15x8x1x128xf32, #tpu.memory_space<vmem>>, vector<1x1x1x128xf32>,
    %c14_349 = arith.constant 14 : index
    %c3_350 = arith.constant 3 : index
    %c0_351 = arith.constant 0 : index
    %c0_352 = arith.constant 0 : index
    %637 = vector.load %arg2[%c14_349, %c3_350, %c0_351, %c0_352] : memref<15x8x1x128xf32, #tpu.memory_space<vmem>>, vector<1x1x1x128xf32>
    %638 = vector.shape_cast %637 : vector<1x1x1x128xf32> to vector<1x128xf32>
    %639 = vector.shape_cast %594 : vector<1x128xf32> to vector<1x1x1x128xf32>
    tpu.vector_store %arg2[%c14_349, %c3_350, %c0_351, %c0_352], %639 {strides = array<i32>} : memref<15x8x1x128xf32, #tpu.memory_space<vmem>>, vector<1x1x1x128xf32>,
    %c0_353 = arith.constant 0 : index
    %c4_354 = arith.constant 4 : index
    %c0_355 = arith.constant 0 : index
    %c0_356 = arith.constant 0 : index
    %640 = vector.load %arg1[%c0_353, %c4_354, %c0_355, %c0_356] : memref<7x8x1x128xf32, #tpu.memory_space<vmem>>, vector<1x1x1x128xf32>
    %641 = vector.shape_cast %640 : vector<1x1x1x128xf32> to vector<1x128xf32>
    %c1_357 = arith.constant 1 : index
    %c4_358 = arith.constant 4 : index
    %c0_359 = arith.constant 0 : index
    %c0_360 = arith.constant 0 : index
    %642 = vector.load %arg1[%c1_357, %c4_358, %c0_359, %c0_360] : memref<7x8x1x128xf32, #tpu.memory_space<vmem>>, vector<1x1x1x128xf32>
    %643 = vector.shape_cast %642 : vector<1x1x1x128xf32> to vector<1x128xf32>
    %c2_361 = arith.constant 2 : index
    %c4_362 = arith.constant 4 : index
    %c0_363 = arith.constant 0 : index
    %c0_364 = arith.constant 0 : index
    %644 = vector.load %arg1[%c2_361, %c4_362, %c0_363, %c0_364] : memref<7x8x1x128xf32, #tpu.memory_space<vmem>>, vector<1x1x1x128xf32>
    %645 = vector.shape_cast %644 : vector<1x1x1x128xf32> to vector<1x128xf32>
    %c3_365 = arith.constant 3 : index
    %c4_366 = arith.constant 4 : index
    %c0_367 = arith.constant 0 : index
    %c0_368 = arith.constant 0 : index
    %646 = vector.load %arg1[%c3_365, %c4_366, %c0_367, %c0_368] : memref<7x8x1x128xf32, #tpu.memory_space<vmem>>, vector<1x1x1x128xf32>
    %647 = vector.shape_cast %646 : vector<1x1x1x128xf32> to vector<1x128xf32>
    %648 = math.cos %641 : vector<1x128xf32>
    %649 = math.sin %641 : vector<1x128xf32>
    %cst_369 = arith.constant 0.000000e+00 : f32
    %650 = vector.broadcast %cst_369 : f32 to vector<1x128xf32>
    %651 = arith.subf %650, %649 : vector<1x128xf32>
    %652 = math.cos %647 : vector<1x128xf32>
    %653 = math.sin %647 : vector<1x128xf32>
    %cst_370 = arith.constant 0.000000e+00 : f32
    %654 = vector.broadcast %cst_370 : f32 to vector<1x128xf32>
    %655 = arith.subf %654, %653 : vector<1x128xf32>
    %656 = math.cos %645 : vector<1x128xf32>
    %657 = math.sin %645 : vector<1x128xf32>
    %cst_371 = arith.constant 0.000000e+00 : f32
    %658 = vector.broadcast %cst_371 : f32 to vector<1x128xf32>
    %659 = arith.subf %658, %657 : vector<1x128xf32>
    %660 = math.cos %643 : vector<1x128xf32>
    %661 = math.sin %643 : vector<1x128xf32>
    %cst_372 = arith.constant 0.000000e+00 : f32
    %662 = vector.broadcast %cst_372 : f32 to vector<1x128xf32>
    %663 = arith.subf %662, %661 : vector<1x128xf32>
    %664 = arith.mulf %652, %656 : vector<1x128xf32>
    %665 = arith.mulf %652, %657 : vector<1x128xf32>
    %666 = arith.mulf %653, %656 : vector<1x128xf32>
    %667 = arith.mulf %653, %657 : vector<1x128xf32>
    %668 = arith.mulf %655, %660 : vector<1x128xf32>
    %669 = arith.mulf %665, %661 : vector<1x128xf32>
    %670 = arith.addf %668, %669 : vector<1x128xf32>
    %671 = arith.mulf %655, %663 : vector<1x128xf32>
    %672 = arith.mulf %665, %660 : vector<1x128xf32>
    %673 = arith.addf %671, %672 : vector<1x128xf32>
    %674 = arith.mulf %652, %660 : vector<1x128xf32>
    %675 = arith.mulf %667, %661 : vector<1x128xf32>
    %676 = arith.addf %674, %675 : vector<1x128xf32>
    %677 = arith.mulf %652, %663 : vector<1x128xf32>
    %678 = arith.mulf %667, %660 : vector<1x128xf32>
    %679 = arith.addf %677, %678 : vector<1x128xf32>
    %680 = arith.mulf %656, %661 : vector<1x128xf32>
    %681 = arith.mulf %656, %660 : vector<1x128xf32>
    %682 = arith.mulf %664, %648 : vector<1x128xf32>
    %683 = arith.mulf %670, %649 : vector<1x128xf32>
    %684 = arith.addf %682, %683 : vector<1x128xf32>
    %685 = arith.mulf %664, %651 : vector<1x128xf32>
    %686 = arith.mulf %670, %648 : vector<1x128xf32>
    %687 = arith.addf %685, %686 : vector<1x128xf32>
    %688 = arith.mulf %666, %648 : vector<1x128xf32>
    %689 = arith.mulf %676, %649 : vector<1x128xf32>
    %690 = arith.addf %688, %689 : vector<1x128xf32>
    %691 = arith.mulf %666, %651 : vector<1x128xf32>
    %692 = arith.mulf %676, %648 : vector<1x128xf32>
    %693 = arith.addf %691, %692 : vector<1x128xf32>
    %694 = arith.mulf %659, %648 : vector<1x128xf32>
    %695 = arith.mulf %680, %649 : vector<1x128xf32>
    %696 = arith.addf %694, %695 : vector<1x128xf32>
    %697 = arith.mulf %659, %651 : vector<1x128xf32>
    %698 = arith.mulf %680, %648 : vector<1x128xf32>
    %699 = arith.addf %697, %698 : vector<1x128xf32>
    %c4_373 = arith.constant 4 : index
    %c4_374 = arith.constant 4 : index
    %c0_375 = arith.constant 0 : index
    %c0_376 = arith.constant 0 : index
    %700 = vector.load %arg1[%c4_373, %c4_374, %c0_375, %c0_376] : memref<7x8x1x128xf32, #tpu.memory_space<vmem>>, vector<1x1x1x128xf32>
    %701 = vector.shape_cast %700 : vector<1x1x1x128xf32> to vector<1x128xf32>
    %c5_377 = arith.constant 5 : index
    %c4_378 = arith.constant 4 : index
    %c0_379 = arith.constant 0 : index
    %c0_380 = arith.constant 0 : index
    %702 = vector.load %arg1[%c5_377, %c4_378, %c0_379, %c0_380] : memref<7x8x1x128xf32, #tpu.memory_space<vmem>>, vector<1x1x1x128xf32>
    %703 = vector.shape_cast %702 : vector<1x1x1x128xf32> to vector<1x128xf32>
    %c6_381 = arith.constant 6 : index
    %c4_382 = arith.constant 4 : index
    %c0_383 = arith.constant 0 : index
    %c0_384 = arith.constant 0 : index
    %704 = vector.load %arg1[%c6_381, %c4_382, %c0_383, %c0_384] : memref<7x8x1x128xf32, #tpu.memory_space<vmem>>, vector<1x1x1x128xf32>
    %705 = vector.shape_cast %704 : vector<1x1x1x128xf32> to vector<1x128xf32>
    %706 = arith.mulf %554, %701 : vector<1x128xf32>
    %707 = arith.mulf %559, %703 : vector<1x128xf32>
    %708 = arith.addf %706, %707 : vector<1x128xf32>
    %709 = arith.mulf %564, %705 : vector<1x128xf32>
    %710 = arith.addf %708, %709 : vector<1x128xf32>
    %711 = arith.mulf %569, %701 : vector<1x128xf32>
    %712 = arith.mulf %574, %703 : vector<1x128xf32>
    %713 = arith.addf %711, %712 : vector<1x128xf32>
    %714 = arith.mulf %579, %705 : vector<1x128xf32>
    %715 = arith.addf %713, %714 : vector<1x128xf32>
    %716 = arith.mulf %584, %701 : vector<1x128xf32>
    %717 = arith.mulf %589, %703 : vector<1x128xf32>
    %718 = arith.addf %716, %717 : vector<1x128xf32>
    %719 = arith.mulf %594, %705 : vector<1x128xf32>
    %720 = arith.addf %718, %719 : vector<1x128xf32>
    %721 = arith.addf %710, %544 : vector<1x128xf32>
    %722 = arith.addf %715, %545 : vector<1x128xf32>
    %723 = arith.addf %720, %546 : vector<1x128xf32>
    %724 = arith.addf %710, %547 : vector<1x128xf32>
    %725 = arith.addf %715, %548 : vector<1x128xf32>
    %726 = arith.addf %720, %549 : vector<1x128xf32>
    %727 = arith.mulf %554, %684 : vector<1x128xf32>
    %728 = arith.mulf %559, %690 : vector<1x128xf32>
    %729 = arith.addf %727, %728 : vector<1x128xf32>
    %730 = arith.mulf %564, %696 : vector<1x128xf32>
    %731 = arith.addf %729, %730 : vector<1x128xf32>
    %732 = arith.mulf %554, %687 : vector<1x128xf32>
    %733 = arith.mulf %559, %693 : vector<1x128xf32>
    %734 = arith.addf %732, %733 : vector<1x128xf32>
    %735 = arith.mulf %564, %699 : vector<1x128xf32>
    %736 = arith.addf %734, %735 : vector<1x128xf32>
    %737 = arith.mulf %554, %673 : vector<1x128xf32>
    %738 = arith.mulf %559, %679 : vector<1x128xf32>
    %739 = arith.addf %737, %738 : vector<1x128xf32>
    %740 = arith.mulf %564, %681 : vector<1x128xf32>
    %741 = arith.addf %739, %740 : vector<1x128xf32>
    %742 = arith.mulf %569, %684 : vector<1x128xf32>
    %743 = arith.mulf %574, %690 : vector<1x128xf32>
    %744 = arith.addf %742, %743 : vector<1x128xf32>
    %745 = arith.mulf %579, %696 : vector<1x128xf32>
    %746 = arith.addf %744, %745 : vector<1x128xf32>
    %747 = arith.mulf %569, %687 : vector<1x128xf32>
    %748 = arith.mulf %574, %693 : vector<1x128xf32>
    %749 = arith.addf %747, %748 : vector<1x128xf32>
    %750 = arith.mulf %579, %699 : vector<1x128xf32>
    %751 = arith.addf %749, %750 : vector<1x128xf32>
    %752 = arith.mulf %569, %673 : vector<1x128xf32>
    %753 = arith.mulf %574, %679 : vector<1x128xf32>
    %754 = arith.addf %752, %753 : vector<1x128xf32>
    %755 = arith.mulf %579, %681 : vector<1x128xf32>
    %756 = arith.addf %754, %755 : vector<1x128xf32>
    %757 = arith.mulf %584, %684 : vector<1x128xf32>
    %758 = arith.mulf %589, %690 : vector<1x128xf32>
    %759 = arith.addf %757, %758 : vector<1x128xf32>
    %760 = arith.mulf %594, %696 : vector<1x128xf32>
    %761 = arith.addf %759, %760 : vector<1x128xf32>
    %762 = arith.mulf %584, %687 : vector<1x128xf32>
    %763 = arith.mulf %589, %693 : vector<1x128xf32>
    %764 = arith.addf %762, %763 : vector<1x128xf32>
    %765 = arith.mulf %594, %699 : vector<1x128xf32>
    %766 = arith.addf %764, %765 : vector<1x128xf32>
    %767 = arith.mulf %584, %673 : vector<1x128xf32>
    %768 = arith.mulf %589, %679 : vector<1x128xf32>
    %769 = arith.addf %767, %768 : vector<1x128xf32>
    %770 = arith.mulf %594, %681 : vector<1x128xf32>
    %771 = arith.addf %769, %770 : vector<1x128xf32>
    %c0_385 = arith.constant 0 : index
    %c4_386 = arith.constant 4 : index
    %c0_387 = arith.constant 0 : index
    %c0_388 = arith.constant 0 : index
    %772 = vector.load %arg2[%c0_385, %c4_386, %c0_387, %c0_388] : memref<15x8x1x128xf32, #tpu.memory_space<vmem>>, vector<1x1x1x128xf32>
    %773 = vector.shape_cast %772 : vector<1x1x1x128xf32> to vector<1x128xf32>
    %774 = vector.shape_cast %721 : vector<1x128xf32> to vector<1x1x1x128xf32>
    tpu.vector_store %arg2[%c0_385, %c4_386, %c0_387, %c0_388], %774 {strides = array<i32>} : memref<15x8x1x128xf32, #tpu.memory_space<vmem>>, vector<1x1x1x128xf32>,
    %c3_389 = arith.constant 3 : index
    %c4_390 = arith.constant 4 : index
    %c0_391 = arith.constant 0 : index
    %c0_392 = arith.constant 0 : index
    %775 = vector.load %arg2[%c3_389, %c4_390, %c0_391, %c0_392] : memref<15x8x1x128xf32, #tpu.memory_space<vmem>>, vector<1x1x1x128xf32>
    %776 = vector.shape_cast %775 : vector<1x1x1x128xf32> to vector<1x128xf32>
    %777 = vector.shape_cast %724 : vector<1x128xf32> to vector<1x1x1x128xf32>
    tpu.vector_store %arg2[%c3_389, %c4_390, %c0_391, %c0_392], %777 {strides = array<i32>} : memref<15x8x1x128xf32, #tpu.memory_space<vmem>>, vector<1x1x1x128xf32>,
    %c1_393 = arith.constant 1 : index
    %c4_394 = arith.constant 4 : index
    %c0_395 = arith.constant 0 : index
    %c0_396 = arith.constant 0 : index
    %778 = vector.load %arg2[%c1_393, %c4_394, %c0_395, %c0_396] : memref<15x8x1x128xf32, #tpu.memory_space<vmem>>, vector<1x1x1x128xf32>
    %779 = vector.shape_cast %778 : vector<1x1x1x128xf32> to vector<1x128xf32>
    %780 = vector.shape_cast %722 : vector<1x128xf32> to vector<1x1x1x128xf32>
    tpu.vector_store %arg2[%c1_393, %c4_394, %c0_395, %c0_396], %780 {strides = array<i32>} : memref<15x8x1x128xf32, #tpu.memory_space<vmem>>, vector<1x1x1x128xf32>,
    %c4_397 = arith.constant 4 : index
    %c4_398 = arith.constant 4 : index
    %c0_399 = arith.constant 0 : index
    %c0_400 = arith.constant 0 : index
    %781 = vector.load %arg2[%c4_397, %c4_398, %c0_399, %c0_400] : memref<15x8x1x128xf32, #tpu.memory_space<vmem>>, vector<1x1x1x128xf32>
    %782 = vector.shape_cast %781 : vector<1x1x1x128xf32> to vector<1x128xf32>
    %783 = vector.shape_cast %725 : vector<1x128xf32> to vector<1x1x1x128xf32>
    tpu.vector_store %arg2[%c4_397, %c4_398, %c0_399, %c0_400], %783 {strides = array<i32>} : memref<15x8x1x128xf32, #tpu.memory_space<vmem>>, vector<1x1x1x128xf32>,
    %c2_401 = arith.constant 2 : index
    %c4_402 = arith.constant 4 : index
    %c0_403 = arith.constant 0 : index
    %c0_404 = arith.constant 0 : index
    %784 = vector.load %arg2[%c2_401, %c4_402, %c0_403, %c0_404] : memref<15x8x1x128xf32, #tpu.memory_space<vmem>>, vector<1x1x1x128xf32>
    %785 = vector.shape_cast %784 : vector<1x1x1x128xf32> to vector<1x128xf32>
    %786 = vector.shape_cast %723 : vector<1x128xf32> to vector<1x1x1x128xf32>
    tpu.vector_store %arg2[%c2_401, %c4_402, %c0_403, %c0_404], %786 {strides = array<i32>} : memref<15x8x1x128xf32, #tpu.memory_space<vmem>>, vector<1x1x1x128xf32>,
    %c5_405 = arith.constant 5 : index
    %c4_406 = arith.constant 4 : index
    %c0_407 = arith.constant 0 : index
    %c0_408 = arith.constant 0 : index
    %787 = vector.load %arg2[%c5_405, %c4_406, %c0_407, %c0_408] : memref<15x8x1x128xf32, #tpu.memory_space<vmem>>, vector<1x1x1x128xf32>
    %788 = vector.shape_cast %787 : vector<1x1x1x128xf32> to vector<1x128xf32>
    %789 = vector.shape_cast %726 : vector<1x128xf32> to vector<1x1x1x128xf32>
    tpu.vector_store %arg2[%c5_405, %c4_406, %c0_407, %c0_408], %789 {strides = array<i32>} : memref<15x8x1x128xf32, #tpu.memory_space<vmem>>, vector<1x1x1x128xf32>,
    %c6_409 = arith.constant 6 : index
    %c4_410 = arith.constant 4 : index
    %c0_411 = arith.constant 0 : index
    %c0_412 = arith.constant 0 : index
    %790 = vector.load %arg2[%c6_409, %c4_410, %c0_411, %c0_412] : memref<15x8x1x128xf32, #tpu.memory_space<vmem>>, vector<1x1x1x128xf32>
    %791 = vector.shape_cast %790 : vector<1x1x1x128xf32> to vector<1x128xf32>
    %792 = vector.shape_cast %731 : vector<1x128xf32> to vector<1x1x1x128xf32>
    tpu.vector_store %arg2[%c6_409, %c4_410, %c0_411, %c0_412], %792 {strides = array<i32>} : memref<15x8x1x128xf32, #tpu.memory_space<vmem>>, vector<1x1x1x128xf32>,
    %c7_413 = arith.constant 7 : index
    %c4_414 = arith.constant 4 : index
    %c0_415 = arith.constant 0 : index
    %c0_416 = arith.constant 0 : index
    %793 = vector.load %arg2[%c7_413, %c4_414, %c0_415, %c0_416] : memref<15x8x1x128xf32, #tpu.memory_space<vmem>>, vector<1x1x1x128xf32>
    %794 = vector.shape_cast %793 : vector<1x1x1x128xf32> to vector<1x128xf32>
    %795 = vector.shape_cast %736 : vector<1x128xf32> to vector<1x1x1x128xf32>
    tpu.vector_store %arg2[%c7_413, %c4_414, %c0_415, %c0_416], %795 {strides = array<i32>} : memref<15x8x1x128xf32, #tpu.memory_space<vmem>>, vector<1x1x1x128xf32>,
    %c8_417 = arith.constant 8 : index
    %c4_418 = arith.constant 4 : index
    %c0_419 = arith.constant 0 : index
    %c0_420 = arith.constant 0 : index
    %796 = vector.load %arg2[%c8_417, %c4_418, %c0_419, %c0_420] : memref<15x8x1x128xf32, #tpu.memory_space<vmem>>, vector<1x1x1x128xf32>
    %797 = vector.shape_cast %796 : vector<1x1x1x128xf32> to vector<1x128xf32>
    %798 = vector.shape_cast %741 : vector<1x128xf32> to vector<1x1x1x128xf32>
    tpu.vector_store %arg2[%c8_417, %c4_418, %c0_419, %c0_420], %798 {strides = array<i32>} : memref<15x8x1x128xf32, #tpu.memory_space<vmem>>, vector<1x1x1x128xf32>,
    %c9_421 = arith.constant 9 : index
    %c4_422 = arith.constant 4 : index
    %c0_423 = arith.constant 0 : index
    %c0_424 = arith.constant 0 : index
    %799 = vector.load %arg2[%c9_421, %c4_422, %c0_423, %c0_424] : memref<15x8x1x128xf32, #tpu.memory_space<vmem>>, vector<1x1x1x128xf32>
    %800 = vector.shape_cast %799 : vector<1x1x1x128xf32> to vector<1x128xf32>
    %801 = vector.shape_cast %746 : vector<1x128xf32> to vector<1x1x1x128xf32>
    tpu.vector_store %arg2[%c9_421, %c4_422, %c0_423, %c0_424], %801 {strides = array<i32>} : memref<15x8x1x128xf32, #tpu.memory_space<vmem>>, vector<1x1x1x128xf32>,
    %c10_425 = arith.constant 10 : index
    %c4_426 = arith.constant 4 : index
    %c0_427 = arith.constant 0 : index
    %c0_428 = arith.constant 0 : index
    %802 = vector.load %arg2[%c10_425, %c4_426, %c0_427, %c0_428] : memref<15x8x1x128xf32, #tpu.memory_space<vmem>>, vector<1x1x1x128xf32>
    %803 = vector.shape_cast %802 : vector<1x1x1x128xf32> to vector<1x128xf32>
    %804 = vector.shape_cast %751 : vector<1x128xf32> to vector<1x1x1x128xf32>
    tpu.vector_store %arg2[%c10_425, %c4_426, %c0_427, %c0_428], %804 {strides = array<i32>} : memref<15x8x1x128xf32, #tpu.memory_space<vmem>>, vector<1x1x1x128xf32>,
    %c11_429 = arith.constant 11 : index
    %c4_430 = arith.constant 4 : index
    %c0_431 = arith.constant 0 : index
    %c0_432 = arith.constant 0 : index
    %805 = vector.load %arg2[%c11_429, %c4_430, %c0_431, %c0_432] : memref<15x8x1x128xf32, #tpu.memory_space<vmem>>, vector<1x1x1x128xf32>
    %806 = vector.shape_cast %805 : vector<1x1x1x128xf32> to vector<1x128xf32>
    %807 = vector.shape_cast %756 : vector<1x128xf32> to vector<1x1x1x128xf32>
    tpu.vector_store %arg2[%c11_429, %c4_430, %c0_431, %c0_432], %807 {strides = array<i32>} : memref<15x8x1x128xf32, #tpu.memory_space<vmem>>, vector<1x1x1x128xf32>,
    %c12_433 = arith.constant 12 : index
    %c4_434 = arith.constant 4 : index
    %c0_435 = arith.constant 0 : index
    %c0_436 = arith.constant 0 : index
    %808 = vector.load %arg2[%c12_433, %c4_434, %c0_435, %c0_436] : memref<15x8x1x128xf32, #tpu.memory_space<vmem>>, vector<1x1x1x128xf32>
    %809 = vector.shape_cast %808 : vector<1x1x1x128xf32> to vector<1x128xf32>
    %810 = vector.shape_cast %761 : vector<1x128xf32> to vector<1x1x1x128xf32>
    tpu.vector_store %arg2[%c12_433, %c4_434, %c0_435, %c0_436], %810 {strides = array<i32>} : memref<15x8x1x128xf32, #tpu.memory_space<vmem>>, vector<1x1x1x128xf32>,
    %c13_437 = arith.constant 13 : index
    %c4_438 = arith.constant 4 : index
    %c0_439 = arith.constant 0 : index
    %c0_440 = arith.constant 0 : index
    %811 = vector.load %arg2[%c13_437, %c4_438, %c0_439, %c0_440] : memref<15x8x1x128xf32, #tpu.memory_space<vmem>>, vector<1x1x1x128xf32>
    %812 = vector.shape_cast %811 : vector<1x1x1x128xf32> to vector<1x128xf32>
    %813 = vector.shape_cast %766 : vector<1x128xf32> to vector<1x1x1x128xf32>
    tpu.vector_store %arg2[%c13_437, %c4_438, %c0_439, %c0_440], %813 {strides = array<i32>} : memref<15x8x1x128xf32, #tpu.memory_space<vmem>>, vector<1x1x1x128xf32>,
    %c14_441 = arith.constant 14 : index
    %c4_442 = arith.constant 4 : index
    %c0_443 = arith.constant 0 : index
    %c0_444 = arith.constant 0 : index
    %814 = vector.load %arg2[%c14_441, %c4_442, %c0_443, %c0_444] : memref<15x8x1x128xf32, #tpu.memory_space<vmem>>, vector<1x1x1x128xf32>
    %815 = vector.shape_cast %814 : vector<1x1x1x128xf32> to vector<1x128xf32>
    %816 = vector.shape_cast %771 : vector<1x128xf32> to vector<1x1x1x128xf32>
    tpu.vector_store %arg2[%c14_441, %c4_442, %c0_443, %c0_444], %816 {strides = array<i32>} : memref<15x8x1x128xf32, #tpu.memory_space<vmem>>, vector<1x1x1x128xf32>,
    %c0_445 = arith.constant 0 : index
    %c5_446 = arith.constant 5 : index
    %c0_447 = arith.constant 0 : index
    %c0_448 = arith.constant 0 : index
    %817 = vector.load %arg1[%c0_445, %c5_446, %c0_447, %c0_448] : memref<7x8x1x128xf32, #tpu.memory_space<vmem>>, vector<1x1x1x128xf32>
    %818 = vector.shape_cast %817 : vector<1x1x1x128xf32> to vector<1x128xf32>
    %c1_449 = arith.constant 1 : index
    %c5_450 = arith.constant 5 : index
    %c0_451 = arith.constant 0 : index
    %c0_452 = arith.constant 0 : index
    %819 = vector.load %arg1[%c1_449, %c5_450, %c0_451, %c0_452] : memref<7x8x1x128xf32, #tpu.memory_space<vmem>>, vector<1x1x1x128xf32>
    %820 = vector.shape_cast %819 : vector<1x1x1x128xf32> to vector<1x128xf32>
    %c2_453 = arith.constant 2 : index
    %c5_454 = arith.constant 5 : index
    %c0_455 = arith.constant 0 : index
    %c0_456 = arith.constant 0 : index
    %821 = vector.load %arg1[%c2_453, %c5_454, %c0_455, %c0_456] : memref<7x8x1x128xf32, #tpu.memory_space<vmem>>, vector<1x1x1x128xf32>
    %822 = vector.shape_cast %821 : vector<1x1x1x128xf32> to vector<1x128xf32>
    %c3_457 = arith.constant 3 : index
    %c5_458 = arith.constant 5 : index
    %c0_459 = arith.constant 0 : index
    %c0_460 = arith.constant 0 : index
    %823 = vector.load %arg1[%c3_457, %c5_458, %c0_459, %c0_460] : memref<7x8x1x128xf32, #tpu.memory_space<vmem>>, vector<1x1x1x128xf32>
    %824 = vector.shape_cast %823 : vector<1x1x1x128xf32> to vector<1x128xf32>
    %825 = math.cos %818 : vector<1x128xf32>
    %826 = math.sin %818 : vector<1x128xf32>
    %cst_461 = arith.constant 0.000000e+00 : f32
    %827 = vector.broadcast %cst_461 : f32 to vector<1x128xf32>
    %828 = arith.subf %827, %826 : vector<1x128xf32>
    %829 = math.cos %824 : vector<1x128xf32>
    %830 = math.sin %824 : vector<1x128xf32>
    %cst_462 = arith.constant 0.000000e+00 : f32
    %831 = vector.broadcast %cst_462 : f32 to vector<1x128xf32>
    %832 = arith.subf %831, %830 : vector<1x128xf32>
    %833 = math.cos %822 : vector<1x128xf32>
    %834 = math.sin %822 : vector<1x128xf32>
    %cst_463 = arith.constant 0.000000e+00 : f32
    %835 = vector.broadcast %cst_463 : f32 to vector<1x128xf32>
    %836 = arith.subf %835, %834 : vector<1x128xf32>
    %837 = math.cos %820 : vector<1x128xf32>
    %838 = math.sin %820 : vector<1x128xf32>
    %cst_464 = arith.constant 0.000000e+00 : f32
    %839 = vector.broadcast %cst_464 : f32 to vector<1x128xf32>
    %840 = arith.subf %839, %838 : vector<1x128xf32>
    %841 = arith.mulf %829, %833 : vector<1x128xf32>
    %842 = arith.mulf %829, %834 : vector<1x128xf32>
    %843 = arith.mulf %830, %833 : vector<1x128xf32>
    %844 = arith.mulf %830, %834 : vector<1x128xf32>
    %845 = arith.mulf %832, %837 : vector<1x128xf32>
    %846 = arith.mulf %842, %838 : vector<1x128xf32>
    %847 = arith.addf %845, %846 : vector<1x128xf32>
    %848 = arith.mulf %832, %840 : vector<1x128xf32>
    %849 = arith.mulf %842, %837 : vector<1x128xf32>
    %850 = arith.addf %848, %849 : vector<1x128xf32>
    %851 = arith.mulf %829, %837 : vector<1x128xf32>
    %852 = arith.mulf %844, %838 : vector<1x128xf32>
    %853 = arith.addf %851, %852 : vector<1x128xf32>
    %854 = arith.mulf %829, %840 : vector<1x128xf32>
    %855 = arith.mulf %844, %837 : vector<1x128xf32>
    %856 = arith.addf %854, %855 : vector<1x128xf32>
    %857 = arith.mulf %833, %838 : vector<1x128xf32>
    %858 = arith.mulf %833, %837 : vector<1x128xf32>
    %859 = arith.mulf %841, %825 : vector<1x128xf32>
    %860 = arith.mulf %847, %826 : vector<1x128xf32>
    %861 = arith.addf %859, %860 : vector<1x128xf32>
    %862 = arith.mulf %841, %828 : vector<1x128xf32>
    %863 = arith.mulf %847, %825 : vector<1x128xf32>
    %864 = arith.addf %862, %863 : vector<1x128xf32>
    %865 = arith.mulf %843, %825 : vector<1x128xf32>
    %866 = arith.mulf %853, %826 : vector<1x128xf32>
    %867 = arith.addf %865, %866 : vector<1x128xf32>
    %868 = arith.mulf %843, %828 : vector<1x128xf32>
    %869 = arith.mulf %853, %825 : vector<1x128xf32>
    %870 = arith.addf %868, %869 : vector<1x128xf32>
    %871 = arith.mulf %836, %825 : vector<1x128xf32>
    %872 = arith.mulf %857, %826 : vector<1x128xf32>
    %873 = arith.addf %871, %872 : vector<1x128xf32>
    %874 = arith.mulf %836, %828 : vector<1x128xf32>
    %875 = arith.mulf %857, %825 : vector<1x128xf32>
    %876 = arith.addf %874, %875 : vector<1x128xf32>
    %c4_465 = arith.constant 4 : index
    %c5_466 = arith.constant 5 : index
    %c0_467 = arith.constant 0 : index
    %c0_468 = arith.constant 0 : index
    %877 = vector.load %arg1[%c4_465, %c5_466, %c0_467, %c0_468] : memref<7x8x1x128xf32, #tpu.memory_space<vmem>>, vector<1x1x1x128xf32>
    %878 = vector.shape_cast %877 : vector<1x1x1x128xf32> to vector<1x128xf32>
    %c5_469 = arith.constant 5 : index
    %c5_470 = arith.constant 5 : index
    %c0_471 = arith.constant 0 : index
    %c0_472 = arith.constant 0 : index
    %879 = vector.load %arg1[%c5_469, %c5_470, %c0_471, %c0_472] : memref<7x8x1x128xf32, #tpu.memory_space<vmem>>, vector<1x1x1x128xf32>
    %880 = vector.shape_cast %879 : vector<1x1x1x128xf32> to vector<1x128xf32>
    %c6_473 = arith.constant 6 : index
    %c5_474 = arith.constant 5 : index
    %c0_475 = arith.constant 0 : index
    %c0_476 = arith.constant 0 : index
    %881 = vector.load %arg1[%c6_473, %c5_474, %c0_475, %c0_476] : memref<7x8x1x128xf32, #tpu.memory_space<vmem>>, vector<1x1x1x128xf32>
    %882 = vector.shape_cast %881 : vector<1x1x1x128xf32> to vector<1x128xf32>
    %883 = arith.mulf %45, %878 : vector<1x128xf32>
    %884 = arith.mulf %48, %880 : vector<1x128xf32>
    %885 = arith.addf %883, %884 : vector<1x128xf32>
    %886 = arith.mulf %34, %882 : vector<1x128xf32>
    %887 = arith.addf %885, %886 : vector<1x128xf32>
    %888 = arith.mulf %51, %878 : vector<1x128xf32>
    %889 = arith.mulf %54, %880 : vector<1x128xf32>
    %890 = arith.addf %888, %889 : vector<1x128xf32>
    %891 = arith.mulf %40, %882 : vector<1x128xf32>
    %892 = arith.addf %890, %891 : vector<1x128xf32>
    %893 = arith.mulf %57, %878 : vector<1x128xf32>
    %894 = arith.mulf %60, %880 : vector<1x128xf32>
    %895 = arith.addf %893, %894 : vector<1x128xf32>
    %896 = arith.mulf %42, %882 : vector<1x128xf32>
    %897 = arith.addf %895, %896 : vector<1x128xf32>
    %898 = arith.addf %887, %62 : vector<1x128xf32>
    %899 = arith.addf %892, %64 : vector<1x128xf32>
    %900 = arith.addf %897, %66 : vector<1x128xf32>
    %901 = arith.mulf %45, %861 : vector<1x128xf32>
    %902 = arith.mulf %48, %867 : vector<1x128xf32>
    %903 = arith.addf %901, %902 : vector<1x128xf32>
    %904 = arith.mulf %34, %873 : vector<1x128xf32>
    %905 = arith.addf %903, %904 : vector<1x128xf32>
    %906 = arith.mulf %45, %864 : vector<1x128xf32>
    %907 = arith.mulf %48, %870 : vector<1x128xf32>
    %908 = arith.addf %906, %907 : vector<1x128xf32>
    %909 = arith.mulf %34, %876 : vector<1x128xf32>
    %910 = arith.addf %908, %909 : vector<1x128xf32>
    %911 = arith.mulf %45, %850 : vector<1x128xf32>
    %912 = arith.mulf %48, %856 : vector<1x128xf32>
    %913 = arith.addf %911, %912 : vector<1x128xf32>
    %914 = arith.mulf %34, %858 : vector<1x128xf32>
    %915 = arith.addf %913, %914 : vector<1x128xf32>
    %916 = arith.mulf %51, %861 : vector<1x128xf32>
    %917 = arith.mulf %54, %867 : vector<1x128xf32>
    %918 = arith.addf %916, %917 : vector<1x128xf32>
    %919 = arith.mulf %40, %873 : vector<1x128xf32>
    %920 = arith.addf %918, %919 : vector<1x128xf32>
    %921 = arith.mulf %51, %864 : vector<1x128xf32>
    %922 = arith.mulf %54, %870 : vector<1x128xf32>
    %923 = arith.addf %921, %922 : vector<1x128xf32>
    %924 = arith.mulf %40, %876 : vector<1x128xf32>
    %925 = arith.addf %923, %924 : vector<1x128xf32>
    %926 = arith.mulf %51, %850 : vector<1x128xf32>
    %927 = arith.mulf %54, %856 : vector<1x128xf32>
    %928 = arith.addf %926, %927 : vector<1x128xf32>
    %929 = arith.mulf %40, %858 : vector<1x128xf32>
    %930 = arith.addf %928, %929 : vector<1x128xf32>
    %931 = arith.mulf %57, %861 : vector<1x128xf32>
    %932 = arith.mulf %60, %867 : vector<1x128xf32>
    %933 = arith.addf %931, %932 : vector<1x128xf32>
    %934 = arith.mulf %42, %873 : vector<1x128xf32>
    %935 = arith.addf %933, %934 : vector<1x128xf32>
    %936 = arith.mulf %57, %864 : vector<1x128xf32>
    %937 = arith.mulf %60, %870 : vector<1x128xf32>
    %938 = arith.addf %936, %937 : vector<1x128xf32>
    %939 = arith.mulf %42, %876 : vector<1x128xf32>
    %940 = arith.addf %938, %939 : vector<1x128xf32>
    %941 = arith.mulf %57, %850 : vector<1x128xf32>
    %942 = arith.mulf %60, %856 : vector<1x128xf32>
    %943 = arith.addf %941, %942 : vector<1x128xf32>
    %944 = arith.mulf %42, %858 : vector<1x128xf32>
    %945 = arith.addf %943, %944 : vector<1x128xf32>
    %c0_477 = arith.constant 0 : index
    %c5_478 = arith.constant 5 : index
    %c0_479 = arith.constant 0 : index
    %c0_480 = arith.constant 0 : index
    %946 = vector.load %arg2[%c0_477, %c5_478, %c0_479, %c0_480] : memref<15x8x1x128xf32, #tpu.memory_space<vmem>>, vector<1x1x1x128xf32>
    %947 = vector.shape_cast %946 : vector<1x1x1x128xf32> to vector<1x128xf32>
    %948 = vector.shape_cast %887 : vector<1x128xf32> to vector<1x1x1x128xf32>
    tpu.vector_store %arg2[%c0_477, %c5_478, %c0_479, %c0_480], %948 {strides = array<i32>} : memref<15x8x1x128xf32, #tpu.memory_space<vmem>>, vector<1x1x1x128xf32>,
    %c3_481 = arith.constant 3 : index
    %c5_482 = arith.constant 5 : index
    %c0_483 = arith.constant 0 : index
    %c0_484 = arith.constant 0 : index
    %949 = vector.load %arg2[%c3_481, %c5_482, %c0_483, %c0_484] : memref<15x8x1x128xf32, #tpu.memory_space<vmem>>, vector<1x1x1x128xf32>
    %950 = vector.shape_cast %949 : vector<1x1x1x128xf32> to vector<1x128xf32>
    %951 = vector.shape_cast %898 : vector<1x128xf32> to vector<1x1x1x128xf32>
    tpu.vector_store %arg2[%c3_481, %c5_482, %c0_483, %c0_484], %951 {strides = array<i32>} : memref<15x8x1x128xf32, #tpu.memory_space<vmem>>, vector<1x1x1x128xf32>,
    %c1_485 = arith.constant 1 : index
    %c5_486 = arith.constant 5 : index
    %c0_487 = arith.constant 0 : index
    %c0_488 = arith.constant 0 : index
    %952 = vector.load %arg2[%c1_485, %c5_486, %c0_487, %c0_488] : memref<15x8x1x128xf32, #tpu.memory_space<vmem>>, vector<1x1x1x128xf32>
    %953 = vector.shape_cast %952 : vector<1x1x1x128xf32> to vector<1x128xf32>
    %954 = vector.shape_cast %892 : vector<1x128xf32> to vector<1x1x1x128xf32>
    tpu.vector_store %arg2[%c1_485, %c5_486, %c0_487, %c0_488], %954 {strides = array<i32>} : memref<15x8x1x128xf32, #tpu.memory_space<vmem>>, vector<1x1x1x128xf32>,
    %c4_489 = arith.constant 4 : index
    %c5_490 = arith.constant 5 : index
    %c0_491 = arith.constant 0 : index
    %c0_492 = arith.constant 0 : index
    %955 = vector.load %arg2[%c4_489, %c5_490, %c0_491, %c0_492] : memref<15x8x1x128xf32, #tpu.memory_space<vmem>>, vector<1x1x1x128xf32>
    %956 = vector.shape_cast %955 : vector<1x1x1x128xf32> to vector<1x128xf32>
    %957 = vector.shape_cast %899 : vector<1x128xf32> to vector<1x1x1x128xf32>
    tpu.vector_store %arg2[%c4_489, %c5_490, %c0_491, %c0_492], %957 {strides = array<i32>} : memref<15x8x1x128xf32, #tpu.memory_space<vmem>>, vector<1x1x1x128xf32>,
    %c2_493 = arith.constant 2 : index
    %c5_494 = arith.constant 5 : index
    %c0_495 = arith.constant 0 : index
    %c0_496 = arith.constant 0 : index
    %958 = vector.load %arg2[%c2_493, %c5_494, %c0_495, %c0_496] : memref<15x8x1x128xf32, #tpu.memory_space<vmem>>, vector<1x1x1x128xf32>
    %959 = vector.shape_cast %958 : vector<1x1x1x128xf32> to vector<1x128xf32>
    %960 = vector.shape_cast %897 : vector<1x128xf32> to vector<1x1x1x128xf32>
    tpu.vector_store %arg2[%c2_493, %c5_494, %c0_495, %c0_496], %960 {strides = array<i32>} : memref<15x8x1x128xf32, #tpu.memory_space<vmem>>, vector<1x1x1x128xf32>,
    %c5_497 = arith.constant 5 : index
    %c5_498 = arith.constant 5 : index
    %c0_499 = arith.constant 0 : index
    %c0_500 = arith.constant 0 : index
    %961 = vector.load %arg2[%c5_497, %c5_498, %c0_499, %c0_500] : memref<15x8x1x128xf32, #tpu.memory_space<vmem>>, vector<1x1x1x128xf32>
    %962 = vector.shape_cast %961 : vector<1x1x1x128xf32> to vector<1x128xf32>
    %963 = vector.shape_cast %900 : vector<1x128xf32> to vector<1x1x1x128xf32>
    tpu.vector_store %arg2[%c5_497, %c5_498, %c0_499, %c0_500], %963 {strides = array<i32>} : memref<15x8x1x128xf32, #tpu.memory_space<vmem>>, vector<1x1x1x128xf32>,
    %c6_501 = arith.constant 6 : index
    %c5_502 = arith.constant 5 : index
    %c0_503 = arith.constant 0 : index
    %c0_504 = arith.constant 0 : index
    %964 = vector.load %arg2[%c6_501, %c5_502, %c0_503, %c0_504] : memref<15x8x1x128xf32, #tpu.memory_space<vmem>>, vector<1x1x1x128xf32>
    %965 = vector.shape_cast %964 : vector<1x1x1x128xf32> to vector<1x128xf32>
    %966 = vector.shape_cast %905 : vector<1x128xf32> to vector<1x1x1x128xf32>
    tpu.vector_store %arg2[%c6_501, %c5_502, %c0_503, %c0_504], %966 {strides = array<i32>} : memref<15x8x1x128xf32, #tpu.memory_space<vmem>>, vector<1x1x1x128xf32>,
    %c7_505 = arith.constant 7 : index
    %c5_506 = arith.constant 5 : index
    %c0_507 = arith.constant 0 : index
    %c0_508 = arith.constant 0 : index
    %967 = vector.load %arg2[%c7_505, %c5_506, %c0_507, %c0_508] : memref<15x8x1x128xf32, #tpu.memory_space<vmem>>, vector<1x1x1x128xf32>
    %968 = vector.shape_cast %967 : vector<1x1x1x128xf32> to vector<1x128xf32>
    %969 = vector.shape_cast %910 : vector<1x128xf32> to vector<1x1x1x128xf32>
    tpu.vector_store %arg2[%c7_505, %c5_506, %c0_507, %c0_508], %969 {strides = array<i32>} : memref<15x8x1x128xf32, #tpu.memory_space<vmem>>, vector<1x1x1x128xf32>,
    %c8_509 = arith.constant 8 : index
    %c5_510 = arith.constant 5 : index
    %c0_511 = arith.constant 0 : index
    %c0_512 = arith.constant 0 : index
    %970 = vector.load %arg2[%c8_509, %c5_510, %c0_511, %c0_512] : memref<15x8x1x128xf32, #tpu.memory_space<vmem>>, vector<1x1x1x128xf32>
    %971 = vector.shape_cast %970 : vector<1x1x1x128xf32> to vector<1x128xf32>
    %972 = vector.shape_cast %915 : vector<1x128xf32> to vector<1x1x1x128xf32>
    tpu.vector_store %arg2[%c8_509, %c5_510, %c0_511, %c0_512], %972 {strides = array<i32>} : memref<15x8x1x128xf32, #tpu.memory_space<vmem>>, vector<1x1x1x128xf32>,
    %c9_513 = arith.constant 9 : index
    %c5_514 = arith.constant 5 : index
    %c0_515 = arith.constant 0 : index
    %c0_516 = arith.constant 0 : index
    %973 = vector.load %arg2[%c9_513, %c5_514, %c0_515, %c0_516] : memref<15x8x1x128xf32, #tpu.memory_space<vmem>>, vector<1x1x1x128xf32>
    %974 = vector.shape_cast %973 : vector<1x1x1x128xf32> to vector<1x128xf32>
    %975 = vector.shape_cast %920 : vector<1x128xf32> to vector<1x1x1x128xf32>
    tpu.vector_store %arg2[%c9_513, %c5_514, %c0_515, %c0_516], %975 {strides = array<i32>} : memref<15x8x1x128xf32, #tpu.memory_space<vmem>>, vector<1x1x1x128xf32>,
    %c10_517 = arith.constant 10 : index
    %c5_518 = arith.constant 5 : index
    %c0_519 = arith.constant 0 : index
    %c0_520 = arith.constant 0 : index
    %976 = vector.load %arg2[%c10_517, %c5_518, %c0_519, %c0_520] : memref<15x8x1x128xf32, #tpu.memory_space<vmem>>, vector<1x1x1x128xf32>
    %977 = vector.shape_cast %976 : vector<1x1x1x128xf32> to vector<1x128xf32>
    %978 = vector.shape_cast %925 : vector<1x128xf32> to vector<1x1x1x128xf32>
    tpu.vector_store %arg2[%c10_517, %c5_518, %c0_519, %c0_520], %978 {strides = array<i32>} : memref<15x8x1x128xf32, #tpu.memory_space<vmem>>, vector<1x1x1x128xf32>,
    %c11_521 = arith.constant 11 : index
    %c5_522 = arith.constant 5 : index
    %c0_523 = arith.constant 0 : index
    %c0_524 = arith.constant 0 : index
    %979 = vector.load %arg2[%c11_521, %c5_522, %c0_523, %c0_524] : memref<15x8x1x128xf32, #tpu.memory_space<vmem>>, vector<1x1x1x128xf32>
    %980 = vector.shape_cast %979 : vector<1x1x1x128xf32> to vector<1x128xf32>
    %981 = vector.shape_cast %930 : vector<1x128xf32> to vector<1x1x1x128xf32>
    tpu.vector_store %arg2[%c11_521, %c5_522, %c0_523, %c0_524], %981 {strides = array<i32>} : memref<15x8x1x128xf32, #tpu.memory_space<vmem>>, vector<1x1x1x128xf32>,
    %c12_525 = arith.constant 12 : index
    %c5_526 = arith.constant 5 : index
    %c0_527 = arith.constant 0 : index
    %c0_528 = arith.constant 0 : index
    %982 = vector.load %arg2[%c12_525, %c5_526, %c0_527, %c0_528] : memref<15x8x1x128xf32, #tpu.memory_space<vmem>>, vector<1x1x1x128xf32>
    %983 = vector.shape_cast %982 : vector<1x1x1x128xf32> to vector<1x128xf32>
    %984 = vector.shape_cast %935 : vector<1x128xf32> to vector<1x1x1x128xf32>
    tpu.vector_store %arg2[%c12_525, %c5_526, %c0_527, %c0_528], %984 {strides = array<i32>} : memref<15x8x1x128xf32, #tpu.memory_space<vmem>>, vector<1x1x1x128xf32>,
    %c13_529 = arith.constant 13 : index
    %c5_530 = arith.constant 5 : index
    %c0_531 = arith.constant 0 : index
    %c0_532 = arith.constant 0 : index
    %985 = vector.load %arg2[%c13_529, %c5_530, %c0_531, %c0_532] : memref<15x8x1x128xf32, #tpu.memory_space<vmem>>, vector<1x1x1x128xf32>
    %986 = vector.shape_cast %985 : vector<1x1x1x128xf32> to vector<1x128xf32>
    %987 = vector.shape_cast %940 : vector<1x128xf32> to vector<1x1x1x128xf32>
    tpu.vector_store %arg2[%c13_529, %c5_530, %c0_531, %c0_532], %987 {strides = array<i32>} : memref<15x8x1x128xf32, #tpu.memory_space<vmem>>, vector<1x1x1x128xf32>,
    %c14_533 = arith.constant 14 : index
    %c5_534 = arith.constant 5 : index
    %c0_535 = arith.constant 0 : index
    %c0_536 = arith.constant 0 : index
    %988 = vector.load %arg2[%c14_533, %c5_534, %c0_535, %c0_536] : memref<15x8x1x128xf32, #tpu.memory_space<vmem>>, vector<1x1x1x128xf32>
    %989 = vector.shape_cast %988 : vector<1x1x1x128xf32> to vector<1x128xf32>
    %990 = vector.shape_cast %945 : vector<1x128xf32> to vector<1x1x1x128xf32>
    tpu.vector_store %arg2[%c14_533, %c5_534, %c0_535, %c0_536], %990 {strides = array<i32>} : memref<15x8x1x128xf32, #tpu.memory_space<vmem>>, vector<1x1x1x128xf32>,
    %c0_537 = arith.constant 0 : index
    %c6_538 = arith.constant 6 : index
    %c0_539 = arith.constant 0 : index
    %c0_540 = arith.constant 0 : index
    %991 = vector.load %arg1[%c0_537, %c6_538, %c0_539, %c0_540] : memref<7x8x1x128xf32, #tpu.memory_space<vmem>>, vector<1x1x1x128xf32>
    %992 = vector.shape_cast %991 : vector<1x1x1x128xf32> to vector<1x128xf32>
    %c1_541 = arith.constant 1 : index
    %c6_542 = arith.constant 6 : index
    %c0_543 = arith.constant 0 : index
    %c0_544 = arith.constant 0 : index
    %993 = vector.load %arg1[%c1_541, %c6_542, %c0_543, %c0_544] : memref<7x8x1x128xf32, #tpu.memory_space<vmem>>, vector<1x1x1x128xf32>
    %994 = vector.shape_cast %993 : vector<1x1x1x128xf32> to vector<1x128xf32>
    %c2_545 = arith.constant 2 : index
    %c6_546 = arith.constant 6 : index
    %c0_547 = arith.constant 0 : index
    %c0_548 = arith.constant 0 : index
    %995 = vector.load %arg1[%c2_545, %c6_546, %c0_547, %c0_548] : memref<7x8x1x128xf32, #tpu.memory_space<vmem>>, vector<1x1x1x128xf32>
    %996 = vector.shape_cast %995 : vector<1x1x1x128xf32> to vector<1x128xf32>
    %c3_549 = arith.constant 3 : index
    %c6_550 = arith.constant 6 : index
    %c0_551 = arith.constant 0 : index
    %c0_552 = arith.constant 0 : index
    %997 = vector.load %arg1[%c3_549, %c6_550, %c0_551, %c0_552] : memref<7x8x1x128xf32, #tpu.memory_space<vmem>>, vector<1x1x1x128xf32>
    %998 = vector.shape_cast %997 : vector<1x1x1x128xf32> to vector<1x128xf32>
    %999 = math.cos %992 : vector<1x128xf32>
    %1000 = math.sin %992 : vector<1x128xf32>
    %cst_553 = arith.constant 0.000000e+00 : f32
    %1001 = vector.broadcast %cst_553 : f32 to vector<1x128xf32>
    %1002 = arith.subf %1001, %1000 : vector<1x128xf32>
    %1003 = math.cos %998 : vector<1x128xf32>
    %1004 = math.sin %998 : vector<1x128xf32>
    %cst_554 = arith.constant 0.000000e+00 : f32
    %1005 = vector.broadcast %cst_554 : f32 to vector<1x128xf32>
    %1006 = arith.subf %1005, %1004 : vector<1x128xf32>
    %1007 = math.cos %996 : vector<1x128xf32>
    %1008 = math.sin %996 : vector<1x128xf32>
    %cst_555 = arith.constant 0.000000e+00 : f32
    %1009 = vector.broadcast %cst_555 : f32 to vector<1x128xf32>
    %1010 = arith.subf %1009, %1008 : vector<1x128xf32>
    %1011 = math.cos %994 : vector<1x128xf32>
    %1012 = math.sin %994 : vector<1x128xf32>
    %cst_556 = arith.constant 0.000000e+00 : f32
    %1013 = vector.broadcast %cst_556 : f32 to vector<1x128xf32>
    %1014 = arith.subf %1013, %1012 : vector<1x128xf32>
    %1015 = arith.mulf %1003, %1007 : vector<1x128xf32>
    %1016 = arith.mulf %1003, %1008 : vector<1x128xf32>
    %1017 = arith.mulf %1004, %1007 : vector<1x128xf32>
    %1018 = arith.mulf %1004, %1008 : vector<1x128xf32>
    %1019 = arith.mulf %1006, %1011 : vector<1x128xf32>
    %1020 = arith.mulf %1016, %1012 : vector<1x128xf32>
    %1021 = arith.addf %1019, %1020 : vector<1x128xf32>
    %1022 = arith.mulf %1006, %1014 : vector<1x128xf32>
    %1023 = arith.mulf %1016, %1011 : vector<1x128xf32>
    %1024 = arith.addf %1022, %1023 : vector<1x128xf32>
    %1025 = arith.mulf %1003, %1011 : vector<1x128xf32>
    %1026 = arith.mulf %1018, %1012 : vector<1x128xf32>
    %1027 = arith.addf %1025, %1026 : vector<1x128xf32>
    %1028 = arith.mulf %1003, %1014 : vector<1x128xf32>
    %1029 = arith.mulf %1018, %1011 : vector<1x128xf32>
    %1030 = arith.addf %1028, %1029 : vector<1x128xf32>
    %1031 = arith.mulf %1007, %1012 : vector<1x128xf32>
    %1032 = arith.mulf %1007, %1011 : vector<1x128xf32>
    %1033 = arith.mulf %1015, %999 : vector<1x128xf32>
    %1034 = arith.mulf %1021, %1000 : vector<1x128xf32>
    %1035 = arith.addf %1033, %1034 : vector<1x128xf32>
    %1036 = arith.mulf %1015, %1002 : vector<1x128xf32>
    %1037 = arith.mulf %1021, %999 : vector<1x128xf32>
    %1038 = arith.addf %1036, %1037 : vector<1x128xf32>
    %1039 = arith.mulf %1017, %999 : vector<1x128xf32>
    %1040 = arith.mulf %1027, %1000 : vector<1x128xf32>
    %1041 = arith.addf %1039, %1040 : vector<1x128xf32>
    %1042 = arith.mulf %1017, %1002 : vector<1x128xf32>
    %1043 = arith.mulf %1027, %999 : vector<1x128xf32>
    %1044 = arith.addf %1042, %1043 : vector<1x128xf32>
    %1045 = arith.mulf %1010, %999 : vector<1x128xf32>
    %1046 = arith.mulf %1031, %1000 : vector<1x128xf32>
    %1047 = arith.addf %1045, %1046 : vector<1x128xf32>
    %1048 = arith.mulf %1010, %1002 : vector<1x128xf32>
    %1049 = arith.mulf %1031, %999 : vector<1x128xf32>
    %1050 = arith.addf %1048, %1049 : vector<1x128xf32>
    %c4_557 = arith.constant 4 : index
    %c6_558 = arith.constant 6 : index
    %c0_559 = arith.constant 0 : index
    %c0_560 = arith.constant 0 : index
    %1051 = vector.load %arg1[%c4_557, %c6_558, %c0_559, %c0_560] : memref<7x8x1x128xf32, #tpu.memory_space<vmem>>, vector<1x1x1x128xf32>
    %1052 = vector.shape_cast %1051 : vector<1x1x1x128xf32> to vector<1x128xf32>
    %c5_561 = arith.constant 5 : index
    %c6_562 = arith.constant 6 : index
    %c0_563 = arith.constant 0 : index
    %c0_564 = arith.constant 0 : index
    %1053 = vector.load %arg1[%c5_561, %c6_562, %c0_563, %c0_564] : memref<7x8x1x128xf32, #tpu.memory_space<vmem>>, vector<1x1x1x128xf32>
    %1054 = vector.shape_cast %1053 : vector<1x1x1x128xf32> to vector<1x128xf32>
    %c6_565 = arith.constant 6 : index
    %c6_566 = arith.constant 6 : index
    %c0_567 = arith.constant 0 : index
    %c0_568 = arith.constant 0 : index
    %1055 = vector.load %arg1[%c6_565, %c6_566, %c0_567, %c0_568] : memref<7x8x1x128xf32, #tpu.memory_space<vmem>>, vector<1x1x1x128xf32>
    %1056 = vector.shape_cast %1055 : vector<1x1x1x128xf32> to vector<1x128xf32>
    %1057 = arith.mulf %905, %1052 : vector<1x128xf32>
    %1058 = arith.mulf %910, %1054 : vector<1x128xf32>
    %1059 = arith.addf %1057, %1058 : vector<1x128xf32>
    %1060 = arith.mulf %915, %1056 : vector<1x128xf32>
    %1061 = arith.addf %1059, %1060 : vector<1x128xf32>
    %1062 = arith.mulf %920, %1052 : vector<1x128xf32>
    %1063 = arith.mulf %925, %1054 : vector<1x128xf32>
    %1064 = arith.addf %1062, %1063 : vector<1x128xf32>
    %1065 = arith.mulf %930, %1056 : vector<1x128xf32>
    %1066 = arith.addf %1064, %1065 : vector<1x128xf32>
    %1067 = arith.mulf %935, %1052 : vector<1x128xf32>
    %1068 = arith.mulf %940, %1054 : vector<1x128xf32>
    %1069 = arith.addf %1067, %1068 : vector<1x128xf32>
    %1070 = arith.mulf %945, %1056 : vector<1x128xf32>
    %1071 = arith.addf %1069, %1070 : vector<1x128xf32>
    %1072 = arith.addf %1061, %887 : vector<1x128xf32>
    %1073 = arith.addf %1066, %892 : vector<1x128xf32>
    %1074 = arith.addf %1071, %897 : vector<1x128xf32>
    %1075 = arith.addf %1061, %898 : vector<1x128xf32>
    %1076 = arith.addf %1066, %899 : vector<1x128xf32>
    %1077 = arith.addf %1071, %900 : vector<1x128xf32>
    %1078 = arith.mulf %905, %1035 : vector<1x128xf32>
    %1079 = arith.mulf %910, %1041 : vector<1x128xf32>
    %1080 = arith.addf %1078, %1079 : vector<1x128xf32>
    %1081 = arith.mulf %915, %1047 : vector<1x128xf32>
    %1082 = arith.addf %1080, %1081 : vector<1x128xf32>
    %1083 = arith.mulf %905, %1038 : vector<1x128xf32>
    %1084 = arith.mulf %910, %1044 : vector<1x128xf32>
    %1085 = arith.addf %1083, %1084 : vector<1x128xf32>
    %1086 = arith.mulf %915, %1050 : vector<1x128xf32>
    %1087 = arith.addf %1085, %1086 : vector<1x128xf32>
    %1088 = arith.mulf %905, %1024 : vector<1x128xf32>
    %1089 = arith.mulf %910, %1030 : vector<1x128xf32>
    %1090 = arith.addf %1088, %1089 : vector<1x128xf32>
    %1091 = arith.mulf %915, %1032 : vector<1x128xf32>
    %1092 = arith.addf %1090, %1091 : vector<1x128xf32>
    %1093 = arith.mulf %920, %1035 : vector<1x128xf32>
    %1094 = arith.mulf %925, %1041 : vector<1x128xf32>
    %1095 = arith.addf %1093, %1094 : vector<1x128xf32>
    %1096 = arith.mulf %930, %1047 : vector<1x128xf32>
    %1097 = arith.addf %1095, %1096 : vector<1x128xf32>
    %1098 = arith.mulf %920, %1038 : vector<1x128xf32>
    %1099 = arith.mulf %925, %1044 : vector<1x128xf32>
    %1100 = arith.addf %1098, %1099 : vector<1x128xf32>
    %1101 = arith.mulf %930, %1050 : vector<1x128xf32>
    %1102 = arith.addf %1100, %1101 : vector<1x128xf32>
    %1103 = arith.mulf %920, %1024 : vector<1x128xf32>
    %1104 = arith.mulf %925, %1030 : vector<1x128xf32>
    %1105 = arith.addf %1103, %1104 : vector<1x128xf32>
    %1106 = arith.mulf %930, %1032 : vector<1x128xf32>
    %1107 = arith.addf %1105, %1106 : vector<1x128xf32>
    %1108 = arith.mulf %935, %1035 : vector<1x128xf32>
    %1109 = arith.mulf %940, %1041 : vector<1x128xf32>
    %1110 = arith.addf %1108, %1109 : vector<1x128xf32>
    %1111 = arith.mulf %945, %1047 : vector<1x128xf32>
    %1112 = arith.addf %1110, %1111 : vector<1x128xf32>
    %1113 = arith.mulf %935, %1038 : vector<1x128xf32>
    %1114 = arith.mulf %940, %1044 : vector<1x128xf32>
    %1115 = arith.addf %1113, %1114 : vector<1x128xf32>
    %1116 = arith.mulf %945, %1050 : vector<1x128xf32>
    %1117 = arith.addf %1115, %1116 : vector<1x128xf32>
    %1118 = arith.mulf %935, %1024 : vector<1x128xf32>
    %1119 = arith.mulf %940, %1030 : vector<1x128xf32>
    %1120 = arith.addf %1118, %1119 : vector<1x128xf32>
    %1121 = arith.mulf %945, %1032 : vector<1x128xf32>
    %1122 = arith.addf %1120, %1121 : vector<1x128xf32>
    %c0_569 = arith.constant 0 : index
    %c6_570 = arith.constant 6 : index
    %c0_571 = arith.constant 0 : index
    %c0_572 = arith.constant 0 : index
    %1123 = vector.load %arg2[%c0_569, %c6_570, %c0_571, %c0_572] : memref<15x8x1x128xf32, #tpu.memory_space<vmem>>, vector<1x1x1x128xf32>
    %1124 = vector.shape_cast %1123 : vector<1x1x1x128xf32> to vector<1x128xf32>
    %1125 = vector.shape_cast %1072 : vector<1x128xf32> to vector<1x1x1x128xf32>
    tpu.vector_store %arg2[%c0_569, %c6_570, %c0_571, %c0_572], %1125 {strides = array<i32>} : memref<15x8x1x128xf32, #tpu.memory_space<vmem>>, vector<1x1x1x128xf32>,
    %c3_573 = arith.constant 3 : index
    %c6_574 = arith.constant 6 : index
    %c0_575 = arith.constant 0 : index
    %c0_576 = arith.constant 0 : index
    %1126 = vector.load %arg2[%c3_573, %c6_574, %c0_575, %c0_576] : memref<15x8x1x128xf32, #tpu.memory_space<vmem>>, vector<1x1x1x128xf32>
    %1127 = vector.shape_cast %1126 : vector<1x1x1x128xf32> to vector<1x128xf32>
    %1128 = vector.shape_cast %1075 : vector<1x128xf32> to vector<1x1x1x128xf32>
    tpu.vector_store %arg2[%c3_573, %c6_574, %c0_575, %c0_576], %1128 {strides = array<i32>} : memref<15x8x1x128xf32, #tpu.memory_space<vmem>>, vector<1x1x1x128xf32>,
    %c1_577 = arith.constant 1 : index
    %c6_578 = arith.constant 6 : index
    %c0_579 = arith.constant 0 : index
    %c0_580 = arith.constant 0 : index
    %1129 = vector.load %arg2[%c1_577, %c6_578, %c0_579, %c0_580] : memref<15x8x1x128xf32, #tpu.memory_space<vmem>>, vector<1x1x1x128xf32>
    %1130 = vector.shape_cast %1129 : vector<1x1x1x128xf32> to vector<1x128xf32>
    %1131 = vector.shape_cast %1073 : vector<1x128xf32> to vector<1x1x1x128xf32>
    tpu.vector_store %arg2[%c1_577, %c6_578, %c0_579, %c0_580], %1131 {strides = array<i32>} : memref<15x8x1x128xf32, #tpu.memory_space<vmem>>, vector<1x1x1x128xf32>,
    %c4_581 = arith.constant 4 : index
    %c6_582 = arith.constant 6 : index
    %c0_583 = arith.constant 0 : index
    %c0_584 = arith.constant 0 : index
    %1132 = vector.load %arg2[%c4_581, %c6_582, %c0_583, %c0_584] : memref<15x8x1x128xf32, #tpu.memory_space<vmem>>, vector<1x1x1x128xf32>
    %1133 = vector.shape_cast %1132 : vector<1x1x1x128xf32> to vector<1x128xf32>
    %1134 = vector.shape_cast %1076 : vector<1x128xf32> to vector<1x1x1x128xf32>
    tpu.vector_store %arg2[%c4_581, %c6_582, %c0_583, %c0_584], %1134 {strides = array<i32>} : memref<15x8x1x128xf32, #tpu.memory_space<vmem>>, vector<1x1x1x128xf32>,
    %c2_585 = arith.constant 2 : index
    %c6_586 = arith.constant 6 : index
    %c0_587 = arith.constant 0 : index
    %c0_588 = arith.constant 0 : index
    %1135 = vector.load %arg2[%c2_585, %c6_586, %c0_587, %c0_588] : memref<15x8x1x128xf32, #tpu.memory_space<vmem>>, vector<1x1x1x128xf32>
    %1136 = vector.shape_cast %1135 : vector<1x1x1x128xf32> to vector<1x128xf32>
    %1137 = vector.shape_cast %1074 : vector<1x128xf32> to vector<1x1x1x128xf32>
    tpu.vector_store %arg2[%c2_585, %c6_586, %c0_587, %c0_588], %1137 {strides = array<i32>} : memref<15x8x1x128xf32, #tpu.memory_space<vmem>>, vector<1x1x1x128xf32>,
    %c5_589 = arith.constant 5 : index
    %c6_590 = arith.constant 6 : index
    %c0_591 = arith.constant 0 : index
    %c0_592 = arith.constant 0 : index
    %1138 = vector.load %arg2[%c5_589, %c6_590, %c0_591, %c0_592] : memref<15x8x1x128xf32, #tpu.memory_space<vmem>>, vector<1x1x1x128xf32>
    %1139 = vector.shape_cast %1138 : vector<1x1x1x128xf32> to vector<1x128xf32>
    %1140 = vector.shape_cast %1077 : vector<1x128xf32> to vector<1x1x1x128xf32>
    tpu.vector_store %arg2[%c5_589, %c6_590, %c0_591, %c0_592], %1140 {strides = array<i32>} : memref<15x8x1x128xf32, #tpu.memory_space<vmem>>, vector<1x1x1x128xf32>,
    %c6_593 = arith.constant 6 : index
    %c6_594 = arith.constant 6 : index
    %c0_595 = arith.constant 0 : index
    %c0_596 = arith.constant 0 : index
    %1141 = vector.load %arg2[%c6_593, %c6_594, %c0_595, %c0_596] : memref<15x8x1x128xf32, #tpu.memory_space<vmem>>, vector<1x1x1x128xf32>
    %1142 = vector.shape_cast %1141 : vector<1x1x1x128xf32> to vector<1x128xf32>
    %1143 = vector.shape_cast %1082 : vector<1x128xf32> to vector<1x1x1x128xf32>
    tpu.vector_store %arg2[%c6_593, %c6_594, %c0_595, %c0_596], %1143 {strides = array<i32>} : memref<15x8x1x128xf32, #tpu.memory_space<vmem>>, vector<1x1x1x128xf32>,
    %c7_597 = arith.constant 7 : index
    %c6_598 = arith.constant 6 : index
    %c0_599 = arith.constant 0 : index
    %c0_600 = arith.constant 0 : index
    %1144 = vector.load %arg2[%c7_597, %c6_598, %c0_599, %c0_600] : memref<15x8x1x128xf32, #tpu.memory_space<vmem>>, vector<1x1x1x128xf32>
    %1145 = vector.shape_cast %1144 : vector<1x1x1x128xf32> to vector<1x128xf32>
    %1146 = vector.shape_cast %1087 : vector<1x128xf32> to vector<1x1x1x128xf32>
    tpu.vector_store %arg2[%c7_597, %c6_598, %c0_599, %c0_600], %1146 {strides = array<i32>} : memref<15x8x1x128xf32, #tpu.memory_space<vmem>>, vector<1x1x1x128xf32>,
    %c8_601 = arith.constant 8 : index
    %c6_602 = arith.constant 6 : index
    %c0_603 = arith.constant 0 : index
    %c0_604 = arith.constant 0 : index
    %1147 = vector.load %arg2[%c8_601, %c6_602, %c0_603, %c0_604] : memref<15x8x1x128xf32, #tpu.memory_space<vmem>>, vector<1x1x1x128xf32>
    %1148 = vector.shape_cast %1147 : vector<1x1x1x128xf32> to vector<1x128xf32>
    %1149 = vector.shape_cast %1092 : vector<1x128xf32> to vector<1x1x1x128xf32>
    tpu.vector_store %arg2[%c8_601, %c6_602, %c0_603, %c0_604], %1149 {strides = array<i32>} : memref<15x8x1x128xf32, #tpu.memory_space<vmem>>, vector<1x1x1x128xf32>,
    %c9_605 = arith.constant 9 : index
    %c6_606 = arith.constant 6 : index
    %c0_607 = arith.constant 0 : index
    %c0_608 = arith.constant 0 : index
    %1150 = vector.load %arg2[%c9_605, %c6_606, %c0_607, %c0_608] : memref<15x8x1x128xf32, #tpu.memory_space<vmem>>, vector<1x1x1x128xf32>
    %1151 = vector.shape_cast %1150 : vector<1x1x1x128xf32> to vector<1x128xf32>
    %1152 = vector.shape_cast %1097 : vector<1x128xf32> to vector<1x1x1x128xf32>
    tpu.vector_store %arg2[%c9_605, %c6_606, %c0_607, %c0_608], %1152 {strides = array<i32>} : memref<15x8x1x128xf32, #tpu.memory_space<vmem>>, vector<1x1x1x128xf32>,
    %c10_609 = arith.constant 10 : index
    %c6_610 = arith.constant 6 : index
    %c0_611 = arith.constant 0 : index
    %c0_612 = arith.constant 0 : index
    %1153 = vector.load %arg2[%c10_609, %c6_610, %c0_611, %c0_612] : memref<15x8x1x128xf32, #tpu.memory_space<vmem>>, vector<1x1x1x128xf32>
    %1154 = vector.shape_cast %1153 : vector<1x1x1x128xf32> to vector<1x128xf32>
    %1155 = vector.shape_cast %1102 : vector<1x128xf32> to vector<1x1x1x128xf32>
    tpu.vector_store %arg2[%c10_609, %c6_610, %c0_611, %c0_612], %1155 {strides = array<i32>} : memref<15x8x1x128xf32, #tpu.memory_space<vmem>>, vector<1x1x1x128xf32>,
    %c11_613 = arith.constant 11 : index
    %c6_614 = arith.constant 6 : index
    %c0_615 = arith.constant 0 : index
    %c0_616 = arith.constant 0 : index
    %1156 = vector.load %arg2[%c11_613, %c6_614, %c0_615, %c0_616] : memref<15x8x1x128xf32, #tpu.memory_space<vmem>>, vector<1x1x1x128xf32>
    %1157 = vector.shape_cast %1156 : vector<1x1x1x128xf32> to vector<1x128xf32>
    %1158 = vector.shape_cast %1107 : vector<1x128xf32> to vector<1x1x1x128xf32>
    tpu.vector_store %arg2[%c11_613, %c6_614, %c0_615, %c0_616], %1158 {strides = array<i32>} : memref<15x8x1x128xf32, #tpu.memory_space<vmem>>, vector<1x1x1x128xf32>,
    %c12_617 = arith.constant 12 : index
    %c6_618 = arith.constant 6 : index
    %c0_619 = arith.constant 0 : index
    %c0_620 = arith.constant 0 : index
    %1159 = vector.load %arg2[%c12_617, %c6_618, %c0_619, %c0_620] : memref<15x8x1x128xf32, #tpu.memory_space<vmem>>, vector<1x1x1x128xf32>
    %1160 = vector.shape_cast %1159 : vector<1x1x1x128xf32> to vector<1x128xf32>
    %1161 = vector.shape_cast %1112 : vector<1x128xf32> to vector<1x1x1x128xf32>
    tpu.vector_store %arg2[%c12_617, %c6_618, %c0_619, %c0_620], %1161 {strides = array<i32>} : memref<15x8x1x128xf32, #tpu.memory_space<vmem>>, vector<1x1x1x128xf32>,
    %c13_621 = arith.constant 13 : index
    %c6_622 = arith.constant 6 : index
    %c0_623 = arith.constant 0 : index
    %c0_624 = arith.constant 0 : index
    %1162 = vector.load %arg2[%c13_621, %c6_622, %c0_623, %c0_624] : memref<15x8x1x128xf32, #tpu.memory_space<vmem>>, vector<1x1x1x128xf32>
    %1163 = vector.shape_cast %1162 : vector<1x1x1x128xf32> to vector<1x128xf32>
    %1164 = vector.shape_cast %1117 : vector<1x128xf32> to vector<1x1x1x128xf32>
    tpu.vector_store %arg2[%c13_621, %c6_622, %c0_623, %c0_624], %1164 {strides = array<i32>} : memref<15x8x1x128xf32, #tpu.memory_space<vmem>>, vector<1x1x1x128xf32>,
    %c14_625 = arith.constant 14 : index
    %c6_626 = arith.constant 6 : index
    %c0_627 = arith.constant 0 : index
    %c0_628 = arith.constant 0 : index
    %1165 = vector.load %arg2[%c14_625, %c6_626, %c0_627, %c0_628] : memref<15x8x1x128xf32, #tpu.memory_space<vmem>>, vector<1x1x1x128xf32>
    %1166 = vector.shape_cast %1165 : vector<1x1x1x128xf32> to vector<1x128xf32>
    %1167 = vector.shape_cast %1122 : vector<1x128xf32> to vector<1x1x1x128xf32>
    tpu.vector_store %arg2[%c14_625, %c6_626, %c0_627, %c0_628], %1167 {strides = array<i32>} : memref<15x8x1x128xf32, #tpu.memory_space<vmem>>, vector<1x1x1x128xf32>,
    %c0_629 = arith.constant 0 : index
    %c7_630 = arith.constant 7 : index
    %c0_631 = arith.constant 0 : index
    %c0_632 = arith.constant 0 : index
    %1168 = vector.load %arg1[%c0_629, %c7_630, %c0_631, %c0_632] : memref<7x8x1x128xf32, #tpu.memory_space<vmem>>, vector<1x1x1x128xf32>
    %1169 = vector.shape_cast %1168 : vector<1x1x1x128xf32> to vector<1x128xf32>
    %c1_633 = arith.constant 1 : index
    %c7_634 = arith.constant 7 : index
    %c0_635 = arith.constant 0 : index
    %c0_636 = arith.constant 0 : index
    %1170 = vector.load %arg1[%c1_633, %c7_634, %c0_635, %c0_636] : memref<7x8x1x128xf32, #tpu.memory_space<vmem>>, vector<1x1x1x128xf32>
    %1171 = vector.shape_cast %1170 : vector<1x1x1x128xf32> to vector<1x128xf32>
    %c2_637 = arith.constant 2 : index
    %c7_638 = arith.constant 7 : index
    %c0_639 = arith.constant 0 : index
    %c0_640 = arith.constant 0 : index
    %1172 = vector.load %arg1[%c2_637, %c7_638, %c0_639, %c0_640] : memref<7x8x1x128xf32, #tpu.memory_space<vmem>>, vector<1x1x1x128xf32>
    %1173 = vector.shape_cast %1172 : vector<1x1x1x128xf32> to vector<1x128xf32>
    %c3_641 = arith.constant 3 : index
    %c7_642 = arith.constant 7 : index
    %c0_643 = arith.constant 0 : index
    %c0_644 = arith.constant 0 : index
    %1174 = vector.load %arg1[%c3_641, %c7_642, %c0_643, %c0_644] : memref<7x8x1x128xf32, #tpu.memory_space<vmem>>, vector<1x1x1x128xf32>
    %1175 = vector.shape_cast %1174 : vector<1x1x1x128xf32> to vector<1x128xf32>
    %1176 = math.cos %1169 : vector<1x128xf32>
    %1177 = math.sin %1169 : vector<1x128xf32>
    %cst_645 = arith.constant 0.000000e+00 : f32
    %1178 = vector.broadcast %cst_645 : f32 to vector<1x128xf32>
    %1179 = arith.subf %1178, %1177 : vector<1x128xf32>
    %1180 = math.cos %1175 : vector<1x128xf32>
    %1181 = math.sin %1175 : vector<1x128xf32>
    %cst_646 = arith.constant 0.000000e+00 : f32
    %1182 = vector.broadcast %cst_646 : f32 to vector<1x128xf32>
    %1183 = arith.subf %1182, %1181 : vector<1x128xf32>
    %1184 = math.cos %1173 : vector<1x128xf32>
    %1185 = math.sin %1173 : vector<1x128xf32>
    %cst_647 = arith.constant 0.000000e+00 : f32
    %1186 = vector.broadcast %cst_647 : f32 to vector<1x128xf32>
    %1187 = arith.subf %1186, %1185 : vector<1x128xf32>
    %1188 = math.cos %1171 : vector<1x128xf32>
    %1189 = math.sin %1171 : vector<1x128xf32>
    %cst_648 = arith.constant 0.000000e+00 : f32
    %1190 = vector.broadcast %cst_648 : f32 to vector<1x128xf32>
    %1191 = arith.subf %1190, %1189 : vector<1x128xf32>
    %1192 = arith.mulf %1180, %1184 : vector<1x128xf32>
    %1193 = arith.mulf %1180, %1185 : vector<1x128xf32>
    %1194 = arith.mulf %1181, %1184 : vector<1x128xf32>
    %1195 = arith.mulf %1181, %1185 : vector<1x128xf32>
    %1196 = arith.mulf %1183, %1188 : vector<1x128xf32>
    %1197 = arith.mulf %1193, %1189 : vector<1x128xf32>
    %1198 = arith.addf %1196, %1197 : vector<1x128xf32>
    %1199 = arith.mulf %1183, %1191 : vector<1x128xf32>
    %1200 = arith.mulf %1193, %1188 : vector<1x128xf32>
    %1201 = arith.addf %1199, %1200 : vector<1x128xf32>
    %1202 = arith.mulf %1180, %1188 : vector<1x128xf32>
    %1203 = arith.mulf %1195, %1189 : vector<1x128xf32>
    %1204 = arith.addf %1202, %1203 : vector<1x128xf32>
    %1205 = arith.mulf %1180, %1191 : vector<1x128xf32>
    %1206 = arith.mulf %1195, %1188 : vector<1x128xf32>
    %1207 = arith.addf %1205, %1206 : vector<1x128xf32>
    %1208 = arith.mulf %1184, %1189 : vector<1x128xf32>
    %1209 = arith.mulf %1184, %1188 : vector<1x128xf32>
    %1210 = arith.mulf %1192, %1176 : vector<1x128xf32>
    %1211 = arith.mulf %1198, %1177 : vector<1x128xf32>
    %1212 = arith.addf %1210, %1211 : vector<1x128xf32>
    %1213 = arith.mulf %1192, %1179 : vector<1x128xf32>
    %1214 = arith.mulf %1198, %1176 : vector<1x128xf32>
    %1215 = arith.addf %1213, %1214 : vector<1x128xf32>
    %1216 = arith.mulf %1194, %1176 : vector<1x128xf32>
    %1217 = arith.mulf %1204, %1177 : vector<1x128xf32>
    %1218 = arith.addf %1216, %1217 : vector<1x128xf32>
    %1219 = arith.mulf %1194, %1179 : vector<1x128xf32>
    %1220 = arith.mulf %1204, %1176 : vector<1x128xf32>
    %1221 = arith.addf %1219, %1220 : vector<1x128xf32>
    %1222 = arith.mulf %1187, %1176 : vector<1x128xf32>
    %1223 = arith.mulf %1208, %1177 : vector<1x128xf32>
    %1224 = arith.addf %1222, %1223 : vector<1x128xf32>
    %1225 = arith.mulf %1187, %1179 : vector<1x128xf32>
    %1226 = arith.mulf %1208, %1176 : vector<1x128xf32>
    %1227 = arith.addf %1225, %1226 : vector<1x128xf32>
    %c4_649 = arith.constant 4 : index
    %c7_650 = arith.constant 7 : index
    %c0_651 = arith.constant 0 : index
    %c0_652 = arith.constant 0 : index
    %1228 = vector.load %arg1[%c4_649, %c7_650, %c0_651, %c0_652] : memref<7x8x1x128xf32, #tpu.memory_space<vmem>>, vector<1x1x1x128xf32>
    %1229 = vector.shape_cast %1228 : vector<1x1x1x128xf32> to vector<1x128xf32>
    %c5_653 = arith.constant 5 : index
    %c7_654 = arith.constant 7 : index
    %c0_655 = arith.constant 0 : index
    %c0_656 = arith.constant 0 : index
    %1230 = vector.load %arg1[%c5_653, %c7_654, %c0_655, %c0_656] : memref<7x8x1x128xf32, #tpu.memory_space<vmem>>, vector<1x1x1x128xf32>
    %1231 = vector.shape_cast %1230 : vector<1x1x1x128xf32> to vector<1x128xf32>
    %c6_657 = arith.constant 6 : index
    %c7_658 = arith.constant 7 : index
    %c0_659 = arith.constant 0 : index
    %c0_660 = arith.constant 0 : index
    %1232 = vector.load %arg1[%c6_657, %c7_658, %c0_659, %c0_660] : memref<7x8x1x128xf32, #tpu.memory_space<vmem>>, vector<1x1x1x128xf32>
    %1233 = vector.shape_cast %1232 : vector<1x1x1x128xf32> to vector<1x128xf32>
    %1234 = arith.mulf %377, %1229 : vector<1x128xf32>
    %1235 = arith.mulf %382, %1231 : vector<1x128xf32>
    %1236 = arith.addf %1234, %1235 : vector<1x128xf32>
    %1237 = arith.mulf %387, %1233 : vector<1x128xf32>
    %1238 = arith.addf %1236, %1237 : vector<1x128xf32>
    %1239 = arith.mulf %392, %1229 : vector<1x128xf32>
    %1240 = arith.mulf %397, %1231 : vector<1x128xf32>
    %1241 = arith.addf %1239, %1240 : vector<1x128xf32>
    %1242 = arith.mulf %402, %1233 : vector<1x128xf32>
    %1243 = arith.addf %1241, %1242 : vector<1x128xf32>
    %1244 = arith.mulf %407, %1229 : vector<1x128xf32>
    %1245 = arith.mulf %412, %1231 : vector<1x128xf32>
    %1246 = arith.addf %1244, %1245 : vector<1x128xf32>
    %1247 = arith.mulf %417, %1233 : vector<1x128xf32>
    %1248 = arith.addf %1246, %1247 : vector<1x128xf32>
    %1249 = arith.addf %1238, %367 : vector<1x128xf32>
    %1250 = arith.addf %1243, %368 : vector<1x128xf32>
    %1251 = arith.addf %1248, %369 : vector<1x128xf32>
    %1252 = arith.addf %1238, %370 : vector<1x128xf32>
    %1253 = arith.addf %1243, %371 : vector<1x128xf32>
    %1254 = arith.addf %1248, %372 : vector<1x128xf32>
    %1255 = arith.mulf %377, %1212 : vector<1x128xf32>
    %1256 = arith.mulf %382, %1218 : vector<1x128xf32>
    %1257 = arith.addf %1255, %1256 : vector<1x128xf32>
    %1258 = arith.mulf %387, %1224 : vector<1x128xf32>
    %1259 = arith.addf %1257, %1258 : vector<1x128xf32>
    %1260 = arith.mulf %377, %1215 : vector<1x128xf32>
    %1261 = arith.mulf %382, %1221 : vector<1x128xf32>
    %1262 = arith.addf %1260, %1261 : vector<1x128xf32>
    %1263 = arith.mulf %387, %1227 : vector<1x128xf32>
    %1264 = arith.addf %1262, %1263 : vector<1x128xf32>
    %1265 = arith.mulf %377, %1201 : vector<1x128xf32>
    %1266 = arith.mulf %382, %1207 : vector<1x128xf32>
    %1267 = arith.addf %1265, %1266 : vector<1x128xf32>
    %1268 = arith.mulf %387, %1209 : vector<1x128xf32>
    %1269 = arith.addf %1267, %1268 : vector<1x128xf32>
    %1270 = arith.mulf %392, %1212 : vector<1x128xf32>
    %1271 = arith.mulf %397, %1218 : vector<1x128xf32>
    %1272 = arith.addf %1270, %1271 : vector<1x128xf32>
    %1273 = arith.mulf %402, %1224 : vector<1x128xf32>
    %1274 = arith.addf %1272, %1273 : vector<1x128xf32>
    %1275 = arith.mulf %392, %1215 : vector<1x128xf32>
    %1276 = arith.mulf %397, %1221 : vector<1x128xf32>
    %1277 = arith.addf %1275, %1276 : vector<1x128xf32>
    %1278 = arith.mulf %402, %1227 : vector<1x128xf32>
    %1279 = arith.addf %1277, %1278 : vector<1x128xf32>
    %1280 = arith.mulf %392, %1201 : vector<1x128xf32>
    %1281 = arith.mulf %397, %1207 : vector<1x128xf32>
    %1282 = arith.addf %1280, %1281 : vector<1x128xf32>
    %1283 = arith.mulf %402, %1209 : vector<1x128xf32>
    %1284 = arith.addf %1282, %1283 : vector<1x128xf32>
    %1285 = arith.mulf %407, %1212 : vector<1x128xf32>
    %1286 = arith.mulf %412, %1218 : vector<1x128xf32>
    %1287 = arith.addf %1285, %1286 : vector<1x128xf32>
    %1288 = arith.mulf %417, %1224 : vector<1x128xf32>
    %1289 = arith.addf %1287, %1288 : vector<1x128xf32>
    %1290 = arith.mulf %407, %1215 : vector<1x128xf32>
    %1291 = arith.mulf %412, %1221 : vector<1x128xf32>
    %1292 = arith.addf %1290, %1291 : vector<1x128xf32>
    %1293 = arith.mulf %417, %1227 : vector<1x128xf32>
    %1294 = arith.addf %1292, %1293 : vector<1x128xf32>
    %1295 = arith.mulf %407, %1201 : vector<1x128xf32>
    %1296 = arith.mulf %412, %1207 : vector<1x128xf32>
    %1297 = arith.addf %1295, %1296 : vector<1x128xf32>
    %1298 = arith.mulf %417, %1209 : vector<1x128xf32>
    %1299 = arith.addf %1297, %1298 : vector<1x128xf32>
    %c0_661 = arith.constant 0 : index
    %c7_662 = arith.constant 7 : index
    %c0_663 = arith.constant 0 : index
    %c0_664 = arith.constant 0 : index
    %1300 = vector.load %arg2[%c0_661, %c7_662, %c0_663, %c0_664] : memref<15x8x1x128xf32, #tpu.memory_space<vmem>>, vector<1x1x1x128xf32>
    %1301 = vector.shape_cast %1300 : vector<1x1x1x128xf32> to vector<1x128xf32>
    %1302 = vector.shape_cast %1249 : vector<1x128xf32> to vector<1x1x1x128xf32>
    tpu.vector_store %arg2[%c0_661, %c7_662, %c0_663, %c0_664], %1302 {strides = array<i32>} : memref<15x8x1x128xf32, #tpu.memory_space<vmem>>, vector<1x1x1x128xf32>,
    %c3_665 = arith.constant 3 : index
    %c7_666 = arith.constant 7 : index
    %c0_667 = arith.constant 0 : index
    %c0_668 = arith.constant 0 : index
    %1303 = vector.load %arg2[%c3_665, %c7_666, %c0_667, %c0_668] : memref<15x8x1x128xf32, #tpu.memory_space<vmem>>, vector<1x1x1x128xf32>
    %1304 = vector.shape_cast %1303 : vector<1x1x1x128xf32> to vector<1x128xf32>
    %1305 = vector.shape_cast %1252 : vector<1x128xf32> to vector<1x1x1x128xf32>
    tpu.vector_store %arg2[%c3_665, %c7_666, %c0_667, %c0_668], %1305 {strides = array<i32>} : memref<15x8x1x128xf32, #tpu.memory_space<vmem>>, vector<1x1x1x128xf32>,
    %c1_669 = arith.constant 1 : index
    %c7_670 = arith.constant 7 : index
    %c0_671 = arith.constant 0 : index
    %c0_672 = arith.constant 0 : index
    %1306 = vector.load %arg2[%c1_669, %c7_670, %c0_671, %c0_672] : memref<15x8x1x128xf32, #tpu.memory_space<vmem>>, vector<1x1x1x128xf32>
    %1307 = vector.shape_cast %1306 : vector<1x1x1x128xf32> to vector<1x128xf32>
    %1308 = vector.shape_cast %1250 : vector<1x128xf32> to vector<1x1x1x128xf32>
    tpu.vector_store %arg2[%c1_669, %c7_670, %c0_671, %c0_672], %1308 {strides = array<i32>} : memref<15x8x1x128xf32, #tpu.memory_space<vmem>>, vector<1x1x1x128xf32>,
    %c4_673 = arith.constant 4 : index
    %c7_674 = arith.constant 7 : index
    %c0_675 = arith.constant 0 : index
    %c0_676 = arith.constant 0 : index
    %1309 = vector.load %arg2[%c4_673, %c7_674, %c0_675, %c0_676] : memref<15x8x1x128xf32, #tpu.memory_space<vmem>>, vector<1x1x1x128xf32>
    %1310 = vector.shape_cast %1309 : vector<1x1x1x128xf32> to vector<1x128xf32>
    %1311 = vector.shape_cast %1253 : vector<1x128xf32> to vector<1x1x1x128xf32>
    tpu.vector_store %arg2[%c4_673, %c7_674, %c0_675, %c0_676], %1311 {strides = array<i32>} : memref<15x8x1x128xf32, #tpu.memory_space<vmem>>, vector<1x1x1x128xf32>,
    %c2_677 = arith.constant 2 : index
    %c7_678 = arith.constant 7 : index
    %c0_679 = arith.constant 0 : index
    %c0_680 = arith.constant 0 : index
    %1312 = vector.load %arg2[%c2_677, %c7_678, %c0_679, %c0_680] : memref<15x8x1x128xf32, #tpu.memory_space<vmem>>, vector<1x1x1x128xf32>
    %1313 = vector.shape_cast %1312 : vector<1x1x1x128xf32> to vector<1x128xf32>
    %1314 = vector.shape_cast %1251 : vector<1x128xf32> to vector<1x1x1x128xf32>
    tpu.vector_store %arg2[%c2_677, %c7_678, %c0_679, %c0_680], %1314 {strides = array<i32>} : memref<15x8x1x128xf32, #tpu.memory_space<vmem>>, vector<1x1x1x128xf32>,
    %c5_681 = arith.constant 5 : index
    %c7_682 = arith.constant 7 : index
    %c0_683 = arith.constant 0 : index
    %c0_684 = arith.constant 0 : index
    %1315 = vector.load %arg2[%c5_681, %c7_682, %c0_683, %c0_684] : memref<15x8x1x128xf32, #tpu.memory_space<vmem>>, vector<1x1x1x128xf32>
    %1316 = vector.shape_cast %1315 : vector<1x1x1x128xf32> to vector<1x128xf32>
    %1317 = vector.shape_cast %1254 : vector<1x128xf32> to vector<1x1x1x128xf32>
    tpu.vector_store %arg2[%c5_681, %c7_682, %c0_683, %c0_684], %1317 {strides = array<i32>} : memref<15x8x1x128xf32, #tpu.memory_space<vmem>>, vector<1x1x1x128xf32>,
    %c6_685 = arith.constant 6 : index
    %c7_686 = arith.constant 7 : index
    %c0_687 = arith.constant 0 : index
    %c0_688 = arith.constant 0 : index
    %1318 = vector.load %arg2[%c6_685, %c7_686, %c0_687, %c0_688] : memref<15x8x1x128xf32, #tpu.memory_space<vmem>>, vector<1x1x1x128xf32>
    %1319 = vector.shape_cast %1318 : vector<1x1x1x128xf32> to vector<1x128xf32>
    %1320 = vector.shape_cast %1259 : vector<1x128xf32> to vector<1x1x1x128xf32>
    tpu.vector_store %arg2[%c6_685, %c7_686, %c0_687, %c0_688], %1320 {strides = array<i32>} : memref<15x8x1x128xf32, #tpu.memory_space<vmem>>, vector<1x1x1x128xf32>,
    %c7_689 = arith.constant 7 : index
    %c7_690 = arith.constant 7 : index
    %c0_691 = arith.constant 0 : index
    %c0_692 = arith.constant 0 : index
    %1321 = vector.load %arg2[%c7_689, %c7_690, %c0_691, %c0_692] : memref<15x8x1x128xf32, #tpu.memory_space<vmem>>, vector<1x1x1x128xf32>
    %1322 = vector.shape_cast %1321 : vector<1x1x1x128xf32> to vector<1x128xf32>
    %1323 = vector.shape_cast %1264 : vector<1x128xf32> to vector<1x1x1x128xf32>
    tpu.vector_store %arg2[%c7_689, %c7_690, %c0_691, %c0_692], %1323 {strides = array<i32>} : memref<15x8x1x128xf32, #tpu.memory_space<vmem>>, vector<1x1x1x128xf32>,
    %c8_693 = arith.constant 8 : index
    %c7_694 = arith.constant 7 : index
    %c0_695 = arith.constant 0 : index
    %c0_696 = arith.constant 0 : index
    %1324 = vector.load %arg2[%c8_693, %c7_694, %c0_695, %c0_696] : memref<15x8x1x128xf32, #tpu.memory_space<vmem>>, vector<1x1x1x128xf32>
    %1325 = vector.shape_cast %1324 : vector<1x1x1x128xf32> to vector<1x128xf32>
    %1326 = vector.shape_cast %1269 : vector<1x128xf32> to vector<1x1x1x128xf32>
    tpu.vector_store %arg2[%c8_693, %c7_694, %c0_695, %c0_696], %1326 {strides = array<i32>} : memref<15x8x1x128xf32, #tpu.memory_space<vmem>>, vector<1x1x1x128xf32>,
    %c9_697 = arith.constant 9 : index
    %c7_698 = arith.constant 7 : index
    %c0_699 = arith.constant 0 : index
    %c0_700 = arith.constant 0 : index
    %1327 = vector.load %arg2[%c9_697, %c7_698, %c0_699, %c0_700] : memref<15x8x1x128xf32, #tpu.memory_space<vmem>>, vector<1x1x1x128xf32>
    %1328 = vector.shape_cast %1327 : vector<1x1x1x128xf32> to vector<1x128xf32>
    %1329 = vector.shape_cast %1274 : vector<1x128xf32> to vector<1x1x1x128xf32>
    tpu.vector_store %arg2[%c9_697, %c7_698, %c0_699, %c0_700], %1329 {strides = array<i32>} : memref<15x8x1x128xf32, #tpu.memory_space<vmem>>, vector<1x1x1x128xf32>,
    %c10_701 = arith.constant 10 : index
    %c7_702 = arith.constant 7 : index
    %c0_703 = arith.constant 0 : index
    %c0_704 = arith.constant 0 : index
    %1330 = vector.load %arg2[%c10_701, %c7_702, %c0_703, %c0_704] : memref<15x8x1x128xf32, #tpu.memory_space<vmem>>, vector<1x1x1x128xf32>
    %1331 = vector.shape_cast %1330 : vector<1x1x1x128xf32> to vector<1x128xf32>
    %1332 = vector.shape_cast %1279 : vector<1x128xf32> to vector<1x1x1x128xf32>
    tpu.vector_store %arg2[%c10_701, %c7_702, %c0_703, %c0_704], %1332 {strides = array<i32>} : memref<15x8x1x128xf32, #tpu.memory_space<vmem>>, vector<1x1x1x128xf32>,
    %c11_705 = arith.constant 11 : index
    %c7_706 = arith.constant 7 : index
    %c0_707 = arith.constant 0 : index
    %c0_708 = arith.constant 0 : index
    %1333 = vector.load %arg2[%c11_705, %c7_706, %c0_707, %c0_708] : memref<15x8x1x128xf32, #tpu.memory_space<vmem>>, vector<1x1x1x128xf32>
    %1334 = vector.shape_cast %1333 : vector<1x1x1x128xf32> to vector<1x128xf32>
    %1335 = vector.shape_cast %1284 : vector<1x128xf32> to vector<1x1x1x128xf32>
    tpu.vector_store %arg2[%c11_705, %c7_706, %c0_707, %c0_708], %1335 {strides = array<i32>} : memref<15x8x1x128xf32, #tpu.memory_space<vmem>>, vector<1x1x1x128xf32>,
    %c12_709 = arith.constant 12 : index
    %c7_710 = arith.constant 7 : index
    %c0_711 = arith.constant 0 : index
    %c0_712 = arith.constant 0 : index
    %1336 = vector.load %arg2[%c12_709, %c7_710, %c0_711, %c0_712] : memref<15x8x1x128xf32, #tpu.memory_space<vmem>>, vector<1x1x1x128xf32>
    %1337 = vector.shape_cast %1336 : vector<1x1x1x128xf32> to vector<1x128xf32>
    %1338 = vector.shape_cast %1289 : vector<1x128xf32> to vector<1x1x1x128xf32>
    tpu.vector_store %arg2[%c12_709, %c7_710, %c0_711, %c0_712], %1338 {strides = array<i32>} : memref<15x8x1x128xf32, #tpu.memory_space<vmem>>, vector<1x1x1x128xf32>,
    %c13_713 = arith.constant 13 : index
    %c7_714 = arith.constant 7 : index
    %c0_715 = arith.constant 0 : index
    %c0_716 = arith.constant 0 : index
    %1339 = vector.load %arg2[%c13_713, %c7_714, %c0_715, %c0_716] : memref<15x8x1x128xf32, #tpu.memory_space<vmem>>, vector<1x1x1x128xf32>
    %1340 = vector.shape_cast %1339 : vector<1x1x1x128xf32> to vector<1x128xf32>
    %1341 = vector.shape_cast %1294 : vector<1x128xf32> to vector<1x1x1x128xf32>
    tpu.vector_store %arg2[%c13_713, %c7_714, %c0_715, %c0_716], %1341 {strides = array<i32>} : memref<15x8x1x128xf32, #tpu.memory_space<vmem>>, vector<1x1x1x128xf32>,
    %c14_717 = arith.constant 14 : index
    %c7_718 = arith.constant 7 : index
    %c0_719 = arith.constant 0 : index
    %c0_720 = arith.constant 0 : index
    %1342 = vector.load %arg2[%c14_717, %c7_718, %c0_719, %c0_720] : memref<15x8x1x128xf32, #tpu.memory_space<vmem>>, vector<1x1x1x128xf32>
    %1343 = vector.shape_cast %1342 : vector<1x1x1x128xf32> to vector<1x128xf32>
    %1344 = vector.shape_cast %1299 : vector<1x128xf32> to vector<1x1x1x128xf32>
    tpu.vector_store %arg2[%c14_717, %c7_718, %c0_719, %c0_720], %1344 {strides = array<i32>} : memref<15x8x1x128xf32, #tpu.memory_space<vmem>>, vector<1x1x1x128xf32>,
    return
  }
  func.func @transform_0(%arg0: i32) -> (i32, i32, i32, i32) {
    %c0_i32 = arith.constant 0 : i32
    %c0_i32_0 = arith.constant 0 : i32
    %c0_i32_1 = arith.constant 0 : i32
    %c0_i32_2 = arith.constant 0 : i32
    return %c0_i32, %c0_i32_0, %arg0, %c0_i32_1 : i32, i32, i32, i32
  }
  func.func @transform_1(%arg0: i32) -> (i32, i32, i32, i32) {
    %c0_i32 = arith.constant 0 : i32
    %c0_i32_0 = arith.constant 0 : i32
    %c0_i32_1 = arith.constant 0 : i32
    %c0_i32_2 = arith.constant 0 : i32
    return %c0_i32, %c0_i32_0, %arg0, %c0_i32_1 : i32, i32, i32, i32
  }
}

</mosaic_0001>

<bundles_post_ra>
// kernel: tpu_custom_call.1
= control target key start
LH: loop header
LB: loop body
LE: loop exit
PB: predicated region body
PF: predicated region fallthrough
CT: control target
= control target key end

     0   :  { %6 = vsyncpa [#allocation3], 0  ;;  %s12906_s0 = inlined_call_operand.hbm [shape: f32[7,8,1,128], index: 0, kind: input, shape index: {}]   ;;  %s12907_s1 = inlined_call_operand.hbm [shape: f32[15,8,1,128], index: 1, kind: output, shape index: {}]  }
   0x1   :  { %7 = vsyncpa [#allocation4], 0  ;;  %s8378_s6 = smov [#allocation2]   ;;  %s8330_s10 = scalar_lea.hbm %s12906_s0, 896 }
   0x2   :  { %s13_s7 = sshll.u32 %s8378_s6, 4  ;;  %p8331_p0 = scmp.ne.s32.totalorder %s12906_s0, %s8330_s10  ;;  %s14_s7 = int_to_ptr.vmem [resolvable:$true] %s13_s7 }
   0x3   :  { %p8334_p1 = scmp.lt.u32.totalorder %s8330_s10, %s12906_s0 }
   0x5   :  { %p8336_p2 = pnand %p8334_p1, %p8331_p0 }
   0x7   :  { %8339 = shalt.err (!%p8336_p2)
}
   0x8   :  { %s8340_s15 = scalar_lea.vmem %s14_s7, 896  ;;  %p8345_p4 = scmp.lt.s32.totalorder %s14_s7, %s14_s7 }
   0x9   :  { %p8341_p3 = scmp.ne.s32.totalorder %s14_s7, %s8340_s15  ;;  %p8346_p5 = scmp.lt.s32.totalorder %s8340_s15, %s8340_s15 }
   0xb   :  { %p8347_p6 = por %p8346_p5, %p8345_p4 }
   0xd   :  { %p8348_p7 = pnand %p8347_p6, %p8341_p3 }
   0xf   :  { %8351 = shalt.err (!%p8348_p7)
}
  0x10   :  { %s8379_s16 = smov 16   ;;  %s8380_s17 = smov 1  }
  0x11   :  { %19 = dma.hbm_to_vmem [thread:$0]  %s12906_s0, 896, %s14_s7, [#allocation3], %s8379_s16, %s8379_s16, %s8380_s17  }
  0x12   :  { %8374 = dma.done.wait [#allocation3], 896  }
  0x13   :  { %8375 = vsyncadd [#allocation3], 4294966400  ;;  %v8381_v0 = vmov 0.0   ;;  %v8414_v1 = vld [vmem:[#allocation2 + $0x20] sm:$0x1]  ;;  %s8388_s0 = smov [#allocation5]  }
  0x14   :  { %904 = vst [vmem:[#allocation5] sm:$0x1] %v8381_v0  ;;  %908 = vst [vmem:[#allocation5 + $0x8] sm:$0x1] %v8381_v0  ;;  %v8416_v2 = vld [vmem:[#allocation2 + $0x28] sm:$0x1] }
  0x15   :  { %912 = vst [vmem:[#allocation5 + $0x10] sm:$0x1] %v8381_v0  ;;  %13001 = vst [vmem:[#allocation8_spill] sm:$0xff] %v8414_v1  ;;  %v8418_v3 = vld [vmem:[#allocation2 + $0x30] sm:$0x1]  ;;  %s7778_s20 = sshll.u32 %s8388_s0, 4  ;;  %s7779_s20 = int_to_ptr.vmem [resolvable:$true] %s7778_s20 }
  0x16   :  { %13002 = vst [vmem:[#allocation9_spill] sm:$0xff] %v8416_v2  ;;  %13003 = vst [vmem:[#allocation10_spill] sm:$0xff] %v8418_v3  ;;  %v8423_v4 = vld [vmem:[#allocation2] sm:$0x1]  ;;  %v8425_v5 = vld [vmem:[#allocation2 + $0x10] sm:$0x1]  ;;  %p8357_p9 = scmp.lt.s32.totalorder %s7779_s20, %s7779_s20 }
  0x17   :  { %906 = vst [vmem:[#allocation5 + $0x18] sm:$0x1] %v8414_v1  ;;  %910 = vst [vmem:[#allocation5 + $0x20] sm:$0x1] %v8416_v2  ;;  %v8427_v6 = vld [vmem:[#allocation2 + $0x18] sm:$0x1] }
  0x18   :  { %914 = vst [vmem:[#allocation5 + $0x28] sm:$0x1] %v8418_v3  ;;  %v30_v7 = vand.u32 2147483647, %v8423_v4  ;;  %v33_v8 = vand.u32 2139095040, %v8423_v4  ;;  %v241_v10 = vand.u32 2139095040, %v8427_v6 }
  0x19   :  { %v238_v9 = vand.u32 2147483647, %v8427_v6  ;;  %v449_v15 = vand.u32 2139095040, %v8425_v5  ;;  %v12921_v33 = vmov 683565275   ;;  %s8352_s21 = scalar_lea.vmem %s7779_s20, 1920 }
  0x1a   :  { %v34_v11 = vshrl.u32 %v33_v8, 23  ;;  %v37_v12 = vand.u32 8388607, %v30_v7  ;;  %v242_v13 = vshrl.u32 %v241_v10, 23  ;;  %v12919_v35 = vmov 2475754826   ;;  %p8353_p8 = scmp.ne.s32.totalorder %s7779_s20, %s8352_s21  ;;  %p8358_p10 = scmp.lt.s32.totalorder %s8352_s21, %s8352_s21 }
  0x1b   :  { %v245_v14 = vand.u32 8388607, %v238_v9  ;;  %v450_v18 = vshrl.u32 %v449_v15, 23  ;;  %v12909_v37 = vmov 2131351028  }
  0x1c   :  { %v7790_v16 = vadd.s32 4294967169, %v34_v11  ;;  %v7798_v17 = vadd.s32 4294967169, %v242_v13  ;;  %v38_v20 = vor.u32 8388608, %v37_v12  ;;  %v12916_v39 = vmov 2102212464   ;;  %p8359_p11 = por %p8358_p10, %p8357_p9 }
  0x1d   :  { %v246_v21 = vor.u32 8388608, %v245_v14  ;;  %v7806_v23 = vadd.s32 4294967169, %v450_v18  ;;  %v12914_v41 = vmov 920167782   ;;  %v12912_v49 = vmov 1326507024  }
  0x1e   :  { %v40_v19 = vadd.s32 1, %v7790_v16  ;;  %v248_v22 = vadd.s32 1, %v7798_v17  ;;  %v8438_v28 = vshll.u32 %v38_v20, 8  ;;  %p8360_p12 = pnand %p8359_p11, %p8353_p8 }
  0x1f   :  { %v8440_v30 = vshll.u32 %v246_v21, 8  ;;  %v8442_v31 = vadd.s32 1, %v7806_v23 }
  0x20   :  { %vm41_vm0 = vcmp.gt.s32.totalorder %v40_v19, 0  ;;  %vm249_vm1 = vcmp.gt.s32.totalorder %v248_v22, 0 }
  0x21   :  { %v42_v24 = vsel %vm41_vm0, %v40_v19, 0  ;;  %v250_v27 = vsel %vm249_vm1, %v248_v22, 0  ;;  %vm457_vm6 = vcmp.gt.s32.totalorder %v8442_v31, 0 }
  0x22   :  { %v43_v25 = vshrl.u32 %v42_v24, 5  ;;  %v44_v26 = vand.u32 31, %v42_v24  ;;  %v252_v29 = vand.u32 31, %v250_v27  ;;  %v8449_v43 = vshrl.u32 %v250_v27, 5 }
  0x24   :  { %v45_v32 = vsub.s32 32, %v44_v26  ;;  %v47_v34 = vshll.u32 %v12921_v33, %v44_v26  ;;  %v50_v36 = vshll.u32 %v12919_v35, %v44_v26  ;;  %v53_v38 = vshll.u32 %v12909_v37, %v44_v26 }
  0x25   :  { %v56_v40 = vshll.u32 %v12916_v39, %v44_v26  ;;  %v59_v42 = vshll.u32 %v12914_v41, %v44_v26  ;;  %vm62_vm2 = vcmp.lt.s32.totalorder %v43_v25, 1  ;;  %vm63_vm3 = vcmp.lt.s32.totalorder %v43_v25, 2 }
  0x26   :  { %v46_v44 = vshrl.u32 %v12921_v33, %v45_v32  ;;  %v48_v45 = vshrl.u32 %v12919_v35, %v45_v32  ;;  %v51_v46 = vshrl.u32 %v12909_v37, %v45_v32  ;;  %v54_v47 = vshrl.u32 %v12916_v39, %v45_v32 }
  0x27   :  { %v57_v48 = vshrl.u32 %v12914_v41, %v45_v32  ;;  %v60_v50 = vshrl.u32 %v12912_v49, %v45_v32  ;;  %vm65_vm4 = vcmp.lt.s32.totalorder %v43_v25, 4  ;;  %v253_v54 = vsub.s32 32, %v252_v29 }
  0x28   :  { %v49_v51 = vor.u32 %v48_v45, %v47_v34  ;;  %v52_v52 = vor.u32 %v51_v46, %v50_v36  ;;  %v55_v53 = vor.u32 %v54_v47, %v53_v38  ;;  %vm64_vm5 = vcmp.lt.s32.totalorder %v43_v25, 3 }
  0x29   :  { %v58_v55 = vor.u32 %v57_v48, %v56_v40  ;;  %v61_v56 = vor.u32 %v60_v50, %v59_v42  ;;  %v255_v57 = vshll.u32 %v12921_v33, %v252_v29  ;;  %v258_v8 = vshll.u32 %v12919_v35, %v252_v29 }
  0x2a   :  { %v66_v58 = vsel %vm62_vm2, %v46_v44, %v49_v51  ;;  %v67_v59 = vsel %vm65_vm4, %v55_v53, 2102212464  ;;  %v70_v60 = vsel %vm62_vm2, %v49_v51, %v52_v52  ;;  %v74_v61 = vsel %vm62_vm2, %v52_v52, %v55_v53 }
  0x2b   :  { %v68_v62 = vsel %vm64_vm5, %v52_v52, %v67_v59  ;;  %v71_v63 = vsel %vm65_vm4, %v58_v55, 920167782  ;;  %v75_v0 = vsel %vm65_vm4, %v61_v56, 1326507024  ;;  %v254_v12 = vshrl.u32 %v12921_v33, %v253_v54 }
  0x2c   :  { %v72_v10 = vsel %vm64_vm5, %v55_v53, %v71_v63  ;;  %v76_v11 = vsel %vm64_vm5, %v58_v55, %v75_v0  ;;  %v256_v13 = vshrl.u32 %v12919_v35, %v253_v54  ;;  %v69_v14 = vsel %vm63_vm3, %v66_v58, %v68_v62 }
  0x2d   :  { %v73_v15 = vsel %vm63_vm3, %v70_v60, %v72_v10  ;;  %v77_v16 = vsel %vm63_vm3, %v74_v61, %v76_v11  ;;  %v259_v17 = vshrl.u32 %v12909_v37, %v253_v54  ;;  %v261_v24 = vshll.u32 %v12909_v37, %v252_v29 }
  0x2e   :  { %v8470_v18 = vmul.u32.u64.low %v8438_v28, %v77_v16  ;;  %v8471_v19 = vmul.u32.u64.high %v8438_v28, %v77_v16, %v8470_v18  ;;  %v8474_v20 = vmul.u32.u64.low %v8438_v28, %v73_v15  ;;  %v8475_v21 = vmul.u32.u64.high %v8438_v28, %v73_v15, %v8474_v20 }
  0x2f   :  { %v257_v22 = vor.u32 %v256_v13, %v255_v57  ;;  %v260_v23 = vor.u32 %v259_v17, %v258_v8  ;;  %v262_v26 = vshrl.u32 %v12916_v39, %v253_v54  ;;  %v264_v25 = vshll.u32 %v12916_v39, %v252_v29 }
  0x30   :  { %v265_v27 = vshrl.u32 %v12914_v41, %v253_v54  ;;  %v267_v32 = vshll.u32 %v12914_v41, %v252_v29  ;;  %v268_v34 = vshrl.u32 %v12912_v49, %v253_v54  ;;  %v85_v36 = vmul.u32 %v8438_v28, %v69_v14 }
  0x31   :  { %v263_v38 = vor.u32 %v262_v26, %v261_v24  ;;  %vm270_vm7 = vcmp.lt.s32.totalorder %v8449_v43, 1  ;;  %vm271_vm8 = vcmp.lt.s32.totalorder %v8449_v43, 2  ;;  %vm87_vm9 = vc.u32 %v8471_v19, %v8474_v20 }
  0x32   :  { %v88_v40 = vadd.s32 1, %v8475_v21  ;;  %v266_v42 = vor.u32 %v265_v27, %v264_v25  ;;  %vm272_vm10 = vcmp.lt.s32.totalorder %v8449_v43, 3  ;;  %v269_v44 = vor.u32 %v268_v34, %v267_v32 }
  0x33   :  { %vm273_vm11 = vcmp.lt.s32.totalorder %v8449_v43, 4  ;;  %v274_v29 = vsel %vm270_vm7, %v254_v12, %v257_v22  ;;  %v278_v45 = vsel %vm270_vm7, %v257_v22, %v260_v23  ;;  %v282_v48 = vsel %vm270_vm7, %v260_v23, %v263_v38  ;;  %v8517_v12 = vld [vmem:[#allocation2 + $0x8] sm:$0x1] }
  0x34   :  { %v89_v28 = vsel %vm87_vm9, %v88_v40, %v8475_v21  ;;  %v275_v46 = vsel %vm273_vm11, %v263_v38, 2102212464  ;;  %v279_v47 = vsel %vm273_vm11, %v266_v42, 920167782  ;;  %v283_v53 = vsel %vm273_vm11, %v269_v44, 1326507024 }
  0x35   :  { %v90_v50 = vadd.s32 %v89_v28, %v85_v36  ;;  %v276_v51 = vsel %vm272_vm10, %v260_v23, %v275_v46  ;;  %v280_v52 = vsel %vm272_vm10, %v263_v38, %v279_v47  ;;  %v284_v56 = vsel %vm272_vm10, %v266_v42, %v283_v53 }
  0x36   :  { %v277_v54 = vsel %vm271_vm8, %v274_v29, %v276_v51  ;;  %v281_v55 = vsel %vm271_vm8, %v278_v45, %v280_v52  ;;  %v458_v57 = vsel %vm457_vm6, %v8442_v31, 0  ;;  %v285_v59 = vsel %vm271_vm8, %v282_v48, %v284_v56 }
  0x37   :  { %v91_v58 = vadd.s32 536870912, %v90_v50  ;;  %v8503_v60 = vmul.u32.u64.low %v8440_v30, %v281_v55  ;;  %v8504_v61 = vmul.u32.u64.high %v8440_v30, %v281_v55, %v8503_v60  ;;  %v460_v8 = vand.u32 31, %v458_v57 }
  0x38   :  { %v8508_v62 = vmul.u32.u64.low %v8440_v30, %v285_v59  ;;  %v8509_v63 = vmul.u32.u64.high %v8440_v30, %v285_v59, %v8508_v62  ;;  %v293_v10 = vmul.u32 %v8440_v30, %v277_v54  ;;  %v446_v43 = vand.u32 2147483647, %v8425_v5 }
  0x39   :  { %v8511_v0 = vshrl.u32 %v91_v58, 30  ;;  %v296_v11 = vadd.s32 1, %v8504_v61  ;;  %v461_v15 = vsub.s32 32, %v460_v8  ;;  %v657_v18 = vand.u32 2139095040, %v8517_v12 }
  0x3a   :  { %vm295_vm12 = vc.u32 %v8509_v63, %v8503_v60  ;;  %v453_v30 = vand.u32 8388607, %v446_v43  ;;  %v8525_v22 = vshrl.u32 %v458_v57, 5  ;;  %v463_v23 = vshll.u32 %v12921_v33, %v460_v8 }
  0x3b   :  { %v93_v31 = vshll.u32 %v8511_v0, 30  ;;  %v297_v14 = vsel %vm295_vm12, %v296_v11, %v8504_v61  ;;  %v464_v26 = vshrl.u32 %v12919_v35, %v461_v15  ;;  %v466_v25 = vshll.u32 %v12919_v35, %v460_v8 }
  0x3c   :  { %v298_v16 = vadd.s32 %v297_v14, %v293_v10  ;;  %v467_v27 = vshrl.u32 %v12909_v37, %v461_v15  ;;  %v469_v34 = vshll.u32 %v12909_v37, %v460_v8  ;;  %v470_v36 = vshrl.u32 %v12916_v39, %v461_v15 }
  0x3d   :  { %v94_v13 = vsub.s32 %v90_v50, %v93_v31  ;;  %v472_v38 = vshll.u32 %v12916_v39, %v460_v8  ;;  %v454_v42 = vor.u32 8388608, %v453_v30  ;;  %v473_v44 = vshrl.u32 %v12914_v41, %v461_v15 }
  0x3e   :  { %v299_v21 = vadd.s32 536870912, %v298_v16  ;;  %v658_v29 = vshrl.u32 %v657_v18, 23  ;;  %v86_v45 = vadd.s32 %v8474_v20, %v8471_v19  ;;  %vm478_vm13 = vcmp.lt.s32.totalorder %v8525_v22, 1 }
  0x3f   :  { %v96_v17 = vsub.s32 0, %v94_v13  ;;  %vm481_vm14 = vcmp.lt.s32.totalorder %v8525_v22, 4  ;;  %v474_v47 = vor.u32 %v473_v44, %v472_v38  ;;  %v475_v48 = vshll.u32 %v12914_v41, %v460_v8 }
  0x40   :  { %v8531_v32 = vshrl.u32 %v299_v21, 30  ;;  %v476_v50 = vshrl.u32 %v12912_v49, %v461_v15  ;;  %v465_v52 = vor.u32 %v464_v26, %v463_v23  ;;  %v468_v53 = vor.u32 %v467_v27, %v466_v25 }
  0x41   :  { %v7791_v24 = vmin.u32 %v96_v17, %v94_v13  ;;  %v471_v54 = vor.u32 %v470_v36, %v469_v34  ;;  %v462_v55 = vshrl.u32 %v12921_v33, %v461_v15  ;;  %vm480_vm0 = vcmp.lt.s32.totalorder %v8525_v22, 3 }
  0x42   :  { %v301_v28 = vshll.u32 %v8531_v32, 30  ;;  %v487_v19 = vsel %vm481_vm14, %v474_v47, 920167782  ;;  %v7814_v58 = vadd.s32 4294967169, %v658_v29  ;;  %v477_v8 = vor.u32 %v476_v50, %v475_v48 }
  0x43   :  { %v98_v40 = vclz %v7791_v24  ;;  %v483_v57 = vsel %vm481_vm14, %v471_v54, 2102212464  ;;  %vm479_vm1 = vcmp.lt.s32.totalorder %v8525_v22, 2  ;;  %v486_v31 = vsel %vm478_vm13, %v465_v52, %v468_v53 }
  0x44   :  { %v302_v51 = vsub.s32 %v298_v16, %v301_v28  ;;  %v488_v11 = vsel %vm480_vm0, %v471_v54, %v487_v19  ;;  %v482_v16 = vsel %vm478_vm13, %v462_v55, %v465_v52  ;;  %v484_v17 = vsel %vm480_vm0, %v468_v53, %v483_v57 }
  0x45   :  { %v7792_v46 = vadd.s32 4294967294, %v98_v40  ;;  %v490_v30 = vsel %vm478_vm13, %v468_v53, %v471_v54  ;;  %v494_v18 = vshll.u32 %v454_v42, 8  ;;  %v489_v24 = vsel %vm479_vm1, %v486_v31, %v488_v11 }
  0x46   :  { %v304_v56 = vsub.s32 0, %v302_v51  ;;  %v491_v26 = vsel %vm481_vm14, %v477_v8, 1326507024  ;;  %v294_v25 = vadd.s32 %v8503_v60, %v8509_v63  ;;  %v485_v34 = vsel %vm479_vm1, %v482_v16, %v484_v17 }
  0x47   :  { %vm7793_vm15 = vcmp.lt.s32.totalorder %v7792_v46, 0  ;;  %v492_v40 = vsel %vm480_vm0, %v474_v47, %v491_v26  ;;  %v664_v42 = vadd.s32 1, %v7814_v58  ;;  %v501_v47 = vmul.u32 %v494_v18, %v485_v34 }
  0x48   :  { %v101_v20 = vsel %vm7793_vm15, 0, %v7792_v46  ;;  %v7799_v10 = vmin.u32 %v304_v56, %v302_v51  ;;  %v493_v44 = vsel %vm479_vm1, %v490_v30, %v492_v40  ;;  %v116_v57 = vsub.s32 4, %v8511_v0 }
  0x49   :  { %v102_v59 = vsub.s32 32, %v101_v20  ;;  %v103_v61 = vshll.u32 %v94_v13, %v101_v20  ;;  %v106_v62 = vsub.s32 4294967266, %v101_v20  ;;  %vm665_vm3 = vcmp.gt.s32.totalorder %v664_v42, 0 }
  0x4a   :  { %v306_v13 = vclz %v7799_v10  ;;  %v8577_v63 = vmul.u32.u64.low %v494_v18, %v493_v44  ;;  %v8578_v46 = vmul.u32.u64.high %v494_v18, %v493_v44, %v8577_v63  ;;  %v666_v54 = vsel %vm665_vm3, %v664_v42, 0 }
  0x4b   :  { %v104_v14 = vshrl.u32 %v86_v45, %v102_v59  ;;  %v107_v15 = vadd.s32 127, %v106_v62  ;;  %v8573_v29 = vmul.u32.u64.low %v494_v18, %v489_v24  ;;  %v8574_v45 = vmul.u32.u64.high %v494_v18, %v489_v24, %v8573_v29 }
  0x4c   :  { %v7800_v27 = vadd.s32 4294967294, %v306_v13  ;;  %v654_v20 = vand.u32 2147483647, %v8517_v12  ;;  %v668_v56 = vand.u32 31, %v666_v54  ;;  %vm32_vm5 = vcmp.lt.s32.totalorder %v8423_v4, 0 }
  0x4d   :  { %v105_v21 = vor.u32 %v104_v14, %v103_v61  ;;  %v108_v23 = vshll.u32 %v107_v15, 23  ;;  %v504_v22 = vadd.s32 1, %v8574_v45  ;;  %vm503_vm4 = vc.u32 %v8578_v46, %v8573_v29 }
  0x4e   :  { %vm7801_vm2 = vcmp.lt.s32.totalorder %v7800_v27, 0  ;;  %v669_v10 = vsub.s32 32, %v668_v56  ;;  %vm8589_vm6 = vcmp.le.f32.partialorder %v30_v7, 0.7853982  ;;  %v117_v14 = vsel %vm32_vm5, %v116_v57, %v8511_v0 }
  0x4f   :  { %v109_v36 = vor.u32 4788187, %v108_v23  ;;  %v112_v38 = vcvt.s32.f32 %v105_v21  ;;  %v309_v60 = vsel %vm7801_vm2, 0, %v7800_v27  ;;  %v661_v17 = vand.u32 8388607, %v654_v20 }
  0x50   :  { %v310_v48 = vsub.s32 32, %v309_v60  ;;  %v311_v50 = vshll.u32 %v302_v51, %v309_v60  ;;  %v314_v52 = vsub.s32 4294967266, %v309_v60  ;;  %v505_v51 = vsel %vm503_vm4, %v504_v22, %v8574_v45 }
  0x51   :  { %v110_v28 = vand.u32 2147483647, %v109_v36  ;;  %v506_v62 = vadd.s32 %v505_v51, %v501_v47  ;;  %v8598_v18 = vshrl.u32 %v666_v54, 5  ;;  %v680_v21 = vshll.u32 %v12916_v39, %v668_v56 }
  0x52   :  { %v312_v55 = vshrl.u32 %v294_v25, %v310_v48  ;;  %v315_v19 = vadd.s32 127, %v314_v52  ;;  %v671_v7 = vshll.u32 %v12921_v33, %v668_v56  ;;  %v672_v23 = vshrl.u32 %v12919_v35, %v669_v10 }
  0x53   :  { %v113_v53 = vmul.f32 %v112_v38, %v110_v28  ;;  %v507_v11 = vadd.s32 536870912, %v506_v62  ;;  %v674_v24 = vshll.u32 %v12919_v35, %v668_v56  ;;  %v681_v0 = vshrl.u32 %v12914_v41, %v669_v10 }
  0x54   :  { %v313_v58 = vor.u32 %v312_v55, %v311_v50  ;;  %v316_v59 = vshll.u32 %v315_v19, 23  ;;  %v675_v25 = vshrl.u32 %v12909_v37, %v669_v10  ;;  %v677_v27 = vshll.u32 %v12909_v37, %v668_v56 }
  0x55   :  { %v114_v61 = vxor.u32 2147483648, %v113_v53  ;;  %v8596_v30 = vshrl.u32 %v507_v11, 30  ;;  %v678_v34 = vshrl.u32 %v12916_v39, %v669_v10  ;;  %v682_v38 = vor.u32 %v681_v0, %v680_v21 }
  0x56   :  { %v317_v8 = vor.u32 4788187, %v316_v59  ;;  %v320_v16 = vcvt.s32.f32 %v313_v58  ;;  %vm240_vm7 = vcmp.lt.s32.totalorder %v8427_v6, 0  ;;  %v662_v42 = vor.u32 8388608, %v661_v17 }
  0x57   :  { %v115_v13 = vsel %vm32_vm5, %v114_v61, %v113_v53  ;;  %v509_v26 = vshll.u32 %v8596_v30, 30  ;;  %vm689_vm8 = vcmp.lt.s32.totalorder %v8598_v18, 4  ;;  %v119_v45 = vsel %vm8589_vm6, 0, %v117_v14 }
  0x58   :  { %v318_v15 = vand.u32 2147483647, %v317_v8  ;;  %v118_v44 = vsel %vm8589_vm6, %v8423_v4, %v115_v13  ;;  %v683_v28 = vshll.u32 %v12914_v41, %v668_v56  ;;  %v684_v60 = vshrl.u32 %v12912_v49, %v669_v10 }
  0x59   :  { %v8610_v40 = vsub.s32 %v506_v62, %v509_v26  ;;  %v673_v48 = vor.u32 %v672_v23, %v671_v7  ;;  %v676_v50 = vor.u32 %v675_v25, %v674_v24  ;;  %v679_v52 = vor.u32 %v678_v34, %v677_v27  ;;  %v8749_v26 = vld [vmem:[#allocation2 + $0x19] sm:$0x1] }
  0x5a   :  { %v321_v36 = vmul.f32 %v320_v16, %v318_v15  ;;  %vm686_vm9 = vcmp.lt.s32.totalorder %v8598_v18, 1  ;;  %vm688_vm10 = vcmp.lt.s32.totalorder %v8598_v18, 3  ;;  %v695_v47 = vsel %vm689_vm8, %v682_v38, 920167782 }
  0x5b   :  { %v512_v63 = vsub.s32 0, %v8610_v40  ;;  %8185 = vcosq.f32 %v118_v44  ;;  %v226_v54 = vadd.s32 3, %v119_v45  ;;  %v324_v55 = vsub.s32 4, %v8531_v32 }
  0x5c   :  { %v322_v53 = vxor.u32 2147483648, %v321_v36  ;;  %8187 = vsinq.f32 %v118_v44  ;;  %vm8629_vm11 = vcmp.le.f32.partialorder %v238_v9, 0.7853982  ;;  %v670_v56 = vshrl.u32 %v12921_v33, %v669_v10 }
  0x5d   :  { %v7807_v19 = vmin.u32 %v512_v63, %v8610_v40  ;;  %v685_v57 = vor.u32 %v684_v60, %v683_v28  ;;  %vm687_vm12 = vcmp.lt.s32.totalorder %v8598_v18, 2  ;;  %v694_v59 = vsel %vm686_vm9, %v673_v48, %v676_v50 }
  0x5e   :  { %v696_v51 = vsel %vm688_vm10, %v679_v52, %v695_v47  ;;  %v8639_v61 = vand.u32 3, %v119_v45  ;;  %v323_v9 = vsel %vm240_vm7, %v322_v53, %v321_v36  ;;  %v691_v62 = vsel %vm689_vm8, %v679_v52, 2102212464  ;;  %v8683_v36 = vld [vmem:[#allocation2 + $0x1] sm:$0x1] }
  0x5f   :  { %v514_v58 = vclz %v7807_v19  ;;  %v702_v8 = vshll.u32 %v662_v42, 8  ;;  %v8645_v10 = vand.u32 3, %v226_v54  ;;  %v325_v31 = vsel %vm240_vm7, %v324_v55, %v8531_v32 }
  0x60   :  { %v698_v14 = vsel %vm686_vm9, %v676_v50, %v679_v52  ;;  %vm448_vm13 = vcmp.lt.s32.totalorder %v8425_v5, 0  ;;  %v502_v15 = vadd.s32 %v8573_v29, %v8578_v46  ;;  %v690_v16 = vsel %vm686_vm9, %v670_v56, %v673_v48 }
  0x61   :  { %v7808_v11 = vadd.s32 4294967294, %v514_v58  ;;  %v697_v17 = vsel %vm687_vm12, %v694_v59, %v696_v51  ;;  %v699_v13 = vsel %vm689_vm8, %v685_v57, 1326507024  ;;  %v326_v32 = vsel %vm8629_vm11, %v8427_v6, %v323_v9 }
  0x62   :  { %v692_v21 = vsel %vm688_vm10, %v676_v50, %v691_v62  ;;  %v700_v29 = vsel %vm688_vm10, %v682_v38, %v699_v13  ;;  %v8670_v23 = vmul.u32.u64.low %v702_v8, %v697_v17  ;;  %v8671_v24 = vmul.u32.u64.high %v702_v8, %v697_v17, %v8670_v23 }
  0x63   :  { %vm7809_vm14 = vcmp.lt.s32.totalorder %v7808_v11, 0  ;;  %v701_v7 = vsel %vm687_vm12, %v698_v14, %v700_v29  ;;  %v327_v0 = vsel %vm8629_vm11, 0, %v325_v31  ;;  %vm8678_vm15 = vcmp.le.f32.partialorder %v446_v43, 0.7853982 }
  0x64   :  { %v517_v46 = vsel %vm7809_vm14, 0, %v7808_v11  ;;  %8189 = vcosq.f32 %v326_v32  ;;  %v693_v38 = vsel %vm687_vm12, %v690_v16, %v692_v21  ;;  %v532_v60 = vsub.s32 4, %v8596_v30 }
  0x65   :  { %v518_v25 = vsub.s32 32, %v517_v46  ;;  %v519_v27 = vshll.u32 %v8610_v40, %v517_v46  ;;  %v522_v34 = vsub.s32 4294967266, %v517_v46  ;;  %v8186_v45 = vpop.eup %8185  ;;  %8191 = vsinq.f32 %v326_v32 }
  0x66   :  { %v8687_v42 = vmul.u32.u64.low %v702_v8, %v701_v7  ;;  %v8688_v44 = vmul.u32.u64.high %v702_v8, %v701_v7, %v8687_v42  ;;  %v8188_v63 = vpop.eup %8187  ;;  %vm124_vm0 = vcmp.lt.s32.totalorder %v8639_v61, 2  ;;  %vm125_vm1 = vcmp.eq.s32.totalorder %v8639_v61, 0 }
  0x67   :  { %v520_v28 = vshrl.u32 %v502_v15, %v518_v25  ;;  %v523_v43 = vadd.s32 127, %v522_v34  ;;  %v712_v40 = vadd.s32 1, %v8671_v24  ;;  %v944_v48 = vand.u32 2139095040, %v8683_v36 }
  0x68   :  { %v434_v18 = vadd.s32 3, %v327_v0  ;;  %v709_v53 = vmul.u32 %v702_v8, %v693_v38  ;;  %vm128_vm2 = vcmp.eq.s32.totalorder %v8639_v61, 2  ;;  %v129_v47 = vxor.u32 2147483648, %v8186_v45 }
  0x69   :  { %v521_v50 = vor.u32 %v520_v28, %v519_v27  ;;  %v524_v52 = vshll.u32 %v523_v43, 23  ;;  %vm232_vm3 = vcmp.eq.s32.totalorder %v8645_v10, 2  ;;  %vm711_vm4 = vc.u32 %v8688_v44, %v8670_v23 }
  0x6a   :  { %v126_v54 = vxor.u32 2147483648, %v8188_v63  ;;  %v533_v22 = vsel %vm448_vm13, %v532_v60, %v8596_v30  ;;  %vm229_vm5 = vcmp.eq.s32.totalorder %v8645_v10, 0  ;;  %v8703_v56 = vand.u32 3, %v327_v0 }
  0x6b   :  { %v525_v55 = vor.u32 4788187, %v524_v52  ;;  %v528_v19 = vcvt.s32.f32 %v521_v50  ;;  %v713_v57 = vsel %vm711_vm4, %v712_v40, %v8671_v24  ;;  %v945_v58 = vshrl.u32 %v944_v48, 23 }
  0x6c   :  { %vm228_vm6 = vcmp.lt.s32.totalorder %v8645_v10, 2  ;;  %v8707_v59 = vand.u32 3, %v434_v18  ;;  %v714_v9 = vadd.s32 %v713_v57, %v709_v53  ;;  %v130_v62 = vsel %vm128_vm2, %v129_v47, %v8188_v63 }
  0x6d   :  { %v526_v51 = vand.u32 2147483647, %v525_v55  ;;  %v234_v8 = vsel %vm232_vm3, %v129_v47, %v8188_v63  ;;  %v535_v30 = vsel %vm8678_vm15, 0, %v533_v22  ;;  %v7822_v31 = vadd.s32 4294967169, %v945_v58 }
  0x6e   :  { %v127_v11 = vsel %vm125_vm1, %v8186_v45, %v126_v54  ;;  %v231_v14 = vsel %vm229_vm5, %v8186_v45, %v126_v54  ;;  %v715_v16 = vadd.s32 536870912, %v714_v9  ;;  %v8190_v17 = vpop.eup %8189  ;;  %vm122_vm7 = vweird.f32 %v8423_v4 }
  0x6f   :  { %v529_v15 = vmul.f32 %v528_v19, %v526_v51  ;;  %vm333_vm8 = vcmp.eq.s32.totalorder %v8703_v56, 0  ;;  %vm336_vm9 = vcmp.eq.s32.totalorder %v8703_v56, 2  ;;  %v951_v13 = vadd.s32 1, %v7822_v31  ;;  %v8192_v32 = vpop.eup %8191 }
  0x70   :  { %vm332_vm10 = vcmp.lt.s32.totalorder %v8703_v56, 2  ;;  %vm436_vm11 = vcmp.lt.s32.totalorder %v8707_v59, 2  ;;  %v642_v29 = vadd.s32 3, %v535_v30  ;;  %v8720_v46 = vshrl.u32 %v715_v16, 30 }
  0x71   :  { %v530_v21 = vxor.u32 2147483648, %v529_v15  ;;  %v131_v7 = vsel %vm124_vm0, %v127_v11, %v130_v62  ;;  %v235_v24 = vsel %vm228_vm6, %v231_v14, %v234_v8  ;;  %vm440_vm12 = vcmp.eq.s32.totalorder %v8707_v59, 2 }
  0x72   :  { %vm952_vm14 = vcmp.gt.s32.totalorder %v951_v13, 0  ;;  %v337_v0 = vxor.u32 2147483648, %v8190_v17  ;;  %v717_v27 = vshll.u32 %v8720_v46, 30  ;;  %v334_v38 = vxor.u32 2147483648, %v8192_v32 }
  0x73   :  { %v531_v25 = vsel %vm448_vm13, %v530_v21, %v529_v15  ;;  %v953_v34 = vsel %vm952_vm14, %v951_v13, 0  ;;  %v941_v61 = vand.u32 2147483647, %v8683_v36  ;;  %vm437_vm0 = vcmp.eq.s32.totalorder %v8707_v59, 0 }
  0x74   :  { %v534_v42 = vsel %vm8678_vm15, %v8425_v5, %v531_v25  ;;  %v955_v45 = vand.u32 31, %v953_v34  ;;  %v8735_v10 = vand.u32 3, %v535_v30  ;;  %v8737_v28 = vand.u32 3, %v642_v29 }
  0x75   :  { %v8739_v43 = vsub.s32 %v714_v9, %v717_v27  ;;  %v8743_v60 = vsel %vm122_vm7, nan, %v131_v7  ;;  %v8747_v63 = vsel %vm122_vm7, nan, %v235_v24  ;;  %8193 = vcosq.f32 %v534_v42 }
  0x76   :  { %v956_v40 = vsub.s32 32, %v955_v45  ;;  %v338_v48 = vsel %vm336_vm9, %v337_v0, %v8192_v32  ;;  %v442_v18 = vsel %vm440_vm12, %v337_v0, %v8192_v32  ;;  %8195 = vsinq.f32 %v534_v42 }
  0x77   :  { %v720_v50 = vsub.s32 0, %v8739_v43  ;;  %v335_v52 = vsel %vm333_vm8, %v8190_v17, %v334_v38  ;;  %v439_v53 = vsel %vm437_vm0, %v8190_v17, %v334_v38  ;;  %v948_v4 = vand.u32 8388607, %v941_v61 }
  0x78   :  { %v1149_v47 = vand.u32 2147483647, %v8749_v26  ;;  %vm656_vm13 = vcmp.lt.s32.totalorder %v8517_v12, 0  ;;  %v8763_v55 = vshrl.u32 %v953_v34, 5  ;;  %v958_v19 = vshll.u32 %v12921_v33, %v955_v45 }
  0x79   :  { %v7815_v54 = vmin.u32 %v720_v50, %v8739_v43  ;;  %v1152_v22 = vand.u32 2139095040, %v8749_v26  ;;  %v959_v57 = vshrl.u32 %v12919_v35, %v956_v40  ;;  %v961_v58 = vshll.u32 %v12919_v35, %v955_v45 }
  0x7a   :  { %v962_v51 = vshrl.u32 %v12909_v37, %v956_v40  ;;  %v964_v9 = vshll.u32 %v12909_v37, %v955_v45  ;;  %vm541_vm15 = vcmp.eq.s32.totalorder %v8735_v10, 0  ;;  %vm544_vm1 = vcmp.eq.s32.totalorder %v8735_v10, 2 }
  0x7b   :  { %v722_v62 = vclz %v7815_v54  ;;  %v965_v8 = vshrl.u32 %v12916_v39, %v956_v40  ;;  %v967_v30 = vshll.u32 %v12916_v39, %v955_v45  ;;  %v968_v31 = vshrl.u32 %v12914_v41, %v956_v40 }
  0x7c   :  { %v8778_v11 = vsel %vm332_vm10, %v335_v52, %v338_v48  ;;  %v443_v14 = vsel %vm436_vm11, %v439_v53, %v442_v18  ;;  %vm8784_vm2 = vcmp.le.f32.partialorder %v654_v20, 0.7853982  ;;  %v710_v16 = vadd.s32 %v8670_v23, %v8688_v44 }
  0x7d   :  { %v949_v17 = vor.u32 8388608, %v948_v4  ;;  %vm330_vm3 = vweird.f32 %v8427_v6  ;;  %vm648_vm4 = vcmp.eq.s32.totalorder %v8737_v28, 2  ;;  %v7816_v56 = vadd.s32 4294967294, %v722_v62 }
  0x7e   :  { %v969_v13 = vor.u32 %v968_v31, %v967_v30  ;;  %v1153_v32 = vshrl.u32 %v1152_v22, 23  ;;  %v8794_v59 = vand.u32 8388607, %v1149_v47  ;;  %vm645_vm5 = vcmp.eq.s32.totalorder %v8737_v28, 0 }
  0x7f   :  { %v740_v20 = vsub.s32 4, %v8720_v46  ;;  %v970_v21 = vshll.u32 %v12914_v41, %v955_v45  ;;  %v971_v23 = vshrl.u32 %v12912_v49, %v956_v40  ;;  %vm976_vm6 = vcmp.lt.s32.totalorder %v8763_v55, 4  ;;  %v8194_v24 = vpop.eup %8193 }
  0x80   :  { %vm540_vm7 = vcmp.lt.s32.totalorder %v8735_v10, 2  ;;  %vm7817_vm8 = vcmp.lt.s32.totalorder %v7816_v56, 0  ;;  %v960_v44 = vor.u32 %v959_v57, %v958_v19  ;;  %v963_v29 = vor.u32 %v962_v51, %v961_v58  ;;  %v8196_v27 = vpop.eup %8195 }
  0x81   :  { %v966_v7 = vor.u32 %v965_v8, %v964_v9  ;;  %v725_v0 = vsel %vm7817_vm8, 0, %v7816_v56  ;;  %vm973_vm9 = vcmp.lt.s32.totalorder %v8763_v55, 1  ;;  %vm975_vm10 = vcmp.lt.s32.totalorder %v8763_v55, 3 }
  0x82   :  { %v982_v25 = vsel %vm976_vm6, %v969_v13, 920167782  ;;  %vm644_vm11 = vcmp.lt.s32.totalorder %v8737_v28, 2  ;;  %v726_v34 = vsub.s32 32, %v725_v0  ;;  %v727_v38 = vshll.u32 %v8739_v43, %v725_v0 }
  0x83   :  { %v730_v42 = vsub.s32 4294967266, %v725_v0  ;;  %v957_v45 = vshrl.u32 %v12921_v33, %v956_v40  ;;  %v741_v48 = vsel %vm656_vm13, %v740_v20, %v8720_v46  ;;  %v972_v18 = vor.u32 %v971_v23, %v970_v21 }
  0x84   :  { %vm974_vm12 = vcmp.lt.s32.totalorder %v8763_v55, 2  ;;  %v978_v50 = vsel %vm976_vm6, %v966_v7, 2102212464  ;;  %v728_v52 = vshrl.u32 %v710_v16, %v726_v34  ;;  %v981_v4 = vsel %vm973_vm9, %v960_v44, %v963_v29 }
  0x85   :  { %v731_v53 = vadd.s32 127, %v730_v42  ;;  %v983_v43 = vsel %vm975_vm10, %v966_v7, %v982_v25  ;;  %vm538_vm14 = vweird.f32 %v8425_v5  ;;  %v542_v40 = vxor.u32 2147483648, %v8196_v27 }
  0x86   :  { %v545_v54 = vxor.u32 2147483648, %v8194_v24  ;;  %v989_v19 = vshll.u32 %v949_v17, 8  ;;  %v7830_v46 = vadd.s32 4294967169, %v1153_v32  ;;  %v729_v22 = vor.u32 %v728_v52, %v727_v38 }
  0x87   :  { %v732_v57 = vshll.u32 %v731_v53, 23  ;;  %v743_v58 = vsel %vm8784_vm2, 0, %v741_v48  ;;  %v977_v51 = vsel %vm973_vm9, %v957_v45, %v960_v44  ;;  %v543_v9 = vsel %vm541_vm15, %v8194_v24, %v542_v40 }
  0x88   :  { %v546_v62 = vsel %vm544_vm1, %v545_v54, %v8196_v27  ;;  %v979_v8 = vsel %vm975_vm10, %v963_v29, %v978_v50  ;;  %v984_v30 = vsel %vm974_vm12, %v981_v4, %v983_v43  ;;  %v736_v16 = vcvt.s32.f32 %v729_v22  ;;  %v8898_v22 = vld [vmem:[#allocation2 + $0x11] sm:$0x1] }
  0x89   :  { %v733_v31 = vor.u32 4788187, %v732_v57  ;;  %v985_v17 = vsel %vm973_vm9, %v963_v29, %v966_v7  ;;  %v986_v56 = vsel %vm976_vm6, %v972_v18, 1326507024  ;;  %v8838_v32 = vsel %vm330_vm3, nan, %v443_v14 }
  0x8a   :  { %v650_v20 = vsel %vm648_vm4, %v545_v54, %v8196_v27  ;;  %v850_v21 = vadd.s32 3, %v743_v58  ;;  %v1157_v23 = vor.u32 8388608, %v8794_v59  ;;  %v647_v44 = vsel %vm645_vm5, %v8194_v24, %v542_v40 }
  0x8b   :  { %v734_v0 = vand.u32 2147483647, %v733_v31  ;;  %v980_v29 = vsel %vm974_vm12, %v977_v51, %v979_v8  ;;  %v987_v7 = vsel %vm975_vm10, %v969_v13, %v986_v56  ;;  %v547_v14 = vsel %vm540_vm7, %v543_v9, %v546_v62 }
  0x8c   :  { %v988_v25 = vsel %vm974_vm12, %v985_v17, %v987_v7  ;;  %v8853_v27 = vmul.u32.u64.low %v989_v19, %v984_v30  ;;  %v8854_v34 = vmul.u32.u64.high %v989_v19, %v984_v30, %v8853_v27  ;;  %v1159_v42 = vadd.s32 1, %v7830_v46 }
  0x8d   :  { %v737_v59 = vmul.f32 %v736_v16, %v734_v0  ;;  %v8857_v38 = vmul.u32.u64.low %v989_v19, %v988_v25  ;;  %v8858_v24 = vmul.u32.u64.high %v989_v19, %v988_v25, %v8857_v38  ;;  %v8863_v45 = vsel %vm330_vm3, nan, %v8778_v11 }
  0x8e   :  { %v445_v10 = vsub.f32 0.0, %v8838_v32  ;;  %v651_v55 = vsel %vm644_vm11, %v647_v44, %v650_v20  ;;  %v8869_v13 = vsub.f32 0.0, %v8747_v63  ;;  %v8873_v48 = vsel %vm538_vm14, nan, %v547_v14 }
  0x8f   :  { %v738_v18 = vxor.u32 2147483648, %v737_v59  ;;  %v996_v50 = vmul.u32 %v989_v19, %v980_v29  ;;  %vm1160_vm0 = vcmp.gt.s32.totalorder %v1159_v42, 0  ;;  %v8875_v52 = vand.u32 3, %v743_v58 }
  0x90   :  { %v999_v6 = vadd.s32 1, %v8854_v34  ;;  %v1161_v11 = vsel %vm1160_vm0, %v1159_v42, 0  ;;  %v8878_v53 = vshll.u32 %v1157_v23, 8  ;;  %v8882_v28 = vsel %vm538_vm14, nan, %v651_v55 }
  0x91   :  { %v739_v4 = vsel %vm656_vm13, %v738_v18, %v737_v59  ;;  %v8886_v43 = vand.u32 3, %v850_v21  ;;  %vm998_vm15 = vc.u32 %v8858_v24, %v8853_v27  ;;  %v862_v54 = vmul.f32 %v8873_v48, %v8863_v45 }
  0x92   :  { %v742_v40 = vsel %vm8784_vm2, %v8517_v12, %v739_v4  ;;  %v1000_v19 = vsel %vm998_vm15, %v999_v6, %v8854_v34  ;;  %v1163_v5 = vand.u32 31, %v1161_v11  ;;  %v864_v46 = vmul.f32 %v8873_v48, %v8838_v32 }
  0x93   :  { %8197 = vcosq.f32 %v742_v40  ;;  %v1001_v57 = vadd.s32 %v1000_v19, %v996_v50  ;;  %v8900_v58 = vshrl.u32 %v1161_v11, 5  ;;  %vm752_vm13 = vcmp.eq.s32.totalorder %v8875_v52, 2 }
  0x94   :  { %8199 = vsinq.f32 %v742_v40  ;;  %v1164_v51 = vsub.s32 32, %v1163_v5  ;;  %v1166_v15 = vshll.u32 %v12921_v33, %v1163_v5  ;;  %v1169_v9 = vshll.u32 %v12919_v35, %v1163_v5 }
  0x95   :  { %vm856_vm1 = vcmp.eq.s32.totalorder %v8886_v43, 2  ;;  %v653_v62 = vsub.f32 0.0, %v8882_v28  ;;  %v1002_v8 = vadd.s32 536870912, %v1001_v57  ;;  %v1172_v30 = vshll.u32 %v12909_v37, %v1163_v5 }
  0x96   :  { %v1175_v31 = vshll.u32 %v12916_v39, %v1163_v5  ;;  %vm749_vm2 = vcmp.eq.s32.totalorder %v8875_v52, 0  ;;  %vm853_vm3 = vcmp.eq.s32.totalorder %v8886_v43, 0  ;;  %v1167_v16 = vshrl.u32 %v12919_v35, %v1164_v51 }
  0x97   :  { %v1170_v17 = vshrl.u32 %v12909_v37, %v1164_v51  ;;  %v1173_v56 = vshrl.u32 %v12916_v39, %v1164_v51  ;;  %v1360_v20 = vand.u32 2139095040, %v8898_v22  ;;  %vm748_vm4 = vcmp.lt.s32.totalorder %v8875_v52, 2 }
  0x98   :  { %vm852_vm5 = vcmp.lt.s32.totalorder %v8886_v43, 2  ;;  %v8917_v21 = vshrl.u32 %v1002_v8, 30  ;;  %v1176_v23 = vshrl.u32 %v12914_v41, %v1164_v51  ;;  %v1178_v44 = vshll.u32 %v12914_v41, %v1163_v5 }
  0x99   :  { %v1179_v0 = vshrl.u32 %v12912_v49, %v1164_v51  ;;  %vm746_vm6 = vweird.f32 %v8517_v12  ;;  %v1168_v29 = vor.u32 %v1167_v16, %v1166_v15  ;;  %v1171_v7 = vor.u32 %v1170_v17, %v1169_v9 }
  0x9a   :  { %v1174_v14 = vor.u32 %v1173_v56, %v1172_v30  ;;  %vm1184_vm7 = vcmp.lt.s32.totalorder %v8900_v58, 4  ;;  %v1004_v25 = vshll.u32 %v8917_v21, 30  ;;  %v1177_v34 = vor.u32 %v1176_v23, %v1175_v31 }
  0x9b   :  { %vm1181_vm8 = vcmp.lt.s32.totalorder %v8900_v58, 1  ;;  %vm1183_vm9 = vcmp.lt.s32.totalorder %v8900_v58, 3  ;;  %v863_v59 = vmul.f32 %v8882_v28, %v8863_v45  ;;  %v8930_v38 = vmul.f32 %v862_v54, %v8743_v60 }
  0x9c   :  { %v865_v42 = vmul.f32 %v8882_v28, %v8838_v32  ;;  %v1361_v55 = vshrl.u32 %v1360_v20, 23  ;;  %v8935_v18 = vmul.f32 %v862_v54, %v8869_v13  ;;  %v8937_v50 = vsub.s32 %v1001_v57, %v1004_v25 }
  0x9d   :  { %v1165_v6 = vshrl.u32 %v12921_v33, %v1164_v51  ;;  %v1190_v11 = vsel %vm1184_vm7, %v1177_v34, 920167782  ;;  %v1180_v4 = vor.u32 %v1179_v0, %v1178_v44  ;;  %vm1182_vm10 = vcmp.lt.s32.totalorder %v8900_v58, 2  ;;  %v8198_v19 = vpop.eup %8197 }
  0x9e   :  { %v1189_v40 = vsel %vm1181_vm8, %v1168_v29, %v1171_v7  ;;  %v1191_v28 = vsel %vm1183_vm9, %v1174_v14, %v1190_v11  ;;  %v8948_v54 = vmul.f32 %v864_v46, %v8743_v60  ;;  %v889_v5 = vmul.f32 %v864_v46, %v8869_v13  ;;  %v8200_v15 = vpop.eup %8199 }
  0x9f   :  { %v892_v57 = vmul.f32 %v653_v62, %v8743_v60  ;;  %v1007_v51 = vsub.s32 0, %v8937_v50  ;;  %v753_v9 = vxor.u32 2147483648, %v8198_v19  ;;  %v895_v8 = vmul.f32 %v653_v62, %v8869_v13 }
  0xa0   :  { %v1186_v30 = vsel %vm1184_vm7, %v1174_v14, 2102212464  ;;  %v8956_v31 = vadd.s32 4294967169, %v1361_v55  ;;  %v750_v16 = vxor.u32 2147483648, %v8200_v15  ;;  %v8961_v56 = vsel %vm1181_vm8, %v1165_v6, %v1168_v29 }
  0xa1   :  { %v7823_v17 = vmin.u32 %v1007_v51, %v8937_v50  ;;  %v8965_v46 = vsel %vm1182_vm10, %v1189_v40, %v1191_v28  ;;  %v754_v20 = vsel %vm752_vm13, %v753_v9, %v8200_v15  ;;  %v858_v13 = vsel %vm856_vm1, %v753_v9, %v8200_v15 }
  0xa2   :  { %v1193_v62 = vsel %vm1181_vm8, %v1171_v7, %v1174_v14  ;;  %v1194_v23 = vsel %vm1184_vm7, %v1180_v4, 1326507024  ;;  %v751_v44 = vsel %vm749_vm2, %v8198_v19, %v750_v16  ;;  %v855_v0 = vsel %vm853_vm3, %v8198_v19, %v750_v16 }
  0xa3   :  { %v1009_v29 = vclz %v7823_v17  ;;  %v8981_v25 = vsel %vm1183_vm9, %v1171_v7, %v1186_v30  ;;  %v755_v55 = vsel %vm748_vm4, %v751_v44, %v754_v20  ;;  %v859_v14 = vsel %vm852_vm5, %v855_v0, %v858_v13 }
  0xa4   :  { %v8989_v6 = vmul.u32.u64.low %v8878_v53, %v8965_v46  ;;  %v8990_v11 = vmul.u32.u64.high %v8878_v53, %v8965_v46, %v8989_v6  ;;  %v756_v4 = vsel %vm746_vm6, nan, %v755_v55  ;;  %v860_v40 = vsel %vm746_vm6, nan, %v859_v14 }
  0xa5   :  { %v7824_v7 = vadd.s32 4294967294, %v1009_v29  ;;  %v1195_v52 = vsel %vm1183_vm9, %v1177_v34, %v1194_v23  ;;  %v866_v43 = vmul.f32 %v756_v4, %v445_v10  ;;  %v867_v28 = vmul.f32 %v863_v59, %v860_v40  ;;  %v1814_v23 = vld [vmem:[#allocation2 + $0x31] sm:$0x1] }
  0xa6   :  { %v861_v19 = vsub.f32 0.0, %v860_v40  ;;  %v870_v51 = vmul.f32 %v863_v59, %v756_v4  ;;  %v872_v15 = vmul.f32 %v756_v4, %v8863_v45  ;;  %v873_v9 = vmul.f32 %v865_v42, %v860_v40 }
  0xa7   :  { %v876_v30 = vmul.f32 %v865_v42, %v756_v4  ;;  %v878_v16 = vmul.f32 %v860_v40, %v8873_v48  ;;  %v868_v17 = vadd.f32 %v867_v28, %v866_v43  ;;  %v9007_v34 = vmul.f32 %v756_v4, %v8873_v48 }
  0xa8   :  { %v869_v12 = vmul.f32 %v861_v19, %v445_v10  ;;  %v875_v46 = vmul.f32 %v861_v19, %v8863_v45  ;;  %v874_v20 = vadd.f32 %v873_v9, %v872_v15  ;;  %vm7825_vm11 = vcmp.lt.s32.totalorder %v7824_v7, 0  ;;  %v1810_v45 = vld [vmem:[#allocation2 + $0x21] sm:$0x1]  ;;  %v1812_v10 = vld [vmem:[#allocation2 + $0x29] sm:$0x1] }
  0xa9   :  { %13012 = vst [vmem:[#allocation11_spill] sm:$0xff] %v9007_v34  ;;  %v893_v13 = vmul.f32 %v878_v16, %v8747_v63  ;;  %v896_v59 = vmul.f32 %v878_v16, %v8743_v60  ;;  %v881_v42 = vmul.f32 %v868_v17, %v8747_v63  ;;  %v884_v44 = vmul.f32 %v868_v17, %v8743_v60 }
  0xaa   :  { %v9013_v0 = vadd.f32 %v870_v51, %v869_v12  ;;  %v9015_v32 = vadd.f32 %v876_v30, %v875_v46  ;;  %932 = vst [vmem:[#allocation5 + $0x70] sm:$0x1] %v9007_v34  ;;  %v887_v48 = vmul.f32 %v874_v20, %v8747_v63  ;;  %v890_v29 = vmul.f32 %v874_v20, %v8743_v60 }
  0xab   :  { %v9020_v55 = vadd.f32 %v893_v13, %v892_v57  ;;  %v9022_v14 = vadd.f32 %v896_v59, %v895_v8  ;;  %v9025_v4 = vadd.f32 %v881_v42, %v8930_v38  ;;  %v9028_v40 = vadd.f32 %v884_v44, %v8935_v18 }
  0xac   :  { %13013 = vst [vmem:[#allocation12_spill] sm:$0xff] %v9013_v0  ;;  %13014 = vst [vmem:[#allocation13_spill] sm:$0xff] %v9015_v32  ;;  %v1818_v43 = vmul.f32 %v1814_v23, %v9013_v0  ;;  %v1196_v63 = vsel %vm1182_vm10, %v1193_v62, %v1195_v52  ;;  %v9036_v60 = vadd.f32 %v887_v48, %v8948_v54  ;;  %v1207_v59 = vadd.s32 1, %v8990_v11 }
  0xad   :  { %13015 = vst [vmem:[#allocation14_spill] sm:$0xff] %v9020_v55  ;;  %13016 = vst [vmem:[#allocation15_spill] sm:$0xff] %v9022_v14  ;;  %v9038_v57 = vadd.f32 %v890_v29, %v889_v5  ;;  %v1825_v38 = vmul.f32 %v1810_v45, %v9020_v55  ;;  %v1826_v18 = vmul.f32 %v1812_v10, %v9022_v14  ;;  %v1012_v5 = vsel %vm7825_vm11, 0, %v7824_v7 }
  0xae   :  { %13017 = vst [vmem:[#allocation16_spill] sm:$0xff] %v9025_v4  ;;  %13018 = vst [vmem:[#allocation17_spill] sm:$0xff] %v9028_v40  ;;  %v1815_v8 = vmul.f32 %v1810_v45, %v9025_v4  ;;  %v1816_v62 = vmul.f32 %v1812_v10, %v9028_v40  ;;  %v1828_v54 = vmul.f32 %v1814_v23, %v9007_v34  ;;  %v1017_v16 = vsub.s32 4294967266, %v1012_v5 }
  0xaf   :  { %920 = vst [vmem:[#allocation5 + $0x40] sm:$0x1] %v9013_v0  ;;  %926 = vst [vmem:[#allocation5 + $0x58] sm:$0x1] %v9015_v32  ;;  %v1820_v52 = vmul.f32 %v1810_v45, %v9036_v60  ;;  %v1821_v28 = vmul.f32 %v1812_v10, %v9038_v57  ;;  %v1823_v19 = vmul.f32 %v1814_v23, %v9015_v32  ;;  %v1367_v23 = vadd.s32 1, %v8956_v31 }
  0xb0   :  { %13019 = vst [vmem:[#allocation18_spill] sm:$0xff] %v9036_v60  ;;  %13020 = vst [vmem:[#allocation19_spill] sm:$0xff] %v9038_v57  ;;  %v1827_v51 = vadd.f32 %v1826_v18, %v1825_v38  ;;  %v1817_v15 = vadd.f32 %v1816_v62, %v1815_v8  ;;  %v1188_v7 = vsel %vm1182_vm10, %v8961_v56, %v8981_v25  ;;  %v1013_v31 = vsub.s32 32, %v1012_v5 }
  0xb1   :  { %928 = vst [vmem:[#allocation5 + $0x60] sm:$0x1] %v9020_v55  ;;  %930 = vst [vmem:[#allocation5 + $0x68] sm:$0x1] %v9022_v14  ;;  %v1822_v9 = vadd.f32 %v1821_v28, %v1820_v52  ;;  %v9064_v12 = vmul.u32.u64.low %v8878_v53, %v1196_v63  ;;  %v9065_v46 = vmul.u32.u64.high %v8878_v53, %v1196_v63, %v9064_v12  ;;  %v997_v56 = vadd.s32 %v8853_v27, %v8858_v24 }
  0xb2   :  { %916 = vst [vmem:[#allocation5 + $0x30] sm:$0x1] %v9025_v4  ;;  %918 = vst [vmem:[#allocation5 + $0x38] sm:$0x1] %v9028_v40  ;;  %v9055_v30 = vadd.f32 %v1828_v54, %v1827_v51  ;;  %v9061_v17 = vadd.f32 %v1818_v43, %v1817_v15  ;;  %v1204_v25 = vmul.u32 %v8878_v53, %v1188_v7  ;;  %v1018_v44 = vadd.s32 127, %v1017_v16 }
  0xb3   :  { %922 = vst [vmem:[#allocation5 + $0x48] sm:$0x1] %v9036_v60  ;;  %924 = vst [vmem:[#allocation5 + $0x50] sm:$0x1] %v9038_v57  ;;  %v9067_v20 = vadd.f32 %v1823_v19, %v1822_v9  ;;  %vm1368_vm12 = vcmp.gt.s32.totalorder %v1367_v23, 0  ;;  %vm1206_vm14 = vc.u32 %v9065_v46, %v8989_v6  ;;  %v1014_v48 = vshll.u32 %v8937_v50, %v1012_v5 }
  0xb4   :  { %1887 = vst [vmem:[#allocation5 + $0x11] sm:$0x1] %v9055_v30  ;;  %v9072_v13 = vadd.f32 %v9055_v30, %v8418_v3  ;;  %1879 = vst [vmem:[#allocation5 + $0x1] sm:$0x1] %v9061_v17  ;;  %v9079_v58 = vadd.f32 %v9061_v17, %v8414_v1  ;;  %v1357_v27 = vand.u32 2147483647, %v8898_v22  ;;  %v1208_v53 = vsel %vm1206_vm14, %v1207_v59, %v8990_v11 }
  0xb5   :  { %1883 = vst [vmem:[#allocation5 + $0x9] sm:$0x1] %v9067_v20  ;;  %v9087_v42 = vadd.f32 %v9067_v20, %v8416_v2  ;;  %v1369_v24 = vsel %vm1368_vm12, %v1367_v23, 0  ;;  %v1209_v10 = vadd.s32 %v1208_v53, %v1204_v25  ;;  %v1015_v29 = vshrl.u32 %v997_v56, %v1013_v31  ;;  %v9102_v54 = vld [vmem:[#allocation2 + $0x9] sm:$0x1] }
  0xb6   :  { %1889 = vst [vmem:[#allocation5 + $0x29] sm:$0x1] %v9072_v13  ;;  %1881 = vst [vmem:[#allocation5 + $0x19] sm:$0x1] %v9079_v58  ;;  %v1371_v45 = vand.u32 31, %v1369_v24  ;;  %v1019_v43 = vshll.u32 %v1018_v44, 23 }
  0xb7   :  { %1885 = vst [vmem:[#allocation5 + $0x21] sm:$0x1] %v9087_v42  ;;  %v1210_v38 = vadd.s32 536870912, %v1209_v10  ;;  %v1364_v18 = vand.u32 8388607, %v1357_v27  ;;  %v9099_v8 = vshrl.u32 %v1369_v24, 5  ;;  %v1016_v9 = vor.u32 %v1015_v29, %v1014_v48 }
  0xb8   :  { %v1372_v63 = vsub.s32 32, %v1371_v45  ;;  %v1374_v62 = vshll.u32 %v12921_v33, %v1371_v45  ;;  %v1377_v11 = vshll.u32 %v12919_v35, %v1371_v45  ;;  %v1383_v50 = vshll.u32 %v12916_v39, %v1371_v45 }
  0xb9   :  { %v9108_v5 = vshrl.u32 %v1210_v38, 30  ;;  %v1380_v19 = vshll.u32 %v12909_v37, %v1371_v45  ;;  %v1020_v16 = vor.u32 4788187, %v1019_v43  ;;  %v1386_v7 = vshll.u32 %v12914_v41, %v1371_v45 }
  0xba   :  { %v1375_v52 = vshrl.u32 %v12919_v35, %v1372_v63  ;;  %v1378_v28 = vshrl.u32 %v12909_v37, %v1372_v63  ;;  %v1381_v51 = vshrl.u32 %v12916_v39, %v1372_v63  ;;  %v1384_v15 = vshrl.u32 %v12914_v41, %v1372_v63 }
  0xbb   :  { %v1387_v12 = vshrl.u32 %v12912_v49, %v1372_v63  ;;  %v1212_v59 = vshll.u32 %v9108_v5, 30  ;;  %v1568_v23 = vand.u32 2139095040, %v9102_v54  ;;  %v1365_v56 = vor.u32 8388608, %v1364_v18 }
  0xbc   :  { %v1376_v25 = vor.u32 %v1375_v52, %v1374_v62  ;;  %v1379_v31 = vor.u32 %v1378_v28, %v1377_v11  ;;  %v1385_v44 = vor.u32 %v1384_v15, %v1383_v50  ;;  %v1382_v53 = vor.u32 %v1381_v51, %v1380_v19 }
  0xbd   :  { %v9117_v24 = vsub.s32 %v1209_v10, %v1212_v59  ;;  %vm1389_vm0 = vcmp.lt.s32.totalorder %v9099_v8, 1  ;;  %vm1392_vm15 = vcmp.lt.s32.totalorder %v9099_v8, 4  ;;  %v1021_v48 = vand.u32 2147483647, %v1020_v16 }
  0xbe   :  { %v1023_v29 = vcvt.s32.f32 %v1016_v9  ;;  %v1388_v45 = vor.u32 %v1387_v12, %v1386_v7  ;;  %vm1391_vm13 = vcmp.lt.s32.totalorder %v9099_v8, 3  ;;  %v1569_v38 = vshrl.u32 %v1568_v23, 23 }
  0xbf   :  { %v1215_v43 = vsub.s32 0, %v9117_v24  ;;  %v1373_v18 = vshrl.u32 %v12921_v33, %v1372_v63  ;;  %vm1390_vm1 = vcmp.lt.s32.totalorder %v9099_v8, 2  ;;  %v1397_v10 = vsel %vm1389_vm0, %v1376_v25, %v1379_v31 }
  0xc0   :  { %v1398_v62 = vsel %vm1392_vm15, %v1385_v44, 920167782  ;;  %v1401_v11 = vsel %vm1389_vm0, %v1379_v31, %v1382_v53  ;;  %v1405_v28 = vshll.u32 %v1365_v56, 8  ;;  %v1024_v50 = vmul.f32 %v1023_v29, %v1021_v48 }
  0xc1   :  { %v7831_v52 = vmin.u32 %v1215_v43, %v9117_v24  ;;  %v1394_v19 = vsel %vm1392_vm15, %v1382_v53, 2102212464  ;;  %v1399_v63 = vsel %vm1391_vm13, %v1382_v53, %v1398_v62  ;;  %v1402_v51 = vsel %vm1392_vm15, %v1388_v45, 1326507024 }
  0xc2   :  { %v1400_v9 = vsel %vm1390_vm1, %v1397_v10, %v1399_v63  ;;  %v1403_v16 = vsel %vm1391_vm13, %v1385_v44, %v1402_v51  ;;  %v7846_v7 = vadd.s32 4294967169, %v1569_v38  ;;  %v1027_v12 = vsub.s32 4, %v8917_v21 }
  0xc3   :  { %v1217_v15 = vclz %v7831_v52  ;;  %v1393_v59 = vsel %vm1389_vm0, %v1373_v18, %v1376_v25  ;;  %v1404_v23 = vsel %vm1390_vm1, %v1401_v11, %v1403_v16  ;;  %v1395_v53 = vsel %vm1391_vm13, %v1379_v31, %v1394_v19 }
  0xc4   :  { %v9149_v48 = vmul.u32.u64.low %v1405_v28, %v1404_v23  ;;  %v9150_v29 = vmul.u32.u64.high %v1405_v28, %v1404_v23, %v9149_v48  ;;  %v1025_v45 = vxor.u32 2147483648, %v1024_v50  ;;  %v1575_v44 = vadd.s32 1, %v7846_v7 }
  0xc5   :  { %v7832_v56 = vadd.s32 4294967294, %v1217_v15  ;;  %v9152_v43 = vmul.u32.u64.low %v1405_v28, %v1400_v9  ;;  %v9153_v10 = vmul.u32.u64.high %v1405_v28, %v1400_v9, %v9152_v43  ;;  %vm943_vm2 = vcmp.lt.s32.totalorder %v8683_v36, 0 }
  0xc6   :  { %v1028_v25 = vsel %vm943_vm2, %v1027_v12, %v8917_v21  ;;  %v1205_v38 = vadd.s32 %v8989_v6, %v9065_v46  ;;  %v1396_v31 = vsel %vm1390_vm1, %v1393_v59, %v1395_v53  ;;  %vm1576_vm4 = vcmp.gt.s32.totalorder %v1575_v44, 0 }
  0xc7   :  { %vm7833_vm3 = vcmp.lt.s32.totalorder %v7832_v56, 0  ;;  %vm942_vm5 = vcmp.le.f32.partialorder %v941_v61, 0.7853982  ;;  %v1026_v11 = vsel %vm943_vm2, %v1025_v45, %v1024_v50  ;;  %v12908_v19 = vand.u32 2147483647, %v9102_v54 }
  0xc8   :  { %v1220_v18 = vsel %vm7833_vm3, 0, %v7832_v56  ;;  %v1030_v63 = vsel %vm942_vm5, 0, %v1028_v25  ;;  %v1412_v15 = vmul.u32 %v1405_v28, %v1396_v31  ;;  %vm1414_vm6 = vc.u32 %v9150_v29, %v9152_v43 }
  0xc9   :  { %v1221_v62 = vsub.s32 32, %v1220_v18  ;;  %v1225_v52 = vsub.s32 4294967266, %v1220_v18  ;;  %v1222_v21 = vshll.u32 %v9117_v24, %v1220_v18  ;;  %v1415_v46 = vadd.s32 1, %v9153_v10 }
  0xca   :  { %v1577_v8 = vsel %vm1576_vm4, %v1575_v44, 0  ;;  %v1029_v9 = vsel %vm942_vm5, %v8683_v36, %v1026_v11  ;;  %v9171_v7 = vand.u32 3, %v1030_v63  ;;  %v1137_v12 = vadd.s32 3, %v1030_v63 }
  0xcb   :  { %v1226_v51 = vadd.s32 127, %v1225_v52  ;;  %v1223_v6 = vshrl.u32 %v1205_v38, %v1221_v62  ;;  %v1416_v61 = vsel %vm1414_vm6, %v1415_v46, %v9153_v10  ;;  %v1579_v50 = vand.u32 31, %v1577_v8  ;;  %v9183_v38 = vld [vmem:[#allocation2 + $0x2] sm:$0x1] }
  0xcc   :  { %vm1151_vm7 = vcmp.lt.s32.totalorder %v8749_v26, 0  ;;  %v1417_v28 = vadd.s32 %v1416_v61, %v1412_v15  ;;  %8201 = vcosq.f32 %v1029_v9  ;;  %v1572_v24 = vand.u32 8388607, %v12908_v19 }
  0xcd   :  { %v1227_v16 = vshll.u32 %v1226_v51, 23  ;;  %v1224_v59 = vor.u32 %v1223_v6, %v1222_v21  ;;  %v1580_v23 = vsub.s32 32, %v1579_v50  ;;  %v9176_v48 = vshrl.u32 %v1577_v8, 5 }
  0xce   :  { %v1418_v53 = vadd.s32 536870912, %v1417_v28  ;;  %v1582_v36 = vshll.u32 %v12921_v33, %v1579_v50  ;;  %v1585_v10 = vshll.u32 %v12919_v35, %v1579_v50  ;;  %v1591_v25 = vshll.u32 %v12916_v39, %v1579_v50 }
  0xcf   :  { %v1228_v56 = vor.u32 4788187, %v1227_v16  ;;  %v1583_v45 = vshrl.u32 %v12919_v35, %v1580_v23  ;;  %v1586_v44 = vshrl.u32 %v12909_v37, %v1580_v23  ;;  %v1588_v31 = vshll.u32 %v12909_v37, %v1579_v50 }
  0xd0   :  { %v9185_v18 = vshrl.u32 %v1418_v53, 30  ;;  %v1589_v62 = vshrl.u32 %v12916_v39, %v1580_v23  ;;  %v1592_v52 = vshrl.u32 %v12914_v41, %v1580_v23  ;;  %8203 = vsinq.f32 %v1029_v9 }
  0xd1   :  { %v1235_v11 = vsub.s32 4, %v9108_v5  ;;  %v1594_v63 = vshll.u32 %v12914_v41, %v1579_v50  ;;  %v1595_v51 = vshrl.u32 %v12912_v49, %v1580_v23  ;;  %v1231_v15 = vcvt.s32.f32 %v1224_v59 }
  0xd2   :  { %v1420_v21 = vshll.u32 %v9185_v18, 30  ;;  %v1573_v6 = vor.u32 8388608, %v1572_v24  ;;  %v1919_v46 = vand.u32 2139095040, %v9183_v38  ;;  %v1229_v8 = vand.u32 2147483647, %v1228_v56 }
  0xd3   :  { %v1584_v16 = vor.u32 %v1583_v45, %v1582_v36  ;;  %v1587_v61 = vor.u32 %v1586_v44, %v1585_v10  ;;  %v1593_v53 = vor.u32 %v1592_v52, %v1591_v25  ;;  %v1590_v37 = vor.u32 %v1589_v62, %v1588_v31 }
  0xd4   :  { %v9195_v19 = vsub.s32 %v1417_v28, %v1420_v21  ;;  %vm1597_vm8 = vcmp.lt.s32.totalorder %v9176_v48, 1  ;;  %vm1600_vm9 = vcmp.lt.s32.totalorder %v9176_v48, 4  ;;  %v9199_v9 = vand.u32 3, %v1137_v12 }
  0xd5   :  { %vm9203_vm10 = vcmp.le.f32.partialorder %v1149_v47, 0.7853982  ;;  %v1236_v59 = vsel %vm1151_vm7, %v1235_v11, %v9108_v5  ;;  %v1596_v24 = vor.u32 %v1595_v51, %v1594_v63  ;;  %v1581_v56 = vshrl.u32 %v12921_v33, %v1580_v23 }
  0xd6   :  { %v1423_v28 = vsub.s32 0, %v9195_v19  ;;  %vm1599_vm11 = vcmp.lt.s32.totalorder %v9176_v48, 3  ;;  %v9213_v36 = vshll.u32 %v1573_v6, 8  ;;  %v8202_v12 = vpop.eup %8201  ;;  %v1232_v45 = vmul.f32 %v1231_v15, %v1229_v8 }
  0xd7   :  { %vm1598_vm12 = vcmp.lt.s32.totalorder %v9176_v48, 2  ;;  %v1605_v47 = vsel %vm1597_vm8, %v1584_v16, %v1587_v61  ;;  %v1606_v10 = vsel %vm1600_vm9, %v1593_v53, 920167782  ;;  %vm1036_vm14 = vcmp.eq.s32.totalorder %v9171_v7, 0 }
  0xd8   :  { %v7839_v5 = vmin.u32 %v1423_v28, %v9195_v19  ;;  %v1602_v23 = vsel %vm1600_vm9, %v1590_v37, 2102212464  ;;  %v1609_v44 = vsel %vm1597_vm8, %v1587_v61, %v1590_v37  ;;  %v1920_v25 = vshrl.u32 %v1919_v46, 23 }
  0xd9   :  { %vm1039_vm0 = vcmp.eq.s32.totalorder %v9171_v7, 2  ;;  %vm1140_vm15 = vcmp.eq.s32.totalorder %v9199_v9, 0  ;;  %v1607_v31 = vsel %vm1599_vm11, %v1590_v37, %v1606_v10  ;;  %v1610_v62 = vsel %vm1600_vm9, %v1596_v24, 1326507024 }
  0xda   :  { %v1238_v52 = vsel %vm9203_vm10, 0, %v1236_v59  ;;  %v1425_v11 = vclz %v7839_v5  ;;  %v1608_v63 = vsel %vm1598_vm12, %v1605_v47, %v1607_v31  ;;  %v1611_v51 = vsel %vm1599_vm11, %v1593_v53, %v1610_v62  ;;  %v8204_v15 = vpop.eup %8203 }
  0xdb   :  { %vm1035_vm13 = vcmp.lt.s32.totalorder %v9171_v7, 2  ;;  %v1233_v21 = vxor.u32 2147483648, %v1232_v45  ;;  %v1601_v37 = vsel %vm1597_vm8, %v1581_v56, %v1584_v16  ;;  %v1603_v6 = vsel %vm1599_vm11, %v1587_v61, %v1602_v23 }
  0xdc   :  { %v1612_v46 = vsel %vm1598_vm12, %v1609_v44, %v1611_v51  ;;  %vm1139_vm1 = vcmp.lt.s32.totalorder %v9199_v9, 2  ;;  %vm1359_vm2 = vcmp.lt.s32.totalorder %v8898_v22, 0  ;;  %v7840_v8 = vadd.s32 4294967294, %v1425_v11  ;;  %v9271_v11 = vld [vmem:[#allocation2 + $0x1] sm:$0x1] }
  0xdd   :  { %v9248_v53 = vmul.u32.u64.low %v9213_v36, %v1612_v46  ;;  %v9249_v59 = vmul.u32.u64.high %v9213_v36, %v1612_v46, %v9248_v53  ;;  %v7854_v24 = vadd.s32 4294967169, %v1920_v25  ;;  %vm1143_vm3 = vcmp.eq.s32.totalorder %v9199_v9, 2 }
  0xde   :  { %v1345_v28 = vadd.s32 3, %v1238_v52  ;;  %v9253_v16 = vmul.u32.u64.low %v9213_v36, %v1608_v63  ;;  %v9254_v56 = vmul.u32.u64.high %v9213_v36, %v1608_v63, %v9253_v16  ;;  %v1413_v61 = vadd.s32 %v9152_v43, %v9150_v29 }
  0xdf   :  { %vm7841_vm4 = vcmp.lt.s32.totalorder %v7840_v8, 0  ;;  %v1604_v47 = vsel %vm1598_vm12, %v1601_v37, %v1603_v6  ;;  %v1926_v10 = vadd.s32 1, %v7854_v24  ;;  %v1037_v5 = vxor.u32 2147483648, %v8204_v15 }
  0xe0   :  { %v1040_v23 = vxor.u32 2147483648, %v8202_v12  ;;  %vm9263_vm5 = vcmp.le.f32.partialorder %v1357_v27, 0.7853982  ;;  %v1428_v25 = vsel %vm7841_vm4, 0, %v7840_v8  ;;  %v1443_v31 = vsub.s32 4, %v9185_v18 }
  0xe1   :  { %v1234_v62 = vsel %vm1151_vm7, %v1233_v21, %v1232_v45  ;;  %v1429_v29 = vsub.s32 32, %v1428_v25  ;;  %v1430_v43 = vshll.u32 %v9195_v19, %v1428_v25  ;;  %v1433_v48 = vsub.s32 4294967266, %v1428_v25 }
  0xe2   :  { %vm1033_vm6 = vweird.f32 %v9271_v11  ;;  %v1620_v63 = vmul.u32 %v9213_v36, %v1604_v47  ;;  %vm1622_vm8 = vc.u32 %v9249_v59, %v9253_v16  ;;  %v1623_v27 = vadd.s32 1, %v9254_v56 }
  0xe3   :  { %vm1927_vm9 = vcmp.gt.s32.totalorder %v1926_v10, 0  ;;  %v1431_v51 = vshrl.u32 %v1413_v61, %v1429_v29  ;;  %v1434_v37 = vadd.s32 127, %v1433_v48  ;;  %v12911_v45 = vand.u32 2147483647, %v9183_v38 }
  0xe4   :  { %v1928_v21 = vsel %vm1927_vm9, %v1926_v10, 0  ;;  %v1038_v19 = vsel %vm1036_vm14, %v8202_v12, %v1037_v5  ;;  %v1041_v6 = vsel %vm1039_vm0, %v1040_v23, %v8204_v15  ;;  %v1145_v36 = vsel %vm1143_vm3, %v1040_v23, %v8204_v15 }
  0xe5   :  { %v1624_v46 = vsel %vm1622_vm8, %v1623_v27, %v9254_v56  ;;  %v1142_v8 = vsel %vm1140_vm15, %v8202_v12, %v1037_v5  ;;  %v1237_v53 = vsel %vm9203_vm10, %v8749_v26, %v1234_v62  ;;  %v1432_v24 = vor.u32 %v1431_v51, %v1430_v43 }
  0xe6   :  { %v1435_v61 = vshll.u32 %v1434_v37, 23  ;;  %v9291_v47 = vand.u32 3, %v1238_v52  ;;  %v1444_v10 = vsel %vm1359_vm2, %v1443_v31, %v9185_v18  ;;  %v1625_v25 = vadd.s32 %v1624_v46, %v1620_v63 }
  0xe7   :  { %v1930_v29 = vand.u32 31, %v1928_v21  ;;  %v9298_v15 = vsel %vm1035_vm13, %v1038_v19, %v1041_v6  ;;  %v9300_v56 = vand.u32 3, %v1345_v28  ;;  %v1439_v5 = vcvt.s32.f32 %v1432_v24 }
  0xe8   :  { %v1436_v12 = vor.u32 4788187, %v1435_v61  ;;  %v1146_v26 = vsel %vm1139_vm1, %v1142_v8, %v1145_v36  ;;  %8205 = vcosq.f32 %v1237_v53  ;;  %v1626_v50 = vadd.s32 536870912, %v1625_v25 }
  0xe9   :  { %v1931_v52 = vsub.s32 32, %v1930_v29  ;;  %8207 = vsinq.f32 %v1237_v53  ;;  %v1446_v18 = vsel %vm9263_vm5, 0, %v1444_v10  ;;  %v9308_v7 = vand.u32 8388607, %v12911_v45 }
  0xea   :  { %v1437_v23 = vand.u32 2147483647, %v1436_v12  ;;  %v9310_v31 = vshrl.u32 %v1626_v50, 30  ;;  %v1933_v28 = vshll.u32 %v12921_v33, %v1930_v29  ;;  %v1936_v62 = vshll.u32 %v12919_v35, %v1930_v29  ;;  %v9336_v50 = vld [vmem:[#allocation2 + $0x1a] sm:$0x1] }
  0xeb   :  { %v1942_v9 = vshll.u32 %v12916_v39, %v1930_v29  ;;  %v1934_v48 = vshrl.u32 %v12919_v35, %v1931_v52  ;;  %v13025_v63 = vmov 2131351028   ;;  %v1943_v51 = vshrl.u32 %v12914_v41, %v1931_v52  ;;  %13026 = vst [vmem:[#allocation20_spill] sm:$0xff] %v9336_v50 }
  0xec   :  { %v1440_v43 = vmul.f32 %v1439_v5, %v1437_v23  ;;  %v1937_v27 = vshrl.u32 %v13025_v63, %v1931_v52  ;;  %v1628_v37 = vshll.u32 %v9310_v31, 30  ;;  %v9319_v19 = vshrl.u32 %v1928_v21, 5 }
  0xed   :  { %v1939_v6 = vshll.u32 %v13025_v63, %v1930_v29  ;;  %v1940_v36 = vshrl.u32 %v12916_v39, %v1931_v52  ;;  %v9325_v46 = vsel %vm1033_vm6, nan, %v1146_v26  ;;  %v9327_v53 = vand.u32 3, %v1446_v18 }
  0xee   :  { %v1441_v8 = vxor.u32 2147483648, %v1440_v43  ;;  %v1553_v24 = vadd.s32 3, %v1446_v18  ;;  %v9329_v61 = vsub.s32 %v1625_v25, %v1628_v37  ;;  %v1924_v10 = vor.u32 8388608, %v9308_v7 }
  0xef   :  { %v1945_v12 = vshll.u32 %v12914_v41, %v1930_v29  ;;  %v1946_v21 = vshrl.u32 %v12912_v49, %v1931_v52  ;;  %v1935_v23 = vor.u32 %v1934_v48, %v1933_v28  ;;  %v1938_v26 = vor.u32 %v1937_v27, %v1936_v62 }
  0xf0   :  { %v1442_v5 = vsel %vm1359_vm2, %v1441_v8, %v1440_v43  ;;  %v1944_v45 = vor.u32 %v1943_v51, %v1942_v9  ;;  %vm1348_vm7 = vcmp.eq.s32.totalorder %v9300_v56, 0  ;;  %vm1351_vm10 = vcmp.eq.s32.totalorder %v9300_v56, 2 }
  0xf1   :  { %v1445_v25 = vsel %vm9263_vm5, %v8898_v22, %v1442_v5  ;;  %v1631_v29 = vsub.s32 0, %v9329_v61  ;;  %v1941_v18 = vor.u32 %v1940_v36, %v1939_v6  ;;  %vm1948_vm11 = vcmp.lt.s32.totalorder %v9319_v19, 1 }
  0xf2   :  { %vm1247_vm12 = vcmp.eq.s32.totalorder %v9291_v47, 2  ;;  %8209 = vcosq.f32 %v1445_v25  ;;  %v1932_v7 = vshrl.u32 %v12921_v33, %v1931_v52  ;;  %vm1950_vm14 = vcmp.lt.s32.totalorder %v9319_v19, 3  ;;  %v8206_v28 = vpop.eup %8205 }
  0xf3   :  { %vm1951_vm0 = vcmp.lt.s32.totalorder %v9319_v19, 4  ;;  %vm1244_vm15 = vcmp.eq.s32.totalorder %v9291_v47, 0  ;;  %8211 = vsinq.f32 %v1445_v25  ;;  %vm1567_vm13 = vcmp.lt.s32.totalorder %v9102_v54, 0  ;;  %v8208_v43 = vpop.eup %8207 }
  0xf4   :  { %v7847_v44 = vmin.u32 %v1631_v29, %v9329_v61  ;;  %v1947_v62 = vor.u32 %v1946_v21, %v1945_v12  ;;  %v2127_v9 = vand.u32 2139095040, %v9336_v50  ;;  %vm1347_vm1 = vcmp.lt.s32.totalorder %v9300_v56, 2 }
  0xf5   :  { %vm1949_vm2 = vcmp.lt.s32.totalorder %v9319_v19, 2  ;;  %v1953_v52 = vsel %vm1951_vm0, %v1941_v18, 2102212464  ;;  %v1956_v48 = vsel %vm1948_vm11, %v1935_v23, %v1938_v26  ;;  %v1957_v27 = vsel %vm1951_vm0, %v1944_v45, 920167782 }
  0xf6   :  { %v9361_v51 = vand.u32 3, %v1553_v24  ;;  %v1621_v37 = vadd.s32 %v9253_v16, %v9249_v59  ;;  %v1633_v6 = vclz %v7847_v44  ;;  %v1958_v36 = vsel %vm1950_vm14, %v1941_v18, %v1957_v27  ;;  %v9379_v16 = vld [vmem:[#allocation2 + $0x19] sm:$0x1] }
  0xf7   :  { %v1248_v8 = vxor.u32 2147483648, %v8206_v28  ;;  %v13027_v12 = vand.u32 2147483647, %v9102_v54  ;;  %v1952_v5 = vsel %vm1948_vm11, %v1932_v7, %v1935_v23  ;;  %v1954_v24 = vsel %vm1950_vm14, %v1938_v26, %v1953_v52 }
  0xf8   :  { %v1960_v59 = vsel %vm1948_vm11, %v1938_v26, %v1941_v18  ;;  %vm1241_vm4 = vweird.f32 %v9379_v16  ;;  %vm1243_vm5 = vcmp.lt.s32.totalorder %v9291_v47, 2  ;;  %v7848_v25 = vadd.s32 4294967294, %v1633_v6 }
  0xf9   :  { %vm9369_vm3 = vcmp.le.f32.partialorder %v13027_v12, 0.7853982  ;;  %v1959_v29 = vsel %vm1949_vm2, %v1956_v48, %v1958_v36  ;;  %v1961_v44 = vsel %vm1951_vm0, %v1947_v62, 1326507024  ;;  %v1964_v23 = vshll.u32 %v1924_v10, 8 }
  0xfa   :  { %v1245_v7 = vxor.u32 2147483648, %v8208_v43  ;;  %vm1452_vm8 = vcmp.eq.s32.totalorder %v9327_v53, 0  ;;  %vm1455_vm9 = vcmp.eq.s32.totalorder %v9327_v53, 2  ;;  %v1651_v26 = vsub.s32 4, %v9310_v31 }
  0xfb   :  { %v1962_v18 = vsel %vm1950_vm14, %v1944_v45, %v1961_v44  ;;  %v2128_v52 = vshrl.u32 %v2127_v9, 23  ;;  %vm7849_vm11 = vcmp.lt.s32.totalorder %v7848_v25, 0  ;;  %v1955_v62 = vsel %vm1949_vm2, %v1952_v5, %v1954_v24 }
  0xfc   :  { %v1963_v27 = vsel %vm1949_vm2, %v1960_v59, %v1962_v18  ;;  %v9394_v48 = vmul.u32.u64.low %v1964_v23, %v1959_v29  ;;  %v9395_v6 = vmul.u32.u64.high %v1964_v23, %v1959_v29, %v9394_v48  ;;  %v1636_v10 = vsel %vm7849_vm11, 0, %v7848_v25  ;;  %v8210_v41 = vpop.eup %8209 }
  0xfd   :  { %v9400_v36 = vmul.u32.u64.low %v1964_v23, %v1963_v27  ;;  %v9401_v12 = vmul.u32.u64.high %v1964_v23, %v1963_v27, %v9400_v36  ;;  %vm1451_vm0 = vcmp.lt.s32.totalorder %v9327_v53, 2  ;;  %v1637_v49 = vsub.s32 32, %v1636_v10  ;;  %v8212_v24 = vpop.eup %8211 }
  0xfe   :  { %v1638_v45 = vshll.u32 %v9329_v61, %v1636_v10  ;;  %v1641_v9 = vsub.s32 4294967266, %v1636_v10  ;;  %v7862_v44 = vadd.s32 4294967169, %v2128_v52  ;;  %v1350_v59 = vsel %vm1348_vm7, %v8206_v28, %v1245_v7 }
  0xff   :  { %v1353_v25 = vsel %vm1351_vm10, %v1248_v8, %v8208_v43  ;;  %vm1555_vm14 = vcmp.lt.s32.totalorder %v9361_v51, 2  ;;  %v1652_v19 = vsel %vm1567_vm13, %v1651_v26, %v9310_v31  ;;  %v12918_v5 = vand.u32 2147483647, %v9336_v50 }
 0x100   :  { %v1249_v61 = vsel %vm1247_vm12, %v1248_v8, %v8208_v43  ;;  %v1639_v29 = vshrl.u32 %v1621_v37, %v1637_v49  ;;  %v1642_v18 = vadd.s32 127, %v1641_v9  ;;  %v1974_v52 = vadd.s32 1, %v9395_v6 }
 0x101   :  { %v1246_v27 = vsel %vm1244_vm15, %v8206_v28, %v1245_v7  ;;  %v1971_v10 = vmul.u32 %v1964_v23, %v1955_v62  ;;  %vm1973_vm7 = vc.u32 %v9401_v12, %v9394_v48  ;;  %v2134_v36 = vadd.s32 1, %v7862_v44 }
 0x102   :  { %v1354_v31 = vsel %vm1347_vm1, %v1350_v59, %v1353_v25  ;;  %v1640_v26 = vor.u32 %v1639_v29, %v1638_v45  ;;  %v1643_v39 = vshll.u32 %v1642_v18, 23  ;;  %v1654_v43 = vsel %vm9369_vm3, 0, %v1652_v19 }
 0x103   :  { %v1453_v49 = vxor.u32 2147483648, %v8212_v24  ;;  %v1456_v37 = vxor.u32 2147483648, %v8210_v41  ;;  %vm1556_vm10 = vcmp.eq.s32.totalorder %v9361_v51, 0  ;;  %v1975_v8 = vsel %vm1973_vm7, %v1974_v52, %v9395_v6  ;;  %v9451_v52 = vld [vmem:[#allocation2 + $0x12] sm:$0x1] }
 0x104   :  { %vm1559_vm12 = vcmp.eq.s32.totalorder %v9361_v51, 2  ;;  %v1644_v28 = vor.u32 4788187, %v1643_v39  ;;  %v1647_v23 = vcvt.s32.f32 %v1640_v26  ;;  %vm2135_vm15 = vcmp.gt.s32.totalorder %v2134_v36, 0 }
 0x105   :  { %v1250_v56 = vsel %vm1243_vm5, %v1246_v27, %v1249_v61  ;;  %v9432_v7 = vsel %vm1241_vm4, nan, %v1354_v31  ;;  %v1761_v62 = vadd.s32 3, %v1654_v43  ;;  %v1976_v45 = vadd.s32 %v1975_v8, %v1971_v10 }
 0x106   :  { %v1454_v9 = vsel %vm1452_vm8, %v8210_v41, %v1453_v49  ;;  %v1457_v6 = vsel %vm1455_vm9, %v1456_v37, %v8212_v24  ;;  %v1645_v44 = vand.u32 2147483647, %v1644_v28  ;;  %v9440_v39 = vand.u32 8388607, %v12918_v5 }
 0x107   :  { %v1558_v59 = vsel %vm1556_vm10, %v8210_v41, %v1453_v49  ;;  %v1561_v47 = vsel %vm1559_vm12, %v1456_v37, %v8212_v24  ;;  %v1977_v25 = vadd.s32 536870912, %v1976_v45  ;;  %v2136_v19 = vsel %vm2135_vm15, %v2134_v36, 0 }
 0x108   :  { %v9445_v61 = vsel %vm1033_vm6, nan, %v9298_v15  ;;  %vm1449_vm1 = vweird.f32 %v8898_v22  ;;  %v1648_v29 = vmul.f32 %v1647_v23, %v1645_v44  ;;  %v9449_v18 = vsub.f32 0.0, %v9325_v46 }
 0x109   :  { %v9455_v27 = vsel %vm1241_vm4, nan, %v1250_v56  ;;  %v1458_v24 = vsel %vm1451_vm0, %v1454_v9, %v1457_v6  ;;  %v9460_v11 = vshrl.u32 %v1977_v25, 30  ;;  %v1562_v15 = vsel %vm1555_vm14, %v1558_v59, %v1561_v47 }
 0x10a   :  { %v1649_v10 = vxor.u32 2147483648, %v1648_v29  ;;  %v9464_v36 = vand.u32 3, %v1654_v43  ;;  %v2138_v31 = vand.u32 31, %v2136_v19  ;;  %v9466_v26 = vand.u32 3, %v1761_v62 }
 0x10b   :  { %v1979_v16 = vshll.u32 %v9460_v11, 30  ;;  %v2132_v49 = vor.u32 8388608, %v9440_v39  ;;  %v9473_v53 = vsel %vm1449_vm1, nan, %v1458_v24  ;;  %v9479_v43 = vadd.s32 %v9394_v48, %v9401_v12 }
 0x10c   :  { %v1650_v51 = vsel %vm1567_vm13, %v1649_v10, %v1648_v29  ;;  %v2139_v8 = vsub.s32 32, %v2138_v31  ;;  %v9483_v28 = vsel %vm1449_vm1, nan, %v1562_v15  ;;  %v2141_v62 = vshll.u32 %v12921_v33, %v2138_v31 }
 0x10d   :  { %v1653_v23 = vsel %vm9369_vm3, %v9102_v54, %v1650_v51  ;;  %v9488_v56 = vsub.s32 %v1976_v45, %v1979_v16  ;;  %v9491_v9 = vshrl.u32 %v2136_v19, 5  ;;  %v2144_v48 = vshll.u32 %v12919_v35, %v2138_v31 }
 0x10e   :  { %8213 = vcosq.f32 %v1653_v23  ;;  %v2142_v6 = vshrl.u32 %v12919_v35, %v2139_v8  ;;  %v12923_v12 = vsub.f32 0.0, %v9483_v28  ;;  %v2147_v44 = vshll.u32 %v13025_v63, %v2138_v31 }
 0x10f   :  { %8215 = vsinq.f32 %v1653_v23  ;;  %v1982_v22 = vsub.s32 0, %v9488_v56  ;;  %vm1663_vm6 = vcmp.eq.s32.totalorder %v9464_v36, 2  ;;  %vm1767_vm13 = vcmp.eq.s32.totalorder %v9466_v26, 2 }
 0x110   :  { %v1773_v21 = vmul.f32 %v9473_v53, %v9455_v27  ;;  %v2145_v45 = vshrl.u32 %v13025_v63, %v2139_v8  ;;  %v13030_v39 = vmov 2102212464   ;;  %vm1660_vm2 = vcmp.eq.s32.totalorder %v9464_v36, 0 }
 0x111   :  { %v2148_v59 = vshrl.u32 %v13030_v39, %v2139_v8  ;;  %v2150_v47 = vshll.u32 %v13030_v39, %v2138_v31  ;;  %vm1764_vm3 = vcmp.eq.s32.totalorder %v9466_v26, 0  ;;  %v9509_v25 = vmul.f32 %v9483_v28, %v9455_v27 }
 0x112   :  { %v1775_v19 = vmul.f32 %v9473_v53, %v9432_v7  ;;  %v7855_v29 = vmin.u32 %v1982_v22, %v9488_v56  ;;  %v2143_v24 = vor.u32 %v2142_v6, %v2141_v62  ;;  %vm1659_vm4 = vcmp.lt.s32.totalorder %v9464_v36, 2 }
 0x113   :  { %vm1763_vm5 = vcmp.lt.s32.totalorder %v9466_v26, 2  ;;  %v2146_v15 = vor.u32 %v2145_v45, %v2144_v48  ;;  %v13031_v10 = vmov 920167782   ;;  %vm2156_vm8 = vcmp.lt.s32.totalorder %v9491_v9, 1 }
 0x114   :  { %v2151_v16 = vshrl.u32 %v13031_v10, %v2139_v8  ;;  %vm2159_vm9 = vcmp.lt.s32.totalorder %v9491_v9, 4  ;;  %vm1657_vm11 = vweird.f32 %v9102_v54  ;;  %v1984_v51 = vclz %v7855_v29 }
 0x115   :  { %v2149_v23 = vor.u32 %v2148_v59, %v2147_v44  ;;  %v2153_v5 = vshll.u32 %v13031_v10, %v2138_v31  ;;  %v13032_v35 = vmov 1326507024   ;;  %v1776_v62 = vmul.f32 %v9483_v28, %v9432_v7 }
 0x116   :  { %v2154_v22 = vshrl.u32 %v13032_v35, %v2139_v8  ;;  %v2152_v6 = vor.u32 %v2151_v16, %v2150_v47  ;;  %vm2157_vm0 = vcmp.lt.s32.totalorder %v9491_v9, 2  ;;  %vm2158_vm14 = vcmp.lt.s32.totalorder %v9491_v9, 3 }
 0x117   :  { %v7856_v48 = vadd.s32 4294967294, %v1984_v51  ;;  %v2140_v45 = vshrl.u32 %v12921_v33, %v2139_v8  ;;  %v2164_v29 = vsel %vm2156_vm8, %v2143_v24, %v2146_v15  ;;  %v1791_v44 = vmul.f32 %v1773_v21, %v9445_v61 }
 0x118   :  { %v2155_v37 = vor.u32 %v2154_v22, %v2153_v5  ;;  %v2161_v31 = vsel %vm2159_vm9, %v2149_v23, 2102212464  ;;  %v2165_v59 = vsel %vm2159_vm9, %v2152_v6, 920167782  ;;  %v9534_v47 = vshll.u32 %v2132_v49, 8  ;;  %v8214_v51 = vpop.eup %8213 }
 0x119   :  { %v1803_v16 = vmul.f32 %v12923_v12, %v9445_v61  ;;  %vm7857_vm7 = vcmp.lt.s32.totalorder %v7856_v48, 0  ;;  %v2166_v5 = vsel %vm2158_vm14, %v2149_v23, %v2165_v59  ;;  %v1794_v22 = vmul.f32 %v1773_v21, %v9449_v18  ;;  %v8216_v12 = vpop.eup %8215 }
 0x11a   :  { %v2169_v8 = vsel %vm2159_vm9, %v2155_v37, 1326507024  ;;  %v2167_v33 = vsel %vm2157_vm0, %v2164_v29, %v2166_v5  ;;  %v2168_v49 = vsel %vm2156_vm8, %v2146_v15, %v2149_v23  ;;  %v1664_v3 = vxor.u32 2147483648, %v8214_v51 }
 0x11b   :  { %v2170_v41 = vsel %vm2158_vm14, %v2152_v6, %v2169_v8  ;;  %v1797_v2 = vmul.f32 %v1775_v19, %v9445_v61  ;;  %v2160_v59 = vsel %vm2156_vm8, %v2140_v45, %v2143_v24  ;;  %v2162_v37 = vsel %vm2158_vm14, %v2146_v15, %v2161_v31 }
 0x11c   :  { %v1661_v21 = vxor.u32 2147483648, %v8216_v12  ;;  %v9555_v1 = vsel %vm7857_vm7, 0, %v7856_v48  ;;  %v9558_v29 = vmul.u32.u64.low %v9534_v47, %v2167_v33  ;;  %v9559_v5 = vmul.u32.u64.high %v9534_v47, %v2167_v33, %v9558_v29 }
 0x11d   :  { %v1665_v23 = vsel %vm1663_vm6, %v1664_v3, %v8216_v12  ;;  %v1769_v6 = vsel %vm1767_vm13, %v1664_v3, %v8216_v12  ;;  %v1800_v8 = vmul.f32 %v1775_v19, %v9449_v18  ;;  %v9569_v24 = vsel %vm2157_vm0, %v2168_v49, %v2170_v41 }
 0x11e   :  { %v1662_v15 = vsel %vm1660_vm2, %v8214_v51, %v1661_v21  ;;  %v1766_v33 = vsel %vm1764_vm3, %v8214_v51, %v1661_v21  ;;  %v13033_v48 = vsub.f32 0.0, %v9483_v28  ;;  %v9580_v31 = vsel %vm2157_vm0, %v2160_v59, %v2162_v37 }
 0x11f   :  { %v1666_v3 = vsel %vm1659_vm4, %v1662_v15, %v1665_v23  ;;  %v1770_v41 = vsel %vm1763_vm5, %v1766_v33, %v1769_v6  ;;  %v9594_v28 = vmul.u32.u64.low %v9534_v47, %v9569_v24  ;;  %v9595_v9 = vmul.u32.u64.high %v9534_v47, %v9569_v24, %v9594_v28 }
 0x120   :  { %v1806_v45 = vmul.f32 %v13033_v48, %v9449_v18  ;;  %v1667_v51 = vsel %vm1657_vm11, nan, %v1666_v3  ;;  %v1771_v18 = vsel %vm1657_vm11, nan, %v1770_v41  ;;  %v13034_v36 = vsub.f32 0.0, %v9432_v7 }
 0x121   :  { %v1778_v49 = vmul.f32 %v9509_v25, %v1771_v18  ;;  %v1783_v59 = vmul.f32 %v1667_v51, %v9455_v27  ;;  %v1784_v37 = vmul.f32 %v1776_v62, %v1771_v18  ;;  %v1789_v21 = vmul.f32 %v1771_v18, %v9473_v53 }
 0x122   :  { %v1777_v26 = vmul.f32 %v1667_v51, %v13034_v36  ;;  %v1772_v23 = vsub.f32 0.0, %v1771_v18  ;;  %v1781_v54 = vmul.f32 %v9509_v25, %v1667_v51  ;;  %v1787_v6 = vmul.f32 %v1776_v62, %v1667_v51 }
 0x123   :  { %v1785_v33 = vadd.f32 %v1784_v37, %v1783_v59  ;;  %v9605_v24 = vmul.f32 %v1667_v51, %v9473_v53  ;;  %v9608_v48 = vadd.s32 1, %v9559_v5  ;;  %v1804_v3 = vmul.f32 %v1789_v21, %v9325_v46 }
 0x124   :  { %v1779_v15 = vadd.f32 %v1778_v49, %v1777_v26  ;;  %v1807_v41 = vmul.f32 %v1789_v21, %v9445_v61  ;;  %v13035_v28 = vmov %v13034_v36  ;;  %v1786_v18 = vmul.f32 %v1772_v23, %v9455_v27 }
 0x125   :  { %v1780_v36 = vmul.f32 %v1772_v23, %v13035_v28  ;;  %v1798_v62 = vmul.f32 %v1785_v33, %v9325_v46  ;;  %v1801_v53 = vmul.f32 %v1785_v33, %v9445_v61  ;;  %v1805_v51 = vadd.f32 %v1804_v3, %v1803_v16 }
 0x126   :  { %v1792_v25 = vmul.f32 %v1779_v15, %v9325_v46  ;;  %v1795_v26 = vmul.f32 %v1779_v15, %v9445_v61  ;;  %v1808_v49 = vadd.f32 %v1807_v41, %v1806_v45  ;;  %v1788_v37 = vadd.f32 %v1787_v6, %v1786_v18 }
 0x127   :  { %v1782_v59 = vadd.f32 %v1781_v54, %v1780_v36  ;;  %v1799_v19 = vadd.f32 %v1798_v62, %v1797_v2  ;;  %v1802_v50 = vadd.f32 %v1801_v53, %v1800_v8  ;;  %v1836_v7 = vmul.f32 %v1805_v51, %v9013_v0 }
 0x128   :  { %v1793_v12 = vadd.f32 %v1792_v25, %v1791_v44  ;;  %v1796_v21 = vadd.f32 %v1795_v26, %v1794_v22  ;;  %v1841_v27 = vmul.f32 %v1808_v49, %v9013_v0  ;;  %v1844_v46 = vmul.f32 %v1788_v37, %v9028_v40 }
 0x129   :  { %v1843_v23 = vmul.f32 %v1782_v59, %v9025_v4  ;;  %v1834_v61 = vmul.f32 %v1799_v19, %v9028_v40  ;;  %v1839_v45 = vmul.f32 %v1802_v50, %v9028_v40  ;;  %v1846_v2 = vmul.f32 %v9605_v24, %v9013_v0 }
 0x12a   :  { %v1833_v15 = vmul.f32 %v1793_v12, %v9025_v4  ;;  %v1838_v16 = vmul.f32 %v1796_v21, %v9025_v4  ;;  %v1848_v22 = vmul.f32 %v1793_v12, %v9036_v60  ;;  %v1849_v8 = vmul.f32 %v1799_v19, %v9038_v57 }
 0x12b   :  { %v1845_v44 = vadd.f32 %v1844_v46, %v1843_v23  ;;  %v1851_v33 = vmul.f32 %v1805_v51, %v9015_v32  ;;  %v1853_v3 = vmul.f32 %v1796_v21, %v9036_v60  ;;  %v1854_v36 = vmul.f32 %v1802_v50, %v9038_v57 }
 0x12c   :  { %v1835_v54 = vadd.f32 %v1834_v61, %v1833_v15  ;;  %v1840_v6 = vadd.f32 %v1839_v45, %v1838_v16  ;;  %v1850_v28 = vadd.f32 %v1849_v8, %v1848_v22  ;;  %v1856_v18 = vmul.f32 %v1808_v49, %v9015_v32  ;;  %v2789_v22 = vld [vmem:[#allocation2 + $0x32] sm:$0x1] }
 0x12d   :  { %v9633_v41 = vadd.f32 %v1846_v2, %v1845_v44  ;;  %v1858_v26 = vmul.f32 %v1782_v59, %v9036_v60  ;;  %v1859_v53 = vmul.f32 %v1788_v37, %v9038_v57  ;;  %v1855_v46 = vadd.f32 %v1854_v36, %v1853_v3  ;;  %v2785_v44 = vld [vmem:[#allocation2 + $0x22] sm:$0x1]  ;;  %v2787_v2 = vld [vmem:[#allocation2 + $0x2a] sm:$0x1] }
 0x12e   :  { %v9637_v25 = vadd.f32 %v1836_v7, %v1835_v54  ;;  %v9639_v62 = vadd.f32 %v1841_v27, %v1840_v6  ;;  %v9644_v23 = vadd.f32 %v1851_v33, %v1850_v28  ;;  %v1861_v15 = vmul.f32 %v9605_v24, %v9015_v32 }
 0x12f   :  { %1895 = vst [vmem:[#allocation5 + $0x41] sm:$0x1] %v9633_v41  ;;  %v1863_v61 = vmul.f32 %v1793_v12, %v9020_v55  ;;  %v1860_v7 = vadd.f32 %v1859_v53, %v1858_v26  ;;  %v1864_v27 = vmul.f32 %v1799_v19, %v9022_v14  ;;  %v1866_v16 = vmul.f32 %v1805_v51, %v9007_v34 }
 0x130   :  { %1891 = vst [vmem:[#allocation5 + $0x31] sm:$0x1] %v9637_v25  ;;  %1893 = vst [vmem:[#allocation5 + $0x39] sm:$0x1] %v9639_v62  ;;  %v1868_v45 = vmul.f32 %v1796_v21, %v9020_v55  ;;  %v9655_v8 = vadd.f32 %v1856_v18, %v1855_v46  ;;  %v1869_v12 = vmul.f32 %v1802_v50, %v9022_v14  ;;  %vm1918_vm15 = vcmp.lt.s32.totalorder %v9183_v38, 0 }
 0x131   :  { %1897 = vst [vmem:[#allocation5 + $0x49] sm:$0x1] %v9644_v23  ;;  %v1871_v54 = vmul.f32 %v1808_v49, %v9007_v34  ;;  %v1873_v6 = vmul.f32 %v1782_v59, %v9020_v55  ;;  %v9660_v33 = vadd.f32 %v1861_v15, %v1860_v7  ;;  %v1865_v19 = vadd.f32 %v1864_v27, %v1863_v61 }
 0x132   :  { %v1874_v51 = vmul.f32 %v1788_v37, %v9022_v14  ;;  %v1876_v21 = vmul.f32 %v9605_v24, %v9007_v34  ;;  %1899 = vst [vmem:[#allocation5 + $0x51] sm:$0x1] %v9655_v8  ;;  %v1870_v3 = vadd.f32 %v1869_v12, %v1868_v45  ;;  %v2790_v28 = vmul.f32 %v2785_v44, %v9637_v25 }
 0x133   :  { %v2791_v36 = vmul.f32 %v2787_v2, %v9639_v62  ;;  %v2793_v50 = vmul.f32 %v2789_v22, %v9633_v41  ;;  %1901 = vst [vmem:[#allocation5 + $0x59] sm:$0x1] %v9660_v33  ;;  %v9670_v49 = vadd.f32 %v1866_v16, %v1865_v19  ;;  %v2795_v18 = vmul.f32 %v2785_v44, %v9644_v23 }
 0x134   :  { %v1875_v59 = vadd.f32 %v1874_v51, %v1873_v6  ;;  %v2796_v37 = vmul.f32 %v2787_v2, %v9655_v8  ;;  %v9674_v26 = vadd.f32 %v1871_v54, %v1870_v3  ;;  %v2798_v53 = vmul.f32 %v2789_v22, %v9660_v33 }
 0x135   :  { %v2792_v24 = vadd.f32 %v2791_v36, %v2790_v28  ;;  %v2179_v46 = vmul.u32 %v9534_v47, %v9580_v31  ;;  %1903 = vst [vmem:[#allocation5 + $0x61] sm:$0x1] %v9670_v49  ;;  %v2800_v7 = vmul.f32 %v2785_v44, %v9670_v49  ;;  %v13036_v27 = vsub.s32 4294967266, %v9555_v1 }
 0x136   :  { %v9680_v15 = vadd.f32 %v1876_v21, %v1875_v59  ;;  %v2797_v61 = vadd.f32 %v2796_v37, %v2795_v18  ;;  %1905 = vst [vmem:[#allocation5 + $0x69] sm:$0x1] %v9674_v26  ;;  %v2801_v12 = vmul.f32 %v2787_v2, %v9674_v26  ;;  %v1989_v54 = vshll.u32 %v9488_v56, %v9555_v1 }
 0x137   :  { %v1993_v16 = vadd.s32 127, %v13036_v27  ;;  %v2794_v45 = vadd.f32 %v2793_v50, %v2792_v24  ;;  %vm2181_vm10 = vc.u32 %v9595_v9, %v9558_v29  ;;  %v13037_v44 = vsub.s32 32, %v9555_v1 }
 0x138   :  { %1907 = vst [vmem:[#allocation5 + $0x71] sm:$0x1] %v9680_v15  ;;  %v2799_v47 = vadd.f32 %v2798_v53, %v2797_v61  ;;  %v2803_v31 = vmul.f32 %v2789_v22, %v9680_v15  ;;  %v2183_v19 = vsel %vm2181_vm10, %v9608_v48, %v9559_v5  ;;  %v2802_v51 = vadd.f32 %v2801_v12, %v2800_v7 }
 0x139   :  { %v1990_v6 = vshrl.u32 %v9479_v43, %v13037_v44  ;;  %v9699_v2 = vadd.f32 %v2794_v45, %v9061_v17  ;;  %v9702_v56 = vadd.f32 %v2794_v45, %v9079_v58  ;;  %v2184_v21 = vadd.s32 %v2183_v19, %v2179_v46 }
 0x13a   :  { %v9705_v3 = vadd.f32 %v2799_v47, %v9067_v20  ;;  %v9708_v22 = vadd.f32 %v2799_v47, %v9087_v42  ;;  %v1994_v1 = vshll.u32 %v1993_v16, 23  ;;  %v13042_v43 = vand.u32 2139095040, %v9451_v52  ;;  %v9730_v47 = vld [vmem:[#allocation2 + $0xa] sm:$0x1] }
 0x13b   :  { %13038 = vst [vmem:[#allocation21_spill] sm:$0xff] %v9699_v2  ;;  %13039 = vst [vmem:[#allocation22_spill] sm:$0xff] %v9702_v56  ;;  %v2804_v5 = vadd.f32 %v2803_v31, %v2802_v51  ;;  %v2185_v48 = vadd.s32 536870912, %v2184_v21  ;;  %v1991_v37 = vor.u32 %v1990_v6, %v1989_v54  ;;  %v12929_v61 = vand.u32 2147483647, %v9451_v52 }
 0x13c   :  { %13040 = vst [vmem:[#allocation23_spill] sm:$0xff] %v9705_v3  ;;  %13041 = vst [vmem:[#allocation24_spill] sm:$0xff] %v9708_v22  ;;  %v2336_v28 = vshrl.u32 %v13042_v43, 23  ;;  %v1995_v24 = vor.u32 4788187, %v1994_v1  ;;  %v2002_v51 = vsub.s32 4, %v9460_v11 }
 0x13d   :  { %2857 = vst [vmem:[#allocation5 + $0x2] sm:$0x1] %v9699_v2  ;;  %2859 = vst [vmem:[#allocation5 + $0x1a] sm:$0x1] %v9702_v56  ;;  %v9717_v50 = vadd.f32 %v2804_v5, %v9055_v30  ;;  %v9720_v59 = vadd.f32 %v2804_v5, %v9072_v13  ;;  %v9722_v18 = vshrl.u32 %v2185_v48, 30  ;;  %v1998_v45 = vcvt.s32.f32 %v1991_v37 }
 0x13e   :  { %2861 = vst [vmem:[#allocation5 + $0xa] sm:$0x1] %v9705_v3  ;;  %2863 = vst [vmem:[#allocation5 + $0x22] sm:$0x1] %v9708_v22  ;;  %v7870_v36 = vadd.s32 4294967169, %v2336_v28  ;;  %v2180_v3 = vadd.s32 %v9558_v29, %v9595_v9 }
 0x13f   :  { %13043 = vst [vmem:[#allocation25_spill] sm:$0xff] %v9717_v50  ;;  %13044 = vst [vmem:[#allocation26_spill] sm:$0xff] %v9720_v59  ;;  %v2187_v46 = vshll.u32 %v9722_v18, 30  ;;  %v1996_v16 = vand.u32 2147483647, %v1995_v24 }
 0x140   :  { %v2342_v53 = vadd.s32 1, %v7870_v36  ;;  %2865 = vst [vmem:[#allocation5 + $0x12] sm:$0x1] %v9717_v50  ;;  %2867 = vst [vmem:[#allocation5 + $0x2a] sm:$0x1] %v9720_v59  ;;  %v2003_v59 = vsel %vm1918_vm15, %v2002_v51, %v9460_v11 }
 0x141   :  { %v9728_v7 = vsub.s32 %v2184_v21, %v2187_v46  ;;  %v2339_v31 = vand.u32 8388607, %v12929_v61  ;;  %v1999_v19 = vmul.f32 %v1998_v45, %v1996_v16  ;;  %v2543_v21 = vand.u32 2139095040, %v9730_v47 }
 0x142   :  { %vm2343_vm12 = vcmp.gt.s32.totalorder %v2342_v53, 0  ;;  %v13045_v28 = vmov 683565275   ;;  %v13046_v48 = vmov 2475754826  }
 0x143   :  { %v2344_v27 = vsel %vm2343_vm12, %v2342_v53, 0  ;;  %v2190_v54 = vsub.s32 0, %v9728_v7  ;;  %v2340_v43 = vor.u32 8388608, %v2339_v31  ;;  %v13047_v31 = vand.u32 2147483647, %v9183_v38 }
 0x144   :  { %v2346_v12 = vand.u32 31, %v2344_v27  ;;  %v2345_v16 = vshrl.u32 %v2344_v27, 5  ;;  %v2000_v27 = vxor.u32 2147483648, %v1999_v19  ;;  %v12948_v38 = vand.u32 2147483647, %v9730_v47 }
 0x145   :  { %v7863_v6 = vmin.u32 %v2190_v54, %v9728_v7  ;;  %vm9749_vm1 = vcmp.le.f32.partialorder %v13047_v31, 0.7853982  ;;  %v9760_v56 = vshll.u32 %v2340_v43, 8 }
 0x146   :  { %v2347_v44 = vsub.s32 32, %v2346_v12  ;;  %v2349_v5 = vshll.u32 %v13045_v28, %v2346_v12  ;;  %v2352_v36 = vshll.u32 %v13046_v48, %v2346_v12  ;;  %v2358_v53 = vshll.u32 %v13030_v39, %v2346_v12 }
 0x147   :  { %v2192_v1 = vclz %v7863_v6  ;;  %v2355_v45 = vshll.u32 %v13025_v63, %v2346_v12  ;;  %v2361_v50 = vshll.u32 %v13031_v10, %v2346_v12  ;;  %vm2364_vm13 = vcmp.lt.s32.totalorder %v2345_v16, 1 }
 0x148   :  { %v2350_v37 = vshrl.u32 %v13046_v48, %v2347_v44  ;;  %v2353_v24 = vshrl.u32 %v13025_v63, %v2347_v44  ;;  %v2359_v46 = vshrl.u32 %v13031_v10, %v2347_v44  ;;  %v2356_v61 = vshrl.u32 %v13030_v39, %v2347_v44 }
 0x149   :  { %v7864_v54 = vadd.s32 4294967294, %v2192_v1  ;;  %v2362_v22 = vshrl.u32 %v13032_v35, %v2347_v44  ;;  %v2544_v1 = vshrl.u32 %v2543_v21, 23  ;;  %v2348_v32 = vshrl.u32 %v13045_v28, %v2347_v44 }
 0x14a   :  { %v2351_v2 = vor.u32 %v2350_v37, %v2349_v5  ;;  %v2354_v34 = vor.u32 %v2353_v24, %v2352_v36  ;;  %v2360_v14 = vor.u32 %v2359_v46, %v2358_v53  ;;  %v2357_v11 = vor.u32 %v2356_v61, %v2355_v45 }
 0x14b   :  { %vm7865_vm6 = vcmp.lt.s32.totalorder %v7864_v54, 0  ;;  %v2363_v21 = vor.u32 %v2362_v22, %v2361_v50  ;;  %v7878_v57 = vadd.s32 4294967169, %v2544_v1  ;;  %vm2365_vm2 = vcmp.lt.s32.totalorder %v2345_v16, 2  ;;  %v13050_v1 = vld [vmem:[#allocation20_spill] sm:$0xff] }
 0x14c   :  { %v2195_v31 = vsel %vm7865_vm6, 0, %v7864_v54  ;;  %vm2366_vm3 = vcmp.lt.s32.totalorder %v2345_v16, 3  ;;  %vm2367_vm4 = vcmp.lt.s32.totalorder %v2345_v16, 4  ;;  %v2372_v43 = vsel %vm2364_vm13, %v2351_v2, %v2354_v34 }
 0x14d   :  { %v2196_v55 = vsub.s32 32, %v2195_v31  ;;  %v2197_v12 = vshll.u32 %v9728_v7, %v2195_v31  ;;  %v2200_v51 = vsub.s32 4294967266, %v2195_v31  ;;  %v2369_v9 = vsel %vm2367_vm4, %v2357_v11, 2102212464 }
 0x14e   :  { %v2373_v5 = vsel %vm2367_vm4, %v2360_v14, 920167782  ;;  %v2368_v36 = vsel %vm2364_vm13, %v2348_v32, %v2351_v2  ;;  %v2370_v37 = vsel %vm2366_vm3, %v2354_v34, %v2369_v9  ;;  %v2376_v61 = vsel %vm2364_vm13, %v2354_v34, %v2357_v11 }
 0x14f   :  { %v2198_v60 = vshrl.u32 %v2180_v3, %v2196_v55  ;;  %v2201_v29 = vadd.s32 127, %v2200_v51  ;;  %v2374_v44 = vsel %vm2366_vm3, %v2357_v11, %v2373_v5  ;;  %v2001_v7 = vsel %vm1918_vm15, %v2000_v27, %v1999_v19  ;;  %v9780_v19 = vld [vmem:[#allocation2 + $0x2] sm:$0x1] }
 0x150   :  { %v2375_v55 = vsel %vm2365_vm2, %v2372_v43, %v2374_v44  ;;  %v2377_v3 = vsel %vm2367_vm4, %v2363_v21, 1326507024  ;;  %v2005_v50 = vsel %vm9749_vm1, 0, %v2003_v59  ;;  %v2371_v32 = vsel %vm2365_vm2, %v2368_v36, %v2370_v37 }
 0x151   :  { %v2202_v22 = vshll.u32 %v2201_v29, 23  ;;  %v2378_v24 = vsel %vm2366_vm3, %v2360_v14, %v2377_v3  ;;  %v9773_v53 = vmul.u32.u64.low %v9760_v56, %v2375_v55  ;;  %v9774_v46 = vmul.u32.u64.high %v9760_v56, %v2375_v55, %v9773_v53 }
 0x152   :  { %v2379_v34 = vsel %vm2365_vm2, %v2376_v61, %v2378_v24  ;;  %v2550_v2 = vadd.s32 1, %v7878_v57  ;;  %v2004_v54 = vsel %vm9749_vm1, %v9780_v19, %v2001_v7  ;;  %v2199_v59 = vor.u32 %v2198_v60, %v2197_v12 }
 0x153   :  { %v9786_v14 = vmul.u32.u64.low %v9760_v56, %v2379_v34  ;;  %v9787_v45 = vmul.u32.u64.high %v9760_v56, %v2379_v34, %v9786_v14  ;;  %vm2126_vm5 = vcmp.lt.s32.totalorder %v13050_v1, 0  ;;  %v2203_v27 = vor.u32 4788187, %v2202_v22  ;;  %v9810_v22 = vld [vmem:[#allocation2 + $0x23] sm:$0x1] }
 0x154   :  { %vm2551_vm8 = vcmp.gt.s32.totalorder %v2550_v2, 0  ;;  %v9790_v16 = vand.u32 3, %v2005_v50  ;;  %v2387_v31 = vmul.u32 %v9760_v56, %v2371_v32  ;;  %v2390_v57 = vadd.s32 1, %v9774_v46 }
 0x155   :  { %v2552_v11 = vsel %vm2551_vm8, %v2550_v2, 0  ;;  %8217 = vcosq.f32 %v2004_v54  ;;  %v2112_v51 = vadd.s32 3, %v2005_v50  ;;  %v13051_v6 = vand.u32 2147483647, %v13050_v1 }
 0x156   :  { %v2210_v12 = vsub.s32 4, %v9722_v18  ;;  %v2554_v21 = vand.u32 31, %v2552_v11  ;;  %8219 = vsinq.f32 %v2004_v54  ;;  %v2206_v29 = vcvt.s32.f32 %v2199_v59  ;;  %v9821_v54 = vld [vmem:[#allocation2 + $0x2b] sm:$0x1] }
 0x157   :  { %vm9796_vm9 = vcmp.le.f32.partialorder %v13051_v6, 0.7853982  ;;  %vm2389_vm11 = vc.u32 %v9787_v45, %v9773_v53  ;;  %v2547_v56 = vand.u32 8388607, %v12948_v38  ;;  %v2204_v9 = vand.u32 2147483647, %v2203_v27 }
 0x158   :  { %v2391_v43 = vsel %vm2389_vm11, %v2390_v57, %v9774_v46  ;;  %v2555_v5 = vsub.s32 32, %v2554_v21  ;;  %v2557_v36 = vshll.u32 %v13045_v28, %v2554_v21  ;;  %v2560_v44 = vshll.u32 %v13046_v48, %v2554_v21 }
 0x159   :  { %v2392_v37 = vadd.s32 %v2391_v43, %v2387_v31  ;;  %v2563_v61 = vshll.u32 %v13025_v63, %v2554_v21  ;;  %v2566_v7 = vshll.u32 %v13030_v39, %v2554_v21  ;;  %v2211_v55 = vsel %vm2126_vm5, %v2210_v12, %v9722_v18 }
 0x15a   :  { %v9815_v3 = vshrl.u32 %v2552_v11, 5  ;;  %v2558_v50 = vshrl.u32 %v13046_v48, %v2555_v5  ;;  %v2561_v24 = vshrl.u32 %v13025_v63, %v2555_v5  ;;  %v2548_v32 = vor.u32 8388608, %v2547_v56 }
 0x15b   :  { %v2393_v46 = vadd.s32 536870912, %v2392_v37  ;;  %v2564_v34 = vshrl.u32 %v13030_v39, %v2555_v5  ;;  %v2567_v2 = vshrl.u32 %v13031_v10, %v2555_v5  ;;  %v2569_v27 = vshll.u32 %v13031_v10, %v2554_v21 }
 0x15c   :  { %v2559_v59 = vor.u32 %v2558_v50, %v2557_v36  ;;  %v2562_v14 = vor.u32 %v2561_v24, %v2560_v44  ;;  %v3768_v18 = vmul.f32 %v9810_v22, %v9637_v25  ;;  %v2207_v31 = vmul.f32 %v2206_v29, %v2204_v9  ;;  %v9838_v29 = vld [vmem:[#allocation2 + $0x33] sm:$0x1] }
 0x15d   :  { %v9826_v57 = vshrl.u32 %v2393_v46, 30  ;;  %v2565_v11 = vor.u32 %v2564_v34, %v2563_v61  ;;  %v2568_v6 = vor.u32 %v2567_v2, %v2566_v7  ;;  %v2570_v12 = vshrl.u32 %v13032_v35, %v2555_v5 }
 0x15e   :  { %vm2572_vm0 = vcmp.lt.s32.totalorder %v9815_v3, 1  ;;  %vm2574_vm14 = vcmp.lt.s32.totalorder %v9815_v3, 3  ;;  %v3769_v56 = vmul.f32 %v9821_v54, %v9639_v62  ;;  %v2213_v21 = vsel %vm9796_vm9, 0, %v2211_v55 }
 0x15f   :  { %v2395_v43 = vshll.u32 %v9826_v57, 30  ;;  %vm2573_vm7 = vcmp.lt.s32.totalorder %v9815_v3, 2  ;;  %vm2575_vm10 = vcmp.lt.s32.totalorder %v9815_v3, 4  ;;  %v9840_v9 = vpop.eup %8217  ;;  %v2571_v36 = vor.u32 %v2570_v12, %v2569_v27 }
 0x160   :  { %v2580_v44 = vsel %vm2572_vm0, %v2559_v59, %v2562_v14  ;;  %v2581_v61 = vsel %vm2575_vm10, %v2568_v6, 920167782  ;;  %v9846_v7 = vshll.u32 %v2548_v32, 8  ;;  %v9848_v55 = vpop.eup %8219  ;;  %v2208_v50 = vxor.u32 2147483648, %v2207_v31 }
 0x161   :  { %v9850_v24 = vsub.s32 %v2392_v37, %v2395_v43  ;;  %v2556_v46 = vshrl.u32 %v13045_v28, %v2555_v5  ;;  %v2582_v34 = vsel %vm2574_vm14, %v2565_v11, %v2581_v61  ;;  %v2577_v2 = vsel %vm2575_vm10, %v2565_v11, 2102212464 }
 0x162   :  { %v2583_v27 = vsel %vm2573_vm7, %v2580_v44, %v2582_v34  ;;  %v3770_v12 = vadd.f32 %v3769_v56, %v3768_v18  ;;  %v3771_v32 = vmul.f32 %v9838_v29, %v9633_v41  ;;  %v9861_v38 = vand.u32 3, %v2112_v51 }
 0x163   :  { %v2398_v37 = vsub.s32 0, %v9850_v24  ;;  %v2584_v5 = vsel %vm2572_vm0, %v2562_v14, %v2565_v11  ;;  %v2585_v43 = vsel %vm2575_vm10, %v2571_v36, 1326507024  ;;  %v2320_v61 = vadd.s32 3, %v2213_v21 }
 0x164   :  { %v2586_v0 = vsel %vm2574_vm14, %v2568_v6, %v2585_v43  ;;  %v9871_v44 = vmul.u32.u64.low %v9846_v7, %v2583_v27  ;;  %v9872_v18 = vmul.u32.u64.high %v9846_v7, %v2583_v27, %v9871_v44  ;;  %v2209_v51 = vsel %vm2126_vm5, %v2208_v50, %v2207_v31 }
 0x165   :  { %v7871_v56 = vmin.u32 %v2398_v37, %v9850_v24  ;;  %v2576_v11 = vsel %vm2572_vm0, %v2556_v46, %v2559_v59  ;;  %v2578_v36 = vsel %vm2574_vm14, %v2562_v14, %v2577_v2  ;;  %v2587_v34 = vsel %vm2573_vm7, %v2584_v5, %v2586_v0 }
 0x166   :  { %v3772_v6 = vadd.f32 %v3771_v32, %v3770_v12  ;;  %v3773_v27 = vmul.f32 %v9810_v22, %v9644_v23  ;;  %v3774_v43 = vmul.f32 %v9821_v54, %v9655_v8  ;;  %vm2011_vm12 = vcmp.eq.s32.totalorder %v9790_v16, 0 }
 0x167   :  { %vm2014_vm15 = vcmp.eq.s32.totalorder %v9790_v16, 2  ;;  %v2400_v31 = vclz %v7871_v56  ;;  %v9891_v59 = vmul.u32.u64.low %v9846_v7, %v2587_v34  ;;  %v9892_v50 = vmul.u32.u64.high %v9846_v7, %v2587_v34, %v9891_v59 }
 0x168   :  { %vm2115_vm1 = vcmp.eq.s32.totalorder %v9861_v38, 0  ;;  %vm2118_vm6 = vcmp.eq.s32.totalorder %v9861_v38, 2  ;;  %v2212_v0 = vsel %vm9796_vm9, %v13050_v1, %v2209_v51  ;;  %v9899_v14 = vand.u32 3, %v2213_v21 }
 0x169   :  { %vm2334_vm13 = vcmp.lt.s32.totalorder %v9451_v52, 0  ;;  %v2579_v46 = vsel %vm2573_vm7, %v2576_v11, %v2578_v36  ;;  %v2015_v2 = vxor.u32 2147483648, %v9840_v9  ;;  %v9905_v12 = vand.u32 3, %v2320_v61 }
 0x16a   :  { %v7872_v32 = vadd.s32 4294967294, %v2400_v31  ;;  %v3776_v37 = vmul.f32 %v9838_v29, %v9660_v33  ;;  %v2598_v5 = vadd.s32 1, %v9872_v18  ;;  %v9911_v60 = vadd.f32 %v3772_v6, %v9061_v17 }
 0x16b   :  { %v9914_v1 = vadd.f32 %v3772_v6, %v9079_v58  ;;  %v3775_v21 = vadd.f32 %v3774_v43, %v3773_v27  ;;  %vm2010_vm2 = vcmp.lt.s32.totalorder %v9790_v16, 2  ;;  %8221 = vcosq.f32 %v2212_v0 }
 0x16c   :  { %13054 = vst [vmem:[#allocation20_spill] sm:$0xff] %v9911_v60  ;;  %v13056_v3 = vand.u32 2147483647, %v9451_v52  ;;  %v2388_v51 = vadd.s32 %v9773_v53, %v9787_v45  ;;  %vm7873_vm4 = vcmp.lt.s32.totalorder %v7872_v32, 0  ;;  %v2595_v17 = vmul.u32 %v9846_v7, %v2579_v46  ;;  %3835 = vst [vmem:[#allocation5 + $0x3] sm:$0x1] %v9911_v60 }
 0x16d   :  { %13055 = vst [vmem:[#allocation27_spill] sm:$0xff] %v9914_v1  ;;  %v2012_v56 = vxor.u32 2147483648, %v9848_v55  ;;  %vm2114_vm5 = vcmp.lt.s32.totalorder %v9861_v38, 2  ;;  %8223 = vsinq.f32 %v2212_v0  ;;  %v2403_v58 = vsel %vm7873_vm4, 0, %v7872_v32  ;;  %3837 = vst [vmem:[#allocation5 + $0x1b] sm:$0x1] %v9914_v1 }
 0x16e   :  { %vm9919_vm3 = vcmp.le.f32.partialorder %v13056_v3, 0.7853982  ;;  %vm2597_vm8 = vc.u32 %v9892_v50, %v9871_v44  ;;  %v2404_v11 = vsub.s32 32, %v2403_v58  ;;  %v2405_v36 = vshll.u32 %v9850_v24, %v2403_v58  ;;  %v9941_v46 = vld [vmem:[#allocation2 + $0x3] sm:$0x1] }
 0x16f   :  { %v2408_v53 = vsub.s32 4294967266, %v2403_v58  ;;  %v2418_v45 = vsub.s32 4, %v9826_v57  ;;  %v2599_v7 = vsel %vm2597_vm8, %v2598_v5, %v9872_v18  ;;  %v3777_v34 = vadd.f32 %v3776_v37, %v3775_v21 }
 0x170   :  { %v3778_v6 = vmul.f32 %v9810_v22, %v9670_v49  ;;  %v3779_v27 = vmul.f32 %v9821_v54, %v9674_v26  ;;  %v2406_v43 = vshrl.u32 %v2388_v51, %v2404_v11  ;;  %v2600_v59 = vadd.s32 %v2599_v7, %v2595_v17 }
 0x171   :  { %v2409_v31 = vadd.s32 127, %v2408_v53  ;;  %v3781_v0 = vmul.f32 %v9838_v29, %v9680_v15  ;;  %v2016_v24 = vsel %vm2014_vm15, %v2015_v2, %v9848_v55  ;;  %v9947_v18 = vadd.f32 %v3777_v34, %v9067_v20 }
 0x172   :  { %v9950_v22 = vadd.f32 %v3777_v34, %v9087_v42  ;;  %v3780_v32 = vadd.f32 %v3779_v27, %v3778_v6  ;;  %v2407_v54 = vor.u32 %v2406_v43, %v2405_v36  ;;  %v2419_v5 = vsel %vm2334_vm13, %v2418_v45, %v9826_v57 }
 0x173   :  { %13059 = vst [vmem:[#allocation28_spill] sm:$0xff] %v9947_v18  ;;  %v2410_v37 = vshll.u32 %v2409_v31, 23  ;;  %v2601_v29 = vadd.s32 536870912, %v2600_v59  ;;  %v2013_v21 = vsel %vm2011_vm12, %v9840_v9, %v2012_v56  ;;  %v2120_v20 = vsel %vm2118_vm6, %v2015_v2, %v9848_v55  ;;  %3839 = vst [vmem:[#allocation5 + $0xb] sm:$0x1] %v9947_v18 }
 0x174   :  { %13060 = vst [vmem:[#allocation29_spill] sm:$0xff] %v9950_v22  ;;  %3841 = vst [vmem:[#allocation5 + $0x23] sm:$0x1] %v9950_v22  ;;  %v3782_v42 = vadd.f32 %v3781_v0, %v3780_v32  ;;  %v2897_v3 = vand.u32 2139095040, %v9941_v46  ;;  %v2117_v57 = vsel %vm2115_vm1, %v9840_v9, %v2012_v56  ;;  %v2414_v17 = vcvt.s32.f32 %v2407_v54 }
 0x175   :  { %v2411_v51 = vor.u32 4788187, %v2410_v37  ;;  %v9967_v58 = vshrl.u32 %v2601_v29, 30  ;;  %v2421_v11 = vsel %vm9919_vm3, 0, %v2419_v5  ;;  %v8222_v53 = vpop.eup %8221  ;;  %vm2008_vm9 = vweird.f32 %v9780_v19 }
 0x176   :  { %v9972_v55 = vadd.f32 %v3782_v42, %v9055_v30  ;;  %v9975_v2 = vadd.f32 %v3782_v42, %v9072_v13  ;;  %v2898_v36 = vshrl.u32 %v2897_v3, 23  ;;  %v2017_v7 = vsel %vm2010_vm2, %v2013_v21, %v2016_v24 }
 0x177   :  { %v2412_v45 = vand.u32 2147483647, %v2411_v51  ;;  %v2603_v9 = vshll.u32 %v9967_v58, 30  ;;  %v8224_v56 = vpop.eup %8223  ;;  %vm2219_vm11 = vcmp.eq.s32.totalorder %v9899_v14, 0  ;;  %v12951_v30 = vand.u32 2147483647, %v9941_v46 }
 0x178   :  { %13061 = vst [vmem:[#allocation30_spill] sm:$0xff] %v9972_v55  ;;  %13062 = vst [vmem:[#allocation31_spill] sm:$0xff] %v9975_v2  ;;  %v7886_v13 = vadd.s32 4294967169, %v2898_v36  ;;  %v2121_v34 = vsel %vm2114_vm5, %v2117_v57, %v2120_v20  ;;  %v2528_v27 = vadd.s32 3, %v2421_v11  ;;  %vm2222_vm0 = vcmp.eq.s32.totalorder %v9899_v14, 2 }
 0x179   :  { %3843 = vst [vmem:[#allocation5 + $0x13] sm:$0x1] %v9972_v55  ;;  %3845 = vst [vmem:[#allocation5 + $0x2b] sm:$0x1] %v9975_v2  ;;  %v2415_v6 = vmul.f32 %v2414_v17, %v2412_v45  ;;  %v9987_v43 = vsub.s32 %v2600_v59, %v2603_v9  ;;  %v2223_v16 = vxor.u32 2147483648, %v8222_v53  ;;  %vm2323_vm14 = vcmp.eq.s32.totalorder %v9905_v12, 0 }
 0x17a   :  { %v2904_v31 = vadd.s32 1, %v7886_v13  ;;  %v2220_v0 = vxor.u32 2147483648, %v8224_v56  ;;  %vm2326_vm7 = vcmp.eq.s32.totalorder %v9905_v12, 2  ;;  %v9995_v38 = vsel %vm2008_vm9, nan, %v2017_v7 }
 0x17b   :  { %v2416_v24 = vxor.u32 2147483648, %v2415_v6  ;;  %v2606_v32 = vsub.s32 0, %v9987_v43  ;;  %v9999_v59 = vsel %vm2008_vm9, nan, %v2121_v34  ;;  %v2901_v54 = vand.u32 8388607, %v12951_v30 }
 0x17c   :  { %vm2905_vm10 = vcmp.gt.s32.totalorder %v2904_v31, 0  ;;  %v10005_v5 = vand.u32 3, %v2421_v11  ;;  %v10007_v29 = vand.u32 3, %v2528_v27  ;;  %v10012_v20 = vsel %vm2222_vm0, %v2223_v16, %v8224_v56 }
 0x17d   :  { %v2417_v37 = vsel %vm2334_vm13, %v2416_v24, %v2415_v6  ;;  %v7879_v21 = vmin.u32 %v2606_v32, %v9987_v43  ;;  %v10014_v19 = vsel %vm2326_vm7, %v2223_v16, %v8224_v56  ;;  %v2906_v3 = vsel %vm2905_vm10, %v2904_v31, 0 }
 0x17e   :  { %v2420_v42 = vsel %vm9919_vm3, %v9451_v52, %v2417_v37  ;;  %v10021_v57 = vsel %vm2219_vm11, %v8222_v53, %v2220_v0  ;;  %vm2542_vm12 = vcmp.lt.s32.totalorder %v9730_v47, 0  ;;  %v2908_v17 = vand.u32 31, %v2906_v3  ;;  %v10049_v37 = vld [vmem:[#allocation2 + $0x1b] sm:$0x1] }
 0x17f   :  { %8225 = vcosq.f32 %v2420_v42  ;;  %v2608_v51 = vclz %v7879_v21  ;;  %v10026_v11 = vsel %vm2323_vm14, %v8222_v53, %v2220_v0  ;;  %v2596_v36 = vadd.s32 %v9871_v44, %v9892_v50  ;;  %13063 = vst [vmem:[#allocation32_spill] sm:$0xff] %v10049_v37 }
 0x180   :  { %8227 = vsinq.f32 %v2420_v42  ;;  %v2902_v61 = vor.u32 8388608, %v2901_v54  ;;  %v2626_v45 = vsub.s32 4, %v9967_v58  ;;  %v2909_v9 = vsub.s32 32, %v2908_v17 }
 0x181   :  { %v7880_v52 = vadd.s32 4294967294, %v2608_v51  ;;  %v2911_v56 = vshll.u32 %v13045_v28, %v2908_v17  ;;  %v2914_v7 = vshll.u32 %v13046_v48, %v2908_v17  ;;  %v2917_v13 = vshll.u32 %v13025_v63, %v2908_v17 }
 0x182   :  { %v2920_v34 = vshll.u32 %v13030_v39, %v2908_v17  ;;  %v2923_v53 = vshll.u32 %v13031_v10, %v2908_v17  ;;  %v10036_v6 = vshrl.u32 %v2906_v3, 5  ;;  %v2912_v44 = vshrl.u32 %v13046_v48, %v2909_v9 }
 0x183   :  { %vm7881_vm15 = vcmp.lt.s32.totalorder %v7880_v52, 0  ;;  %v2915_v50 = vshrl.u32 %v13025_v63, %v2909_v9  ;;  %vm2427_vm1 = vcmp.eq.s32.totalorder %v10005_v5, 0  ;;  %vm2430_vm6 = vcmp.eq.s32.totalorder %v10005_v5, 2 }
 0x184   :  { %v2611_v27 = vsel %vm7881_vm15, 0, %v7880_v52  ;;  %v2918_v16 = vshrl.u32 %v13030_v39, %v2909_v9  ;;  %v2921_v31 = vshrl.u32 %v13031_v10, %v2909_v9  ;;  %v2924_v0 = vshrl.u32 %v13032_v35, %v2909_v9 }
 0x185   :  { %vm2322_vm13 = vcmp.lt.s32.totalorder %v9905_v12, 2  ;;  %vm2531_vm2 = vcmp.eq.s32.totalorder %v10007_v29, 0  ;;  %vm2534_vm3 = vcmp.eq.s32.totalorder %v10007_v29, 2  ;;  %v2612_v24 = vsub.s32 32, %v2611_v27 }
 0x186   :  { %v2613_v32 = vshll.u32 %v9987_v43, %v2611_v27  ;;  %v2616_v54 = vsub.s32 4294967266, %v2611_v27  ;;  %v2913_v21 = vor.u32 %v2912_v44, %v2911_v56  ;;  %v13064_v42 = vand.u32 2147483647, %v9730_v47  ;;  %v10062_v56 = vld [vmem:[#allocation2 + $0x1a] sm:$0x1] }
 0x187   :  { %v2916_v51 = vor.u32 %v2915_v50, %v2914_v7  ;;  %v2919_v17 = vor.u32 %v2918_v16, %v2917_v13  ;;  %v2922_v52 = vor.u32 %v2921_v31, %v2920_v34  ;;  %v2925_v30 = vor.u32 %v2924_v0, %v2923_v53  ;;  %v8317_v31 = vld [vmem:[#allocation2 + $0x12] sm:$0x1] }
 0x188   :  { %vm10053_vm4 = vcmp.le.f32.partialorder %v13064_v42, 0.7853982  ;;  %vm2218_vm5 = vcmp.lt.s32.totalorder %v9899_v14, 2  ;;  %vm2426_vm8 = vcmp.lt.s32.totalorder %v10005_v5, 2  ;;  %v2614_v40 = vshrl.u32 %v2596_v36, %v2612_v24 }
 0x189   :  { %v2617_v43 = vadd.s32 127, %v2616_v54  ;;  %vm2926_vm9 = vcmp.lt.s32.totalorder %v10036_v6, 1  ;;  %v10060_v27 = vshll.u32 %v2902_v61, 8  ;;  %vm2216_vm11 = vweird.f32 %v10062_v56  ;;  %v8226_v13 = vpop.eup %8225 }
 0x18a   :  { %vm2530_vm0 = vcmp.lt.s32.totalorder %v10007_v29, 2  ;;  %v2627_v7 = vsel %vm2542_vm12, %v2626_v45, %v9967_v58  ;;  %vm2928_vm14 = vcmp.lt.s32.totalorder %v10036_v6, 3  ;;  %vm2929_vm7 = vcmp.lt.s32.totalorder %v10036_v6, 4  ;;  %v8228_v50 = vpop.eup %8227 }
 0x18b   :  { %v3105_v36 = vand.u32 2139095040, %v10049_v37  ;;  %v2615_v34 = vor.u32 %v2614_v40, %v2613_v32  ;;  %v2618_v61 = vshll.u32 %v2617_v43, 23  ;;  %v2910_v53 = vshrl.u32 %v13045_v28, %v2909_v9 }
 0x18c   :  { %v2935_v44 = vsel %vm2929_vm7, %v2922_v52, 920167782  ;;  %vm2927_vm10 = vcmp.lt.s32.totalorder %v10036_v6, 2  ;;  %v2934_v58 = vsel %vm2926_vm9, %v2913_v21, %v2916_v51  ;;  %v2938_v45 = vsel %vm2926_vm9, %v2916_v51, %v2919_v17 }
 0x18d   :  { %v2939_v16 = vsel %vm2929_vm7, %v2925_v30, 1326507024  ;;  %vm2424_vm15 = vweird.f32 %v8317_v31  ;;  %v2619_v40 = vor.u32 4788187, %v2618_v61  ;;  %v2622_v0 = vcvt.s32.f32 %v2615_v34 }
 0x18e   :  { %v2931_v9 = vsel %vm2929_vm7, %v2919_v17, 2102212464  ;;  %v2936_v24 = vsel %vm2928_vm14, %v2919_v17, %v2935_v44  ;;  %v2428_v32 = vxor.u32 2147483648, %v8228_v50  ;;  %v2431_v54 = vxor.u32 2147483648, %v8226_v13 }
 0x18f   :  { %v2940_v42 = vsel %vm2928_vm14, %v2922_v52, %v2939_v16  ;;  %v3106_v43 = vshrl.u32 %v3105_v36, 23  ;;  %v2620_v4 = vand.u32 2147483647, %v2619_v40  ;;  %v2930_v30 = vsel %vm2926_vm9, %v2910_v53, %v2913_v21 }
 0x190   :  { %v2941_v61 = vsel %vm2927_vm10, %v2938_v45, %v2940_v42  ;;  %v12958_v34 = vand.u32 2147483647, %v10049_v37  ;;  %v2932_v2 = vsel %vm2928_vm14, %v2916_v51, %v2931_v9  ;;  %v2937_v17 = vsel %vm2927_vm10, %v2934_v58, %v2936_v24 }
 0x191   :  { %v10098_v44 = vmul.u32.u64.low %v10060_v27, %v2941_v61  ;;  %v10099_v55 = vmul.u32.u64.high %v10060_v27, %v2941_v61, %v10098_v44  ;;  %v2429_v52 = vsel %vm2427_vm1, %v8226_v13, %v2428_v32  ;;  %v2432_v21 = vsel %vm2430_vm6, %v2431_v54, %v8228_v50 }
 0x192   :  { %v2623_v36 = vmul.f32 %v2622_v0, %v2620_v4  ;;  %v2629_v53 = vsel %vm10053_vm4, 0, %v2627_v7  ;;  %v2329_v51 = vsel %vm2322_vm13, %v10026_v11, %v10014_v19  ;;  %v2533_v58 = vsel %vm2531_vm2, %v8226_v13, %v2428_v32 }
 0x193   :  { %v2536_v45 = vsel %vm2534_vm3, %v2431_v54, %v8228_v50  ;;  %v7894_v16 = vadd.s32 4294967169, %v3106_v43  ;;  %v2933_v9 = vsel %vm2927_vm10, %v2930_v30, %v2932_v2  ;;  %v2225_v12 = vsel %vm2218_vm5, %v10021_v57, %v10012_v20 }
 0x194   :  { %v2624_v40 = vxor.u32 2147483648, %v2623_v36  ;;  %v10118_v4 = vmul.u32.u64.low %v10060_v27, %v2937_v17  ;;  %v10119_v0 = vmul.u32.u64.high %v10060_v27, %v2937_v17, %v10118_v4  ;;  %v2433_v19 = vsel %vm2426_vm8, %v2429_v52, %v2432_v21 }
 0x195   :  { %v2736_v11 = vadd.s32 3, %v2629_v53  ;;  %v2123_v7 = vsub.f32 0.0, %v9999_v59  ;;  %v10131_v6 = vsel %vm2216_vm11, nan, %v2329_v51  ;;  %v2537_v2 = vsel %vm2530_vm0, %v2533_v58, %v2536_v45 }
 0x196   :  { %v2625_v13 = vsel %vm2542_vm12, %v2624_v40, %v2623_v36  ;;  %v3109_v14 = vand.u32 8388607, %v12958_v34  ;;  %v2949_v20 = vmul.u32 %v10060_v27, %v2933_v9  ;;  %vm2951_vm1 = vc.u32 %v10099_v55, %v10118_v4 }
 0x197   :  { %v2628_v5 = vsel %vm10053_vm4, %v9730_v47, %v2625_v13  ;;  %v3112_v57 = vadd.s32 1, %v7894_v16  ;;  %v10146_v50 = vsel %vm2424_vm15, nan, %v2433_v19  ;;  %v10148_v29 = vand.u32 3, %v2629_v53  ;;  %v10168_v53 = vld [vmem:[#allocation2 + $0x13] sm:$0x1] }
 0x198   :  { %8229 = vcosq.f32 %v2628_v5  ;;  %v2952_v24 = vadd.s32 1, %v10119_v0  ;;  %v2538_v32 = vsel %vm2424_vm15, nan, %v2537_v2  ;;  %v2737_v54 = vand.u32 3, %v2736_v11 }
 0x199   :  { %8231 = vsinq.f32 %v2628_v5  ;;  %vm3113_vm12 = vcmp.gt.s32.totalorder %v3112_v57, 0  ;;  %v10154_v3 = vsel %vm2216_vm11, nan, %v2225_v12  ;;  %v2539_v27 = vsub.f32 0.0, %v2538_v32 }
 0x19a   :  { %v2953_v42 = vsel %vm2951_vm1, %v2952_v24, %v10119_v0  ;;  %v3114_v43 = vsel %vm3113_vm12, %v3112_v57, 0  ;;  %v2748_v30 = vmul.f32 %v10146_v50, %v10154_v3  ;;  %v2750_v61 = vmul.f32 %v10146_v50, %v10131_v6 }
 0x19b   :  { %v2954_v17 = vadd.s32 %v2953_v42, %v2949_v20  ;;  %v3116_v31 = vand.u32 31, %v3114_v43  ;;  %vm2634_vm6 = vcmp.lt.s32.totalorder %v10148_v29, 2  ;;  %vm2635_vm13 = vcmp.eq.s32.totalorder %v10148_v29, 0 }
 0x19c   :  { %v3110_v56 = vor.u32 8388608, %v3109_v14  ;;  %vm2632_vm2 = vweird.f32 %v9730_v47  ;;  %vm2638_vm3 = vcmp.eq.s32.totalorder %v10148_v29, 2  ;;  %vm2738_vm4 = vcmp.lt.s32.totalorder %v2737_v54, 2 }
 0x19d   :  { %vm2739_vm5 = vcmp.eq.s32.totalorder %v2737_v54, 0  ;;  %v2955_v52 = vadd.s32 536870912, %v2954_v17  ;;  %vm2742_vm8 = vcmp.eq.s32.totalorder %v2737_v54, 2  ;;  %v2749_v21 = vmul.f32 %v2538_v32, %v10154_v3 }
 0x19e   :  { %v2751_v36 = vmul.f32 %v2538_v32, %v10131_v6  ;;  %v3117_v51 = vsub.s32 32, %v3116_v31  ;;  %v10171_v58 = vmul.f32 %v2748_v30, %v9995_v38  ;;  %v10174_v45 = vmul.f32 %v2750_v61, %v9995_v38 }
 0x19f   :  { %v2778_v16 = vmul.f32 %v2539_v27, %v9995_v38  ;;  %v10177_v40 = vshrl.u32 %v2955_v52, 30  ;;  %v10179_v9 = vmul.f32 %v2748_v30, %v2123_v7  ;;  %v10181_v0 = vmul.f32 %v2750_v61, %v2123_v7 }
 0x1a0   :  { %v2781_v12 = vmul.f32 %v2539_v27, %v2123_v7  ;;  %v10183_v19 = vshll.u32 %v3110_v56, 8  ;;  %v10186_v2 = vshrl.u32 %v3114_v43, 5  ;;  %v3119_v13 = vshll.u32 %v13045_v28, %v3116_v31 }
 0x1a1   :  { %v2957_v11 = vshll.u32 %v10177_v40, 30  ;;  %v3120_v20 = vshrl.u32 %v13046_v48, %v3117_v51  ;;  %v3122_v57 = vshll.u32 %v13046_v48, %v3116_v31  ;;  %v3123_v24 = vshrl.u32 %v13025_v63, %v3117_v51 }
 0x1a2   :  { %v8230_v5 = vpop.eup %8229  ;;  %v3125_v32 = vshll.u32 %v13025_v63, %v3116_v31  ;;  %v3126_v43 = vshrl.u32 %v13030_v39, %v3117_v51  ;;  %v3128_v30 = vshll.u32 %v13030_v39, %v3116_v31  ;;  %v3129_v56 = vshrl.u32 %v13031_v10, %v3117_v51 }
 0x1a3   :  { %v8232_v7 = vpop.eup %8231  ;;  %v2639_v27 = vxor.u32 2147483648, %v8230_v5  ;;  %v10194_v42 = vsub.s32 %v2954_v17, %v2957_v11  ;;  %v10200_v52 = vshll.u32 %v13031_v10, %v3116_v31  ;;  %v10203_v34 = vshrl.u32 %v13032_v35, %v3117_v51 }
 0x1a4   :  { %v2636_v61 = vxor.u32 2147483648, %v8232_v7  ;;  %v10210_v11 = vshrl.u32 %v13045_v28, %v3117_v51  ;;  %v10215_v31 = vor.u32 %v3120_v20, %v3119_v13  ;;  %v10217_v1 = vor.u32 %v3123_v24, %v3122_v57 }
 0x1a5   :  { %v2640_v14 = vsel %vm2638_vm3, %v2639_v27, %v8232_v7  ;;  %v2744_v44 = vsel %vm2742_vm8, %v2639_v27, %v8232_v7  ;;  %v2960_v17 = vsub.s32 0, %v10194_v42  ;;  %v10225_v27 = vor.u32 %v3126_v43, %v3125_v32 }
 0x1a6   :  { %v2637_v22 = vsel %vm2635_vm13, %v8230_v5, %v2636_v61  ;;  %v2741_v18 = vsel %vm2739_vm5, %v8230_v5, %v2636_v61  ;;  %v10231_v13 = vor.u32 %v3129_v56, %v3128_v30  ;;  %v3133_v20 = vor.u32 %v10203_v34, %v10200_v52 }
 0x1a7   :  { %v2641_v60 = vsel %vm2634_vm6, %v2637_v22, %v2640_v14  ;;  %v2745_v37 = vsel %vm2738_vm4, %v2741_v18, %v2744_v44  ;;  %v10223_v7 = vmin.u32 %v2960_v17, %v10194_v42  ;;  %v13067_v22 = vsub.f32 0.0, %v10131_v6 }
 0x1a8   :  { %v2642_v51 = vsel %vm2632_vm2, nan, %v2641_v60  ;;  %v2746_v5 = vsel %vm2632_vm2, nan, %v2745_v37  ;;  %vm3134_vm9 = vcmp.lt.s32.totalorder %v10186_v2, 1  ;;  %vm3137_vm11 = vcmp.lt.s32.totalorder %v10186_v2, 4 }
 0x1a9   :  { %v2752_v29 = vmul.f32 %v2642_v51, %v13067_v22  ;;  %v2753_v18 = vmul.f32 %v2749_v21, %v2746_v5  ;;  %v2758_v54 = vmul.f32 %v2642_v51, %v10154_v3  ;;  %v2759_v44 = vmul.f32 %v2751_v36, %v2746_v5 }
 0x1aa   :  { %v2764_v14 = vmul.f32 %v2746_v5, %v10146_v50  ;;  %v2747_v57 = vsub.f32 0.0, %v2746_v5  ;;  %v2756_v24 = vmul.f32 %v2749_v21, %v2642_v51  ;;  %v2762_v60 = vmul.f32 %v2751_v36, %v2642_v51 }
 0x1ab   :  { %v2754_v32 = vadd.f32 %v2753_v18, %v2752_v29  ;;  %v2760_v47 = vadd.f32 %v2759_v44, %v2758_v54  ;;  %v10240_v37 = vmul.f32 %v2642_v51, %v10146_v50  ;;  %v2962_v43 = vclz %v10223_v7 }
 0x1ac   :  { %v2779_v30 = vmul.f32 %v2764_v14, %v9999_v59  ;;  %v2782_v61 = vmul.f32 %v2764_v14, %v9995_v38  ;;  %v13068_v56 = vmov %v13067_v22  ;;  %v2761_v22 = vmul.f32 %v2747_v57, %v10154_v3 }
 0x1ad   :  { %v2755_v17 = vmul.f32 %v2747_v57, %v13068_v56  ;;  %v2767_v5 = vmul.f32 %v2754_v32, %v9999_v59  ;;  %v2773_v21 = vmul.f32 %v2760_v47, %v9999_v59  ;;  %v2770_v36 = vmul.f32 %v2754_v32, %v9995_v38 }
 0x1ae   :  { %v2776_v50 = vmul.f32 %v2760_v47, %v9995_v38  ;;  %v2780_v51 = vadd.f32 %v2779_v30, %v2778_v16  ;;  %v2783_v29 = vadd.f32 %v2782_v61, %v2781_v12  ;;  %v2763_v54 = vadd.f32 %v2762_v60, %v2761_v22 }
 0x1af   :  { %v2757_v18 = vadd.f32 %v2756_v24, %v2755_v17  ;;  %v2768_v44 = vadd.f32 %v2767_v5, %v10171_v58  ;;  %v2774_v14 = vadd.f32 %v2773_v21, %v10174_v45  ;;  %v2771_v6 = vadd.f32 %v2770_v36, %v10179_v9 }
 0x1b0   :  { %v2777_v3 = vadd.f32 %v2776_v50, %v10181_v0  ;;  %v2814_v57 = vmul.f32 %v2780_v51, %v9633_v41  ;;  %v2819_v59 = vmul.f32 %v2783_v29, %v9633_v41  ;;  %v2822_v38 = vmul.f32 %v2763_v54, %v9639_v62 }
 0x1b1   :  { %v2821_v32 = vmul.f32 %v2757_v18, %v9637_v25  ;;  %v2811_v58 = vmul.f32 %v2768_v44, %v9637_v25  ;;  %v2812_v45 = vmul.f32 %v2774_v14, %v9639_v62  ;;  %v2816_v16 = vmul.f32 %v2771_v6, %v9637_v25 }
 0x1b2   :  { %v2817_v9 = vmul.f32 %v2777_v3, %v9639_v62  ;;  %v2824_v12 = vmul.f32 %v10240_v37, %v9633_v41  ;;  %v2826_v24 = vmul.f32 %v2768_v44, %v9644_v23  ;;  %v2827_v60 = vmul.f32 %v2774_v14, %v9655_v8 }
 0x1b3   :  { %v2823_v0 = vadd.f32 %v2822_v38, %v2821_v32  ;;  %v2813_v47 = vadd.f32 %v2812_v45, %v2811_v58  ;;  %v2829_v61 = vmul.f32 %v2780_v51, %v9660_v33  ;;  %v2831_v56 = vmul.f32 %v2771_v6, %v9644_v23 }
 0x1b4   :  { %v2818_v30 = vadd.f32 %v2817_v9, %v2816_v16  ;;  %vm3135_vm0 = vcmp.lt.s32.totalorder %v10186_v2, 2  ;;  %v2828_v22 = vadd.f32 %v2827_v60, %v2826_v24  ;;  %v2832_v5 = vmul.f32 %v2777_v3, %v9655_v8 }
 0x1b5   :  { %v10273_v17 = vadd.f32 %v2824_v12, %v2823_v0  ;;  %v2834_v21 = vmul.f32 %v2783_v29, %v9660_v33  ;;  %v10277_v36 = vadd.f32 %v2814_v57, %v2813_v47  ;;  %v2836_v32 = vmul.f32 %v2757_v18, %v9644_v23 }
 0x1b6   :  { %v10279_v50 = vadd.f32 %v2819_v59, %v2818_v30  ;;  %v2837_v38 = vmul.f32 %v2763_v54, %v9655_v8  ;;  %v10284_v58 = vadd.f32 %v2829_v61, %v2828_v22  ;;  %v2833_v45 = vadd.f32 %v2832_v5, %v2831_v56 }
 0x1b7   :  { %13069 = vst [vmem:[#allocation33_spill] sm:$0xff] %v10273_v17  ;;  %13070 = vst [vmem:[#allocation34_spill] sm:$0xff] %v10277_v36  ;;  %v2839_v16 = vmul.f32 %v10240_v37, %v9660_v33  ;;  %v2841_v9 = vmul.f32 %v2768_v44, %v9670_v49  ;;  %v2842_v59 = vmul.f32 %v2774_v14, %v9674_v26  ;;  %vm3136_vm14 = vcmp.lt.s32.totalorder %v10186_v2, 3 }
 0x1b8   :  { %13071 = vst [vmem:[#allocation35_spill] sm:$0xff] %v10279_v50  ;;  %2873 = vst [vmem:[#allocation5 + $0x42] sm:$0x1] %v10273_v17  ;;  %v2838_v57 = vadd.f32 %v2837_v38, %v2836_v32  ;;  %v2844_v0 = vmul.f32 %v2780_v51, %v9680_v15  ;;  %v2846_v12 = vmul.f32 %v2771_v6, %v9670_v49  ;;  %v7888_v6 = vadd.s32 4294967294, %v2962_v43 }
 0x1b9   :  { %13072 = vst [vmem:[#allocation36_spill] sm:$0xff] %v10284_v58  ;;  %2869 = vst [vmem:[#allocation5 + $0x32] sm:$0x1] %v10277_v36  ;;  %v10295_v24 = vadd.f32 %v2834_v21, %v2833_v45  ;;  %v2847_v60 = vmul.f32 %v2777_v3, %v9674_v26  ;;  %v2849_v47 = vmul.f32 %v2783_v29, %v9680_v15  ;;  %v3139_v29 = vsel %vm3137_vm11, %v10225_v27, 2102212464 }
 0x1ba   :  { %2871 = vst [vmem:[#allocation5 + $0x3a] sm:$0x1] %v10279_v50  ;;  %2875 = vst [vmem:[#allocation5 + $0x4a] sm:$0x1] %v10284_v58  ;;  %v2851_v44 = vmul.f32 %v2757_v18, %v9670_v49  ;;  %v10300_v30 = vadd.f32 %v2839_v16, %v2838_v57  ;;  %v2843_v61 = vadd.f32 %v2842_v59, %v2841_v9  ;;  %v3143_v7 = vsel %vm3137_vm11, %v10231_v13, 920167782 }
 0x1bb   :  { %13073 = vst [vmem:[#allocation37_spill] sm:$0xff] %v10295_v24  ;;  %v2852_v56 = vmul.f32 %v2763_v54, %v9674_v26  ;;  %v2854_v51 = vmul.f32 %v10240_v37, %v9680_v15  ;;  %2877 = vst [vmem:[#allocation5 + $0x52] sm:$0x1] %v10295_v24  ;;  %v2848_v14 = vadd.f32 %v2847_v60, %v2846_v12  ;;  %vm7889_vm7 = vcmp.lt.s32.totalorder %v7888_v6, 0 }
 0x1bc   :  { %13074 = vst [vmem:[#allocation38_spill] sm:$0xff] %v10300_v30  ;;  %2879 = vst [vmem:[#allocation5 + $0x5a] sm:$0x1] %v10300_v30  ;;  %v10313_v18 = vadd.f32 %v2844_v0, %v2843_v61  ;;  %v3142_v37 = vsel %vm3134_vm9, %v10215_v31, %v10217_v1  ;;  %v2965_v22 = vsel %vm7889_vm7, 0, %v7888_v6  ;;  %v3144_v5 = vsel %vm3136_vm14, %v10225_v27, %v3143_v7 }
 0x1bd   :  { %v2853_v54 = vadd.f32 %v2852_v56, %v2851_v44  ;;  %v10322_v43 = vadd.f32 %v2849_v47, %v2848_v14  ;;  %v13078_v21 = vand.u32 2139095040, %v10168_v53  ;;  %v2970_v38 = vsub.s32 4294967266, %v2965_v22 }
 0x1be   :  { %13075 = vst [vmem:[#allocation39_spill] sm:$0xff] %v10313_v18  ;;  %2881 = vst [vmem:[#allocation5 + $0x62] sm:$0x1] %v10313_v18  ;;  %v3138_v45 = vsel %vm3134_vm9, %v10210_v11, %v10215_v31  ;;  %v3140_v16 = vsel %vm3136_vm14, %v10217_v1, %v3139_v29  ;;  %v3145_v9 = vsel %vm3135_vm0, %v3142_v37, %v3144_v5  ;;  %v3147_v11 = vsel %vm3137_vm11, %v3133_v20, 1326507024 }
 0x1bf   :  { %13076 = vst [vmem:[#allocation40_spill] sm:$0xff] %v10322_v43  ;;  %v10325_v3 = vadd.f32 %v2854_v51, %v2853_v54  ;;  %v3314_v32 = vshrl.u32 %v13078_v21, 23  ;;  %2883 = vst [vmem:[#allocation5 + $0x6a] sm:$0x1] %v10322_v43  ;;  %v3146_v57 = vsel %vm3134_vm9, %v10217_v1, %v10225_v27  ;;  %v2950_v0 = vadd.s32 %v10118_v4, %v10099_v55  ;;  %v10366_v20 = vld [vmem:[#allocation2 + $0xb] sm:$0x1] }
 0x1c0   :  { %v10353_v31 = vmul.u32.u64.low %v10183_v19, %v3145_v9  ;;  %v10354_v59 = vmul.u32.u64.high %v10183_v19, %v3145_v9, %v10353_v31  ;;  %v2966_v12 = vsub.s32 32, %v2965_v22  ;;  %v3148_v60 = vsel %vm3136_vm14, %v10231_v13, %v3147_v11 }
 0x1c1   :  { %13077 = vst [vmem:[#allocation41_spill] sm:$0xff] %v10325_v3  ;;  %2885 = vst [vmem:[#allocation5 + $0x72] sm:$0x1] %v10325_v3  ;;  %v2971_v1 = vadd.s32 127, %v2970_v38  ;;  %v3141_v34 = vsel %vm3135_vm0, %v3138_v45, %v3140_v16  ;;  %v3149_v52 = vsel %vm3135_vm0, %v3146_v57, %v3148_v60  ;;  %v7902_v27 = vadd.s32 4294967169, %v3314_v32 }
 0x1c2   :  { %v10369_v47 = vmul.u32.u64.low %v10183_v19, %v3149_v52  ;;  %v10370_v44 = vmul.u32.u64.high %v10183_v19, %v3149_v52, %v10369_v47  ;;  %v3160_v55 = vadd.s32 1, %v10354_v59  ;;  %v2967_v61 = vshll.u32 %v10194_v42, %v2965_v22 }
 0x1c3   :  { %v3320_v4 = vadd.s32 1, %v7902_v27  ;;  %v2968_v13 = vshrl.u32 %v2950_v0, %v2966_v12  ;;  %v3157_v56 = vmul.u32 %v10183_v19, %v3141_v34  ;;  %v3310_v51 = vand.u32 2147483647, %v10168_v53 }
 0x1c4   :  { %v2972_v14 = vshll.u32 %v2971_v1, 23  ;;  %v3521_v2 = vand.u32 2139095040, %v10366_v20  ;;  %vm3159_vm15 = vc.u32 %v10370_v44, %v10353_v31  ;;  %vm2896_vm3 = vcmp.lt.s32.totalorder %v9941_v46, 0 }
 0x1c5   :  { %vm3321_vm10 = vcmp.gt.s32.totalorder %v3320_v4, 0  ;;  %v3161_v29 = vsel %vm3159_vm15, %v3160_v55, %v10354_v59  ;;  %v2969_v37 = vor.u32 %v2968_v13, %v2967_v61  ;;  %v3317_v42 = vand.u32 8388607, %v3310_v51 }
 0x1c6   :  { %v3322_v6 = vsel %vm3321_vm10, %v3320_v4, 0  ;;  %v3162_v7 = vadd.s32 %v3161_v29, %v3157_v56  ;;  %v2973_v22 = vor.u32 4788187, %v2972_v14  ;;  %v3522_v21 = vshrl.u32 %v3521_v2, 23 }
 0x1c7   :  { %v3324_v54 = vand.u32 31, %v3322_v6  ;;  %v3323_v12 = vshrl.u32 %v3322_v6, 5  ;;  %v2976_v52 = vcvt.s32.f32 %v2969_v37  ;;  %v3318_v2 = vor.u32 8388608, %v3317_v42 }
 0x1c8   :  { %v3163_v32 = vadd.s32 536870912, %v3162_v7  ;;  %v2974_v34 = vand.u32 2147483647, %v2973_v22  ;;  %v7910_v27 = vadd.s32 4294967169, %v3522_v21  ;;  %v2980_v6 = vsub.s32 4, %v10177_v40 }
 0x1c9   :  { %v3325_v19 = vsub.s32 32, %v3324_v54  ;;  %v3327_v5 = vshll.u32 %v13045_v28, %v3324_v54  ;;  %v3330_v38 = vshll.u32 %v13046_v48, %v3324_v54  ;;  %v3333_v45 = vshll.u32 %v13025_v63, %v3324_v54 }
 0x1ca   :  { %v3336_v16 = vshll.u32 %v13030_v39, %v3324_v54  ;;  %v3339_v59 = vshll.u32 %v13031_v10, %v3324_v54  ;;  %v10390_v0 = vshrl.u32 %v3163_v32, 30  ;;  %vm3342_vm1 = vcmp.lt.s32.totalorder %v3323_v12, 1 }
 0x1cb   :  { %v3328_v9 = vshrl.u32 %v13046_v48, %v3325_v19  ;;  %v3331_v57 = vshrl.u32 %v13025_v63, %v3325_v19  ;;  %v3334_v11 = vshrl.u32 %v13030_v39, %v3325_v19  ;;  %v3337_v60 = vshrl.u32 %v13031_v10, %v3325_v19 }
 0x1cc   :  { %v3340_v1 = vshrl.u32 %v13032_v35, %v3325_v19  ;;  %v3165_v47 = vshll.u32 %v10390_v0, 30  ;;  %vm3345_vm12 = vcmp.lt.s32.totalorder %v3323_v12, 4  ;;  %v2977_v29 = vmul.f32 %v2976_v52, %v2974_v34 }
 0x1cd   :  { %v3329_v55 = vor.u32 %v3328_v9, %v3327_v5  ;;  %v3332_v4 = vor.u32 %v3331_v57, %v3330_v38  ;;  %v3335_v61 = vor.u32 %v3334_v11, %v3333_v45  ;;  %v3338_v13 = vor.u32 %v3337_v60, %v3336_v16 }
 0x1ce   :  { %v3341_v56 = vor.u32 %v3340_v1, %v3339_v59  ;;  %v3166_v14 = vsub.s32 %v3162_v7, %v3165_v47  ;;  %v3528_v54 = vadd.s32 1, %v7910_v27  ;;  %v3326_v22 = vshrl.u32 %v13045_v28, %v3325_v19 }
 0x1cf   :  { %vm3343_vm6 = vcmp.lt.s32.totalorder %v3323_v12, 2  ;;  %vm3344_vm13 = vcmp.lt.s32.totalorder %v3323_v12, 3  ;;  %v3350_v37 = vsel %vm3342_vm1, %v3329_v55, %v3332_v4  ;;  %v3351_v5 = vsel %vm3345_vm12, %v3338_v13, 920167782 }
 0x1d0   :  { %v3168_v32 = vsub.s32 0, %v3166_v14  ;;  %v3354_v21 = vsel %vm3342_vm1, %v3332_v4, %v3335_v61  ;;  %v3355_v7 = vsel %vm3345_vm12, %v3341_v56, 1326507024  ;;  %v13079_v42 = vand.u32 2147483647, %v9941_v46 }
 0x1d1   :  { %v3358_v19 = vshll.u32 %v3318_v2, 8  ;;  %v2978_v16 = vxor.u32 2147483648, %v2977_v29  ;;  %v3347_v9 = vsel %vm3345_vm12, %v3335_v61, 2102212464  ;;  %v3352_v57 = vsel %vm3344_vm13, %v3335_v61, %v3351_v5 }
 0x1d2   :  { %vm10403_vm2 = vcmp.le.f32.partialorder %v13079_v42, 0.7853982  ;;  %v7895_v45 = vmin.u32 %v3168_v32, %v3166_v14  ;;  %v3356_v11 = vsel %vm3344_vm13, %v3338_v13, %v3355_v7  ;;  %v3353_v60 = vsel %vm3343_vm6, %v3350_v37, %v3352_v57 }
 0x1d3   :  { %v3357_v1 = vsel %vm3343_vm6, %v3354_v21, %v3356_v11  ;;  %vm3529_vm4 = vcmp.gt.s32.totalorder %v3528_v54, 0  ;;  %v2981_v34 = vsel %vm2896_vm3, %v2980_v6, %v10177_v40  ;;  %v3346_v52 = vsel %vm3342_vm1, %v3326_v22, %v3329_v55 }
 0x1d4   :  { %v3170_v59 = vclz %v7895_v45  ;;  %v12966_v27 = vand.u32 2147483647, %v10366_v20  ;;  %v3530_v47 = vsel %vm3529_vm4, %v3528_v54, 0  ;;  %v3348_v61 = vsel %vm3344_vm13, %v3332_v4, %v3347_v9 }
 0x1d5   :  { %v10419_v2 = vmul.u32.u64.low %v3358_v19, %v3357_v1  ;;  %v10420_v13 = vmul.u32.u64.high %v3358_v19, %v3357_v1, %v10419_v2  ;;  %v2979_v32 = vsel %vm2896_vm3, %v2978_v16, %v2977_v29  ;;  %v3532_v21 = vand.u32 31, %v3530_v47 }
 0x1d6   :  { %v7896_v56 = vadd.s32 4294967294, %v3170_v59  ;;  %v10424_v37 = vmul.u32.u64.low %v3358_v19, %v3353_v60  ;;  %v10425_v5 = vmul.u32.u64.high %v3358_v19, %v3353_v60, %v10424_v37  ;;  %v2983_v40 = vsel %vm10403_vm2, 0, %v2981_v34 }
 0x1d7   :  { %v3158_v55 = vadd.s32 %v10353_v31, %v10370_v44  ;;  %v3349_v4 = vsel %vm3343_vm6, %v3346_v52, %v3348_v61  ;;  %v2982_v54 = vsel %vm10403_vm2, %v9941_v46, %v2979_v32  ;;  %v3533_v7 = vsub.s32 32, %v3532_v21 }
 0x1d8   :  { %vm7897_vm5 = vcmp.lt.s32.totalorder %v7896_v56, 0  ;;  %v3090_v42 = vadd.s32 3, %v2983_v40  ;;  %v3525_v16 = vand.u32 8388607, %v12966_v27  ;;  %v3365_v57 = vmul.u32 %v3358_v19, %v3349_v4 }
 0x1d9   :  { %v3173_v6 = vsel %vm7897_vm5, 0, %v7896_v56  ;;  %vm3367_vm8 = vc.u32 %v10420_v13, %v10424_v37  ;;  %v10440_v31 = vshrl.u32 %v3530_v47, 5  ;;  %8233 = vcosq.f32 %v2982_v54 }
 0x1da   :  { %v3174_v29 = vsub.s32 32, %v3173_v6  ;;  %v3175_v22 = vshll.u32 %v3166_v14, %v3173_v6  ;;  %v3178_v45 = vsub.s32 4294967266, %v3173_v6  ;;  %v3368_v12 = vadd.s32 1, %v10425_v5 }
 0x1db   :  { %v3535_v46 = vshll.u32 %v13045_v28, %v3532_v21  ;;  %v3536_v38 = vshrl.u32 %v13046_v48, %v3533_v7  ;;  %v3538_v11 = vshll.u32 %v13046_v48, %v3532_v21  ;;  %v3539_v59 = vshrl.u32 %v13025_v63, %v3533_v7 }
 0x1dc   :  { %v3176_v9 = vshrl.u32 %v3158_v55, %v3174_v29  ;;  %v3179_v44 = vadd.s32 127, %v3178_v45  ;;  %v3369_v19 = vsel %vm3367_vm8, %v3368_v12, %v10425_v5  ;;  %v3541_v1 = vshll.u32 %v13025_v63, %v3532_v21  ;;  %v13082_v29 = vld [vmem:[#allocation32_spill] sm:$0xff] }
 0x1dd   :  { %v3542_v34 = vshrl.u32 %v13030_v39, %v3533_v7  ;;  %8235 = vsinq.f32 %v2982_v54  ;;  %v3370_v52 = vadd.s32 %v3369_v19, %v3365_v57  ;;  %v3526_v47 = vor.u32 8388608, %v3525_v16 }
 0x1de   :  { %v3177_v14 = vor.u32 %v3176_v9, %v3175_v22  ;;  %v3180_v60 = vshll.u32 %v3179_v44, 23  ;;  %vm3550_vm9 = vcmp.lt.s32.totalorder %v10440_v31, 1  ;;  %v3540_v61 = vor.u32 %v3539_v59, %v3538_v11 }
 0x1df   :  { %v3544_v2 = vshll.u32 %v13030_v39, %v3532_v21  ;;  %v3545_v32 = vshrl.u32 %v13031_v10, %v3533_v7  ;;  %v3371_v55 = vadd.s32 536870912, %v3370_v52  ;;  %v3543_v6 = vor.u32 %v3542_v34, %v3541_v1 }
 0x1e0   :  { %v3181_v56 = vor.u32 4788187, %v3180_v60  ;;  %v3547_v4 = vshll.u32 %v13031_v10, %v3532_v21  ;;  %v3548_v5 = vshrl.u32 %v13032_v35, %v3533_v7  ;;  %vm3104_vm11 = vcmp.lt.s32.totalorder %v13082_v29, 0 }
 0x1e1   :  { %v3184_v22 = vcvt.s32.f32 %v3177_v14  ;;  %v3537_v54 = vor.u32 %v3536_v38, %v3535_v46  ;;  %v3546_v45 = vor.u32 %v3545_v32, %v3544_v2  ;;  %vm3553_vm0 = vcmp.lt.s32.totalorder %v10440_v31, 4 }
 0x1e2   :  { %v3182_v16 = vand.u32 2147483647, %v3181_v56  ;;  %v10457_v9 = vshrl.u32 %v3371_v55, 30  ;;  %v3549_v57 = vor.u32 %v3548_v5, %v3547_v4  ;;  %vm3552_vm14 = vcmp.lt.s32.totalorder %v10440_v31, 3 }
 0x1e3   :  { %v10460_v44 = vand.u32 3, %v2983_v40  ;;  %v10462_v12 = vand.u32 3, %v3090_v42  ;;  %v3534_v21 = vshrl.u32 %v13045_v28, %v3533_v7  ;;  %v3559_v11 = vsel %vm3553_vm0, %v3546_v45, 920167782  ;;  %v10479_v7 = vld [vmem:[#allocation2 + $0x4] sm:$0x1]  ;;  %v8234_v59 = vpop.eup %8233 }
 0x1e4   :  { %v13083_v46 = vand.u32 2147483647, %v13082_v29  ;;  %v3373_v38 = vshll.u32 %v10457_v9, 30  ;;  %vm3551_vm10 = vcmp.lt.s32.totalorder %v10440_v31, 2  ;;  %v3555_v40 = vsel %vm3553_vm0, %v3543_v6, 2102212464 }
 0x1e5   :  { %v3562_v42 = vsel %vm3550_vm9, %v3540_v61, %v3543_v6  ;;  %v3558_v60 = vsel %vm3550_vm9, %v3537_v54, %v3540_v61  ;;  %v3560_v19 = vsel %vm3552_vm14, %v3543_v6, %v3559_v11  ;;  %v3563_v1 = vsel %vm3553_vm0, %v3549_v57, 1326507024 }
 0x1e6   :  { %vm10469_vm7 = vcmp.le.f32.partialorder %v13083_v46, 0.7853982  ;;  %v3566_v34 = vshll.u32 %v3526_v47, 8  ;;  %v3185_v56 = vmul.f32 %v3184_v22, %v3182_v16  ;;  %v3188_v2 = vsub.s32 4, %v10390_v0 }
 0x1e7   :  { %v10488_v32 = vsub.s32 %v3370_v52, %v3373_v38  ;;  %v3564_v55 = vsel %vm3552_vm14, %v3546_v45, %v3563_v1  ;;  %vm3312_vm15 = vcmp.lt.s32.totalorder %v10168_v53, 0  ;;  %v3554_v4 = vsel %vm3550_vm9, %v3534_v21, %v3537_v54  ;;  %v8236_v22 = vpop.eup %8235 }
 0x1e8   :  { %v3556_v6 = vsel %vm3552_vm14, %v3540_v61, %v3555_v40  ;;  %v3565_v5 = vsel %vm3551_vm10, %v3562_v42, %v3564_v55  ;;  %v3875_v47 = vand.u32 2139095040, %v10479_v7  ;;  %vm2989_vm1 = vcmp.eq.s32.totalorder %v10460_v44, 0 }
 0x1e9   :  { %vm2992_vm12 = vcmp.eq.s32.totalorder %v10460_v44, 2  ;;  %v3376_v52 = vsub.s32 0, %v10488_v32  ;;  %v3561_v45 = vsel %vm3551_vm10, %v3558_v60, %v3560_v19  ;;  %vm3093_vm6 = vcmp.eq.s32.totalorder %v10462_v12, 0 }
 0x1ea   :  { %v10506_v54 = vmul.u32.u64.low %v3566_v34, %v3565_v5  ;;  %v10507_v16 = vmul.u32.u64.high %v3566_v34, %v3565_v5, %v10506_v54  ;;  %v3876_v61 = vshrl.u32 %v3875_v47, 23  ;;  %vm2988_vm13 = vcmp.lt.s32.totalorder %v10460_v44, 2 }
 0x1eb   :  { %v3186_v57 = vxor.u32 2147483648, %v3185_v56  ;;  %v3189_v21 = vsel %vm3104_vm11, %v3188_v2, %v10390_v0  ;;  %vm10515_vm2 = vcmp.le.f32.partialorder %v3310_v51, 0.7853982  ;;  %v7903_v46 = vmin.u32 %v3376_v52, %v10488_v32 }
 0x1ec   :  { %v3557_v38 = vsel %vm3551_vm10, %v3554_v4, %v3556_v6  ;;  %v2990_v40 = vxor.u32 2147483648, %v8236_v22  ;;  %v2993_v42 = vxor.u32 2147483648, %v8234_v59  ;;  %vm3096_vm3 = vcmp.eq.s32.totalorder %v10462_v12, 2 }
 0x1ed   :  { %v10522_v60 = vmul.u32.u64.low %v3566_v34, %v3561_v45  ;;  %v10523_v19 = vmul.u32.u64.high %v3566_v34, %v3561_v45, %v10522_v60  ;;  %v3378_v1 = vclz %v7903_v46  ;;  %v3396_v0 = vsub.s32 4, %v10457_v9 }
 0x1ee   :  { %v7918_v2 = vadd.s32 4294967169, %v3876_v61  ;;  %v2994_v51 = vsel %vm2992_vm12, %v2993_v42, %v8236_v22  ;;  %vm3092_vm4 = vcmp.lt.s32.totalorder %v10462_v12, 2  ;;  %v3191_v31 = vsel %vm10469_vm7, 0, %v3189_v21 }
 0x1ef   :  { %v3573_v55 = vmul.u32 %v3566_v34, %v3557_v38  ;;  %v3187_v4 = vsel %vm3104_vm11, %v3186_v57, %v3185_v56  ;;  %v7904_v6 = vadd.s32 4294967294, %v3378_v1  ;;  %vm3575_vm5 = vc.u32 %v10507_v16, %v10522_v60 }
 0x1f0   :  { %v3882_v5 = vadd.s32 1, %v7918_v2  ;;  %v2991_v47 = vsel %vm2989_vm1, %v8234_v59, %v2990_v40  ;;  %v3095_v52 = vsel %vm3093_vm6, %v8234_v59, %v2990_v40  ;;  %v3098_v45 = vsel %vm3096_vm3, %v2993_v42, %v8236_v22 }
 0x1f1   :  { %v3576_v54 = vadd.s32 1, %v10523_v19  ;;  %v3366_v61 = vadd.s32 %v10424_v37, %v10420_v13  ;;  %vm7905_vm8 = vcmp.lt.s32.totalorder %v7904_v6, 0  ;;  %v3397_v34 = vsel %vm3312_vm15, %v3396_v0, %v10457_v9  ;;  %v8318_v9 = vld [vmem:[#allocation2 + $0x3] sm:$0x1] }
 0x1f2   :  { %vm3883_vm9 = vcmp.gt.s32.totalorder %v3882_v5, 0  ;;  %v3190_v56 = vsel %vm10469_vm7, %v13082_v29, %v3187_v4  ;;  %v3381_v57 = vsel %vm7905_vm8, 0, %v7904_v6  ;;  %v3298_v13 = vadd.s32 3, %v3191_v31 }
 0x1f3   :  { %v3577_v21 = vsel %vm3575_vm5, %v3576_v54, %v10523_v19  ;;  %v3884_v59 = vsel %vm3883_vm9, %v3882_v5, 0  ;;  %v3382_v22 = vsub.s32 32, %v3381_v57  ;;  %v3383_v46 = vshll.u32 %v10488_v32, %v3381_v57 }
 0x1f4   :  { %v3386_v38 = vsub.s32 4294967266, %v3381_v57  ;;  %v3578_v40 = vadd.s32 %v3577_v21, %v3573_v55  ;;  %v3399_v37 = vsel %vm10515_vm2, 0, %v3397_v34  ;;  %v3886_v42 = vand.u32 31, %v3884_v59 }
 0x1f5   :  { %vm2986_vm11 = vweird.f32 %v8318_v9  ;;  %v3384_v1 = vshrl.u32 %v3366_v61, %v3382_v22  ;;  %v2995_v29 = vsel %vm2988_vm13, %v2991_v47, %v2994_v51  ;;  %v3099_v19 = vsel %vm3092_vm4, %v3095_v52, %v3098_v45  ;;  %v10563_v61 = vld [vmem:[#allocation2 + $0x1c] sm:$0x1] }
 0x1f6   :  { %v3387_v0 = vadd.s32 127, %v3386_v38  ;;  %v3579_v14 = vadd.s32 536870912, %v3578_v40  ;;  %8237 = vcosq.f32 %v3190_v56  ;;  %v12965_v32 = vand.u32 2147483647, %v10479_v7  ;;  %13088 = vst [vmem:[#allocation32_spill] sm:$0xff] %v10563_v61 }
 0x1f7   :  { %v3385_v2 = vor.u32 %v3384_v1, %v3383_v46  ;;  %v3506_v4 = vadd.s32 3, %v3399_v37  ;;  %v10557_v6 = vand.u32 3, %v3191_v31  ;;  %v10559_v5 = vand.u32 3, %v3298_v13 }
 0x1f8   :  { %v3388_v55 = vshll.u32 %v3387_v0, 23  ;;  %v10561_v54 = vshrl.u32 %v3579_v14, 30  ;;  %v3887_v34 = vsub.s32 32, %v3886_v42  ;;  %v10566_v44 = vsel %vm2986_vm11, nan, %v2995_v29 }
 0x1f9   :  { %v10569_v12 = vsel %vm2986_vm11, nan, %v3099_v19  ;;  %v3392_v47 = vcvt.s32.f32 %v3385_v2  ;;  %8239 = vsinq.f32 %v3190_v56  ;;  %v10571_v52 = vand.u32 3, %v3399_v37 }
 0x1fa   :  { %v3389_v51 = vor.u32 4788187, %v3388_v55  ;;  %v3581_v31 = vshll.u32 %v10561_v54, 30  ;;  %v3879_v45 = vand.u32 8388607, %v12965_v32  ;;  %v10576_v21 = vand.u32 3, %v3506_v4 }
 0x1fb   :  { %v10579_v22 = vadd.s32 %v10522_v60, %v10507_v16  ;;  %v4083_v46 = vand.u32 2139095040, %v10563_v61  ;;  %v3889_v13 = vshll.u32 %v13045_v28, %v3886_v42  ;;  %v3890_v56 = vshrl.u32 %v13046_v48, %v3887_v34 }
 0x1fc   :  { %v3390_v57 = vand.u32 2147483647, %v3389_v51  ;;  %v10582_v38 = vsub.s32 %v3578_v40, %v3581_v31  ;;  %v3892_v37 = vshll.u32 %v13046_v48, %v3886_v42  ;;  %v3893_v1 = vshrl.u32 %v13025_v63, %v3887_v34 }
 0x1fd   :  { %v3895_v0 = vshll.u32 %v13025_v63, %v3886_v42  ;;  %v3896_v14 = vshrl.u32 %v13030_v39, %v3887_v34  ;;  %v3880_v60 = vor.u32 8388608, %v3879_v45  ;;  %v3885_v29 = vshrl.u32 %v3884_v59, 5 }
 0x1fe   :  { %v3393_v9 = vmul.f32 %v3392_v47, %v3390_v57  ;;  %v3584_v16 = vsub.s32 0, %v10582_v38  ;;  %v3898_v2 = vshll.u32 %v13030_v39, %v3886_v42  ;;  %v3899_v55 = vshrl.u32 %v13031_v10, %v3887_v34 }
 0x1ff   :  { %v4084_v4 = vshrl.u32 %v4083_v46, 23  ;;  %v3888_v31 = vshrl.u32 %v13045_v28, %v3887_v34  ;;  %v3891_v57 = vor.u32 %v3890_v56, %v3889_v13  ;;  %v3901_v32 = vshll.u32 %v13031_v10, %v3886_v42 }
 0x200   :  { %v3394_v19 = vxor.u32 2147483648, %v3393_v9  ;;  %v10594_v51 = vpop.eup %8237  ;;  %v7911_v47 = vmin.u32 %v3584_v16, %v10582_v38  ;;  %v3894_v45 = vor.u32 %v3893_v1, %v3892_v37  ;;  %v3897_v40 = vor.u32 %v3896_v14, %v3895_v0 }
 0x201   :  { %v3902_v27 = vshrl.u32 %v13032_v35, %v3887_v34  ;;  %vm3304_vm0 = vcmp.eq.s32.totalorder %v10559_v5, 2  ;;  %v3900_v16 = vor.u32 %v3899_v55, %v3898_v2  ;;  %vm3904_vm14 = vcmp.lt.s32.totalorder %v3885_v29, 1 }
 0x202   :  { %v3395_v59 = vsel %vm3312_vm15, %v3394_v19, %v3393_v9  ;;  %v3586_v3 = vclz %v7911_v47  ;;  %vm3301_vm7 = vcmp.eq.s32.totalorder %v10559_v5, 0  ;;  %vm3520_vm10 = vcmp.lt.s32.totalorder %v10366_v20, 0 }
 0x203   :  { %v3398_v46 = vsel %vm10515_vm2, %v10168_v53, %v3395_v59  ;;  %vm3905_vm15 = vcmp.lt.s32.totalorder %v3885_v29, 2  ;;  %v10609_v42 = vshll.u32 %v3880_v60, 8  ;;  %v8240_v34 = vpop.eup %8239  ;;  %v3903_v37 = vor.u32 %v3902_v27, %v3901_v32 }
 0x204   :  { %8241 = vcosq.f32 %v3398_v46  ;;  %v7912_v56 = vadd.s32 4294967294, %v3586_v3  ;;  %vm3906_vm1 = vcmp.lt.s32.totalorder %v3885_v29, 3  ;;  %vm3197_vm12 = vcmp.eq.s32.totalorder %v10557_v6, 0 }
 0x205   :  { %8243 = vsinq.f32 %v3398_v46  ;;  %vm3200_vm6 = vcmp.eq.s32.totalorder %v10557_v6, 2  ;;  %vm3907_vm13 = vcmp.lt.s32.totalorder %v3885_v29, 4  ;;  %v3908_v11 = vsel %vm3904_vm14, %v3888_v31, %v3891_v57  ;;  %v10627_v46 = vld [vmem:[#allocation2 + $0x1b] sm:$0x1] }
 0x206   :  { %v3912_v9 = vsel %vm3904_vm14, %v3891_v57, %v3894_v45  ;;  %v3916_v1 = vsel %vm3904_vm14, %v3894_v45, %v3897_v40  ;;  %vm3300_vm2 = vcmp.lt.s32.totalorder %v10559_v5, 2  ;;  %v13089_v0 = vand.u32 2147483647, %v10366_v20 }
 0x207   :  { %vm7913_vm4 = vcmp.lt.s32.totalorder %v7912_v56, 0  ;;  %v3909_v3 = vsel %vm3907_vm13, %v3897_v40, 2102212464  ;;  %v3913_v27 = vsel %vm3907_vm13, %v3900_v16, 920167782  ;;  %v7926_v32 = vadd.s32 4294967169, %v4084_v4 }
 0x208   :  { %vm10619_vm3 = vcmp.le.f32.partialorder %v13089_v0, 0.7853982  ;;  %v3589_v60 = vsel %vm7913_vm4, 0, %v7912_v56  ;;  %v3910_v19 = vsel %vm3906_vm1, %v3894_v45, %v3909_v3  ;;  %v3914_v2 = vsel %vm3906_vm1, %v3897_v40, %v3913_v27 }
 0x209   :  { %v3917_v55 = vsel %vm3907_vm13, %v3903_v37, 1326507024  ;;  %v3590_v47 = vsub.s32 32, %v3589_v60  ;;  %v3591_v31 = vshll.u32 %v10582_v38, %v3589_v60  ;;  %v3594_v57 = vsub.s32 4294967266, %v3589_v60 }
 0x20a   :  { %v3604_v59 = vsub.s32 4, %v10561_v54  ;;  %vm3194_vm5 = vweird.f32 %v10627_v46  ;;  %vm3196_vm8 = vcmp.lt.s32.totalorder %v10557_v6, 2  ;;  %v3198_v0 = vxor.u32 2147483648, %v8240_v34 }
 0x20b   :  { %v3911_v4 = vsel %vm3905_vm15, %v3908_v11, %v3910_v19  ;;  %v3915_v45 = vsel %vm3905_vm15, %v3912_v9, %v3914_v2  ;;  %v3918_v40 = vsel %vm3906_vm1, %v3900_v16, %v3917_v55  ;;  %v3592_v56 = vshrl.u32 %v10579_v22, %v3590_v47 }
 0x20c   :  { %v3595_v37 = vadd.s32 127, %v3594_v57  ;;  %v3919_v38 = vsel %vm3905_vm15, %v3916_v1, %v3918_v40  ;;  %v4090_v3 = vadd.s32 1, %v7926_v32  ;;  %vm3405_vm9 = vcmp.eq.s32.totalorder %v10571_v52, 0 }
 0x20d   :  { %v10637_v27 = vmul.u32.u64.low %v10609_v42, %v3919_v38  ;;  %v10638_v60 = vmul.u32.u64.high %v10609_v42, %v3919_v38, %v10637_v27  ;;  %v10641_v13 = vmul.u32.u64.low %v10609_v42, %v3915_v45  ;;  %v10642_v43 = vmul.u32.u64.high %v10609_v42, %v3915_v45, %v10641_v13 }
 0x20e   :  { %v3593_v11 = vor.u32 %v3592_v56, %v3591_v31  ;;  %v3596_v9 = vshll.u32 %v3595_v37, 23  ;;  %v3605_v22 = vsel %vm3520_vm10, %v3604_v59, %v10561_v54  ;;  %v8242_v29 = vpop.eup %8241  ;;  %v13092_v16 = vxor.u32 2147483648, %v10594_v51 }
 0x20f   :  { %vm3408_vm11 = vcmp.eq.s32.totalorder %v10571_v52, 2  ;;  %vm3509_vm14 = vcmp.eq.s32.totalorder %v10576_v21, 0  ;;  %vm4091_vm15 = vcmp.gt.s32.totalorder %v4090_v3, 0  ;;  %v8244_v32 = vpop.eup %8243  ;;  %v3303_v19 = vsel %vm3301_vm7, %v10594_v51, %v3198_v0 }
 0x210   :  { %v3306_v1 = vsel %vm3304_vm0, %v13092_v16, %v8240_v34  ;;  %v3597_v2 = vor.u32 4788187, %v3596_v9  ;;  %v3600_v55 = vcvt.s32.f32 %v3593_v11  ;;  %v3927_v54 = vmul.u32 %v10609_v42, %v3911_v4 }
 0x211   :  { %v3607_v47 = vsel %vm10619_vm3, 0, %v3605_v22  ;;  %vm3929_vm0 = vc.u32 %v10638_v60, %v10641_v13  ;;  %v3930_v31 = vadd.s32 1, %v10642_v43  ;;  %v13093_v57 = vand.u32 2147483647, %v10563_v61 }
 0x212   :  { %v3199_v45 = vsel %vm3197_vm12, %v10594_v51, %v3198_v0  ;;  %v13094_v40 = vmov %v13092_v16  ;;  %vm3402_vm7 = vweird.f32 %v10168_v53  ;;  %v3598_v4 = vand.u32 2147483647, %v3597_v2 }
 0x213   :  { %v4087_v59 = vand.u32 8388607, %v13093_v57  ;;  %v3202_v42 = vsel %vm3200_vm6, %v13094_v40, %v8240_v34  ;;  %v4092_v56 = vsel %vm4091_vm15, %v4090_v3, 0  ;;  %v3307_v37 = vsel %vm3300_vm2, %v3303_v19, %v3306_v1 }
 0x214   :  { %v3406_v38 = vxor.u32 2147483648, %v8244_v32  ;;  %v3409_v27 = vxor.u32 2147483648, %v8242_v29  ;;  %v3931_v11 = vsel %vm3929_vm0, %v3930_v31, %v10642_v43  ;;  %vm3512_vm1 = vcmp.eq.s32.totalorder %v10576_v21, 2 }
 0x215   :  { %v3601_v9 = vmul.f32 %v3600_v55, %v3598_v4  ;;  %v3714_v0 = vadd.s32 3, %v3607_v47  ;;  %v3932_v22 = vadd.s32 %v3931_v11, %v3927_v54  ;;  %vm3404_vm12 = vcmp.lt.s32.totalorder %v10571_v52, 2 }
 0x216   :  { %v3407_v51 = vsel %vm3405_vm9, %v8242_v29, %v3406_v38  ;;  %v3410_v34 = vsel %vm3408_vm11, %v3409_v27, %v8244_v32  ;;  %v4094_v3 = vand.u32 31, %v4092_v56  ;;  %v3203_v5 = vsel %vm3196_vm8, %v3199_v45, %v3202_v42 }
 0x217   :  { %v10687_v43 = vsel %vm3194_vm5, nan, %v3307_v37  ;;  %vm3508_vm6 = vcmp.lt.s32.totalorder %v10576_v21, 2  ;;  %v3602_v16 = vxor.u32 2147483648, %v3601_v9  ;;  %v3511_v1 = vsel %vm3509_vm14, %v8242_v29, %v3406_v38 }
 0x218   :  { %v3514_v19 = vsel %vm3512_vm1, %v3409_v27, %v8244_v32  ;;  %v3933_v2 = vadd.s32 536870912, %v3932_v22  ;;  %v4088_v55 = vor.u32 8388608, %v4087_v59  ;;  %v3411_v54 = vsel %vm3404_vm12, %v3407_v51, %v3410_v34  ;;  %v10706_v32 = vld [vmem:[#allocation2 + $0x14] sm:$0x1] }
 0x219   :  { %v3603_v52 = vsel %vm3520_vm10, %v3602_v16, %v3601_v9  ;;  %v10694_v31 = vand.u32 3, %v3607_v47  ;;  %v10696_v6 = vand.u32 3, %v3714_v0  ;;  %v10700_v57 = vsel %vm3194_vm5, nan, %v3203_v5 }
 0x21a   :  { %v3606_v45 = vsel %vm10619_vm3, %v10366_v20, %v3603_v52  ;;  %v3101_v29 = vsub.f32 0.0, %v10569_v12  ;;  %v4095_v59 = vsub.s32 32, %v4094_v3  ;;  %v3515_v47 = vsel %vm3508_vm6, %v3511_v1, %v3514_v19 }
 0x21b   :  { %8245 = vcosq.f32 %v3606_v45  ;;  %v10711_v42 = vshrl.u32 %v3933_v2, 30  ;;  %v10715_v46 = vsel %vm3402_vm7, nan, %v3411_v54  ;;  %v10717_v14 = vshll.u32 %v4088_v55, 8 }
 0x21c   :  { %8247 = vsinq.f32 %v3606_v45  ;;  %vm3616_vm10 = vcmp.eq.s32.totalorder %v10694_v31, 2  ;;  %vm3720_vm13 = vcmp.eq.s32.totalorder %v10696_v6, 2  ;;  %v10724_v21 = vadd.s32 %v10641_v13, %v10638_v60 }
 0x21d   :  { %v3935_v37 = vshll.u32 %v10711_v42, 30  ;;  %v10727_v38 = vshrl.u32 %v4092_v56, 5  ;;  %v4291_v27 = vand.u32 2139095040, %v10706_v32  ;;  %v3516_v11 = vsel %vm3402_vm7, nan, %v3515_v47 }
 0x21e   :  { %vm3613_vm2 = vcmp.eq.s32.totalorder %v10694_v31, 0  ;;  %vm3717_vm3 = vcmp.eq.s32.totalorder %v10696_v6, 0  ;;  %v4097_v9 = vshll.u32 %v13045_v28, %v4094_v3  ;;  %v4106_v0 = vshll.u32 %v13030_v39, %v4094_v3 }
 0x21f   :  { %v4107_v13 = vshrl.u32 %v13031_v10, %v4095_v59  ;;  %v3517_v60 = vsub.f32 0.0, %v3516_v11  ;;  %vm3612_vm4 = vcmp.lt.s32.totalorder %v10694_v31, 2  ;;  %vm3716_vm5 = vcmp.lt.s32.totalorder %v10696_v6, 2 }
 0x220   :  { %v3726_v56 = vmul.f32 %v10715_v46, %v10700_v57  ;;  %v10741_v53 = vsub.s32 %v3932_v22, %v3935_v37  ;;  %v4098_v51 = vshrl.u32 %v13046_v48, %v4095_v59  ;;  %vm3610_vm8 = vweird.f32 %v10366_v20 }
 0x221   :  { %v4100_v34 = vshll.u32 %v13046_v48, %v4094_v3  ;;  %v4101_v5 = vshrl.u32 %v13025_v63, %v4095_v59  ;;  %v4103_v16 = vshll.u32 %v13025_v63, %v4094_v3  ;;  %v4104_v1 = vshrl.u32 %v13030_v39, %v4095_v59 }
 0x222   :  { %v3727_v19 = vmul.f32 %v3516_v11, %v10700_v57  ;;  %v3728_v2 = vmul.f32 %v10715_v46, %v10687_v43  ;;  %v3938_v22 = vsub.s32 0, %v10741_v53  ;;  %vm4112_vm9 = vcmp.lt.s32.totalorder %v10727_v38, 1 }
 0x223   :  { %v3729_v55 = vmul.f32 %v3516_v11, %v10687_v43  ;;  %v10755_v54 = vor.u32 %v4107_v13, %v4106_v0  ;;  %v4109_v52 = vshll.u32 %v13031_v10, %v4094_v3  ;;  %v4110_v45 = vshrl.u32 %v13032_v35, %v4095_v59 }
 0x224   :  { %v3744_v47 = vmul.f32 %v3726_v56, %v10566_v44  ;;  %v7919_v37 = vmin.u32 %v3938_v22, %v10741_v53  ;;  %v4096_v4 = vshrl.u32 %v13045_v28, %v4095_v59  ;;  %vm4115_vm11 = vcmp.lt.s32.totalorder %v10727_v38, 4 }
 0x225   :  { %v3756_v40 = vmul.f32 %v3517_v60, %v10566_v44  ;;  %v4099_v18 = vor.u32 %v4098_v51, %v4097_v9  ;;  %v4102_v30 = vor.u32 %v4101_v5, %v4100_v34  ;;  %v4105_v24 = vor.u32 %v4104_v1, %v4103_v16  ;;  %v8246_v11 = vpop.eup %8245 }
 0x226   :  { %v3750_v0 = vmul.f32 %v3728_v2, %v10566_v44  ;;  %v3747_v13 = vmul.f32 %v3726_v56, %v3101_v29  ;;  %v3940_v3 = vclz %v7919_v37  ;;  %vm4114_vm14 = vcmp.lt.s32.totalorder %v10727_v38, 3  ;;  %v8248_v58 = vpop.eup %8247 }
 0x227   :  { %v3617_v17 = vxor.u32 2147483648, %v8246_v11  ;;  %v4111_v50 = vor.u32 %v4110_v45, %v4109_v52  ;;  %v4117_v59 = vsel %vm4115_vm11, %v4105_v24, 2102212464  ;;  %v4121_v22 = vsel %vm4115_vm11, %v10755_v54, 920167782 }
 0x228   :  { %v3614_v9 = vxor.u32 2147483648, %v8248_v58  ;;  %v3753_v51 = vmul.f32 %v3728_v2, %v3101_v29  ;;  %v3759_v34 = vmul.f32 %v3517_v60, %v3101_v29  ;;  %v7920_v5 = vadd.s32 4294967294, %v3940_v3 }
 0x229   :  { %v3618_v56 = vsel %vm3616_vm10, %v3617_v17, %v8248_v58  ;;  %v3722_v16 = vsel %vm3720_vm13, %v3617_v17, %v8248_v58  ;;  %v10777_v1 = vsel %vm4112_vm9, %v4096_v4, %v4099_v18  ;;  %v10781_v52 = vsel %vm4112_vm9, %v4099_v18, %v4102_v30 }
 0x22a   :  { %v3615_v45 = vsel %vm3613_vm2, %v8246_v11, %v3614_v9  ;;  %v3719_v29 = vsel %vm3717_vm3, %v8246_v11, %v3614_v9  ;;  %v10789_v60 = vsel %vm4114_vm14, %v4102_v30, %v4117_v59  ;;  %v10793_v17 = vsel %vm4114_vm14, %v4105_v24, %v4121_v22 }
 0x22b   :  { %v3619_v58 = vsel %vm3612_vm4, %v3615_v45, %v3618_v56  ;;  %v3723_v18 = vsel %vm3716_vm5, %v3719_v29, %v3722_v16  ;;  %v10801_v4 = vsel %vm4112_vm9, %v4102_v30, %v4105_v24  ;;  %v10805_v2 = vsel %vm4115_vm11, %v4111_v50, 1326507024 }
 0x22c   :  { %v3620_v37 = vsel %vm3610_vm8, nan, %v3619_v58  ;;  %v3724_v11 = vsel %vm3610_vm8, nan, %v3723_v18  ;;  %vm7921_vm15 = vcmp.lt.s32.totalorder %v7920_v5, 0  ;;  %v10811_v31 = vshrl.u32 %v4291_v27, 23 }
 0x22d   :  { %v13095_v6 = vsub.f32 0.0, %v10687_v43  ;;  %v3731_v59 = vmul.f32 %v3727_v19, %v3724_v11  ;;  %v3736_v24 = vmul.f32 %v3620_v37, %v10700_v57  ;;  %v3737_v30 = vmul.f32 %v3729_v55, %v3724_v11 }
 0x22e   :  { %v3742_v22 = vmul.f32 %v3724_v11, %v10715_v46  ;;  %v3725_v50 = vsub.f32 0.0, %v3724_v11  ;;  %v3734_v9 = vmul.f32 %v3727_v19, %v3620_v37  ;;  %v3740_v56 = vmul.f32 %v3729_v55, %v3620_v37 }
 0x22f   :  { %v3730_v3 = vmul.f32 %v3620_v37, %v13095_v6  ;;  %v3738_v45 = vadd.f32 %v3737_v30, %v3736_v24  ;;  %v10818_v20 = vmul.f32 %v3620_v37, %v10715_v46  ;;  %v10820_v29 = vsel %vm7921_vm15, 0, %v7920_v5 }
 0x230   :  { %v3757_v27 = vmul.f32 %v3742_v22, %v10569_v12  ;;  %v3760_v58 = vmul.f32 %v3742_v22, %v10566_v44  ;;  %v13096_v18 = vmov %v13095_v6  ;;  %v3739_v36 = vmul.f32 %v3725_v50, %v10700_v57 }
 0x231   :  { %v3732_v16 = vadd.f32 %v3731_v59, %v3730_v3  ;;  %v3733_v6 = vmul.f32 %v3725_v50, %v13096_v18  ;;  %v3751_v19 = vmul.f32 %v3738_v45, %v10569_v12  ;;  %v3754_v46 = vmul.f32 %v3738_v45, %v10566_v44 }
 0x232   :  { %v3758_v37 = vadd.f32 %v3757_v27, %v3756_v40  ;;  %v3761_v5 = vadd.f32 %v3760_v58, %v3759_v34  ;;  %v3741_v59 = vadd.f32 %v3740_v56, %v3739_v36  ;;  %vm4113_vm0 = vcmp.lt.s32.totalorder %v10727_v38, 2 }
 0x233   :  { %v3745_v11 = vmul.f32 %v3732_v16, %v10569_v12  ;;  %v3748_v55 = vmul.f32 %v3732_v16, %v10566_v44  ;;  %v3735_v3 = vadd.f32 %v3734_v9, %v3733_v6  ;;  %v3752_v30 = vadd.f32 %v3751_v19, %v3750_v0 }
 0x234   :  { %v3755_v61 = vadd.f32 %v3754_v46, %v3753_v51  ;;  %v3792_v43 = vmul.f32 %v3758_v37, %v9633_v41  ;;  %v3797_v57 = vmul.f32 %v3761_v5, %v9633_v41  ;;  %v3800_v12 = vmul.f32 %v3741_v59, %v9639_v62 }
 0x235   :  { %v3746_v24 = vadd.f32 %v3745_v11, %v3744_v47  ;;  %v3749_v22 = vadd.f32 %v3748_v55, %v3747_v13  ;;  %v3799_v50 = vmul.f32 %v3735_v3, %v9637_v25  ;;  %v3790_v44 = vmul.f32 %v3752_v30, %v9639_v62 }
 0x236   :  { %v3795_v36 = vmul.f32 %v3755_v61, %v9639_v62  ;;  %v3802_v0 = vmul.f32 %v10818_v20, %v9633_v41  ;;  %v3805_v51 = vmul.f32 %v3752_v30, %v9655_v8  ;;  %v3807_v56 = vmul.f32 %v3758_v37, %v9660_v33 }
 0x237   :  { %v3789_v16 = vmul.f32 %v3746_v24, %v9637_v25  ;;  %v3794_v40 = vmul.f32 %v3749_v22, %v9637_v25  ;;  %v3801_v47 = vadd.f32 %v3800_v12, %v3799_v50  ;;  %v3804_v13 = vmul.f32 %v3746_v24, %v9644_v23  ;;  %v4741_v12 = vld [vmem:[#allocation2 + $0x24] sm:$0x1] }
 0x238   :  { %v3809_v45 = vmul.f32 %v3749_v22, %v9644_v23  ;;  %v3810_v25 = vmul.f32 %v3755_v61, %v9655_v8  ;;  %v3812_v62 = vmul.f32 %v3761_v5, %v9660_v33  ;;  %v3814_v6 = vmul.f32 %v3735_v3, %v9644_v23 }
 0x239   :  { %v3791_v34 = vadd.f32 %v3790_v44, %v3789_v16  ;;  %v3796_v9 = vadd.f32 %v3795_v36, %v3794_v40  ;;  %v10845_v27 = vadd.f32 %v3802_v0, %v3801_v47  ;;  %v3806_v58 = vadd.f32 %v3805_v51, %v3804_v13  ;;  %v4743_v16 = vld [vmem:[#allocation2 + $0x2c] sm:$0x1]  ;;  %v4745_v44 = vld [vmem:[#allocation2 + $0x34] sm:$0x1] }
 0x23a   :  { %v3815_v11 = vmul.f32 %v3741_v59, %v9655_v8  ;;  %v3811_v55 = vadd.f32 %v3810_v25, %v3809_v45  ;;  %v3817_v46 = vmul.f32 %v10818_v20, %v9660_v33  ;;  %v3819_v50 = vmul.f32 %v3746_v24, %v9670_v49 }
 0x23b   :  { %v10850_v41 = vadd.f32 %v3792_v43, %v3791_v34  ;;  %v10852_v18 = vadd.f32 %v3797_v57, %v3796_v9  ;;  %3851 = vst [vmem:[#allocation5 + $0x43] sm:$0x1] %v10845_v27  ;;  %v10857_v19 = vadd.f32 %v3807_v56, %v3806_v58  ;;  %v3820_v57 = vmul.f32 %v3752_v30, %v9674_v26 }
 0x23c   :  { %v3816_v43 = vadd.f32 %v3815_v11, %v3814_v6  ;;  %v3822_v23 = vmul.f32 %v3758_v37, %v9680_v15  ;;  %v3824_v8 = vmul.f32 %v3749_v22, %v9670_v49  ;;  %v10868_v40 = vadd.f32 %v3812_v62, %v3811_v55 }
 0x23d   :  { %3847 = vst [vmem:[#allocation5 + $0x33] sm:$0x1] %v10850_v41  ;;  %3849 = vst [vmem:[#allocation5 + $0x3b] sm:$0x1] %v10852_v18  ;;  %v3825_v33 = vmul.f32 %v3755_v61, %v9674_v26  ;;  %v3827_v24 = vmul.f32 %v3761_v5, %v9680_v15  ;;  %v3829_v36 = vmul.f32 %v3735_v3, %v9670_v49  ;;  %v3948_v58 = vsub.s32 4294967266, %v10820_v29 }
 0x23e   :  { %3853 = vst [vmem:[#allocation5 + $0x4b] sm:$0x1] %v10857_v19  ;;  %v10873_v47 = vadd.f32 %v3817_v46, %v3816_v43  ;;  %v3821_v30 = vadd.f32 %v3820_v57, %v3819_v50  ;;  %v3830_v37 = vmul.f32 %v3741_v59, %v9674_v26  ;;  %v3832_v22 = vmul.f32 %v10818_v20, %v9680_v15  ;;  %v13097_v50 = vld [vmem:[#allocation20_spill] sm:$0xff]  ;;  %v13098_v57 = vld [vmem:[#allocation27_spill] sm:$0xff] }
 0x23f   :  { %3855 = vst [vmem:[#allocation5 + $0x53] sm:$0x1] %v10868_v40  ;;  %v3826_v0 = vadd.f32 %v3825_v33, %v3824_v8  ;;  %v4746_v13 = vmul.f32 %v4741_v12, %v10850_v41  ;;  %v4747_v51 = vmul.f32 %v4743_v16, %v10852_v18  ;;  %v4749_v61 = vmul.f32 %v4745_v44, %v10845_v27 }
 0x240   :  { %3857 = vst [vmem:[#allocation5 + $0x5b] sm:$0x1] %v10873_v47  ;;  %v10883_v49 = vadd.f32 %v3822_v23, %v3821_v30  ;;  %v3831_v5 = vadd.f32 %v3830_v37, %v3829_v36  ;;  %v4751_v3 = vmul.f32 %v4741_v12, %v10857_v19  ;;  %v4752_v26 = vmul.f32 %v4743_v16, %v10868_v40  ;;  %v13099_v23 = vld [vmem:[#allocation28_spill] sm:$0xff]  ;;  %v13101_v30 = vld [vmem:[#allocation30_spill] sm:$0xff] }
 0x241   :  { %v10887_v59 = vadd.f32 %v3827_v24, %v3826_v0  ;;  %v4748_v15 = vadd.f32 %v4747_v51, %v4746_v13  ;;  %v4754_v20 = vmul.f32 %v4745_v44, %v10873_v47  ;;  %v4126_v34 = vsel %vm4114_vm14, %v10755_v54, %v10805_v2 }
 0x242   :  { %3859 = vst [vmem:[#allocation5 + $0x63] sm:$0x1] %v10883_v49  ;;  %v10895_v9 = vadd.f32 %v3832_v22, %v3831_v5  ;;  %v4753_v56 = vadd.f32 %v4752_v26, %v4751_v3  ;;  %v4756_v45 = vmul.f32 %v4741_v12, %v10883_v49  ;;  %v4119_v6 = vsel %vm4113_vm0, %v10777_v1, %v10789_v60  ;;  %v13100_v12 = vld [vmem:[#allocation29_spill] sm:$0xff]  ;;  %v13102_v22 = vld [vmem:[#allocation31_spill] sm:$0xff] }
 0x243   :  { %3861 = vst [vmem:[#allocation5 + $0x6b] sm:$0x1] %v10887_v59  ;;  %v4750_v25 = vadd.f32 %v4749_v61, %v4748_v15  ;;  %v4757_v62 = vmul.f32 %v4743_v16, %v10887_v59  ;;  %v7934_v54 = vadd.s32 4294967169, %v10811_v31  ;;  %v4123_v55 = vsel %vm4113_vm0, %v10781_v52, %v10793_v17 }
 0x244   :  { %3863 = vst [vmem:[#allocation5 + $0x73] sm:$0x1] %v10895_v9  ;;  %v4755_v2 = vadd.f32 %v4754_v20, %v4753_v56  ;;  %v4759_v11 = vmul.f32 %v4745_v44, %v10895_v9  ;;  %v4127_v46 = vsel %vm4113_vm0, %v10801_v4, %v4126_v34  ;;  %v3944_v44 = vsub.s32 32, %v10820_v29 }
 0x245   :  { %v4761_v43 = vadd.f32 %v4750_v25, %v13097_v50  ;;  %v4764_v1 = vadd.f32 %v4750_v25, %v13098_v57  ;;  %v4758_v60 = vadd.f32 %v4757_v62, %v4756_v45  ;;  %v4298_v31 = vadd.s32 1, %v7934_v54 }
 0x246   :  { %v4762_v8 = vadd.f32 %v4755_v2, %v13099_v23  ;;  %v4765_v16 = vadd.f32 %v4755_v2, %v13100_v12  ;;  %v3949_v33 = vadd.s32 127, %v3948_v58  ;;  %v3945_v51 = vshll.u32 %v10741_v53, %v10820_v29 }
 0x247   :  { %4813 = vst [vmem:[#allocation5 + $0x4] sm:$0x1] %v4761_v43  ;;  %4815 = vst [vmem:[#allocation5 + $0x1c] sm:$0x1] %v4764_v1  ;;  %v4760_v52 = vadd.f32 %v4759_v11, %v4758_v60  ;;  %v10921_v17 = vmul.u32.u64.low %v10717_v14, %v4127_v46  ;;  %v10922_v38 = vmul.u32.u64.high %v10717_v14, %v4127_v46, %v10921_v17  ;;  %vm4299_vm7 = vcmp.gt.s32.totalorder %v4298_v31, 0 }
 0x248   :  { %4817 = vst [vmem:[#allocation5 + $0xc] sm:$0x1] %v4762_v8  ;;  %4819 = vst [vmem:[#allocation5 + $0x24] sm:$0x1] %v4765_v16  ;;  %v10925_v4 = vmul.u32.u64.low %v10717_v14, %v4123_v55  ;;  %v10926_v24 = vmul.u32.u64.high %v10717_v14, %v4123_v55, %v10925_v4  ;;  %v4300_v36 = vsel %vm4299_vm7, %v4298_v31, 0  ;;  %v3946_v61 = vshrl.u32 %v10724_v21, %v3944_v44 }
 0x249   :  { %v4763_v37 = vadd.f32 %v4760_v52, %v13101_v30  ;;  %v4766_v0 = vadd.f32 %v4760_v52, %v13102_v22  ;;  %v4302_v13 = vand.u32 31, %v4300_v36  ;;  %v4135_v5 = vmul.u32 %v10717_v14, %v4119_v6  ;;  %v10951_v8 = vld [vmem:[#allocation2 + $0xc] sm:$0x1] }
 0x24a   :  { %v13103_v3 = vand.u32 2147483647, %v10706_v32  ;;  %v3950_v15 = vshll.u32 %v3949_v33, 23  ;;  %vm4137_vm1 = vc.u32 %v10922_v38, %v10925_v4  ;;  %v4138_v56 = vadd.s32 1, %v10926_v24 }
 0x24b   :  { %4821 = vst [vmem:[#allocation5 + $0x14] sm:$0x1] %v4763_v37  ;;  %4823 = vst [vmem:[#allocation5 + $0x2c] sm:$0x1] %v4766_v0  ;;  %v4303_v20 = vsub.s32 32, %v4302_v13  ;;  %v4305_v34 = vshll.u32 %v13045_v28, %v4302_v13  ;;  %v4301_v45 = vshrl.u32 %v4300_v36, 5  ;;  %v4308_v53 = vshll.u32 %v13046_v48, %v4302_v13 }
 0x24c   :  { %v4295_v26 = vand.u32 8388607, %v13103_v3  ;;  %v4311_v29 = vshll.u32 %v13025_v63, %v4302_v13  ;;  %v3947_v25 = vor.u32 %v3946_v61, %v3945_v51  ;;  %v4139_v62 = vsel %vm4137_vm1, %v4138_v56, %v10926_v24 }
 0x24d   :  { %v4306_v21 = vshrl.u32 %v13046_v48, %v4303_v20  ;;  %v4309_v14 = vshrl.u32 %v13025_v63, %v4303_v20  ;;  %v4312_v58 = vshrl.u32 %v13030_v39, %v4303_v20  ;;  %v4314_v6 = vshll.u32 %v13030_v39, %v4302_v13 }
 0x24e   :  { %v4315_v54 = vshrl.u32 %v13031_v10, %v4303_v20  ;;  %v3951_v2 = vor.u32 4788187, %v3950_v15  ;;  %v4140_v11 = vadd.s32 %v4139_v62, %v4135_v5  ;;  %v4296_v55 = vor.u32 8388608, %v4295_v26 }
 0x24f   :  { %v4307_v46 = vor.u32 %v4306_v21, %v4305_v34  ;;  %v4310_v50 = vor.u32 %v4309_v14, %v4308_v53  ;;  %v4317_v57 = vshll.u32 %v13031_v10, %v4302_v13  ;;  %v4318_v1 = vshrl.u32 %v13032_v35, %v4303_v20 }
 0x250   :  { %v4316_v43 = vor.u32 %v4315_v54, %v4314_v6  ;;  %v4141_v60 = vadd.s32 536870912, %v4140_v11  ;;  %v4313_v31 = vor.u32 %v4312_v58, %v4311_v29  ;;  %vm4320_vm12 = vcmp.lt.s32.totalorder %v4301_v45, 1 }
 0x251   :  { %v4319_v23 = vor.u32 %v4318_v1, %v4317_v57  ;;  %vm4322_vm6 = vcmp.lt.s32.totalorder %v4301_v45, 3  ;;  %vm4323_vm10 = vcmp.lt.s32.totalorder %v4301_v45, 4  ;;  %v3954_v12 = vcvt.s32.f32 %v3947_v25 }
 0x252   :  { %v4142_v16 = vshrl.u32 %v4141_v60, 30  ;;  %v4304_v44 = vshrl.u32 %v13045_v28, %v4303_v20  ;;  %vm4321_vm13 = vcmp.lt.s32.totalorder %v4301_v45, 2  ;;  %v3952_v33 = vand.u32 2147483647, %v3951_v2  ;;  %v13107_v60 = vld [vmem:[#allocation32_spill] sm:$0xff] }
 0x253   :  { %v4328_v52 = vsel %vm4320_vm12, %v4307_v46, %v4310_v50  ;;  %v4329_v17 = vsel %vm4323_vm10, %v4316_v43, 920167782  ;;  %v4336_v24 = vshll.u32 %v4296_v55, 8  ;;  %v4325_v30 = vsel %vm4323_vm10, %v4313_v31, 2102212464 }
 0x254   :  { %v4143_v36 = vshll.u32 %v4142_v16, 30  ;;  %v4330_v37 = vsel %vm4322_vm6, %v4313_v31, %v4329_v17  ;;  %v4332_v22 = vsel %vm4320_vm12, %v4310_v50, %v4313_v31  ;;  %v3958_v0 = vsub.s32 4, %v10711_v42 }
 0x255   :  { %v4331_v13 = vsel %vm4321_vm13, %v4328_v52, %v4330_v37  ;;  %v4333_v51 = vsel %vm4323_vm10, %v4319_v23, 1326507024  ;;  %v4324_v5 = vsel %vm4320_vm12, %v4304_v44, %v4307_v46  ;;  %v4499_v26 = vand.u32 2139095040, %v10951_v8 }
 0x256   :  { %v4144_v61 = vsub.s32 %v4140_v11, %v4143_v36  ;;  %v4334_v3 = vsel %vm4322_vm6, %v4316_v43, %v4333_v51  ;;  %v4326_v15 = vsel %vm4322_vm6, %v4310_v50, %v4325_v30  ;;  %v3955_v53 = vmul.f32 %v3954_v12, %v3952_v33 }
 0x257   :  { %v4335_v20 = vsel %vm4321_vm13, %v4332_v22, %v4334_v3  ;;  %v10967_v34 = vmul.u32.u64.low %v4336_v24, %v4331_v13  ;;  %v10968_v56 = vmul.u32.u64.high %v4336_v24, %v4331_v13, %v10967_v34  ;;  %v4500_v14 = vshrl.u32 %v4499_v26, 23  ;;  %v10999_v22 = vld [vmem:[#allocation2 + $0x4] sm:$0x1] }
 0x258   :  { %v4146_v21 = vsub.s32 0, %v4144_v61  ;;  %v10971_v29 = vmul.u32.u64.low %v4336_v24, %v4335_v20  ;;  %v10972_v58 = vmul.u32.u64.high %v4336_v24, %v4335_v20, %v10971_v29  ;;  %vm3874_vm2 = vcmp.lt.s32.totalorder %v10479_v7, 0  ;;  %v11020_v20 = vld [vmem:[#allocation2 + $0x25] sm:$0x1] }
 0x259   :  { %v4327_v62 = vsel %vm4321_vm13, %v4324_v5, %v4326_v15  ;;  %v3959_v6 = vsel %vm3874_vm2, %v3958_v0, %v10711_v42  ;;  %v7942_v54 = vadd.s32 4294967169, %v4500_v14  ;;  %v3956_v2 = vxor.u32 2147483648, %v3955_v53  ;;  %v11022_v14 = vld [vmem:[#allocation2 + $0x2d] sm:$0x1] }
 0x25a   :  { %v7927_v25 = vmin.u32 %v4146_v21, %v4144_v61  ;;  %v4346_v55 = vadd.s32 1, %v10968_v56  ;;  %v13104_v46 = vand.u32 2147483647, %v10479_v7  ;;  %v4166_v43 = vsub.s32 4, %v4142_v16 }
 0x25b   :  { %v4343_v57 = vmul.u32 %v4336_v24, %v4327_v62  ;;  %vm4082_vm4 = vcmp.lt.s32.totalorder %v13107_v60, 0  ;;  %vm4345_vm5 = vc.u32 %v10972_v58, %v10967_v34  ;;  %v12987_v42 = vand.u32 2147483647, %v10951_v8 }
 0x25c   :  { %v4148_v11 = vclz %v7927_v25  ;;  %vm10982_vm3 = vcmp.le.f32.partialorder %v13104_v46, 0.7853982  ;;  %v4506_v31 = vadd.s32 1, %v7942_v54  ;;  %v3957_v23 = vsel %vm3874_vm2, %v3956_v2, %v3955_v53 }
 0x25d   :  { %v3961_v45 = vsel %vm10982_vm3, 0, %v3959_v6  ;;  %v4136_v12 = vadd.s32 %v10925_v4, %v10922_v38  ;;  %v4347_v44 = vsel %vm4345_vm5, %v4346_v55, %v10968_v56  ;;  %v4167_v17 = vsel %vm4082_vm4, %v4166_v43, %v4142_v16 }
 0x25e   :  { %v7928_v1 = vadd.s32 4294967294, %v4148_v11  ;;  %v4068_v33 = vadd.s32 3, %v3961_v45  ;;  %v4348_v24 = vadd.s32 %v4347_v44, %v4343_v57  ;;  %vm4507_vm9 = vcmp.gt.s32.totalorder %v4506_v31, 0  ;;  %v13111_v11 = vld [vmem:[#allocation16_spill] sm:$0xff]  ;;  %v13112_v57 = vld [vmem:[#allocation17_spill] sm:$0xff] }
 0x25f   :  { %v3960_v7 = vsel %vm10982_vm3, %v10999_v22, %v3957_v23  ;;  %v4503_v4 = vand.u32 8388607, %v12987_v42  ;;  %v4508_v0 = vsel %vm4507_vm9, %v4506_v31, 0  ;;  %v13108_v13 = vand.u32 2147483647, %v13107_v60 }
 0x260   :  { %vm7929_vm8 = vcmp.lt.s32.totalorder %v7928_v1, 0  ;;  %v4349_v38 = vadd.s32 536870912, %v4348_v24  ;;  %v4510_v5 = vand.u32 31, %v4508_v0  ;;  %v11012_v3 = vand.u32 3, %v3961_v45  ;;  %v11042_v44 = vld [vmem:[#allocation2 + $0x35] sm:$0x1] }
 0x261   :  { %v4151_v52 = vsel %vm7929_vm8, 0, %v7928_v1  ;;  %vm11008_vm11 = vcmp.le.f32.partialorder %v13108_v13, 0.7853982  ;;  %8249 = vcosq.f32 %v3960_v7  ;;  %v11024_v29 = vand.u32 3, %v4068_v33 }
 0x262   :  { %v4152_v36 = vsub.s32 32, %v4151_v52  ;;  %v4153_v30 = vshll.u32 %v4144_v61, %v4151_v52  ;;  %v4156_v37 = vsub.s32 4294967266, %v4151_v52  ;;  %v11016_v26 = vsel %vm11008_vm11, 0, %v4167_v17 }
 0x263   :  { %v11018_v15 = vshrl.u32 %v4349_v38, 30  ;;  %v4511_v21 = vsub.s32 32, %v4510_v5  ;;  %8251 = vsinq.f32 %v3960_v7  ;;  %v4504_v62 = vor.u32 8388608, %v4503_v4  ;;  %v13113_v4 = vld [vmem:[#allocation12_spill] sm:$0xff] }
 0x264   :  { %v4154_v51 = vshrl.u32 %v4136_v12, %v4152_v36  ;;  %v4157_v61 = vadd.s32 127, %v4156_v37  ;;  %v11028_v2 = vadd.s32 3, %v11016_v26  ;;  %v5724_v55 = vmul.f32 %v11020_v20, %v13111_v11 }
 0x265   :  { %v4351_v25 = vshll.u32 %v11018_v15, 30  ;;  %v4513_v50 = vshll.u32 %v13045_v28, %v4510_v5  ;;  %v4514_v43 = vshrl.u32 %v13046_v48, %v4511_v21  ;;  %v5725_v45 = vmul.f32 %v11022_v14, %v13112_v57 }
 0x266   :  { %v4155_v56 = vor.u32 %v4154_v51, %v4153_v30  ;;  %v4158_v53 = vshll.u32 %v4157_v61, 23  ;;  %v4344_v31 = vadd.s32 %v10967_v34, %v10972_v58  ;;  %v4516_v23 = vshll.u32 %v13046_v48, %v4510_v5 }
 0x267   :  { %v11032_v46 = vsub.s32 %v4348_v24, %v4351_v25  ;;  %v4517_v12 = vshrl.u32 %v13025_v63, %v4511_v21  ;;  %v4509_v52 = vshrl.u32 %v4508_v0, 5  ;;  %v4522_v17 = vshll.u32 %v13030_v39, %v4510_v5 }
 0x268   :  { %v4159_v6 = vor.u32 4788187, %v4158_v53  ;;  %v4162_v54 = vcvt.s32.f32 %v4155_v56  ;;  %v11046_v24 = vshll.u32 %v4504_v62, 8  ;;  %v4519_v30 = vshll.u32 %v13025_v63, %v4510_v5 }
 0x269   :  { %v4354_v33 = vsub.s32 0, %v11032_v46  ;;  %v4520_v37 = vshrl.u32 %v13030_v39, %v4511_v21  ;;  %v4523_v34 = vshrl.u32 %v13031_v10, %v4511_v21  ;;  %v4515_v7 = vor.u32 %v4514_v43, %v4513_v50  ;;  %v13114_v50 = vld [vmem:[#allocation18_spill] sm:$0xff] }
 0x26a   :  { %v4160_v1 = vand.u32 2147483647, %v4159_v6  ;;  %v5726_v38 = vadd.f32 %v5725_v45, %v5724_v55  ;;  %v5727_v13 = vmul.f32 %v11042_v44, %v13113_v4  ;;  %v4518_v0 = vor.u32 %v4517_v12, %v4516_v23 }
 0x26b   :  { %v7935_v58 = vmin.u32 %v4354_v33, %v11032_v46  ;;  %v4525_v61 = vshll.u32 %v13031_v10, %v4510_v5  ;;  %v4526_v56 = vshrl.u32 %v13032_v35, %v4511_v21  ;;  %v4512_v25 = vshrl.u32 %v13045_v28, %v4511_v21  ;;  %v11057_v6 = vpop.eup %8249 }
 0x26c   :  { %v4163_v36 = vmul.f32 %v4162_v54, %v4160_v1  ;;  %v4524_v62 = vor.u32 %v4523_v34, %v4522_v17  ;;  %vm4528_vm14 = vcmp.lt.s32.totalorder %v4509_v52, 1  ;;  %v4521_v55 = vor.u32 %v4520_v37, %v4519_v30 }
 0x26d   :  { %v4356_v53 = vclz %v7935_v58  ;;  %vm4529_vm15 = vcmp.lt.s32.totalorder %v4509_v52, 2  ;;  %v5729_v43 = vmul.f32 %v11020_v20, %v13114_v50  ;;  %v11063_v45 = vpop.eup %8251  ;;  %vm4530_vm0 = vcmp.lt.s32.totalorder %v4509_v52, 3 }
 0x26e   :  { %v4164_v51 = vxor.u32 2147483648, %v4163_v36  ;;  %vm4531_vm7 = vcmp.lt.s32.totalorder %v4509_v52, 4  ;;  %v4527_v21 = vor.u32 %v4526_v56, %v4525_v61  ;;  %v4536_v12 = vsel %vm4528_vm14, %v4515_v7, %v4518_v0 }
 0x26f   :  { %v7936_v1 = vadd.s32 4294967294, %v4356_v53  ;;  %v4533_v23 = vsel %vm4531_vm7, %v4521_v55, 2102212464  ;;  %v4532_v33 = vsel %vm4528_vm14, %v4512_v25, %v4515_v7  ;;  %v4540_v16 = vsel %vm4528_vm14, %v4518_v0, %v4521_v55 }
 0x270   :  { %v4165_v54 = vsel %vm4082_vm4, %v4164_v51, %v4163_v36  ;;  %v4534_v17 = vsel %vm4530_vm0, %v4518_v0, %v4533_v23  ;;  %v4537_v36 = vsel %vm4531_vm7, %v4524_v62, 920167782  ;;  %v4541_v7 = vsel %vm4531_vm7, %v4527_v21, 1326507024  ;;  %v13117_v23 = vld [vmem:[#allocation13_spill] sm:$0xff] }
 0x271   :  { %v4168_v5 = vsel %vm11008_vm11, %v13107_v60, %v4165_v54  ;;  %vm7937_vm1 = vcmp.lt.s32.totalorder %v7936_v1, 0  ;;  %v4538_v60 = vsel %vm4530_vm0, %v4521_v55, %v4537_v36  ;;  %v4535_v61 = vsel %vm4529_vm15, %v4532_v33, %v4534_v17 }
 0x272   :  { %8253 = vcosq.f32 %v4168_v5  ;;  %v4359_v30 = vsel %vm7937_vm1, 0, %v7936_v1  ;;  %v4539_v51 = vsel %vm4529_vm15, %v4536_v12, %v4538_v60  ;;  %vm4290_vm12 = vcmp.lt.s32.totalorder %v10706_v32, 0  ;;  %v13118_v12 = vld [vmem:[#allocation14_spill] sm:$0xff]  ;;  %v13121_v60 = vld [vmem:[#allocation15_spill] sm:$0xff] }
 0x273   :  { %8255 = vsinq.f32 %v4168_v5  ;;  %v4360_v37 = vsub.s32 32, %v4359_v30  ;;  %v4361_v34 = vshll.u32 %v11032_v46, %v4359_v30  ;;  %v4364_v58 = vsub.s32 4294967266, %v4359_v30  ;;  %v13116_v5 = vld [vmem:[#allocation19_spill] sm:$0xff] }
 0x274   :  { %v11080_v56 = vmul.u32.u64.low %v11046_v24, %v4539_v51  ;;  %v11081_v53 = vmul.u32.u64.high %v11046_v24, %v4539_v51, %v11080_v56  ;;  %v4542_v0 = vsel %vm4530_vm0, %v4524_v62, %v4541_v7  ;;  %v11086_v55 = vadd.f32 %v5727_v13, %v5726_v38  ;;  %v13119_v38 = vld [vmem:[#allocation8_spill] sm:$0xff]  ;;  %v11111_v7 = vld [vmem:[#allocation2 + $0x5] sm:$0x1] }
 0x275   :  { %v4362_v25 = vshrl.u32 %v4344_v31, %v4360_v37  ;;  %v4365_v54 = vadd.s32 127, %v4364_v58  ;;  %v4543_v46 = vsel %vm4529_vm15, %v4540_v16, %v4542_v0  ;;  %v5730_v1 = vmul.f32 %v11022_v14, %v13116_v5  ;;  %v13122_v58 = vld [vmem:[#allocation11_spill] sm:$0xff]  ;;  %13123 = vst [vmem:[#allocation28_spill] sm:$0xff] %v11111_v7 }
 0x276   :  { %13115 = vst [vmem:[#allocation20_spill] sm:$0xff] %v11086_v55  ;;  %v5732_v21 = vmul.f32 %v11042_v44, %v13117_v23  ;;  %v5734_v33 = vmul.f32 %v11020_v20, %v13118_v12  ;;  %vm3967_vm6 = vcmp.eq.s32.totalorder %v11012_v3, 0  ;;  %5788 = vst [vmem:[#allocation5 + $0x5] sm:$0x1] %v11086_v55  ;;  %v4554_v52 = vadd.s32 1, %v11081_v53 }
 0x277   :  { %v4363_v17 = vor.u32 %v4362_v25, %v4361_v34  ;;  %v4366_v31 = vshll.u32 %v4365_v54, 23  ;;  %v11097_v36 = vmul.u32.u64.low %v11046_v24, %v4543_v46  ;;  %v11098_v62 = vmul.u32.u64.high %v11046_v24, %v4543_v46, %v11097_v36  ;;  %v8322_v23 = vld [vmem:[#allocation2 + $0x14] sm:$0x1] }
 0x278   :  { %v11104_v13 = vadd.f32 %v11086_v55, %v13119_v38  ;;  %v5731_v30 = vadd.f32 %v5730_v1, %v5729_v43  ;;  %v5735_v20 = vmul.f32 %v11022_v14, %v13121_v60  ;;  %v4551_v34 = vmul.u32 %v11046_v24, %v4535_v61  ;;  %v13125_v1 = vld [vmem:[#allocation9_spill] sm:$0xff]  ;;  %v13131_v38 = vld [vmem:[#allocation10_spill] sm:$0xff] }
 0x279   :  { %v4367_v16 = vor.u32 4788187, %v4366_v31  ;;  %v4370_v37 = vcvt.s32.f32 %v4363_v17  ;;  %v5737_v51 = vmul.f32 %v11042_v44, %v13122_v58  ;;  %vm3966_vm10 = vcmp.lt.s32.totalorder %v11012_v3, 2 }
 0x27a   :  { %13120 = vst [vmem:[#allocation27_spill] sm:$0xff] %v11104_v13  ;;  %vm3970_vm13 = vcmp.eq.s32.totalorder %v11012_v3, 2  ;;  %v4374_v43 = vsub.s32 4, %v11018_v15  ;;  %5790 = vst [vmem:[#allocation5 + $0x1d] sm:$0x1] %v11104_v13  ;;  %v11119_v14 = vadd.f32 %v5732_v21, %v5731_v30  ;;  %v5736_v54 = vadd.f32 %v5735_v20, %v5734_v33 }
 0x27b   :  { %vm4070_vm2 = vcmp.lt.s32.totalorder %v11024_v29, 2  ;;  %v11123_v24 = vand.u32 3, %v11016_v26  ;;  %v11126_v44 = vand.u32 3, %v11028_v2  ;;  %v4368_v61 = vand.u32 2147483647, %v4367_v16 }
 0x27c   :  { %v11113_v25 = vpop.eup %8253  ;;  %13124 = vst [vmem:[#allocation29_spill] sm:$0xff] %v11119_v14  ;;  %vm4553_vm3 = vc.u32 %v11098_v62, %v11080_v56  ;;  %5792 = vst [vmem:[#allocation5 + $0xd] sm:$0x1] %v11119_v14  ;;  %v11136_v21 = vadd.f32 %v11119_v14, %v13125_v1  ;;  %v11138_v33 = vadd.f32 %v5737_v51, %v5736_v54  ;;  %v4853_v26 = vand.u32 2139095040, %v11111_v7  ;;  %v11177_v1 = vld [vmem:[#allocation2 + $0x1c] sm:$0x1] }
 0x27d   :  { %v11130_v0 = vpop.eup %8255  ;;  %v4555_v46 = vsel %vm4553_vm3, %v4554_v52, %v11081_v53  ;;  %vm4071_vm4 = vcmp.eq.s32.totalorder %v11024_v29, 0  ;;  %vm4074_vm5 = vcmp.eq.s32.totalorder %v11024_v29, 2  ;;  %v4371_v2 = vmul.f32 %v4370_v37, %v4368_v61 }
 0x27e   :  { %13126 = vst [vmem:[#allocation30_spill] sm:$0xff] %v11136_v21  ;;  %13127 = vst [vmem:[#allocation31_spill] sm:$0xff] %v11138_v33  ;;  %v4556_v17 = vadd.s32 %v4555_v46, %v4551_v34  ;;  %v3971_v31 = vxor.u32 2147483648, %v11057_v6  ;;  %v13128_v53 = vand.u32 2147483647, %v10706_v32  ;;  %v4375_v52 = vsel %vm4290_vm12, %v4374_v43, %v11018_v15 }
 0x27f   :  { %5794 = vst [vmem:[#allocation5 + $0x25] sm:$0x1] %v11136_v21  ;;  %5796 = vst [vmem:[#allocation5 + $0x15] sm:$0x1] %v11138_v33  ;;  %v11157_v30 = vadd.f32 %v11138_v33, %v13131_v38  ;;  %vm3964_vm9 = vweird.f32 %v10999_v22  ;;  %v3968_v20 = vxor.u32 2147483648, %v11063_v45  ;;  %vm4174_vm11 = vcmp.lt.s32.totalorder %v11123_v24, 2 }
 0x280   :  { %vm11146_vm8 = vcmp.le.f32.partialorder %v13128_v53, 0.7853982  ;;  %vm4175_vm14 = vcmp.eq.s32.totalorder %v11123_v24, 0  ;;  %v4372_v16 = vxor.u32 2147483648, %v4371_v2  ;;  %v4557_v37 = vadd.s32 536870912, %v4556_v17 }
 0x281   :  { %13132 = vst [vmem:[#allocation32_spill] sm:$0xff] %v11157_v30  ;;  %v3972_v15 = vsel %vm3970_vm13, %v3971_v31, %v11063_v45  ;;  %vm4178_vm15 = vcmp.eq.s32.totalorder %v11123_v24, 2  ;;  %vm4279_vm0 = vcmp.eq.s32.totalorder %v11126_v44, 0  ;;  %5798 = vst [vmem:[#allocation5 + $0x2d] sm:$0x1] %v11157_v30  ;;  %v4854_v34 = vshrl.u32 %v4853_v26, 23 }
 0x282   :  { %v4373_v51 = vsel %vm4290_vm12, %v4372_v16, %v4371_v2  ;;  %v4377_v43 = vsel %vm11146_vm8, 0, %v4375_v52  ;;  %v4558_v54 = vshrl.u32 %v4557_v37, 30  ;;  %v3969_v46 = vsel %vm3967_vm6, %v11057_v6, %v3968_v20  ;;  %v11240_v22 = vld [vmem:[#allocation2 + $0x1d] sm:$0x1] }
 0x283   :  { %vm4172_vm7 = vweird.f32 %v11177_v1  ;;  %v4179_v53 = vxor.u32 2147483648, %v11113_v25  ;;  %v4376_v26 = vsel %vm11146_vm8, %v10706_v32, %v4373_v51  ;;  %v7950_v2 = vadd.s32 4294967169, %v4854_v34  ;;  %13137 = vst [vmem:[#allocation8_spill] sm:$0xff] %v11240_v22 }
 0x284   :  { %v4073_v52 = vsel %vm4071_vm4, %v11057_v6, %v3968_v20  ;;  %v4076_v38 = vsel %vm4074_vm5, %v3971_v31, %v11063_v45  ;;  %v4176_v16 = vxor.u32 2147483648, %v11130_v0  ;;  %v4559_v37 = vshll.u32 %v4558_v54, 30 }
 0x285   :  { %vm4282_vm1 = vcmp.eq.s32.totalorder %v11126_v44, 2  ;;  %8257 = vcosq.f32 %v4376_v26  ;;  %v4484_v42 = vadd.s32 3, %v4377_v43  ;;  %v4860_v61 = vadd.s32 1, %v7950_v2 }
 0x286   :  { %v3973_v32 = vsel %vm3966_vm10, %v3969_v46, %v3972_v15  ;;  %8259 = vsinq.f32 %v4376_v26  ;;  %v11194_v36 = vsub.s32 %v4556_v17, %v4559_v37  ;;  %v13133_v6 = vand.u32 2147483647, %v11111_v7 }
 0x287   :  { %v4077_v45 = vsel %vm4070_vm2, %v4073_v52, %v4076_v38  ;;  %v4180_v31 = vsel %vm4178_vm15, %v4179_v53, %v11130_v0  ;;  %v11203_v34 = vand.u32 3, %v4377_v43  ;;  %vm4861_vm12 = vcmp.gt.s32.totalorder %v4860_v61, 0 }
 0x288   :  { %v4857_v20 = vand.u32 8388607, %v13133_v6  ;;  %v4177_v3 = vsel %vm4175_vm14, %v11113_v25, %v4176_v16  ;;  %v4562_v17 = vsub.s32 0, %v11194_v36  ;;  %v4582_v15 = vsub.s32 4, %v4558_v54 }
 0x289   :  { %v4862_v51 = vsel %vm4861_vm12, %v4860_v61, 0  ;;  %vm4278_vm6 = vcmp.lt.s32.totalorder %v11126_v44, 2  ;;  %v11210_v46 = vand.u32 3, %v4484_v42  ;;  %vm4498_vm10 = vcmp.lt.s32.totalorder %v10951_v8, 0 }
 0x28a   :  { %v4864_v29 = vand.u32 31, %v4862_v51  ;;  %v4281_v43 = vsel %vm4279_vm0, %v11113_v25, %v4176_v16  ;;  %v4284_v26 = vsel %vm4282_vm1, %v4179_v53, %v11130_v0  ;;  %v7943_v2 = vmin.u32 %v4562_v17, %v11194_v36 }
 0x28b   :  { %v4858_v52 = vor.u32 8388608, %v4857_v20  ;;  %v11222_v61 = vsel %vm3964_vm9, nan, %v3973_v32  ;;  %v11226_v42 = vsel %vm3964_vm9, nan, %v4077_v45  ;;  %v4181_v38 = vsel %vm4174_vm11, %v4177_v3, %v4180_v31 }
 0x28c   :  { %v13134_v25 = vand.u32 2147483647, %v10951_v8  ;;  %vm4383_vm2 = vcmp.eq.s32.totalorder %v11203_v34, 0  ;;  %vm4386_vm3 = vcmp.eq.s32.totalorder %v11203_v34, 2  ;;  %v4564_v0 = vclz %v7943_v2 }
 0x28d   :  { %v4583_v53 = vsel %vm4498_vm10, %v4582_v15, %v4558_v54  ;;  %v11244_v24 = vsel %vm4278_vm6, %v4281_v43, %v4284_v26  ;;  %vm4382_vm4 = vcmp.lt.s32.totalorder %v11203_v34, 2  ;;  %vm4487_vm5 = vcmp.eq.s32.totalorder %v11210_v46, 0 }
 0x28e   :  { %vm11232_vm13 = vcmp.le.f32.partialorder %v13134_v25, 0.7853982  ;;  %vm4490_vm8 = vcmp.eq.s32.totalorder %v11210_v46, 2  ;;  %v4552_v37 = vadd.s32 %v11080_v56, %v11098_v62  ;;  %v4865_v32 = vsub.s32 32, %v4864_v29 }
 0x28f   :  { %v11253_v6 = vsel %vm4172_vm7, nan, %v4181_v38  ;;  %v7944_v54 = vadd.s32 4294967294, %v4564_v0  ;;  %v11255_v20 = vshll.u32 %v4858_v52, 8  ;;  %v8258_v45 = vpop.eup %8257  ;;  %v11260_v31 = vsel %vm11232_vm13, 0, %v4583_v53 }
 0x290   :  { %v4863_v3 = vshrl.u32 %v4862_v51, 5  ;;  %v4867_v17 = vshll.u32 %v13045_v28, %v4864_v29  ;;  %v5061_v56 = vand.u32 2139095040, %v11240_v22  ;;  %v8260_v62 = vpop.eup %8259  ;;  %v4870_v15 = vshll.u32 %v13046_v48, %v4864_v29 }
 0x291   :  { %vm7945_vm9 = vcmp.lt.s32.totalorder %v7944_v54, 0  ;;  %v4873_v43 = vshll.u32 %v13025_v63, %v4864_v29  ;;  %v4876_v26 = vshll.u32 %v13030_v39, %v4864_v29  ;;  %v4868_v52 = vshrl.u32 %v13046_v48, %v4865_v32 }
 0x292   :  { %v4567_v2 = vsel %vm7945_vm9, 0, %v7944_v54  ;;  %v4871_v38 = vshrl.u32 %v13025_v63, %v4865_v32  ;;  %v4879_v25 = vshll.u32 %v13031_v10, %v4864_v29  ;;  %v4874_v53 = vshrl.u32 %v13030_v39, %v4865_v32 }
 0x293   :  { %v4568_v51 = vsub.s32 32, %v4567_v2  ;;  %v4569_v0 = vshll.u32 %v11194_v36, %v4567_v2  ;;  %v4877_v44 = vshrl.u32 %v13031_v10, %v4865_v32  ;;  %v4384_v30 = vxor.u32 2147483648, %v8260_v62 }
 0x294   :  { %v4387_v33 = vxor.u32 2147483648, %v8258_v45  ;;  %vm4486_vm11 = vcmp.lt.s32.totalorder %v11210_v46, 2  ;;  %v4572_v21 = vsub.s32 4294967266, %v4567_v2  ;;  %v4880_v54 = vshrl.u32 %v13032_v35, %v4865_v32 }
 0x295   :  { %v4570_v14 = vshrl.u32 %v4552_v37, %v4568_v51  ;;  %v4692_v13 = vadd.s32 3, %v11260_v31  ;;  %v4866_v55 = vshrl.u32 %v13045_v28, %v4865_v32  ;;  %v5062_v29 = vshrl.u32 %v5061_v56, 23 }
 0x296   :  { %v4385_v36 = vsel %vm4383_vm2, %v8258_v45, %v4384_v30  ;;  %v4388_v58 = vsel %vm4386_vm3, %v4387_v33, %v8260_v62  ;;  %v4573_v60 = vadd.s32 127, %v4572_v21  ;;  %v4869_v12 = vor.u32 %v4868_v52, %v4867_v17 }
 0x297   :  { %vm4380_vm14 = vweird.f32 %v8322_v23  ;;  %v4571_v5 = vor.u32 %v4570_v14, %v4569_v0  ;;  %v4872_v2 = vor.u32 %v4871_v38, %v4870_v15  ;;  %v4875_v50 = vor.u32 %v4874_v53, %v4873_v43 }
 0x298   :  { %v4878_v57 = vor.u32 %v4877_v44, %v4876_v26  ;;  %v4492_v37 = vsel %vm4490_vm8, %v4387_v33, %v8260_v62  ;;  %v4574_v51 = vshll.u32 %v4573_v60, 23  ;;  %v4881_v32 = vor.u32 %v4880_v54, %v4879_v25 }
 0x299   :  { %vm4882_vm15 = vcmp.lt.s32.totalorder %v4863_v3, 1  ;;  %v4389_v56 = vsel %vm4382_vm4, %v4385_v36, %v4388_v58  ;;  %v4489_v11 = vsel %vm4487_vm5, %v8258_v45, %v4384_v30  ;;  %v4578_v21 = vcvt.s32.f32 %v4571_v5 }
 0x29a   :  { %vm4883_vm0 = vcmp.lt.s32.totalorder %v4863_v3, 2  ;;  %v4575_v17 = vor.u32 4788187, %v4574_v51  ;;  %vm4884_vm1 = vcmp.lt.s32.totalorder %v4863_v3, 3  ;;  %vm4885_vm12 = vcmp.lt.s32.totalorder %v4863_v3, 4 }
 0x29b   :  { %v4886_v14 = vsel %vm4882_vm15, %v4866_v55, %v4869_v12  ;;  %v4887_v15 = vsel %vm4885_vm12, %v4875_v50, 2102212464  ;;  %v4890_v44 = vsel %vm4882_vm15, %v4869_v12, %v4872_v2  ;;  %v4891_v43 = vsel %vm4885_vm12, %v4878_v57, 920167782 }
 0x29c   :  { %v4894_v26 = vsel %vm4882_vm15, %v4872_v2, %v4875_v50  ;;  %v4576_v33 = vand.u32 2147483647, %v4575_v17  ;;  %v4888_v60 = vsel %vm4884_vm1, %v4872_v2, %v4887_v15  ;;  %v4892_v62 = vsel %vm4884_vm1, %v4875_v50, %v4891_v43  ;;  %v11333_v17 = vld [vmem:[#allocation2 + $0x15] sm:$0x1] }
 0x29d   :  { %v4895_v52 = vsel %vm4885_vm12, %v4881_v32, 1326507024  ;;  %v4889_v34 = vsel %vm4883_vm0, %v4886_v14, %v4888_v60  ;;  %v4893_v58 = vsel %vm4883_vm0, %v4890_v44, %v4892_v62  ;;  %v7958_v30 = vadd.s32 4294967169, %v5062_v29 }
 0x29e   :  { %v4896_v38 = vsel %vm4884_vm1, %v4878_v57, %v4895_v52  ;;  %v4579_v5 = vmul.f32 %v4578_v21, %v4576_v33  ;;  %v11291_v25 = vmul.u32.u64.low %v11255_v20, %v4893_v58  ;;  %v11292_v55 = vmul.u32.u64.high %v11255_v20, %v4893_v58, %v11291_v25 }
 0x29f   :  { %v4897_v45 = vsel %vm4883_vm0, %v4894_v26, %v4896_v38  ;;  %v4493_v12 = vsel %vm4486_vm11, %v4489_v11, %v4492_v37  ;;  %v5068_v53 = vadd.s32 1, %v7958_v30  ;;  %v11304_v57 = vsel %vm4172_vm7, nan, %v11244_v24 }
 0x2a0   :  { %v11298_v50 = vmul.u32.u64.low %v11255_v20, %v4897_v45  ;;  %v11299_v0 = vmul.u32.u64.high %v11255_v20, %v4897_v45, %v11298_v50  ;;  %v11307_v3 = vsel %vm4380_vm14, nan, %v4389_v56  ;;  %v4580_v54 = vxor.u32 2147483648, %v4579_v5 }
 0x2a1   :  { %v13138_v29 = vand.u32 2147483647, %v11240_v22  ;;  %v11314_v11 = vand.u32 3, %v11260_v31  ;;  %v11316_v46 = vand.u32 3, %v4692_v13  ;;  %v4905_v2 = vmul.u32 %v11255_v20, %v4889_v34 }
 0x2a2   :  { %vm5069_vm6 = vcmp.gt.s32.totalorder %v5068_v53, 0  ;;  %v4494_v1 = vsel %vm4380_vm14, nan, %v4493_v12  ;;  %v4581_v24 = vsel %vm4498_vm10, %v4580_v54, %v4579_v5  ;;  %v4908_v37 = vadd.s32 1, %v11292_v55 }
 0x2a3   :  { %v11311_v36 = vand.u32 8388607, %v13138_v29  ;;  %v5070_v51 = vsel %vm5069_vm6, %v5068_v53, 0  ;;  %v4495_v32 = vsub.f32 0.0, %v4494_v1  ;;  %v4584_v56 = vsel %vm11232_vm13, %v10951_v8, %v4581_v24 }
 0x2a4   :  { %v4704_v13 = vmul.f32 %v11307_v3, %v11253_v6  ;;  %vm4907_vm7 = vc.u32 %v11299_v0, %v11291_v25  ;;  %8261 = vcosq.f32 %v4584_v56  ;;  %v4079_v23 = vsub.f32 0.0, %v11226_v42 }
 0x2a5   :  { %v4909_v20 = vsel %vm4907_vm7, %v4908_v37, %v11292_v55  ;;  %v5072_v31 = vand.u32 31, %v5070_v51  ;;  %8263 = vsinq.f32 %v4584_v56  ;;  %v5066_v16 = vor.u32 8388608, %v11311_v36 }
 0x2a6   :  { %v4910_v14 = vadd.s32 %v4909_v20, %v4905_v2  ;;  %vm4594_vm10 = vcmp.eq.s32.totalorder %v11314_v11, 2  ;;  %vm4698_vm13 = vcmp.eq.s32.totalorder %v11316_v46, 2  ;;  %v11339_v15 = vmul.f32 %v4494_v1, %v11253_v6 }
 0x2a7   :  { %v4706_v44 = vmul.f32 %v11307_v3, %v11304_v57  ;;  %v5073_v43 = vsub.s32 32, %v5072_v31  ;;  %vm4591_vm2 = vcmp.eq.s32.totalorder %v11314_v11, 0  ;;  %vm4695_vm3 = vcmp.eq.s32.totalorder %v11316_v46, 0 }
 0x2a8   :  { %v11346_v26 = vmul.f32 %v4494_v1, %v11304_v57  ;;  %v11349_v33 = vmul.f32 %v4704_v13, %v11222_v61  ;;  %v11352_v60 = vmul.f32 %v4495_v32, %v11222_v61  ;;  %v4911_v62 = vadd.s32 536870912, %v4910_v14 }
 0x2a9   :  { %vm4590_vm4 = vcmp.lt.s32.totalorder %v11314_v11, 2  ;;  %vm4694_vm5 = vcmp.lt.s32.totalorder %v11316_v46, 2  ;;  %v11356_v52 = vmul.f32 %v4704_v13, %v4079_v23  ;;  %v11358_v34 = vshrl.u32 %v5070_v51, 5 }
 0x2aa   :  { %v5084_v58 = vshll.u32 %v13030_v39, %v5072_v31  ;;  %v5269_v38 = vand.u32 2139095040, %v11333_v17  ;;  %vm4588_vm8 = vweird.f32 %v10951_v8  ;;  %v11363_v30 = vshrl.u32 %v4911_v62, 30 }
 0x2ab   :  { %v5085_v5 = vshrl.u32 %v13031_v10, %v5073_v43  ;;  %v5087_v45 = vshll.u32 %v13031_v10, %v5072_v31  ;;  %v5088_v55 = vshrl.u32 %v13032_v35, %v5073_v43  ;;  %v5075_v12 = vshll.u32 %v13045_v28, %v5072_v31 }
 0x2ac   :  { %v5076_v50 = vshrl.u32 %v13046_v48, %v5073_v43  ;;  %v5078_v53 = vshll.u32 %v13046_v48, %v5072_v31  ;;  %v5079_v54 = vshrl.u32 %v13025_v63, %v5073_v43  ;;  %v11373_v29 = vmul.f32 %v4706_v44, %v11222_v61 }
 0x2ad   :  { %v4913_v36 = vshll.u32 %v11363_v30, 30  ;;  %v5081_v2 = vshll.u32 %v13025_v63, %v5072_v31  ;;  %v5082_v1 = vshrl.u32 %v13030_v39, %v5073_v43  ;;  %v11378_v24 = vmul.f32 %v4706_v44, %v4079_v23 }
 0x2ae   :  { %v5074_v37 = vshrl.u32 %v13045_v28, %v5073_v43  ;;  %v5086_v51 = vor.u32 %v5085_v5, %v5084_v58  ;;  %v5270_v56 = vshrl.u32 %v5269_v38, 23  ;;  %v4737_v13 = vmul.f32 %v4495_v32, %v4079_v23  ;;  %v8262_v21 = vpop.eup %8261 }
 0x2af   :  { %v11381_v20 = vsub.s32 %v4910_v14, %v4913_v36  ;;  %v5089_v62 = vor.u32 %v5088_v55, %v5087_v45  ;;  %vm5093_vm9 = vcmp.lt.s32.totalorder %v11358_v34, 4  ;;  %v5077_v4 = vor.u32 %v5076_v50, %v5075_v12  ;;  %v8264_v44 = vpop.eup %8263 }
 0x2b0   :  { %v11384_v22 = vor.u32 %v5079_v54, %v5078_v53  ;;  %vm5090_vm11 = vcmp.lt.s32.totalorder %v11358_v34, 1  ;;  %v11387_v31 = vshll.u32 %v5066_v16, 8  ;;  %v4595_v7 = vxor.u32 2147483648, %v8262_v21 }
 0x2b1   :  { %v4916_v43 = vsub.s32 0, %v11381_v20  ;;  %v5083_v58 = vor.u32 %v5082_v1, %v5081_v2  ;;  %vm5092_vm14 = vcmp.lt.s32.totalorder %v11358_v34, 3  ;;  %v4592_v32 = vxor.u32 2147483648, %v8264_v44 }
 0x2b2   :  { %v11393_v23 = vsel %vm5090_vm11, %v5074_v37, %v5077_v4  ;;  %v5099_v14 = vsel %vm5093_vm9, %v5086_v51, 920167782  ;;  %v11397_v38 = vadd.s32 4294967169, %v5270_v56  ;;  %v4596_v16 = vsel %vm4594_vm10, %v4595_v7, %v8264_v44 }
 0x2b3   :  { %v4700_v5 = vsel %vm4698_vm13, %v4595_v7, %v8264_v44  ;;  %v7951_v45 = vmin.u32 %v4916_v43, %v11381_v20  ;;  %v5103_v55 = vsel %vm5093_vm9, %v5089_v62, 1326507024  ;;  %v4593_v12 = vsel %vm4591_vm2, %v8262_v21, %v4592_v32 }
 0x2b4   :  { %v4697_v50 = vsel %vm4695_vm3, %v8262_v21, %v4592_v32  ;;  %v11412_v53 = vsel %vm5093_vm9, %v5083_v58, 2102212464  ;;  %v11417_v54 = vsel %vm5090_vm11, %v5077_v4, %v11384_v22  ;;  %v4597_v7 = vsel %vm4590_vm4, %v4593_v12, %v4596_v16 }
 0x2b5   :  { %v4701_v36 = vsel %vm4694_vm5, %v4697_v50, %v4700_v5  ;;  %v4918_v2 = vclz %v7951_v45  ;;  %v11426_v21 = vsel %vm5090_vm11, %v11384_v22, %v5083_v58  ;;  %v4598_v1 = vsel %vm4588_vm8, nan, %v4597_v7 }
 0x2b6   :  { %v4702_v37 = vsel %vm4588_vm8, nan, %v4701_v36  ;;  %v11434_v4 = vsel %vm5092_vm14, %v5083_v58, %v5099_v14  ;;  %v11438_v11 = vsel %vm5092_vm14, %v5086_v51, %v5103_v55  ;;  %v13139_v46 = vsub.f32 0.0, %v11304_v57 }
 0x2b7   :  { %v4709_v62 = vmul.f32 %v11339_v15, %v4702_v37  ;;  %v4714_v44 = vmul.f32 %v4598_v1, %v11253_v6  ;;  %v4715_v43 = vmul.f32 %v11346_v26, %v4702_v37  ;;  %v4720_v8 = vmul.f32 %v4702_v37, %v11307_v3 }
 0x2b8   :  { %v4708_v56 = vmul.f32 %v4598_v1, %v13139_v46  ;;  %v4703_v32 = vsub.f32 0.0, %v4702_v37  ;;  %v4712_v16 = vmul.f32 %v11339_v15, %v4598_v1  ;;  %v4718_v58 = vmul.f32 %v11346_v26, %v4598_v1 }
 0x2b9   :  { %v4716_v5 = vadd.f32 %v4715_v43, %v4714_v44  ;;  %v4721_v51 = vmul.f32 %v4598_v1, %v11307_v3  ;;  %v11449_v45 = vadd.s32 4294967294, %v4918_v2  ;;  %v4735_v55 = vmul.f32 %v4720_v8, %v11226_v42 }
 0x2ba   :  { %v4710_v14 = vadd.f32 %v4709_v62, %v4708_v56  ;;  %v4738_v12 = vmul.f32 %v4720_v8, %v11222_v61  ;;  %v13140_v50 = vmov %v13139_v46  ;;  %v4717_v36 = vmul.f32 %v4703_v32, %v11253_v6 }
 0x2bb   :  { %v4711_v7 = vmul.f32 %v4703_v32, %v13140_v50  ;;  %v4729_v15 = vmul.f32 %v4716_v5, %v11226_v42  ;;  %v4732_v46 = vmul.f32 %v4716_v5, %v11222_v61  ;;  %v4736_v3 = vadd.f32 %v4735_v55, %v11352_v60 }
 0x2bc   :  { %v4723_v37 = vmul.f32 %v4710_v14, %v11226_v42  ;;  %v4726_v26 = vmul.f32 %v4710_v14, %v11222_v61  ;;  %v4739_v2 = vadd.f32 %v4738_v12, %v4737_v13  ;;  %v4719_v56 = vadd.f32 %v4718_v58, %v4717_v36 }
 0x2bd   :  { %v4713_v1 = vadd.f32 %v4712_v16, %v4711_v7  ;;  %v4730_v57 = vadd.f32 %v4729_v15, %v11373_v29  ;;  %v4733_v6 = vadd.f32 %v4732_v46, %v11378_v24  ;;  %vm5091_vm15 = vcmp.lt.s32.totalorder %v11358_v34, 2 }
 0x2be   :  { %v4724_v62 = vadd.f32 %v4723_v37, %v11349_v33  ;;  %v4727_v44 = vadd.f32 %v4726_v26, %v11356_v52  ;;  %v4770_v42 = vmul.f32 %v4736_v3, %v10845_v27  ;;  %v4775_v43 = vmul.f32 %v4739_v2, %v10845_v27 }
 0x2bf   :  { %v4777_v61 = vmul.f32 %v4713_v1, %v10850_v41  ;;  %v4778_v60 = vmul.f32 %v4719_v56, %v10852_v18  ;;  %v4768_v33 = vmul.f32 %v4730_v57, %v10852_v18  ;;  %v4773_v52 = vmul.f32 %v4733_v6, %v10852_v18 }
 0x2c0   :  { %v4767_v13 = vmul.f32 %v4724_v62, %v10850_v41  ;;  %v4772_v29 = vmul.f32 %v4727_v44, %v10850_v41  ;;  %v4780_v24 = vmul.f32 %v4721_v51, %v10845_v27  ;;  %v4782_v32 = vmul.f32 %v4724_v62, %v10857_v19 }
 0x2c1   :  { %v4779_v8 = vadd.f32 %v4778_v60, %v4777_v61  ;;  %v4783_v16 = vmul.f32 %v4730_v57, %v10868_v40  ;;  %v4785_v5 = vmul.f32 %v4736_v3, %v10873_v47  ;;  %v4787_v55 = vmul.f32 %v4727_v44, %v10857_v19 }
 0x2c2   :  { %v4769_v58 = vadd.f32 %v4768_v33, %v4767_v13  ;;  %v4774_v14 = vadd.f32 %v4773_v52, %v4772_v29  ;;  %v4788_v7 = vmul.f32 %v4733_v6, %v10868_v40  ;;  %v4790_v41 = vmul.f32 %v4739_v2, %v10873_v47 }
 0x2c3   :  { %v4781_v12 = vadd.f32 %v4780_v24, %v4779_v8  ;;  %v4784_v50 = vadd.f32 %v4783_v16, %v4782_v32  ;;  %v4792_v27 = vmul.f32 %v4713_v1, %v10857_v19  ;;  %v4793_v37 = vmul.f32 %v4719_v56, %v10868_v40 }
 0x2c4   :  { %v4771_v18 = vadd.f32 %v4770_v42, %v4769_v58  ;;  %v4776_v36 = vadd.f32 %v4775_v43, %v4774_v14  ;;  %v4789_v26 = vadd.f32 %v4788_v7, %v4787_v55  ;;  %v4795_v46 = vmul.f32 %v4721_v51, %v10873_v47 }
 0x2c5   :  { %4829 = vst [vmem:[#allocation5 + $0x44] sm:$0x1] %v4781_v12  ;;  %v4786_v15 = vadd.f32 %v4785_v5, %v4784_v50  ;;  %v4797_v61 = vmul.f32 %v4724_v62, %v10883_v49  ;;  %v4794_v60 = vadd.f32 %v4793_v37, %v4792_v27  ;;  %v4798_v13 = vmul.f32 %v4730_v57, %v10887_v59 }
 0x2c6   :  { %4825 = vst [vmem:[#allocation5 + $0x34] sm:$0x1] %v4771_v18  ;;  %4827 = vst [vmem:[#allocation5 + $0x3c] sm:$0x1] %v4776_v36  ;;  %v4800_v33 = vmul.f32 %v4736_v3, %v10895_v9  ;;  %v4802_v42 = vmul.f32 %v4727_v44, %v10883_v49  ;;  %v4791_v19 = vadd.f32 %v4790_v41, %v4789_v26  ;;  %vm7953_vm0 = vcmp.lt.s32.totalorder %v11449_v45, 0 }
 0x2c7   :  { %4831 = vst [vmem:[#allocation5 + $0x4c] sm:$0x1] %v4786_v15  ;;  %v4803_v40 = vmul.f32 %v4733_v6, %v10887_v59  ;;  %v4805_v43 = vmul.f32 %v4739_v2, %v10895_v9  ;;  %v4807_v29 = vmul.f32 %v4713_v1, %v10883_v49  ;;  %v4796_v47 = vadd.f32 %v4795_v46, %v4794_v60  ;;  %v11534_v41 = vld [vmem:[#allocation2 + $0xd] sm:$0x1] }
 0x2c8   :  { %v4799_v52 = vadd.f32 %v4798_v13, %v4797_v61  ;;  %v4808_v62 = vmul.f32 %v4719_v56, %v10887_v59  ;;  %v4810_v8 = vmul.f32 %v4721_v51, %v10895_v9  ;;  %4833 = vst [vmem:[#allocation5 + $0x54] sm:$0x1] %v4791_v19  ;;  %v5096_v3 = vsel %vm5092_vm14, %v11384_v22, %v11412_v53 }
 0x2c9   :  { %v4804_v57 = vadd.f32 %v4803_v40, %v4802_v42  ;;  %v5105_v49 = vsel %vm5091_vm15, %v11426_v21, %v11438_v11  ;;  %4835 = vst [vmem:[#allocation5 + $0x5c] sm:$0x1] %v4796_v47  ;;  %v4921_v59 = vsel %vm7953_vm0, 0, %v11449_v45  ;;  %v5101_v9 = vsel %vm5091_vm15, %v11417_v54, %v11434_v4 }
 0x2ca   :  { %v4801_v2 = vadd.f32 %v4800_v33, %v4799_v52  ;;  %v4809_v1 = vadd.f32 %v4808_v62, %v4807_v29  ;;  %v4926_v56 = vsub.s32 4294967266, %v4921_v59  ;;  %v5276_v21 = vadd.s32 1, %v11397_v38 }
 0x2cb   :  { %v4806_v51 = vadd.f32 %v4805_v43, %v4804_v57  ;;  %v11508_v22 = vmul.u32.u64.low %v11387_v31, %v5105_v49  ;;  %v11509_v53 = vmul.u32.u64.high %v11387_v31, %v5105_v49, %v11508_v22  ;;  %v5097_v11 = vsel %vm5091_vm15, %v11393_v23, %v5096_v3 }
 0x2cc   :  { %4837 = vst [vmem:[#allocation5 + $0x64] sm:$0x1] %v4801_v2  ;;  %v4811_v44 = vadd.f32 %v4810_v8, %v4809_v1  ;;  %v11516_v45 = vmul.u32.u64.low %v11387_v31, %v5101_v9  ;;  %v11517_v6 = vmul.u32.u64.high %v11387_v31, %v5101_v9, %v11516_v45  ;;  %v5266_v54 = vand.u32 2147483647, %v11333_v17 }
 0x2cd   :  { %4839 = vst [vmem:[#allocation5 + $0x6c] sm:$0x1] %v4806_v51  ;;  %v4906_v4 = vadd.s32 %v11291_v25, %v11299_v0  ;;  %v4922_v24 = vsub.s32 32, %v4921_v59  ;;  %vm5277_vm1 = vcmp.gt.s32.totalorder %v5276_v21, 0  ;;  %v4927_v32 = vadd.s32 127, %v4926_v56 }
 0x2ce   :  { %4841 = vst [vmem:[#allocation5 + $0x74] sm:$0x1] %v4811_v44  ;;  %v5278_v38 = vsel %vm5277_vm1, %v5276_v21, 0  ;;  %v5113_v16 = vmul.u32 %v11387_v31, %v5097_v11  ;;  %vm5115_vm12 = vc.u32 %v11509_v53, %v11516_v45  ;;  %v4923_v23 = vshll.u32 %v11381_v20, %v4921_v59 }
 0x2cf   :  { %v5280_v34 = vand.u32 31, %v5278_v38  ;;  %v5116_v58 = vadd.s32 1, %v11517_v6  ;;  %v5273_v14 = vand.u32 8388607, %v5266_v54  ;;  %v4924_v5 = vshrl.u32 %v4906_v4, %v4922_v24 }
 0x2d0   :  { %v4928_v12 = vshll.u32 %v4927_v32, 23  ;;  %v5279_v50 = vshrl.u32 %v5278_v38, 5  ;;  %v5477_v40 = vand.u32 2139095040, %v11534_v41 }
 0x2d1   :  { %v5281_v55 = vsub.s32 32, %v5280_v34  ;;  %v5283_v25 = vshll.u32 %v13045_v28, %v5280_v34  ;;  %v5286_v0 = vshll.u32 %v13046_v48, %v5280_v34  ;;  %v5117_v31 = vsel %vm5115_vm12, %v5116_v58, %v11517_v6 }
 0x2d2   :  { %v5292_v7 = vshll.u32 %v13030_v39, %v5280_v34  ;;  %v5118_v20 = vadd.s32 %v5117_v31, %v5113_v16  ;;  %v5289_v27 = vshll.u32 %v13025_v63, %v5280_v34  ;;  %v5295_v26 = vshll.u32 %v13031_v10, %v5280_v34 }
 0x2d3   :  { %v5284_v18 = vshrl.u32 %v13046_v48, %v5281_v55  ;;  %v5287_v36 = vshrl.u32 %v13025_v63, %v5281_v55  ;;  %v5290_v37 = vshrl.u32 %v13030_v39, %v5281_v55  ;;  %v5293_v15 = vshrl.u32 %v13031_v10, %v5281_v55 }
 0x2d4   :  { %v5296_v46 = vshrl.u32 %v13032_v35, %v5281_v55  ;;  %v5119_v61 = vadd.s32 536870912, %v5118_v20  ;;  %v5274_v60 = vor.u32 8388608, %v5273_v14  ;;  %v4925_v42 = vor.u32 %v4924_v5, %v4923_v23 }
 0x2d5   :  { %v5285_v13 = vor.u32 %v5284_v18, %v5283_v25  ;;  %v5288_v33 = vor.u32 %v5287_v36, %v5286_v0  ;;  %v5294_v19 = vor.u32 %v5293_v15, %v5292_v7  ;;  %vm5298_vm6 = vcmp.lt.s32.totalorder %v5279_v50, 1  ;;  %v13141_v36 = vld [vmem:[#allocation28_spill] sm:$0xff] }
 0x2d6   :  { %v4929_v43 = vor.u32 4788187, %v4928_v12  ;;  %v11544_v29 = vshrl.u32 %v5119_v61, 30  ;;  %v5291_v47 = vor.u32 %v5290_v37, %v5289_v27  ;;  %vm5301_vm7 = vcmp.lt.s32.totalorder %v5279_v50, 4 }
 0x2d7   :  { %v5282_v52 = vshrl.u32 %v13045_v28, %v5281_v55  ;;  %v5297_v62 = vor.u32 %v5296_v46, %v5295_v26  ;;  %vm5300_vm10 = vcmp.lt.s32.totalorder %v5279_v50, 3  ;;  %vm5299_vm13 = vcmp.lt.s32.totalorder %v5279_v50, 2 }
 0x2d8   :  { %v5121_v8 = vshll.u32 %v11544_v29, 30  ;;  %v5303_v57 = vsel %vm5301_vm7, %v5291_v47, 2102212464  ;;  %v5306_v3 = vsel %vm5298_vm6, %v5285_v13, %v5288_v33  ;;  %v4932_v49 = vcvt.s32.f32 %v4925_v42 }
 0x2d9   :  { %v5307_v2 = vsel %vm5301_vm7, %v5294_v19, 920167782  ;;  %v5314_v1 = vshll.u32 %v5274_v60, 8  ;;  %v5478_v59 = vshrl.u32 %v5477_v40, 23  ;;  %v4930_v9 = vand.u32 2147483647, %v4929_v43 }
 0x2da   :  { %v5122_v51 = vsub.s32 %v5118_v20, %v5121_v8  ;;  %v5308_v56 = vsel %vm5300_vm10, %v5291_v47, %v5307_v2  ;;  %v5310_v44 = vsel %vm5298_vm6, %v5288_v33, %v5291_v47  ;;  %v5302_v22 = vsel %vm5298_vm6, %v5282_v52, %v5285_v13 }
 0x2db   :  { %v5304_v21 = vsel %vm5300_vm10, %v5288_v33, %v5303_v57  ;;  %v5309_v11 = vsel %vm5299_vm13, %v5306_v3, %v5308_v56  ;;  %v5311_v6 = vsel %vm5301_vm7, %v5297_v62, 1326507024  ;;  %v7974_v34 = vadd.s32 4294967169, %v5478_v59 }
 0x2dc   :  { %v5124_v4 = vsub.s32 0, %v5122_v51  ;;  %v5312_v24 = vsel %vm5300_vm10, %v5294_v19, %v5311_v6  ;;  %v11559_v38 = vmul.u32.u64.low %v5314_v1, %v5309_v11  ;;  %v11560_v16 = vmul.u32.u64.high %v5314_v1, %v5309_v11, %v11559_v38 }
 0x2dd   :  { %v5313_v32 = vsel %vm5299_vm13, %v5310_v44, %v5312_v24  ;;  %v4933_v23 = vmul.f32 %v4932_v49, %v4930_v9  ;;  %v5305_v14 = vsel %vm5299_vm13, %v5302_v22, %v5304_v21  ;;  %v5484_v0 = vadd.s32 1, %v7974_v34  ;;  %v13143_v34 = vld [vmem:[#allocation8_spill] sm:$0xff] }
 0x2de   :  { %v7959_v58 = vmin.u32 %v5124_v4, %v5122_v51  ;;  %v11564_v5 = vmul.u32.u64.low %v5314_v1, %v5313_v32  ;;  %v11565_v55 = vmul.u32.u64.high %v5314_v1, %v5313_v32, %v11564_v5  ;;  %v4936_v12 = vsub.s32 4, %v11363_v30 }
 0x2df   :  { %v5321_v31 = vmul.u32 %v5314_v1, %v5305_v14  ;;  %v5324_v7 = vadd.s32 1, %v11560_v16  ;;  %v4934_v20 = vxor.u32 2147483648, %v4933_v23  ;;  %vm5485_vm2 = vcmp.gt.s32.totalorder %v5484_v0, 0 }
 0x2e0   :  { %v5126_v25 = vclz %v7959_v58  ;;  %vm4852_vm3 = vcmp.lt.s32.totalorder %v13141_v36, 0  ;;  %vm5323_vm4 = vc.u32 %v11565_v55, %v11559_v38  ;;  %v5486_v50 = vsel %vm5485_vm2, %v5484_v0, 0 }
 0x2e1   :  { %v5114_v27 = vadd.s32 %v11516_v45, %v11509_v53  ;;  %v5325_v37 = vsel %vm5323_vm4, %v5324_v7, %v11560_v16  ;;  %v4937_v15 = vsel %vm4852_vm3, %v4936_v12, %v11363_v30  ;;  %v5488_v61 = vand.u32 31, %v5486_v50 }
 0x2e2   :  { %v7960_v18 = vadd.s32 4294967294, %v5126_v25  ;;  %v5326_v46 = vadd.s32 %v5325_v37, %v5321_v31  ;;  %v13142_v60 = vand.u32 2147483647, %v13141_v36  ;;  %v4935_v13 = vsel %vm4852_vm3, %v4934_v20, %v4933_v23 }
 0x2e3   :  { %v5489_v62 = vsub.s32 32, %v5488_v61  ;;  %v5474_v3 = vand.u32 2147483647, %v11534_v41  ;;  %v11583_v2 = vshrl.u32 %v5486_v50, 5  ;;  %v5491_v1 = vshll.u32 %v13045_v28, %v5488_v61 }
 0x2e4   :  { %vm7961_vm5 = vcmp.lt.s32.totalorder %v7960_v18, 0  ;;  %vm4851_vm8 = vcmp.le.f32.partialorder %v13142_v60, 0.7853982  ;;  %v5327_v40 = vadd.s32 536870912, %v5326_v46  ;;  %v5494_v56 = vshll.u32 %v13046_v48, %v5488_v61 }
 0x2e5   :  { %v5129_v26 = vsel %vm7961_vm5, 0, %v7960_v18  ;;  %v4939_v43 = vsel %vm4851_vm8, 0, %v4937_v15  ;;  %v4938_v53 = vsel %vm4851_vm8, %v13141_v36, %v4935_v13  ;;  %v5495_v22 = vshrl.u32 %v13025_v63, %v5489_v62 }
 0x2e6   :  { %v5130_v33 = vsub.s32 32, %v5129_v26  ;;  %v5131_v42 = vshll.u32 %v5122_v51, %v5129_v26  ;;  %v5134_v19 = vsub.s32 4294967266, %v5129_v26  ;;  %v11579_v52 = vshrl.u32 %v5327_v40, 30 }
 0x2e7   :  { %8265 = vcosq.f32 %v4938_v53  ;;  %v5046_v49 = vadd.s32 3, %v4939_v43  ;;  %v5492_v51 = vshrl.u32 %v13046_v48, %v5489_v62  ;;  %v5500_v21 = vshll.u32 %v13030_v39, %v5488_v61 }
 0x2e8   :  { %v5132_v47 = vshrl.u32 %v5114_v27, %v5130_v33  ;;  %v5135_v45 = vadd.s32 127, %v5134_v19  ;;  %v5329_v57 = vshll.u32 %v11579_v52, 30  ;;  %v5501_v11 = vshrl.u32 %v13031_v10, %v5489_v62 }
 0x2e9   :  { %v5497_v24 = vshll.u32 %v13025_v63, %v5488_v61  ;;  %v5498_v32 = vshrl.u32 %v13030_v39, %v5489_v62  ;;  %8267 = vsinq.f32 %v4938_v53  ;;  %v11596_v16 = vand.u32 3, %v5046_v49 }
 0x2ea   :  { %v5133_v30 = vor.u32 %v5132_v47, %v5131_v42  ;;  %v5136_v8 = vshll.u32 %v5135_v45, 23  ;;  %v11586_v9 = vsub.s32 %v5326_v46, %v5329_v57  ;;  %vm5060_vm9 = vcmp.lt.s32.totalorder %v13143_v34, 0  ;;  %v11636_v47 = vld [vmem:[#allocation2 + $0x6] sm:$0x1] }
 0x2eb   :  { %v5144_v23 = vsub.s32 4, %v11544_v29  ;;  %v5481_v14 = vand.u32 8388607, %v5474_v3  ;;  %v5503_v5 = vshll.u32 %v13031_v10, %v5488_v61  ;;  %v5504_v25 = vshrl.u32 %v13032_v35, %v5489_v62 }
 0x2ec   :  { %v5137_v59 = vor.u32 4788187, %v5136_v8  ;;  %v5140_v44 = vcvt.s32.f32 %v5133_v30  ;;  %v5332_v4 = vsub.s32 0, %v11586_v9  ;;  %v5493_v12 = vor.u32 %v5492_v51, %v5491_v1 }
 0x2ed   :  { %v5496_v31 = vor.u32 %v5495_v22, %v5494_v56  ;;  %v5502_v7 = vor.u32 %v5501_v11, %v5500_v21  ;;  %v13144_v20 = vand.u32 2147483647, %v13143_v34  ;;  %v5490_v50 = vshrl.u32 %v13045_v28, %v5489_v62 }
 0x2ee   :  { %v5138_v6 = vand.u32 2147483647, %v5137_v59  ;;  %v7967_v58 = vmin.u32 %v5332_v4, %v11586_v9  ;;  %v5499_v27 = vor.u32 %v5498_v32, %v5497_v24  ;;  %vm5506_vm14 = vcmp.lt.s32.totalorder %v11583_v2, 1 }
 0x2ef   :  { %vm11607_vm11 = vcmp.le.f32.partialorder %v13144_v20, 0.7853982  ;;  %v11613_v37 = vand.u32 3, %v4939_v43  ;;  %v5145_v15 = vsel %vm5060_vm9, %v5144_v23, %v11544_v29  ;;  %vm5508_vm15 = vcmp.lt.s32.totalorder %v11583_v2, 3 }
 0x2f0   :  { %v5141_v0 = vmul.f32 %v5140_v44, %v5138_v6  ;;  %v5334_v36 = vclz %v7967_v58  ;;  %vm5509_vm0 = vcmp.lt.s32.totalorder %v11583_v2, 4  ;;  %v5505_v46 = vor.u32 %v5504_v25, %v5503_v5  ;;  %v8323_v5 = vld [vmem:[#allocation2 + $0x5] sm:$0x1] }
 0x2f1   :  { %vm5507_vm1 = vcmp.lt.s32.totalorder %v11583_v2, 2  ;;  %v5511_v61 = vsel %vm5509_vm0, %v5499_v27, 2102212464  ;;  %v11623_v60 = vpop.eup %8265  ;;  %v5482_v33 = vor.u32 8388608, %v5481_v14  ;;  %v5514_v42 = vsel %vm5506_vm14, %v5493_v12, %v5496_v31 }
 0x2f2   :  { %v7968_v26 = vadd.s32 4294967294, %v5334_v36  ;;  %v5142_v13 = vxor.u32 2147483648, %v5141_v0  ;;  %v5515_v29 = vsel %vm5509_vm0, %v5502_v7, 920167782  ;;  %vm5052_vm12 = vcmp.eq.s32.totalorder %v11596_v16, 2 }
 0x2f3   :  { %v5322_v19 = vadd.s32 %v11559_v38, %v11565_v55  ;;  %v5510_v40 = vsel %vm5506_vm14, %v5490_v50, %v5493_v12  ;;  %v5516_v43 = vsel %vm5508_vm15, %v5499_v27, %v5515_v29  ;;  %vm5268_vm7 = vcmp.lt.s32.totalorder %v11333_v17, 0  ;;  %v8268_v49 = vpop.eup %8267 }
 0x2f4   :  { %vm7969_vm6 = vcmp.lt.s32.totalorder %v7968_v26, 0  ;;  %v5512_v45 = vsel %vm5508_vm15, %v5496_v31, %v5511_v61  ;;  %v5517_v62 = vsel %vm5507_vm1, %v5514_v42, %v5516_v43  ;;  %v5518_v38 = vsel %vm5506_vm14, %v5496_v31, %v5499_v27 }
 0x2f5   :  { %v5337_v53 = vsel %vm7969_vm6, 0, %v7968_v26  ;;  %v5519_v57 = vsel %vm5509_vm0, %v5505_v46, 1326507024  ;;  %vm4945_vm10 = vcmp.eq.s32.totalorder %v11613_v37, 0  ;;  %v5143_v1 = vsel %vm5060_vm9, %v5142_v13, %v5141_v0 }
 0x2f6   :  { %v5338_v55 = vsub.s32 32, %v5337_v53  ;;  %v5339_v30 = vshll.u32 %v11586_v9, %v5337_v53  ;;  %v5342_v8 = vsub.s32 4294967266, %v5337_v53  ;;  %v5520_v59 = vsel %vm5508_vm15, %v5502_v7, %v5519_v57 }
 0x2f7   :  { %v5522_v51 = vshll.u32 %v5482_v33, 8  ;;  %v5828_v56 = vand.u32 2139095040, %v11636_v47  ;;  %vm11656_vm13 = vcmp.le.f32.partialorder %v5266_v54, 0.7853982  ;;  %v5513_v21 = vsel %vm5507_vm1, %v5510_v40, %v5512_v45 }
 0x2f8   :  { %v5340_v44 = vshrl.u32 %v5322_v19, %v5338_v55  ;;  %v5343_v22 = vadd.s32 127, %v5342_v8  ;;  %v5521_v11 = vsel %vm5507_vm1, %v5518_v38, %v5520_v59  ;;  %vm4944_vm2 = vcmp.lt.s32.totalorder %v11613_v37, 2  ;;  %v11706_v55 = vld [vmem:[#allocation2 + $0x1e] sm:$0x1] }
 0x2f9   :  { %v11664_v6 = vmul.u32.u64.low %v5522_v51, %v5521_v11  ;;  %v11665_v4 = vmul.u32.u64.high %v5522_v51, %v5521_v11, %v11664_v6  ;;  %v11667_v24 = vmul.u32.u64.low %v5522_v51, %v5517_v62  ;;  %v11668_v32 = vmul.u32.u64.high %v5522_v51, %v5517_v62, %v11667_v24 }
 0x2fa   :  { %v5341_v54 = vor.u32 %v5340_v44, %v5339_v30  ;;  %v5344_v23 = vshll.u32 %v5343_v22, 23  ;;  %v5352_v58 = vsub.s32 4, %v11579_v52  ;;  %v5829_v14 = vshrl.u32 %v5828_v56, 23 }
 0x2fb   :  { %vm4942_vm3 = vweird.f32 %v8323_v5  ;;  %v4946_v25 = vxor.u32 2147483648, %v8268_v49  ;;  %v4949_v2 = vxor.u32 2147483648, %v11623_v60  ;;  %v5146_v0 = vsel %vm11607_vm11, %v13143_v34, %v5143_v1 }
 0x2fc   :  { %v5147_v12 = vsel %vm11607_vm11, 0, %v5145_v15  ;;  %v5345_v31 = vor.u32 4788187, %v5344_v23  ;;  %v5348_v7 = vcvt.s32.f32 %v5341_v54  ;;  %v5529_v20 = vmul.u32 %v5522_v51, %v5513_v21 }
 0x2fd   :  { %v7982_v36 = vadd.s32 4294967169, %v5829_v14  ;;  %vm4948_vm4 = vcmp.eq.s32.totalorder %v11613_v37, 2  ;;  %vm5049_vm5 = vcmp.eq.s32.totalorder %v11596_v16, 0  ;;  %vm5531_vm8 = vc.u32 %v11665_v4, %v11667_v24 }
 0x2fe   :  { %v5532_v50 = vadd.s32 1, %v11668_v32  ;;  %vm5048_vm9 = vcmp.lt.s32.totalorder %v11596_v16, 2  ;;  %v5346_v27 = vand.u32 2147483647, %v5345_v31  ;;  %v5353_v34 = vsel %vm5268_vm7, %v5352_v58, %v11579_v52 }
 0x2ff   :  { %v5835_v18 = vadd.s32 1, %v7982_v36  ;;  %v5054_v15 = vsel %vm5052_vm12, %v4949_v2, %v8268_v49  ;;  %8269 = vcosq.f32 %v5146_v0  ;;  %v5254_v26 = vadd.s32 3, %v5147_v12 }
 0x300   :  { %v5533_v46 = vsel %vm5531_vm8, %v5532_v50, %v11668_v32  ;;  %v5051_v61 = vsel %vm5049_vm5, %v11623_v60, %v4946_v25  ;;  %v5349_v13 = vmul.f32 %v5348_v7, %v5346_v27  ;;  %v4950_v42 = vsel %vm4948_vm4, %v4949_v2, %v8268_v49 }
 0x301   :  { %v5534_v33 = vadd.s32 %v5533_v46, %v5529_v20  ;;  %vm5836_vm11 = vcmp.gt.s32.totalorder %v5835_v18, 0  ;;  %v5355_v29 = vsel %vm11656_vm13, 0, %v5353_v34  ;;  %v5825_v52 = vand.u32 2147483647, %v11636_v47 }
 0x302   :  { %v5837_v19 = vsel %vm5836_vm11, %v5835_v18, 0  ;;  %v4947_v40 = vsel %vm4945_vm10, %v11623_v60, %v4946_v25  ;;  %8271 = vsinq.f32 %v5146_v0  ;;  %v5350_v43 = vxor.u32 2147483648, %v5349_v13 }
 0x303   :  { %v5535_v53 = vadd.s32 536870912, %v5534_v33  ;;  %v5055_v45 = vsel %vm5048_vm9, %v5051_v61, %v5054_v15  ;;  %v11702_v62 = vand.u32 3, %v5147_v12  ;;  %v11704_v38 = vand.u32 3, %v5254_v26 }
 0x304   :  { %v5839_v30 = vand.u32 31, %v5837_v19  ;;  %v5351_v8 = vsel %vm5268_vm7, %v5350_v43, %v5349_v13  ;;  %v5462_v57 = vadd.s32 3, %v5355_v29  ;;  %v4951_v60 = vsel %vm4944_vm2, %v4947_v40, %v4950_v42 }
 0x305   :  { %v11710_v49 = vshrl.u32 %v5535_v53, 30  ;;  %v5832_v16 = vand.u32 8388607, %v5825_v52  ;;  %v11717_v1 = vsel %vm4942_vm3, nan, %v5055_v45  ;;  %v5354_v59 = vsel %vm11656_vm13, %v11333_v17, %v5351_v8 }
 0x306   :  { %v6036_v56 = vand.u32 2139095040, %v11706_v55  ;;  %vm5156_vm14 = vcmp.eq.s32.totalorder %v11702_v62, 2  ;;  %vm5260_vm15 = vcmp.eq.s32.totalorder %v11704_v38, 2  ;;  %v11726_v37 = vsub.s32 32, %v5839_v30 }
 0x307   :  { %v5537_v51 = vshll.u32 %v11710_v49, 30  ;;  %v11729_v44 = vsel %vm4942_vm3, nan, %v4951_v60  ;;  %vm5153_vm0 = vcmp.eq.s32.totalorder %v11702_v62, 0  ;;  %vm5257_vm1 = vcmp.eq.s32.totalorder %v11704_v38, 0 }
 0x308   :  { %v11733_v22 = vand.u32 3, %v5355_v29  ;;  %v11735_v9 = vand.u32 3, %v5462_v57  ;;  %8273 = vcosq.f32 %v5354_v59  ;;  %v11740_v6 = vsub.f32 0.0, %v11717_v1 }
 0x309   :  { %v11737_v21 = vsub.s32 %v5534_v33, %v5537_v51  ;;  %v8270_v11 = vpop.eup %8269  ;;  %v5833_v32 = vor.u32 8388608, %v5832_v16  ;;  %v6033_v54 = vand.u32 2147483647, %v11706_v55  ;;  %8275 = vsinq.f32 %v5354_v59  ;;  %v11775_v33 = vld [vmem:[#allocation2 + $0x1d] sm:$0x1] }
 0x30a   :  { %v11744_v58 = vshrl.u32 %v5837_v19, 5  ;;  %v6037_v14 = vshrl.u32 %v6036_v56, 23  ;;  %vm5476_vm12 = vcmp.lt.s32.totalorder %v11534_v41, 0  ;;  %v5851_v5 = vshll.u32 %v13030_v39, %v5839_v30 }
 0x30b   :  { %v5540_v23 = vsub.s32 0, %v11737_v21  ;;  %v5852_v25 = vshrl.u32 %v13031_v10, %v11726_v37  ;;  %v5854_v2 = vshll.u32 %v13031_v10, %v5839_v30  ;;  %v5855_v0 = vshrl.u32 %v13032_v35, %v11726_v37 }
 0x30c   :  { %v8272_v12 = vpop.eup %8271  ;;  %vm5152_vm6 = vcmp.lt.s32.totalorder %v11702_v62, 2  ;;  %v5157_v31 = vxor.u32 2147483648, %v8270_v11  ;;  %vm5256_vm7 = vcmp.lt.s32.totalorder %v11704_v38, 2  ;;  %v5842_v20 = vshll.u32 %v13045_v28, %v5839_v30 }
 0x30d   :  { %v7975_v7 = vmin.u32 %v5540_v23, %v11737_v21  ;;  %v5845_v36 = vshll.u32 %v13046_v48, %v5839_v30  ;;  %v5843_v50 = vshrl.u32 %v13046_v48, %v11726_v37  ;;  %v5846_v27 = vshrl.u32 %v13025_v63, %v11726_v37 }
 0x30e   :  { %v5848_v34 = vshll.u32 %v13025_v63, %v5839_v30  ;;  %v5849_v18 = vshrl.u32 %v13030_v39, %v11726_v37  ;;  %vm11767_vm10 = vcmp.le.f32.partialorder %v5474_v3, 0.7853982  ;;  %v5530_v26 = vadd.s32 %v11667_v24, %v11665_v4 }
 0x30f   :  { %v5542_v46 = vclz %v7975_v7  ;;  %v5856_v61 = vor.u32 %v5855_v0, %v5854_v2  ;;  %v11773_v13 = vshll.u32 %v5833_v32, 8  ;;  %vm5150_vm13 = vweird.f32 %v11775_v33 }
 0x310   :  { %v5154_v42 = vxor.u32 2147483648, %v8272_v12  ;;  %vm5361_vm2 = vcmp.eq.s32.totalorder %v11733_v22, 0  ;;  %vm5364_vm3 = vcmp.eq.s32.totalorder %v11733_v22, 2  ;;  %v5853_v3 = vor.u32 %v5852_v25, %v5851_v5 }
 0x311   :  { %vm5860_vm4 = vcmp.lt.s32.totalorder %v11744_v58, 4  ;;  %v11783_v29 = vand.u32 8388607, %v6033_v54  ;;  %v5158_v4 = vsel %vm5156_vm14, %v5157_v31, %v8272_v12  ;;  %v5262_v24 = vsel %vm5260_vm15, %v5157_v31, %v8272_v12 }
 0x312   :  { %v7976_v19 = vadd.s32 4294967294, %v5542_v46  ;;  %v5560_v40 = vsub.s32 4, %v11710_v49  ;;  %v5844_v43 = vor.u32 %v5843_v50, %v5842_v20  ;;  %v5847_v53 = vor.u32 %v5846_v27, %v5845_v36  ;;  %v8274_v57 = vpop.eup %8273 }
 0x313   :  { %v5850_v45 = vor.u32 %v5849_v18, %v5848_v34  ;;  %v7990_v30 = vadd.s32 4294967169, %v6037_v14  ;;  %vm5857_vm8 = vcmp.lt.s32.totalorder %v11744_v58, 1  ;;  %vm5859_vm9 = vcmp.lt.s32.totalorder %v11744_v58, 3  ;;  %v8276_v56 = vpop.eup %8275 }
 0x314   :  { %vm7977_vm5 = vcmp.lt.s32.totalorder %v7976_v19, 0  ;;  %v5870_v8 = vsel %vm5860_vm4, %v5856_v61, 1326507024  ;;  %v5155_v60 = vsel %vm5153_vm0, %v8270_v11, %v5154_v42  ;;  %v5259_v16 = vsel %vm5257_vm1, %v8270_v11, %v5154_v42 }
 0x315   :  { %vm5360_vm11 = vcmp.lt.s32.totalorder %v11733_v22, 2  ;;  %vm5465_vm14 = vcmp.eq.s32.totalorder %v11735_v9, 0  ;;  %vm5468_vm15 = vcmp.eq.s32.totalorder %v11735_v9, 2  ;;  %v5545_v59 = vsel %vm7977_vm5, 0, %v7976_v19 }
 0x316   :  { %v5866_v51 = vsel %vm5860_vm4, %v5853_v3, 920167782  ;;  %v5546_v32 = vsub.s32 32, %v5545_v59  ;;  %v5547_v23 = vshll.u32 %v11737_v21, %v5545_v59  ;;  %v5561_v14 = vsel %vm5476_vm12, %v5560_v40, %v11710_v49 }
 0x317   :  { %v5841_v11 = vshrl.u32 %v13045_v28, %v11726_v37  ;;  %v5550_v5 = vsub.s32 4294967266, %v5545_v59  ;;  %vm5858_vm0 = vcmp.lt.s32.totalorder %v11744_v58, 2  ;;  %v5869_v25 = vsel %vm5857_vm8, %v5847_v53, %v5850_v45 }
 0x318   :  { %v5871_v2 = vsel %vm5859_vm9, %v5853_v3, %v5870_v8  ;;  %vm5464_vm1 = vcmp.lt.s32.totalorder %v11735_v9, 2  ;;  %v5548_v0 = vshrl.u32 %v5530_v26, %v5546_v32  ;;  %v5862_v21 = vsel %vm5860_vm4, %v5850_v45, 2102212464  ;;  %v11866_v32 = vld [vmem:[#allocation2 + $0x16] sm:$0x1] }
 0x319   :  { %v5865_v49 = vsel %vm5857_vm8, %v5844_v43, %v5847_v53  ;;  %v5867_v37 = vsel %vm5859_vm9, %v5850_v45, %v5866_v51  ;;  %v5159_v12 = vsel %vm5152_vm6, %v5155_v60, %v5158_v4  ;;  %v5263_v31 = vsel %vm5256_vm7, %v5259_v16, %v5262_v24 }
 0x31a   :  { %v5551_v7 = vadd.s32 127, %v5550_v5  ;;  %v5563_v20 = vsel %vm11767_vm10, 0, %v5561_v14  ;;  %vm5358_vm5 = vweird.f32 %v11333_v17  ;;  %v5362_v36 = vxor.u32 2147483648, %v8276_v56 }
 0x31b   :  { %v5365_v50 = vxor.u32 2147483648, %v8274_v57  ;;  %v5549_v27 = vor.u32 %v5548_v0, %v5547_v23  ;;  %v5872_v34 = vsel %vm5858_vm0, %v5869_v25, %v5871_v2  ;;  %v5861_v62 = vsel %vm5857_vm8, %v5841_v11, %v5844_v43 }
 0x31c   :  { %v5552_v18 = vshll.u32 %v5551_v7, 23  ;;  %v5863_v38 = vsel %vm5859_vm9, %v5847_v53, %v5862_v21  ;;  %v5868_v26 = vsel %vm5858_vm0, %v5865_v49, %v5867_v37  ;;  %v11838_v46 = vsel %vm5150_vm13, nan, %v5263_v31 }
 0x31d   :  { %v5363_v61 = vsel %vm5361_vm2, %v8274_v57, %v5362_v36  ;;  %v5366_v42 = vsel %vm5364_vm3, %v5365_v50, %v8276_v56  ;;  %v5556_v3 = vcvt.s32.f32 %v5549_v27  ;;  %v6043_v40 = vadd.s32 1, %v7990_v30 }
 0x31e   :  { %v5553_v4 = vor.u32 4788187, %v5552_v18  ;;  %v11845_v24 = vmul.u32.u64.low %v11773_v13, %v5872_v34  ;;  %v11846_v19 = vmul.u32.u64.high %v11773_v13, %v5872_v34, %v11845_v24  ;;  %v5670_v43 = vadd.s32 3, %v5563_v20 }
 0x31f   :  { %v5864_v53 = vsel %vm5858_vm0, %v5861_v62, %v5863_v38  ;;  %v11851_v45 = vmul.u32.u64.low %v11773_v13, %v5868_v26  ;;  %v11852_v8 = vmul.u32.u64.high %v11773_v13, %v5868_v26, %v11851_v45  ;;  %v11857_v60 = vsel %vm5150_vm13, nan, %v5159_v12 }
 0x320   :  { %v5265_v16 = vsub.f32 0.0, %v11838_v46  ;;  %v5554_v59 = vand.u32 2147483647, %v5553_v4  ;;  %vm6044_vm6 = vcmp.gt.s32.totalorder %v6043_v40, 0  ;;  %v5367_v30 = vsel %vm5360_vm11, %v5363_v61, %v5366_v42 }
 0x321   :  { %v5467_v58 = vsel %vm5465_vm14, %v8274_v57, %v5362_v36  ;;  %v5470_v51 = vsel %vm5468_vm15, %v5365_v50, %v8276_v56  ;;  %v6045_v23 = vsel %vm6044_vm6, %v6043_v40, 0  ;;  %v11868_v33 = vand.u32 3, %v5563_v20 }
 0x322   :  { %v5557_v14 = vmul.f32 %v5556_v3, %v5554_v59  ;;  %v5880_v11 = vmul.u32 %v11773_v13, %v5864_v53  ;;  %vm5882_vm7 = vc.u32 %v11846_v19, %v11851_v45  ;;  %v11873_v5 = vand.u32 3, %v5670_v43 }
 0x323   :  { %v5883_v22 = vadd.s32 1, %v11852_v8  ;;  %v11876_v25 = vshrl.u32 %v6045_v23, 5  ;;  %v6047_v57 = vand.u32 31, %v6045_v23  ;;  %v11880_v56 = vsel %vm5358_vm5, nan, %v5367_v30 }
 0x324   :  { %v5471_v2 = vsel %vm5464_vm1, %v5467_v58, %v5470_v51  ;;  %v5558_v0 = vxor.u32 2147483648, %v5557_v14  ;;  %v6244_v13 = vand.u32 2139095040, %v11866_v32  ;;  %vm5673_vm2 = vcmp.eq.s32.totalorder %v11873_v5, 0 }
 0x325   :  { %v5884_v21 = vsel %vm5882_vm7, %v5883_v22, %v11852_v8  ;;  %v6048_v49 = vsub.s32 32, %v6047_v57  ;;  %v6050_v37 = vshll.u32 %v13045_v28, %v6047_v57  ;;  %v6053_v12 = vshll.u32 %v13046_v48, %v6047_v57 }
 0x326   :  { %v5559_v31 = vsel %vm5476_vm12, %v5558_v0, %v5557_v14  ;;  %v5885_v7 = vadd.s32 %v5884_v21, %v5880_v11  ;;  %v6056_v20 = vshll.u32 %v13025_v63, %v6047_v57  ;;  %v6059_v36 = vshll.u32 %v13030_v39, %v6047_v57 }
 0x327   :  { %v5562_v9 = vsel %vm11767_vm10, %v11534_v41, %v5559_v31  ;;  %v6051_v50 = vshrl.u32 %v13046_v48, %v6048_v49  ;;  %v6054_v27 = vshrl.u32 %v13025_v63, %v6048_v49  ;;  %vm6065_vm13 = vcmp.lt.s32.totalorder %v11876_v25, 1 }
 0x328   :  { %8277 = vcosq.f32 %v5562_v9  ;;  %v5886_v34 = vadd.s32 536870912, %v5885_v7  ;;  %v6057_v18 = vshrl.u32 %v13030_v39, %v6048_v49  ;;  %v6060_v62 = vshrl.u32 %v13031_v10, %v6048_v49 }
 0x329   :  { %8279 = vsinq.f32 %v5562_v9  ;;  %v6052_v38 = vor.u32 %v6051_v50, %v6050_v37  ;;  %v6055_v26 = vor.u32 %v6054_v27, %v6053_v12  ;;  %v6062_v61 = vshll.u32 %v13031_v10, %v6047_v57 }
 0x32a   :  { %vm5572_vm12 = vcmp.eq.s32.totalorder %v11868_v33, 2  ;;  %v11902_v15 = vshrl.u32 %v5886_v34, 30  ;;  %v6058_v42 = vor.u32 %v6057_v18, %v6056_v20  ;;  %v6061_v3 = vor.u32 %v6060_v62, %v6059_v36 }
 0x32b   :  { %v6063_v4 = vshrl.u32 %v13032_v35, %v6048_v49  ;;  %vm5569_vm10 = vcmp.eq.s32.totalorder %v11868_v33, 0  ;;  %v6041_v24 = vor.u32 8388608, %v11783_v29  ;;  %vm6067_vm3 = vcmp.lt.s32.totalorder %v11876_v25, 3 }
 0x32c   :  { %vm6068_vm4 = vcmp.lt.s32.totalorder %v11876_v25, 4  ;;  %v5472_v40 = vsel %vm5358_vm5, nan, %v5471_v2  ;;  %vm5568_vm8 = vcmp.lt.s32.totalorder %v11868_v33, 2  ;;  %vm5672_vm9 = vcmp.lt.s32.totalorder %v11873_v5, 2 }
 0x32d   :  { %v5682_v43 = vmul.f32 %v11880_v56, %v11857_v60  ;;  %v5888_v53 = vshll.u32 %v11902_v15, 30  ;;  %v6064_v8 = vor.u32 %v6063_v4, %v6062_v61  ;;  %v5473_v59 = vsub.f32 0.0, %v5472_v40 }
 0x32e   :  { %vm5566_vm11 = vweird.f32 %v11534_v41  ;;  %vm6066_vm14 = vcmp.lt.s32.totalorder %v11876_v25, 2  ;;  %v6073_v29 = vsel %vm6065_vm13, %v6052_v38, %v6055_v26  ;;  %v6074_v17 = vsel %vm6068_vm4, %v6061_v3, 920167782 }
 0x32f   :  { %vm5676_vm15 = vcmp.eq.s32.totalorder %v11873_v5, 2  ;;  %v11924_v30 = vsub.s32 %v5885_v7, %v5888_v53  ;;  %v6075_v58 = vsel %vm6067_vm3, %v6058_v42, %v6074_v17  ;;  %v6245_v51 = vshrl.u32 %v6244_v13, 23 }
 0x330   :  { %v5683_v23 = vmul.f32 %v5472_v40, %v11857_v60  ;;  %v5684_v14 = vmul.f32 %v11880_v56, %v11838_v46  ;;  %v6078_v11 = vsel %vm6068_vm4, %v6064_v8, 1326507024  ;;  %v11933_v22 = vshll.u32 %v6041_v24, 8 }
 0x331   :  { %v5685_v57 = vmul.f32 %v5472_v40, %v11838_v46  ;;  %v5700_v2 = vmul.f32 %v5682_v43, %v11729_v44  ;;  %v5891_v0 = vsub.s32 0, %v11924_v30  ;;  %v6076_v21 = vsel %vm6066_vm14, %v6073_v29, %v6075_v58  ;;  %v13151_v46 = vld [vmem:[#allocation12_spill] sm:$0xff] }
 0x332   :  { %v5712_v13 = vmul.f32 %v5473_v59, %v11729_v44  ;;  %v6049_v37 = vshrl.u32 %v13045_v28, %v6048_v49  ;;  %v6077_v12 = vsel %vm6065_vm13, %v6055_v26, %v6058_v42  ;;  %v6079_v31 = vsel %vm6067_vm3, %v6061_v3, %v6078_v11  ;;  %v8278_v7 = vpop.eup %8277 }
 0x333   :  { %v5703_v20 = vmul.f32 %v5682_v43, %v11740_v6  ;;  %v7983_v36 = vmin.u32 %v5891_v0, %v11924_v30  ;;  %v6070_v9 = vsel %vm6068_vm4, %v6058_v42, 2102212464  ;;  %v7998_v50 = vadd.s32 4294967169, %v6245_v51  ;;  %v8280_v27 = vpop.eup %8279 }
 0x334   :  { %v5573_v34 = vxor.u32 2147483648, %v8278_v7  ;;  %v5706_v18 = vmul.f32 %v5684_v14, %v11729_v44  ;;  %v11952_v49 = vmul.u32.u64.low %v11933_v22, %v6076_v21  ;;  %v11953_v62 = vmul.u32.u64.high %v11933_v22, %v6076_v21, %v11952_v49 }
 0x335   :  { %v5570_v61 = vxor.u32 2147483648, %v8280_v27  ;;  %v5709_v3 = vmul.f32 %v5684_v14, %v11740_v6  ;;  %v5893_v4 = vclz %v7983_v36  ;;  %v11959_v24 = vsel %vm6066_vm14, %v6077_v12, %v6079_v31 }
 0x336   :  { %v5574_v42 = vsel %vm5572_vm12, %v5573_v34, %v8280_v27  ;;  %v5678_v40 = vsel %vm5676_vm15, %v5573_v34, %v8280_v27  ;;  %v6069_v43 = vsel %vm6065_vm13, %v6049_v37, %v6052_v38  ;;  %v6071_v53 = vsel %vm6067_vm3, %v6055_v26, %v6070_v9 }
 0x337   :  { %v5571_v8 = vsel %vm5569_vm10, %v8278_v7, %v5570_v61  ;;  %v5675_v29 = vsel %vm5673_vm2, %v8278_v7, %v5570_v61  ;;  %v5715_v17 = vmul.f32 %v5473_v59, %v11740_v6  ;;  %v11974_v58 = vadd.s32 1, %v7998_v50 }
 0x338   :  { %v5575_v51 = vsel %vm5568_vm8, %v5571_v8, %v5574_v42  ;;  %v5679_v14 = vsel %vm5672_vm9, %v5675_v29, %v5678_v40  ;;  %v11982_v38 = vmul.u32.u64.low %v11933_v22, %v11959_v24  ;;  %v11983_v26 = vmul.u32.u64.high %v11933_v22, %v11959_v24, %v11982_v38 }
 0x339   :  { %v5576_v11 = vsel %vm5566_vm11, nan, %v5575_v51  ;;  %v5680_v6 = vsel %vm5566_vm11, nan, %v5679_v14  ;;  %v11990_v59 = vadd.s32 4294967294, %v5893_v4  ;;  %v11994_v33 = vsel %vm6066_vm14, %v6069_v43, %v6071_v53  ;;  %v13152_v38 = vld [vmem:[#allocation16_spill] sm:$0xff] }
 0x33a   :  { %v5686_v5 = vmul.f32 %v5576_v11, %v5265_v16  ;;  %v5687_v0 = vmul.f32 %v5683_v23, %v5680_v6  ;;  %v5692_v21 = vmul.f32 %v5576_v11, %v11857_v60  ;;  %v5693_v37 = vmul.f32 %v5685_v57, %v5680_v6 }
 0x33b   :  { %v5698_v12 = vmul.f32 %v5680_v6, %v11880_v56  ;;  %v5681_v31 = vsub.f32 0.0, %v5680_v6  ;;  %v5690_v7 = vmul.f32 %v5683_v23, %v5576_v11  ;;  %v5696_v36 = vmul.f32 %v5685_v57, %v5576_v11  ;;  %v13153_v6 = vld [vmem:[#allocation17_spill] sm:$0xff] }
 0x33c   :  { %v5688_v41 = vadd.f32 %v5687_v0, %v5686_v5  ;;  %v5694_v9 = vadd.f32 %v5693_v37, %v5692_v21  ;;  %v12001_v50 = vmul.f32 %v5576_v11, %v11880_v56  ;;  %v12004_v25 = vadd.s32 1, %v11953_v62  ;;  %v13155_v0 = vld [vmem:[#allocation19_spill] sm:$0xff] }
 0x33d   :  { %v5713_v27 = vmul.f32 %v5698_v12, %v11717_v1  ;;  %v5716_v34 = vmul.f32 %v5698_v12, %v11729_v44  ;;  %v5689_v61 = vmul.f32 %v5681_v31, %v5265_v16  ;;  %v5695_v4 = vmul.f32 %v5681_v31, %v11857_v60  ;;  %v13156_v31 = vld [vmem:[#allocation13_spill] sm:$0xff] }
 0x33e   :  { %v5701_v23 = vmul.f32 %v5688_v41, %v11717_v1  ;;  %v5707_v57 = vmul.f32 %v5694_v9, %v11717_v1  ;;  %v5704_v24 = vmul.f32 %v5688_v41, %v11729_v44  ;;  %v5710_v56 = vmul.f32 %v5694_v9, %v11729_v44 }
 0x33f   :  { %v5714_v42 = vadd.f32 %v5713_v27, %v5712_v13  ;;  %v5717_v40 = vadd.f32 %v5716_v34, %v5715_v17  ;;  %v5691_v43 = vadd.f32 %v5690_v7, %v5689_v61  ;;  %v5697_v53 = vadd.f32 %v5696_v36, %v5695_v4 }
 0x340   :  { %v5702_v8 = vadd.f32 %v5701_v23, %v5700_v2  ;;  %v5708_v29 = vadd.f32 %v5707_v57, %v5706_v18  ;;  %v5705_v51 = vadd.f32 %v5704_v24, %v5703_v20  ;;  %v5711_v14 = vadd.f32 %v5710_v56, %v5709_v3  ;;  %v13154_v18 = vld [vmem:[#allocation18_spill] sm:$0xff] }
 0x341   :  { %v5745_v16 = vmul.f32 %v5714_v42, %v13151_v46  ;;  %v5750_v60 = vmul.f32 %v5717_v40, %v13151_v46  ;;  %v5752_v11 = vmul.f32 %v5691_v43, %v13152_v38  ;;  %v5753_v1 = vmul.f32 %v5697_v53, %v13153_v6 }
 0x342   :  { %v5742_v5 = vmul.f32 %v5702_v8, %v13152_v38  ;;  %v5743_v44 = vmul.f32 %v5708_v29, %v13153_v6  ;;  %v5747_v13 = vmul.f32 %v5705_v51, %v13152_v38  ;;  %v5748_v17 = vmul.f32 %v5711_v14, %v13153_v6  ;;  %v13157_v38 = vld [vmem:[#allocation14_spill] sm:$0xff] }
 0x343   :  { %v5754_v2 = vadd.f32 %v5753_v1, %v5752_v11  ;;  %v5755_v20 = vmul.f32 %v12001_v50, %v13151_v46  ;;  %v5757_v3 = vmul.f32 %v5702_v8, %v13154_v18  ;;  %v5758_v21 = vmul.f32 %v5708_v29, %v13155_v0  ;;  %v13159_v1 = vld [vmem:[#allocation11_spill] sm:$0xff] }
 0x344   :  { %v5744_v37 = vadd.f32 %v5743_v44, %v5742_v5  ;;  %v5749_v12 = vadd.f32 %v5748_v17, %v5747_v13  ;;  %v5760_v7 = vmul.f32 %v5714_v42, %v13156_v31  ;;  %v5762_v36 = vmul.f32 %v5705_v51, %v13154_v18  ;;  %v6694_v13 = vld [vmem:[#allocation2 + $0x26] sm:$0x1]  ;;  %v6696_v17 = vld [vmem:[#allocation2 + $0x2e] sm:$0x1] }
 0x345   :  { %v12029_v41 = vadd.f32 %v5755_v20, %v5754_v2  ;;  %v5759_v9 = vadd.f32 %v5758_v21, %v5757_v3  ;;  %v5763_v27 = vmul.f32 %v5711_v14, %v13155_v0  ;;  %v5765_v34 = vmul.f32 %v5717_v40, %v13156_v31  ;;  %v6698_v2 = vld [vmem:[#allocation2 + $0x36] sm:$0x1] }
 0x346   :  { %vm6252_vm0 = vcmp.gt.s32.totalorder %v11974_v58, 0  ;;  %v12034_v61 = vadd.f32 %v5745_v16, %v5744_v37  ;;  %v12036_v4 = vadd.f32 %v5750_v60, %v5749_v12  ;;  %v5767_v23 = vmul.f32 %v5691_v43, %v13154_v18  ;;  %v13158_v60 = vld [vmem:[#allocation15_spill] sm:$0xff] }
 0x347   :  { %v5768_v57 = vmul.f32 %v5697_v53, %v13155_v0  ;;  %5804 = vst [vmem:[#allocation5 + $0x45] sm:$0x1] %v12029_v41  ;;  %v12041_v24 = vadd.f32 %v5760_v7, %v5759_v9  ;;  %v5764_v56 = vadd.f32 %v5763_v27, %v5762_v36  ;;  %v5770_v46 = vmul.f32 %v12001_v50, %v13156_v31 }
 0x348   :  { %v5772_v11 = vmul.f32 %v5702_v8, %v13157_v38  ;;  %5800 = vst [vmem:[#allocation5 + $0x35] sm:$0x1] %v12034_v61  ;;  %5802 = vst [vmem:[#allocation5 + $0x3d] sm:$0x1] %v12036_v4  ;;  %v5773_v6 = vmul.f32 %v5708_v29, %v13158_v60  ;;  %v5775_v5 = vmul.f32 %v5714_v42, %v13159_v1  ;;  %vm7985_vm5 = vcmp.lt.s32.totalorder %v11990_v59, 0 }
 0x349   :  { %v5769_v16 = vadd.f32 %v5768_v57, %v5767_v23  ;;  %v5777_v44 = vmul.f32 %v5705_v51, %v13157_v38  ;;  %5806 = vst [vmem:[#allocation5 + $0x4d] sm:$0x1] %v12041_v24  ;;  %v12052_v20 = vadd.f32 %v5765_v34, %v5764_v56  ;;  %v5778_v8 = vmul.f32 %v5711_v14, %v13158_v60 }
 0x34a   :  { %v5780_v18 = vmul.f32 %v5717_v40, %v13159_v1  ;;  %v5782_v3 = vmul.f32 %v5691_v43, %v13157_v38  ;;  %v5774_v29 = vadd.f32 %v5773_v6, %v5772_v11  ;;  %v5783_v42 = vmul.f32 %v5697_v53, %v13158_v60  ;;  %v13161_v6 = vld [vmem:[#allocation27_spill] sm:$0xff] }
 0x34b   :  { %v12057_v0 = vadd.f32 %v5770_v46, %v5769_v16  ;;  %v5785_v51 = vmul.f32 %v12001_v50, %v13159_v1  ;;  %5808 = vst [vmem:[#allocation5 + $0x55] sm:$0x1] %v12052_v20  ;;  %v5779_v21 = vadd.f32 %v5778_v8, %v5777_v44  ;;  %v6699_v37 = vmul.f32 %v6694_v13, %v12034_v61  ;;  %v13162_v44 = vld [vmem:[#allocation29_spill] sm:$0xff] }
 0x34c   :  { %v6700_v12 = vmul.f32 %v6696_v17, %v12036_v4  ;;  %v6702_v14 = vmul.f32 %v6698_v2, %v12029_v41  ;;  %v12067_v40 = vadd.f32 %v5775_v5, %v5774_v29  ;;  %v5784_v43 = vadd.f32 %v5783_v42, %v5782_v3  ;;  %v13164_v29 = vld [vmem:[#allocation31_spill] sm:$0xff] }
 0x34d   :  { %5810 = vst [vmem:[#allocation5 + $0x5d] sm:$0x1] %v12057_v0  ;;  %v6704_v31 = vmul.f32 %v6694_v13, %v12041_v24  ;;  %v6705_v53 = vmul.f32 %v6696_v17, %v12052_v20  ;;  %v12071_v7 = vadd.f32 %v5780_v18, %v5779_v21  ;;  %v6707_v36 = vmul.f32 %v6698_v2, %v12057_v0 }
 0x34e   :  { %v6701_v50 = vadd.f32 %v6700_v12, %v6699_v37  ;;  %vm6090_vm1 = vc.u32 %v11983_v26, %v11952_v49  ;;  %5812 = vst [vmem:[#allocation5 + $0x65] sm:$0x1] %v12067_v40  ;;  %v12077_v9 = vadd.f32 %v5785_v51, %v5784_v43  ;;  %v6709_v34 = vmul.f32 %v6694_v13, %v12067_v40  ;;  %v13165_v51 = vld [vmem:[#allocation32_spill] sm:$0xff] }
 0x34f   :  { %v6706_v27 = vadd.f32 %v6705_v53, %v6704_v31  ;;  %v6088_v23 = vmul.u32 %v11933_v22, %v11994_v33  ;;  %5814 = vst [vmem:[#allocation5 + $0x6d] sm:$0x1] %v12071_v7  ;;  %v6710_v56 = vmul.f32 %v6696_v17, %v12071_v7  ;;  %v6241_v46 = vand.u32 2147483647, %v11866_v32  ;;  %v13160_v33 = vld [vmem:[#allocation20_spill] sm:$0xff]  ;;  %v13163_v17 = vld [vmem:[#allocation30_spill] sm:$0xff] }
 0x350   :  { %v6703_v57 = vadd.f32 %v6702_v14, %v6701_v50  ;;  %5816 = vst [vmem:[#allocation5 + $0x75] sm:$0x1] %v12077_v9  ;;  %v6712_v11 = vmul.f32 %v6698_v2, %v12077_v9  ;;  %v6092_v16 = vsel %vm6090_vm1, %v12004_v25, %v11953_v62  ;;  %v6253_v22 = vsel %vm6252_vm0, %v11974_v58, 0 }
 0x351   :  { %v6708_v38 = vadd.f32 %v6707_v36, %v6706_v27  ;;  %v6711_v5 = vadd.f32 %v6710_v56, %v6709_v34  ;;  %v5896_v18 = vsel %vm7985_vm5, 0, %v11990_v59  ;;  %v6093_v3 = vadd.s32 %v6092_v16, %v6088_v23 }
 0x352   :  { %v6714_v60 = vadd.f32 %v6703_v57, %v13160_v33  ;;  %v6717_v1 = vadd.f32 %v6703_v57, %v13161_v6  ;;  %v6255_v62 = vand.u32 31, %v6253_v22  ;;  %v6248_v58 = vand.u32 8388607, %v6241_v46 }
 0x353   :  { %v6715_v13 = vadd.f32 %v6708_v38, %v13162_v44  ;;  %v6718_v8 = vadd.f32 %v6708_v38, %v13163_v17  ;;  %v6713_v2 = vadd.f32 %v6712_v11, %v6711_v5  ;;  %v6094_v25 = vadd.s32 536870912, %v6093_v3 }
 0x354   :  { %6766 = vst [vmem:[#allocation5 + $0x6] sm:$0x1] %v6714_v60  ;;  %6768 = vst [vmem:[#allocation5 + $0x1e] sm:$0x1] %v6717_v1  ;;  %v5901_v37 = vsub.s32 4294967266, %v5896_v18  ;;  %v6256_v12 = vsub.s32 32, %v6255_v62  ;;  %v5881_v59 = vadd.s32 %v11851_v45, %v11846_v19  ;;  %v6258_v53 = vshll.u32 %v13045_v28, %v6255_v62 }
 0x355   :  { %6770 = vst [vmem:[#allocation5 + $0xe] sm:$0x1] %v6715_v13  ;;  %6772 = vst [vmem:[#allocation5 + $0x26] sm:$0x1] %v6718_v8  ;;  %v6716_v42 = vadd.f32 %v6713_v2, %v13164_v29  ;;  %v6719_v21 = vadd.f32 %v6713_v2, %v13165_v51  ;;  %v5897_v14 = vsub.s32 32, %v5896_v18  ;;  %v12104_v43 = vshrl.u32 %v6094_v25, 30 }
 0x356   :  { %v6254_v31 = vshrl.u32 %v6253_v22, 5  ;;  %v6259_v50 = vshrl.u32 %v13046_v48, %v6256_v12  ;;  %v6264_v36 = vshll.u32 %v13025_v63, %v6255_v62  ;;  %v6265_v27 = vshrl.u32 %v13030_v39, %v6256_v12 }
 0x357   :  { %6774 = vst [vmem:[#allocation5 + $0x16] sm:$0x1] %v6716_v42  ;;  %6776 = vst [vmem:[#allocation5 + $0x2e] sm:$0x1] %v6719_v21  ;;  %v6096_v34 = vshll.u32 %v12104_v43, 30  ;;  %v6261_v23 = vshll.u32 %v13046_v48, %v6255_v62  ;;  %v6262_v19 = vshrl.u32 %v13025_v63, %v6256_v12  ;;  %v6267_v45 = vshll.u32 %v13030_v39, %v6255_v62 }
 0x358   :  { %v5902_v57 = vadd.s32 127, %v5901_v37  ;;  %v6249_v56 = vor.u32 8388608, %v6248_v58  ;;  %v6268_v38 = vshrl.u32 %v13031_v10, %v6256_v12  ;;  %v5898_v11 = vshll.u32 %v11924_v30, %v5896_v18 }
 0x359   :  { %v5899_v16 = vshrl.u32 %v5881_v59, %v5897_v14  ;;  %v12116_v22 = vsub.s32 %v6093_v3, %v6096_v34  ;;  %v6270_v33 = vshll.u32 %v13031_v10, %v6255_v62  ;;  %v6257_v60 = vshrl.u32 %v13045_v28, %v6256_v12 }
 0x35a   :  { %v6260_v6 = vor.u32 %v6259_v50, %v6258_v53  ;;  %v6266_v1 = vor.u32 %v6265_v27, %v6264_v36  ;;  %v6271_v5 = vshrl.u32 %v13032_v35, %v6256_v12  ;;  %v6263_v13 = vor.u32 %v6262_v19, %v6261_v23  ;;  %v12137_v19 = vld [vmem:[#allocation2 + $0xe] sm:$0x1] }
 0x35b   :  { %v6099_v44 = vsub.s32 0, %v12116_v22  ;;  %v6269_v17 = vor.u32 %v6268_v38, %v6267_v45  ;;  %vm6276_vm6 = vcmp.lt.s32.totalorder %v6254_v31, 4  ;;  %v5903_v8 = vshll.u32 %v5902_v57, 23  ;;  %v12144_v57 = vld [vmem:[#allocation2 + $0x27] sm:$0x1] }
 0x35c   :  { %vm6273_vm7 = vcmp.lt.s32.totalorder %v6254_v31, 1  ;;  %v6278_v30 = vsel %vm6276_vm6, %v6266_v1, 2102212464  ;;  %v6272_v3 = vor.u32 %v6271_v5, %v6270_v33  ;;  %v6289_v2 = vshll.u32 %v6249_v56, 8  ;;  %v12149_v33 = vld [vmem:[#allocation2 + $0x2f] sm:$0x1] }
 0x35d   :  { %v7991_v18 = vmin.u32 %v6099_v44, %v12116_v22  ;;  %v5900_v62 = vor.u32 %v5899_v16, %v5898_v11  ;;  %vm6274_vm13 = vcmp.lt.s32.totalorder %v6254_v31, 2  ;;  %vm6275_vm12 = vcmp.lt.s32.totalorder %v6254_v31, 3  ;;  %v13166_v44 = vld [vmem:[#allocation34_spill] sm:$0xff] }
 0x35e   :  { %v6277_v25 = vsel %vm6273_vm7, %v6257_v60, %v6260_v6  ;;  %v6279_v29 = vsel %vm6275_vm12, %v6263_v13, %v6278_v30  ;;  %v6281_v42 = vsel %vm6273_vm7, %v6260_v6, %v6263_v13  ;;  %v6282_v51 = vsel %vm6276_vm6, %v6269_v17, 920167782 }
 0x35f   :  { %v6101_v58 = vclz %v7991_v18  ;;  %v5904_v21 = vor.u32 4788187, %v5903_v8  ;;  %v5911_v37 = vsub.s32 4, %v11902_v15  ;;  %v6089_v12 = vadd.s32 %v11952_v49, %v11983_v26  ;;  %v13167_v18 = vld [vmem:[#allocation35_spill] sm:$0xff] }
 0x360   :  { %v6283_v14 = vsel %vm6275_vm12, %v6266_v1, %v6282_v51  ;;  %v6285_v53 = vsel %vm6273_vm7, %v6263_v13, %v6266_v1  ;;  %v6286_v50 = vsel %vm6276_vm6, %v6272_v3, 1326507024  ;;  %v5907_v36 = vcvt.s32.f32 %v5900_v62 }
 0x361   :  { %v7992_v59 = vadd.s32 4294967294, %v6101_v58  ;;  %v6280_v27 = vsel %vm6274_vm13, %v6277_v25, %v6279_v29  ;;  %v6284_v34 = vsel %vm6274_vm13, %v6281_v42, %v6283_v14  ;;  %v6287_v23 = vsel %vm6275_vm12, %v6269_v17, %v6286_v50  ;;  %v12164_v25 = vld [vmem:[#allocation2 + $0x37] sm:$0x1] }
 0x362   :  { %v6288_v45 = vsel %vm6274_vm13, %v6285_v53, %v6287_v23  ;;  %v12140_v49 = vmul.u32.u64.low %v6289_v2, %v6284_v34  ;;  %v12141_v26 = vmul.u32.u64.high %v6289_v2, %v6284_v34, %v12140_v49  ;;  %v5905_v56 = vand.u32 2147483647, %v5904_v21  ;;  %v13170_v53 = vld [vmem:[#allocation33_spill] sm:$0xff] }
 0x363   :  { %vm7993_vm10 = vcmp.lt.s32.totalorder %v7992_v59, 0  ;;  %v12146_v11 = vmul.u32.u64.low %v6289_v2, %v6288_v45  ;;  %v12147_v16 = vmul.u32.u64.high %v6289_v2, %v6288_v45, %v12146_v11  ;;  %vm5827_vm2 = vcmp.lt.s32.totalorder %v11636_v47, 0 }
 0x364   :  { %v6104_v38 = vsel %vm7993_vm10, 0, %v7992_v59  ;;  %v6296_v31 = vmul.u32 %v6289_v2, %v6280_v27  ;;  %v6452_v5 = vand.u32 2139095040, %v12137_v19  ;;  %v7677_v13 = vmul.f32 %v12144_v57, %v13166_v44 }
 0x365   :  { %v6105_v60 = vsub.s32 32, %v6104_v38  ;;  %v6106_v6 = vshll.u32 %v12116_v22, %v6104_v38  ;;  %v6109_v1 = vsub.s32 4294967266, %v6104_v38  ;;  %v6299_v30 = vadd.s32 1, %v12141_v26 }
 0x366   :  { %v7678_v3 = vmul.f32 %v12149_v33, %v13167_v18  ;;  %v5908_v62 = vmul.f32 %v5907_v36, %v5905_v56  ;;  %v5912_v22 = vsel %vm5827_vm2, %v5911_v37, %v11902_v15  ;;  %vm6298_vm3 = vc.u32 %v12147_v16, %v12140_v49 }
 0x367   :  { %v6107_v17 = vshrl.u32 %v6089_v12, %v6105_v60  ;;  %v6110_v8 = vadd.s32 127, %v6109_v1  ;;  %v6453_v2 = vshrl.u32 %v6452_v5, 23  ;;  %v6300_v42 = vsel %vm6298_vm3, %v6299_v30, %v12141_v26 }
 0x368   :  { %v7679_v51 = vadd.f32 %v7678_v3, %v7677_v13  ;;  %vm12169_vm4 = vcmp.le.f32.partialorder %v5825_v52, 0.7853982  ;;  %v6301_v12 = vadd.s32 %v6300_v42, %v6296_v31  ;;  %v7680_v50 = vmul.f32 %v12164_v25, %v13170_v53  ;;  %v13171_v13 = vld [vmem:[#allocation21_spill] sm:$0xff]  ;;  %v8327_v53 = vld [vmem:[#allocation2 + $0x16] sm:$0x1] }
 0x369   :  { %v6108_v58 = vor.u32 %v6107_v17, %v6106_v6  ;;  %v6111_v29 = vshll.u32 %v6110_v8, 23  ;;  %v8006_v59 = vadd.s32 4294967169, %v6453_v2  ;;  %v5914_v15 = vsel %vm12169_vm4, 0, %v5912_v22  ;;  %v13172_v8 = vld [vmem:[#allocation22_spill] sm:$0xff] }
 0x36a   :  { %v5909_v36 = vxor.u32 2147483648, %v5908_v62  ;;  %v6302_v27 = vadd.s32 536870912, %v6301_v12  ;;  %v12998_v34 = vand.u32 2147483647, %v12137_v19  ;;  %v7681_v52 = vadd.f32 %v7680_v50, %v7679_v51  ;;  %v12191_v2 = vld [vmem:[#allocation2 + $0x6] sm:$0x1] }
 0x36b   :  { %v6112_v37 = vor.u32 4788187, %v6111_v29  ;;  %v6115_v14 = vcvt.s32.f32 %v6108_v58  ;;  %v6459_v23 = vadd.s32 1, %v8006_v59  ;;  %v6021_v56 = vadd.s32 3, %v5914_v15 }
 0x36c   :  { %v12178_v26 = vshrl.u32 %v6302_v27, 30  ;;  %v6119_v11 = vsub.s32 4, %v12104_v43  ;;  %v5910_v6 = vsel %vm5827_vm2, %v5909_v36, %v5908_v62  ;;  %v6456_v31 = vand.u32 8388607, %v12998_v34 }
 0x36d   :  { %v6113_v45 = vand.u32 2147483647, %v6112_v37  ;;  %vm6460_vm8 = vcmp.gt.s32.totalorder %v6459_v23, 0  ;;  %v7692_v17 = vadd.f32 %v7681_v52, %v13171_v13  ;;  %v7695_v30 = vadd.f32 %v7681_v52, %v13172_v8 }
 0x36e   :  { %v6461_v60 = vsel %vm6460_vm8, %v6459_v23, 0  ;;  %v6304_v1 = vshll.u32 %v12178_v26, 30  ;;  %vm6035_vm9 = vcmp.lt.s32.totalorder %v11706_v55, 0  ;;  %v5913_v47 = vsel %vm12169_vm4, %v12191_v2, %v5910_v6 }
 0x36f   :  { %v6116_v38 = vmul.f32 %v6115_v14, %v6113_v45  ;;  %v6463_v5 = vand.u32 31, %v6461_v60  ;;  %vm12198_vm11 = vcmp.le.f32.partialorder %v6033_v54, 0.7853982  ;;  %v6120_v29 = vsel %vm6035_vm9, %v6119_v11, %v12104_v43  ;;  %7744 = vst [vmem:[#allocation5 + $0x7] sm:$0x1] %v7692_v17 }
 0x370   :  { %v12189_v3 = vsub.s32 %v6301_v12, %v6304_v1  ;;  %7746 = vst [vmem:[#allocation5 + $0x1f] sm:$0x1] %v7695_v30  ;;  %v12205_v42 = vand.u32 3, %v5914_v15  ;;  %v12207_v51 = vand.u32 3, %v6021_v56  ;;  %v6457_v12 = vor.u32 8388608, %v6456_v31 }
 0x371   :  { %v6464_v22 = vsub.s32 32, %v6463_v5  ;;  %v6117_v58 = vxor.u32 2147483648, %v6116_v38  ;;  %v6466_v59 = vshll.u32 %v13045_v28, %v6463_v5  ;;  %v6469_v37 = vshll.u32 %v13046_v48, %v6463_v5 }
 0x372   :  { %v6307_v21 = vsub.s32 0, %v12189_v3  ;;  %8281 = vcosq.f32 %v5913_v47  ;;  %v6122_v43 = vsel %vm12198_vm11, 0, %v6120_v29  ;;  %v6472_v50 = vshll.u32 %v13025_v63, %v6463_v5 }
 0x373   :  { %v6467_v54 = vshrl.u32 %v13046_v48, %v6464_v22  ;;  %v6470_v14 = vshrl.u32 %v13025_v63, %v6464_v22  ;;  %8283 = vsinq.f32 %v5913_v47  ;;  %v6118_v36 = vsel %vm6035_vm9, %v6117_v58, %v6116_v38 }
 0x374   :  { %v7999_v15 = vmin.u32 %v6307_v21, %v12189_v3  ;;  %v6297_v27 = vadd.s32 %v12140_v49, %v12147_v16  ;;  %v6462_v23 = vshrl.u32 %v6461_v60, 5  ;;  %v6473_v52 = vshrl.u32 %v13030_v39, %v6464_v22 }
 0x375   :  { %v6475_v56 = vshll.u32 %v13030_v39, %v6463_v5  ;;  %v6476_v11 = vshrl.u32 %v13031_v10, %v6464_v22  ;;  %v6468_v6 = vor.u32 %v6467_v54, %v6466_v59  ;;  %v6471_v1 = vor.u32 %v6470_v14, %v6469_v37 }
 0x376   :  { %v6309_v45 = vclz %v7999_v15  ;;  %v6478_v31 = vshll.u32 %v13031_v10, %v6463_v5  ;;  %v12226_v13 = vshll.u32 %v6457_v12, 8  ;;  %v6474_v8 = vor.u32 %v6473_v52, %v6472_v50 }
 0x377   :  { %v6477_v38 = vor.u32 %v6476_v11, %v6475_v56  ;;  %v6479_v30 = vshrl.u32 %v13032_v35, %v6464_v22  ;;  %v6121_v49 = vsel %vm12198_vm11, %v11706_v55, %v6118_v36  ;;  %v6465_v16 = vshrl.u32 %v13045_v28, %v6464_v22 }
 0x378   :  { %v8000_v17 = vadd.s32 4294967294, %v6309_v45  ;;  %vm6481_vm14 = vcmp.lt.s32.totalorder %v6462_v23, 1  ;;  %vm6484_vm15 = vcmp.lt.s32.totalorder %v6462_v23, 4  ;;  %vm6483_vm1 = vcmp.lt.s32.totalorder %v6462_v23, 3 }
 0x379   :  { %v6480_v60 = vor.u32 %v6479_v30, %v6478_v31  ;;  %v6486_v5 = vsel %vm6484_vm15, %v6474_v8, 2102212464  ;;  %vm6482_vm5 = vcmp.lt.s32.totalorder %v6462_v23, 2  ;;  %v6489_v58 = vsel %vm6481_vm14, %v6468_v6, %v6471_v1 }
 0x37a   :  { %vm8001_vm0 = vcmp.lt.s32.totalorder %v8000_v17, 0  ;;  %v6490_v29 = vsel %vm6484_vm15, %v6477_v38, 920167782  ;;  %8285 = vcosq.f32 %v6121_v49  ;;  %v6485_v22 = vsel %vm6481_vm14, %v6465_v16, %v6468_v6 }
 0x37b   :  { %v6312_v47 = vsel %vm8001_vm0, 0, %v8000_v17  ;;  %v6487_v12 = vsel %vm6483_vm1, %v6471_v1, %v6486_v5  ;;  %v6491_v59 = vsel %vm6483_vm1, %v6474_v8, %v6490_v29  ;;  %v6494_v54 = vsel %vm6484_vm15, %v6480_v60, 1326507024  ;;  %v13178_v29 = vld [vmem:[#allocation37_spill] sm:$0xff] }
 0x37c   :  { %v6313_v21 = vsub.s32 32, %v6312_v47  ;;  %v6314_v62 = vshll.u32 %v12189_v3, %v6312_v47  ;;  %v6317_v55 = vsub.s32 4294967266, %v6312_v47  ;;  %v12241_v37 = vpop.eup %8281  ;;  %v6492_v50 = vsel %vm6482_vm5, %v6489_v58, %v6491_v59 }
 0x37d   :  { %v6493_v36 = vsel %vm6481_vm14, %v6471_v1, %v6474_v8  ;;  %v12245_v45 = vpop.eup %8283  ;;  %8287 = vsinq.f32 %v6121_v49  ;;  %v6495_v3 = vsel %vm6483_vm1, %v6477_v38, %v6494_v54  ;;  %vm6024_vm6 = vcmp.eq.s32.totalorder %v12207_v51, 0  ;;  %v13177_v49 = vld [vmem:[#allocation36_spill] sm:$0xff] }
 0x37e   :  { %v6315_v14 = vshrl.u32 %v6297_v27, %v6313_v21  ;;  %v6318_v15 = vadd.s32 127, %v6317_v55  ;;  %v12249_v52 = vmul.u32.u64.low %v12226_v13, %v6492_v50  ;;  %v12250_v56 = vmul.u32.u64.high %v12226_v13, %v6492_v50, %v12249_v52  ;;  %v13179_v55 = vld [vmem:[#allocation38_spill] sm:$0xff]  ;;  %v13181_v54 = vld [vmem:[#allocation40_spill] sm:$0xff] }
 0x37f   :  { %vm6243_vm7 = vcmp.lt.s32.totalorder %v11866_v32, 0  ;;  %vm6027_vm13 = vcmp.eq.s32.totalorder %v12207_v51, 2  ;;  %v12256_v6 = vand.u32 3, %v6122_v43  ;;  %vm12260_vm12 = vcmp.le.f32.partialorder %v6241_v46, 0.7853982 }
 0x380   :  { %v6316_v27 = vor.u32 %v6315_v14, %v6314_v62  ;;  %v6319_v11 = vshll.u32 %v6318_v15, 23  ;;  %v6488_v31 = vsel %vm6482_vm5, %v6485_v22, %v6487_v12  ;;  %v6496_v17 = vsel %vm6482_vm5, %v6493_v36, %v6495_v3  ;;  %v12281_v62 = vld [vmem:[#allocation2 + $0x7] sm:$0x1]  ;;  %v13180_v12 = vld [vmem:[#allocation39_spill] sm:$0xff]  ;;  %v13182_v15 = vld [vmem:[#allocation41_spill] sm:$0xff] }
 0x381   :  { %v6229_v8 = vadd.s32 3, %v6122_v43  ;;  %v7682_v16 = vmul.f32 %v12144_v57, %v13177_v49  ;;  %vm5923_vm10 = vcmp.eq.s32.totalorder %v12205_v42, 2  ;;  %v5924_v60 = vxor.u32 2147483648, %v12241_v37 }
 0x382   :  { %v6320_v38 = vor.u32 4788187, %v6319_v11  ;;  %v6323_v30 = vcvt.s32.f32 %v6316_v27  ;;  %v6327_v5 = vsub.s32 4, %v12178_v26  ;;  %vm5920_vm2 = vcmp.eq.s32.totalorder %v12205_v42, 0 }
 0x383   :  { %v12272_v46 = vmul.u32.u64.low %v12226_v13, %v6496_v17  ;;  %v12273_v47 = vmul.u32.u64.high %v12226_v13, %v6496_v17, %v12272_v46  ;;  %vm6023_vm3 = vcmp.lt.s32.totalorder %v12207_v51, 2  ;;  %v6504_v23 = vmul.u32 %v12226_v13, %v6488_v31 }
 0x384   :  { %v6321_v43 = vand.u32 2147483647, %v6320_v38  ;;  %v6507_v58 = vadd.s32 1, %v12250_v56  ;;  %v7683_v21 = vmul.f32 %v12149_v33, %v13178_v29  ;;  %v7685_v22 = vmul.f32 %v12164_v25, %v13179_v55  ;;  %v12291_v13 = vpop.eup %8285 }
 0x385   :  { %v7687_v59 = vmul.f32 %v12144_v57, %v13180_v12  ;;  %v7688_v14 = vmul.f32 %v12149_v33, %v13181_v54  ;;  %v7690_v50 = vmul.f32 %v12164_v25, %v13182_v15  ;;  %v5921_v36 = vxor.u32 2147483648, %v12245_v45  ;;  %v8326_v15 = vld [vmem:[#allocation2 + $0x1e] sm:$0x1] }
 0x386   :  { %vm6128_vm4 = vcmp.eq.s32.totalorder %v12256_v6, 0  ;;  %v6324_v3 = vmul.f32 %v6323_v30, %v6321_v43  ;;  %v7684_v27 = vadd.f32 %v7683_v21, %v7682_v16  ;;  %v6328_v11 = vsel %vm6243_vm7, %v6327_v5, %v12178_v26  ;;  %v13183_v43 = vld [vmem:[#allocation23_spill] sm:$0xff]  ;;  %v13184_v21 = vld [vmem:[#allocation24_spill] sm:$0xff] }
 0x387   :  { %vm6506_vm8 = vc.u32 %v12273_v47, %v12249_v52  ;;  %v7689_v57 = vadd.f32 %v7688_v14, %v7687_v59  ;;  %v6806_v33 = vand.u32 2139095040, %v12281_v62  ;;  %vm5919_vm9 = vcmp.lt.s32.totalorder %v12205_v42, 2  ;;  %v8288_v30 = vpop.eup %8287 }
 0x388   :  { %v12302_v25 = vand.u32 3, %v6229_v8  ;;  %v6325_v31 = vxor.u32 2147483648, %v6324_v3  ;;  %v6508_v17 = vsel %vm6506_vm8, %v6507_v58, %v12250_v56  ;;  %v7686_v38 = vadd.f32 %v7685_v22, %v7684_v27  ;;  %v13185_v27 = vld [vmem:[#allocation25_spill] sm:$0xff] }
 0x389   :  { %vm5917_vm11 = vweird.f32 %v12191_v2  ;;  %v6029_v26 = vsel %vm6027_vm13, %v5924_v60, %v12245_v45  ;;  %vm6127_vm14 = vcmp.lt.s32.totalorder %v12256_v6, 2  ;;  %v6509_v16 = vadd.s32 %v6508_v17, %v6504_v23  ;;  %v13186_v23 = vld [vmem:[#allocation26_spill] sm:$0xff] }
 0x38a   :  { %v7691_v5 = vadd.f32 %v7690_v50, %v7689_v57  ;;  %v6807_v46 = vshrl.u32 %v6806_v33, 23  ;;  %v6026_v8 = vsel %vm6024_vm6, %v12241_v37, %v5921_v36  ;;  %v6330_v56 = vsel %vm12260_vm12, 0, %v6328_v11 }
 0x38b   :  { %v7693_v58 = vadd.f32 %v7686_v38, %v13183_v43  ;;  %v7696_v22 = vadd.f32 %v7686_v38, %v13184_v21  ;;  %v6326_v59 = vsel %vm6243_vm7, %v6325_v31, %v6324_v3  ;;  %v6510_v14 = vadd.s32 536870912, %v6509_v16  ;;  %v12338_v21 = vld [vmem:[#allocation2 + $0x1f] sm:$0x1] }
 0x38c   :  { %v7694_v34 = vadd.f32 %v7691_v5, %v13185_v27  ;;  %v7697_v50 = vadd.f32 %v7691_v5, %v13186_v23  ;;  %v6129_v57 = vxor.u32 2147483648, %v8288_v30  ;;  %v6132_v33 = vxor.u32 2147483648, %v12291_v13 }
 0x38d   :  { %7748 = vst [vmem:[#allocation5 + $0xf] sm:$0x1] %v7693_v58  ;;  %7750 = vst [vmem:[#allocation5 + $0x27] sm:$0x1] %v7696_v22  ;;  %v13000_v17 = vand.u32 2147483647, %v12281_v62  ;;  %vm6125_vm15 = vweird.f32 %v8326_v15  ;;  %v5925_v31 = vsel %vm5923_vm10, %v5924_v60, %v12245_v45  ;;  %v6329_v38 = vsel %vm12260_vm12, %v11866_v32, %v6326_v59 }
 0x38e   :  { %v8014_v11 = vadd.s32 4294967169, %v6807_v46  ;;  %vm6131_vm0 = vcmp.eq.s32.totalorder %v12256_v6, 2  ;;  %vm6231_vm1 = vcmp.lt.s32.totalorder %v12302_v25, 2  ;;  %vm6232_vm5 = vcmp.eq.s32.totalorder %v12302_v25, 0  ;;  %7752 = vst [vmem:[#allocation5 + $0x17] sm:$0x1] %v7694_v34 }
 0x38f   :  { %v6511_v3 = vshrl.u32 %v6510_v14, 30  ;;  %7754 = vst [vmem:[#allocation5 + $0x2f] sm:$0x1] %v7697_v50  ;;  %vm6235_vm6 = vcmp.eq.s32.totalorder %v12302_v25, 2  ;;  %v5922_v46 = vsel %vm5920_vm2, %v12241_v37, %v5921_v36  ;;  %v6030_v43 = vsel %vm6023_vm3, %v6026_v8, %v6029_v26 }
 0x390   :  { %v6813_v5 = vadd.s32 1, %v8014_v11  ;;  %v6437_v34 = vadd.s32 3, %v6330_v56  ;;  %v6130_v45 = vsel %vm6128_vm4, %v12291_v13, %v6129_v57  ;;  %v6133_v1 = vsel %vm6131_vm0, %v6132_v33, %v8288_v30 }
 0x391   :  { %v6512_v58 = vshll.u32 %v6511_v3, 30  ;;  %v6810_v32 = vand.u32 8388607, %v13000_v17  ;;  %8289 = vcosq.f32 %v6329_v38  ;;  %v12999_v60 = vand.u32 2147483647, %v12338_v21 }
 0x392   :  { %vm6814_vm7 = vcmp.gt.s32.totalorder %v6813_v5, 0  ;;  %v6234_v36 = vsel %vm6232_vm5, %v12291_v13, %v6129_v57  ;;  %v6237_v26 = vsel %vm6235_vm6, %v6132_v33, %v8288_v30  ;;  %8291 = vsinq.f32 %v6329_v38 }
 0x393   :  { %v12347_v37 = vsub.s32 %v6509_v16, %v6512_v58  ;;  %v6815_v51 = vsel %vm6814_vm7, %v6813_v5, 0  ;;  %v7014_v8 = vand.u32 2139095040, %v12338_v21  ;;  %v5926_v22 = vsel %vm5919_vm9, %v5922_v46, %v5925_v31 }
 0x394   :  { %v6535_v16 = vsub.s32 4, %v6511_v3  ;;  %v6817_v14 = vand.u32 31, %v6815_v51  ;;  %v12361_v27 = vsel %vm5917_vm11, nan, %v6030_v43  ;;  %v6134_v13 = vsel %vm6127_vm14, %v6130_v45, %v6133_v1 }
 0x395   :  { %v6515_v59 = vsub.s32 0, %v12347_v37  ;;  %v12365_v23 = vand.u32 3, %v6330_v56  ;;  %v12367_v30 = vand.u32 3, %v6437_v34  ;;  %v6238_v50 = vsel %vm6231_vm1, %v6234_v36, %v6237_v26 }
 0x396   :  { %v6811_v57 = vor.u32 8388608, %v6810_v32  ;;  %v12374_v33 = vand.u32 8388607, %v12999_v60  ;;  %v12378_v11 = vsel %vm5917_vm11, nan, %v5926_v22  ;;  %v13187_v6 = vand.u32 2147483647, %v12137_v19 }
 0x397   :  { %v8007_v42 = vmin.u32 %v6515_v59, %v12347_v37  ;;  %vm6451_vm12 = vcmp.lt.s32.totalorder %v12137_v19, 0  ;;  %v7015_v25 = vshrl.u32 %v7014_v8, 23  ;;  %v12390_v5 = vsub.f32 0.0, %v12361_v27 }
 0x398   :  { %vm12382_vm13 = vcmp.le.f32.partialorder %v13187_v6, 0.7853982  ;;  %v6536_v38 = vsel %vm6451_vm12, %v6535_v16, %v6511_v3  ;;  %v6818_v46 = vsub.s32 32, %v6817_v14  ;;  %v12393_v2 = vsel %vm6125_vm15, nan, %v6134_v13 }
 0x399   :  { %v6517_v31 = vclz %v8007_v42  ;;  %v12396_v43 = vsel %vm6125_vm15, nan, %v6238_v50  ;;  %vm6339_vm10 = vcmp.eq.s32.totalorder %v12365_v23, 2  ;;  %vm6443_vm2 = vcmp.eq.s32.totalorder %v12367_v30, 2 }
 0x39a   :  { %vm6336_vm3 = vcmp.eq.s32.totalorder %v12365_v23, 0  ;;  %v6505_v34 = vadd.s32 %v12249_v52, %v12273_v47  ;;  %v12403_v58 = vshll.u32 %v6811_v57, 8  ;;  %vm6440_vm4 = vcmp.eq.s32.totalorder %v12367_v30, 0 }
 0x39b   :  { %v8008_v3 = vadd.s32 4294967294, %v6517_v31  ;;  %v12409_v15 = vsel %vm12382_vm13, 0, %v6536_v38  ;;  %v12411_v1 = vshrl.u32 %v6815_v51, 5  ;;  %v6820_v32 = vshll.u32 %v13045_v28, %v6817_v14  ;;  %v8290_v26 = vpop.eup %8289 }
 0x39c   :  { %v8022_v36 = vadd.s32 4294967169, %v7015_v25  ;;  %v6821_v52 = vshrl.u32 %v13046_v48, %v6818_v46  ;;  %v6823_v47 = vshll.u32 %v13046_v48, %v6817_v14  ;;  %v6826_v8 = vshll.u32 %v13025_v63, %v6817_v14  ;;  %v8292_v22 = vpop.eup %8291 }
 0x39d   :  { %vm8009_vm8 = vcmp.lt.s32.totalorder %v8008_v3, 0  ;;  %v6824_v16 = vshrl.u32 %v13025_v63, %v6818_v46  ;;  %v6827_v13 = vshrl.u32 %v13030_v39, %v6818_v46  ;;  %v6829_v51 = vshll.u32 %v13030_v39, %v6817_v14 }
 0x39e   :  { %v6520_v59 = vsel %vm8009_vm8, 0, %v8008_v3  ;;  %vm6335_vm9 = vcmp.lt.s32.totalorder %v12365_v23, 2  ;;  %v6830_v6 = vshrl.u32 %v13031_v10, %v6818_v46  ;;  %v6340_v25 = vxor.u32 2147483648, %v8290_v26 }
 0x39f   :  { %v6521_v50 = vsub.s32 32, %v6520_v59  ;;  %v6522_v42 = vshll.u32 %v12347_v37, %v6520_v59  ;;  %v6525_v57 = vsub.s32 4294967266, %v6520_v59  ;;  %v6645_v31 = vadd.s32 3, %v12409_v15 }
 0x3a0   :  { %v6819_v38 = vshrl.u32 %v13045_v28, %v6818_v46  ;;  %v7021_v3 = vadd.s32 1, %v8022_v36  ;;  %v6337_v60 = vxor.u32 2147483648, %v8292_v22  ;;  %v6832_v54 = vshll.u32 %v13031_v10, %v6817_v14 }
 0x3a1   :  { %v6523_v17 = vshrl.u32 %v6505_v34, %v6521_v50  ;;  %v6526_v45 = vadd.s32 127, %v6525_v57  ;;  %v6341_v12 = vsel %vm6339_vm10, %v6340_v25, %v8292_v22  ;;  %vm6439_vm11 = vcmp.lt.s32.totalorder %v12367_v30, 2 }
 0x3a2   :  { %v6822_v37 = vor.u32 %v6821_v52, %v6820_v32  ;;  %v6825_v59 = vor.u32 %v6824_v16, %v6823_v47  ;;  %v6828_v55 = vor.u32 %v6827_v13, %v6826_v8  ;;  %v6831_v18 = vor.u32 %v6830_v6, %v6829_v51 }
 0x3a3   :  { %v6524_v29 = vor.u32 %v6523_v17, %v6522_v42  ;;  %v6527_v49 = vshll.u32 %v6526_v45, 23  ;;  %v6833_v44 = vshrl.u32 %v13032_v35, %v6818_v46  ;;  %vm6333_vm14 = vweird.f32 %v8327_v53 }
 0x3a4   :  { %v6445_v34 = vsel %vm6443_vm2, %v6340_v25, %v8292_v22  ;;  %vm6835_vm15 = vcmp.lt.s32.totalorder %v12411_v1, 1  ;;  %vm6837_vm0 = vcmp.lt.s32.totalorder %v12411_v1, 3  ;;  %vm6838_vm1 = vcmp.lt.s32.totalorder %v12411_v1, 4 }
 0x3a5   :  { %v6528_v14 = vor.u32 4788187, %v6527_v49  ;;  %v6531_v32 = vcvt.s32.f32 %v6524_v29  ;;  %v6834_v36 = vor.u32 %v6833_v44, %v6832_v54  ;;  %vm6836_vm5 = vcmp.lt.s32.totalorder %v12411_v1, 2 }
 0x3a6   :  { %v6338_v17 = vsel %vm6336_vm3, %v8290_v26, %v6337_v60  ;;  %v6843_v46 = vsel %vm6835_vm15, %v6822_v37, %v6825_v59  ;;  %v6844_v45 = vsel %vm6838_vm1, %v6831_v18, 920167782  ;;  %v6847_v52 = vsel %vm6835_vm15, %v6825_v59, %v6828_v55 }
 0x3a7   :  { %v6442_v47 = vsel %vm6440_vm4, %v8290_v26, %v6337_v60  ;;  %v6529_v8 = vand.u32 2147483647, %v6528_v14  ;;  %v6845_v49 = vsel %vm6837_vm0, %v6828_v55, %v6844_v45  ;;  %v6848_v44 = vsel %vm6838_vm1, %v6834_v36, 1326507024 }
 0x3a8   :  { %v6840_v29 = vsel %vm6838_vm1, %v6828_v55, 2102212464  ;;  %v6846_v54 = vsel %vm6836_vm5, %v6843_v46, %v6845_v49  ;;  %v6849_v22 = vsel %vm6837_vm0, %v6831_v18, %v6848_v44  ;;  %vm7022_vm6 = vcmp.gt.s32.totalorder %v7021_v3, 0 }
 0x3a9   :  { %v6532_v16 = vmul.f32 %v6531_v32, %v6529_v8  ;;  %v6850_v13 = vsel %vm6836_vm5, %v6847_v52, %v6849_v22  ;;  %v12453_v51 = vmul.u32.u64.low %v12403_v58, %v6846_v54  ;;  %v12454_v60 = vmul.u32.u64.high %v12403_v58, %v6846_v54, %v12453_v51 }
 0x3aa   :  { %v6342_v26 = vsel %vm6335_vm9, %v6338_v17, %v6341_v12  ;;  %v12460_v55 = vmul.u32.u64.low %v12403_v58, %v6850_v13  ;;  %v12461_v50 = vmul.u32.u64.high %v12403_v58, %v6850_v13, %v12460_v55  ;;  %v7023_v42 = vsel %vm7022_vm6, %v7021_v3, 0 }
 0x3ab   :  { %v6533_v57 = vxor.u32 2147483648, %v6532_v16  ;;  %v6839_v18 = vsel %vm6835_vm15, %v6819_v38, %v6822_v37  ;;  %v6841_v6 = vsel %vm6837_vm0, %v6825_v59, %v6840_v29  ;;  %v7025_v25 = vand.u32 31, %v7023_v42 }
 0x3ac   :  { %v6240_v14 = vsub.f32 0.0, %v12396_v43  ;;  %v12469_v32 = vand.u32 3, %v12409_v15  ;;  %v12471_v23 = vand.u32 3, %v6645_v31  ;;  %v13190_v12 = vor.u32 8388608, %v12374_v33 }
 0x3ad   :  { %v12478_v3 = vsel %vm6333_vm14, nan, %v6342_v26  ;;  %v6446_v38 = vsel %vm6439_vm11, %v6442_v47, %v6445_v34  ;;  %v6534_v37 = vsel %vm6451_vm12, %v6533_v57, %v6532_v16  ;;  %v7026_v59 = vsub.s32 32, %v7025_v25 }
 0x3ae   :  { %v12475_v36 = vshll.u32 %v13190_v12, 8  ;;  %v6537_v15 = vsel %vm12382_vm13, %v12137_v19, %v6534_v37  ;;  %v6842_v31 = vsel %vm6836_vm5, %v6839_v18, %v6841_v6  ;;  %v6861_v33 = vadd.s32 1, %v12454_v60 }
 0x3af   :  { %v12490_v17 = vshrl.u32 %v7023_v42, 5  ;;  %8293 = vcosq.f32 %v6537_v15  ;;  %vm6860_vm7 = vc.u32 %v12461_v50, %v12453_v51  ;;  %v7028_v30 = vshll.u32 %v13045_v28, %v7025_v25 }
 0x3b0   :  { %v7029_v34 = vshrl.u32 %v13046_v48, %v7026_v59  ;;  %8295 = vsinq.f32 %v6537_v15  ;;  %v7031_v46 = vshll.u32 %v13046_v48, %v7025_v25  ;;  %v7032_v56 = vshrl.u32 %v13025_v63, %v7026_v59 }
 0x3b1   :  { %v7034_v1 = vshll.u32 %v13025_v63, %v7025_v25  ;;  %vm6547_vm13 = vcmp.eq.s32.totalorder %v12469_v32, 2  ;;  %v6858_v45 = vmul.u32 %v12403_v58, %v6842_v31  ;;  %v7035_v52 = vshrl.u32 %v13030_v39, %v7026_v59 }
 0x3b2   :  { %v7037_v47 = vshll.u32 %v13030_v39, %v7025_v25  ;;  %v7038_v8 = vshrl.u32 %v13031_v10, %v7026_v59  ;;  %v6447_v49 = vsel %vm6333_vm14, nan, %v6446_v38  ;;  %vm6544_vm12 = vcmp.eq.s32.totalorder %v12469_v32, 0 }
 0x3b3   :  { %vm6648_vm10 = vcmp.eq.s32.totalorder %v12471_v23, 0  ;;  %v6862_v44 = vsel %vm6860_vm7, %v6861_v33, %v12454_v60  ;;  %v7040_v29 = vshll.u32 %v13031_v10, %v7025_v25  ;;  %v7041_v54 = vshrl.u32 %v13032_v35, %v7026_v59 }
 0x3b4   :  { %v6448_v22 = vsub.f32 0.0, %v6447_v49  ;;  %vm6543_vm2 = vcmp.lt.s32.totalorder %v12469_v32, 2  ;;  %vm6647_vm3 = vcmp.lt.s32.totalorder %v12471_v23, 2  ;;  %v6657_v58 = vmul.f32 %v12478_v3, %v12393_v2 }
 0x3b5   :  { %v7030_v53 = vor.u32 %v7029_v34, %v7028_v30  ;;  %v7039_v16 = vor.u32 %v7038_v8, %v7037_v47  ;;  %vm6541_vm4 = vweird.f32 %v12137_v19  ;;  %v7033_v13 = vor.u32 %v7032_v56, %v7031_v46 }
 0x3b6   :  { %v7036_v26 = vor.u32 %v7035_v52, %v7034_v1  ;;  %v7042_v55 = vor.u32 %v7041_v54, %v7040_v29  ;;  %vm7046_vm8 = vcmp.lt.s32.totalorder %v12490_v17, 4  ;;  %v12516_v60 = vadd.s32 %v6862_v44, %v6858_v45 }
 0x3b7   :  { %vm7043_vm9 = vcmp.lt.s32.totalorder %v12490_v17, 1  ;;  %vm7045_vm11 = vcmp.lt.s32.totalorder %v12490_v17, 3  ;;  %v7052_v42 = vsel %vm7046_vm8, %v7039_v16, 920167782  ;;  %vm6651_vm14 = vcmp.eq.s32.totalorder %v12471_v23, 2 }
 0x3b8   :  { %v6658_v57 = vmul.f32 %v6447_v49, %v12393_v2  ;;  %v6659_v18 = vmul.f32 %v12478_v3, %v12396_v43  ;;  %v7027_v6 = vshrl.u32 %v13045_v28, %v7026_v59  ;;  %v6660_v25 = vmul.f32 %v6447_v49, %v12396_v43  ;;  %v12534_v59 = vld [vmem:[#allocation2 + $0x17] sm:$0x1] }
 0x3b9   :  { %v6687_v12 = vmul.f32 %v6448_v22, %v12378_v11  ;;  %v7048_v38 = vsel %vm7046_vm8, %v7036_v26, 2102212464  ;;  %v7056_v37 = vsel %vm7046_vm8, %v7042_v55, 1326507024  ;;  %v6690_v15 = vmul.f32 %v6448_v22, %v12390_v5  ;;  %v8294_v30 = vpop.eup %8293 }
 0x3ba   :  { %vm7044_vm15 = vcmp.lt.s32.totalorder %v12490_v17, 2  ;;  %v7051_v31 = vsel %vm7043_vm9, %v7030_v53, %v7033_v13  ;;  %v7053_v33 = vsel %vm7045_vm11, %v7036_v26, %v7052_v42  ;;  %v6675_v34 = vmul.f32 %v6657_v58, %v12378_v11  ;;  %v8296_v45 = vpop.eup %8295 }
 0x3bb   :  { %v6864_v46 = vadd.s32 536870912, %v12516_v60  ;;  %v7055_v56 = vsel %vm7043_vm9, %v7033_v13, %v7036_v26  ;;  %v7057_v1 = vsel %vm7045_vm11, %v7039_v16, %v7056_v37  ;;  %v6548_v52 = vxor.u32 2147483648, %v8294_v30 }
 0x3bc   :  { %v6681_v47 = vmul.f32 %v6659_v18, %v12378_v11  ;;  %v7047_v8 = vsel %vm7043_vm9, %v7027_v6, %v7030_v53  ;;  %v7049_v49 = vsel %vm7045_vm11, %v7033_v13, %v7048_v38  ;;  %v6545_v44 = vxor.u32 2147483648, %v8296_v45 }
 0x3bd   :  { %v6678_v29 = vmul.f32 %v6657_v58, %v12390_v5  ;;  %v6684_v54 = vmul.f32 %v6659_v18, %v12390_v5  ;;  %v12550_v22 = vsel %vm7044_vm15, %v7051_v31, %v7053_v33  ;;  %v6549_v16 = vsel %vm6547_vm13, %v6548_v52, %v8296_v45 }
 0x3be   :  { %v6653_v26 = vsel %vm6651_vm14, %v6548_v52, %v8296_v45  ;;  %v12558_v53 = vsel %vm7044_vm15, %v7055_v56, %v7057_v1  ;;  %v7222_v13 = vand.u32 2139095040, %v12534_v59  ;;  %v6546_v58 = vsel %vm6544_vm12, %v8294_v30, %v6545_v44 }
 0x3bf   :  { %v6650_v5 = vsel %vm6648_vm10, %v8294_v30, %v6545_v44  ;;  %v12565_v55 = vshrl.u32 %v6864_v46, 30  ;;  %v12569_v42 = vsel %vm7044_vm15, %v7047_v8, %v7049_v49  ;;  %v6550_v18 = vsel %vm6543_vm2, %v6546_v58, %v6549_v16 }
 0x3c0   :  { %v6654_v6 = vsel %vm6647_vm3, %v6650_v5, %v6653_v26  ;;  %v12577_v38 = vmul.u32.u64.low %v12475_v36, %v12550_v22  ;;  %v12578_v37 = vmul.u32.u64.high %v12475_v36, %v12550_v22, %v12577_v38  ;;  %v6551_v31 = vsel %vm6541_vm4, nan, %v6550_v18 }
 0x3c1   :  { %v6655_v17 = vsel %vm6541_vm4, nan, %v6654_v6  ;;  %v12587_v33 = vmul.u32.u64.low %v12475_v36, %v12558_v53  ;;  %v12588_v32 = vmul.u32.u64.high %v12475_v36, %v12558_v53, %v12587_v33  ;;  %v6661_v23 = vmul.f32 %v6551_v31, %v6240_v14 }
 0x3c2   :  { %v6662_v30 = vmul.f32 %v6658_v57, %v6655_v17  ;;  %v6667_v46 = vmul.f32 %v6551_v31, %v12393_v2  ;;  %v6668_v56 = vmul.f32 %v6660_v25, %v6655_v17  ;;  %v6673_v1 = vmul.f32 %v6655_v17, %v12478_v3 }
 0x3c3   :  { %v6656_v45 = vsub.f32 0.0, %v6655_v17  ;;  %v6665_v52 = vmul.f32 %v6658_v57, %v6551_v31  ;;  %v6671_v8 = vmul.f32 %v6660_v25, %v6551_v31  ;;  %v6674_v44 = vmul.f32 %v6551_v31, %v12478_v3 }
 0x3c4   :  { %v6663_v19 = vadd.f32 %v6662_v30, %v6661_v23  ;;  %v6669_v49 = vadd.f32 %v6668_v56, %v6667_v46  ;;  %v12596_v22 = vshrl.u32 %v7222_v13, 23  ;;  %v6688_v16 = vmul.f32 %v6673_v1, %v12361_v27 }
 0x3c5   :  { %v6691_v26 = vmul.f32 %v6673_v1, %v12378_v11  ;;  %v6664_v53 = vmul.f32 %v6656_v45, %v6240_v14  ;;  %v6670_v58 = vmul.f32 %v6656_v45, %v12393_v2  ;;  %vm7068_vm0 = vc.u32 %v12588_v32, %v12577_v38 }
 0x3c6   :  { %v6676_v5 = vmul.f32 %v6663_v19, %v12361_v27  ;;  %v6682_v57 = vmul.f32 %v6669_v49, %v12361_v27  ;;  %v6679_v25 = vmul.f32 %v6663_v19, %v12378_v11  ;;  %v6685_v18 = vmul.f32 %v6669_v49, %v12378_v11 }
 0x3c7   :  { %v6689_v3 = vadd.f32 %v6688_v16, %v6687_v12  ;;  %v6692_v13 = vadd.f32 %v6691_v26, %v6690_v15  ;;  %v6666_v6 = vadd.f32 %v6665_v52, %v6664_v53  ;;  %v6672_v31 = vadd.f32 %v6671_v8, %v6670_v58 }
 0x3c8   :  { %v6677_v17 = vadd.f32 %v6676_v5, %v6675_v34  ;;  %v6683_v33 = vadd.f32 %v6682_v57, %v6681_v47  ;;  %v6680_v23 = vadd.f32 %v6679_v25, %v6678_v29  ;;  %v6686_v30 = vadd.f32 %v6685_v18, %v6684_v54 }
 0x3c9   :  { %v6723_v43 = vmul.f32 %v6689_v3, %v12029_v41  ;;  %v6728_v2 = vmul.f32 %v6692_v13, %v12029_v41  ;;  %v6730_v14 = vmul.f32 %v6666_v6, %v12034_v61  ;;  %v6731_v27 = vmul.f32 %v6672_v31, %v12036_v4 }
 0x3ca   :  { %v6720_v46 = vmul.f32 %v6677_v17, %v12034_v61  ;;  %v6721_v11 = vmul.f32 %v6683_v33, %v12036_v4  ;;  %v6725_v12 = vmul.f32 %v6680_v23, %v12034_v61  ;;  %v6726_v15 = vmul.f32 %v6686_v30, %v12036_v4 }
 0x3cb   :  { %v6732_v34 = vadd.f32 %v6731_v27, %v6730_v14  ;;  %v6733_v47 = vmul.f32 %v6674_v44, %v12029_v41  ;;  %v6735_v29 = vmul.f32 %v6677_v17, %v12041_v24  ;;  %v6736_v54 = vmul.f32 %v6683_v33, %v12052_v20 }
 0x3cc   :  { %v6722_v56 = vadd.f32 %v6721_v11, %v6720_v46  ;;  %v6727_v1 = vadd.f32 %v6726_v15, %v6725_v12  ;;  %v6738_v45 = vmul.f32 %v6689_v3, %v12057_v0  ;;  %v6740_v52 = vmul.f32 %v6680_v23, %v12041_v24 }
 0x3cd   :  { %v6734_v8 = vadd.f32 %v6733_v47, %v6732_v34  ;;  %v6737_v19 = vadd.f32 %v6736_v54, %v6735_v29  ;;  %v6741_v49 = vmul.f32 %v6686_v30, %v12052_v20  ;;  %v6743_v61 = vmul.f32 %v6692_v13, %v12057_v0  ;;  %v12647_v54 = vld [vmem:[#allocation2 + $0xf] sm:$0x1] }
 0x3ce   :  { %v6724_v4 = vadd.f32 %v6723_v43, %v6722_v56  ;;  %v6729_v16 = vadd.f32 %v6728_v2, %v6727_v1  ;;  %v6745_v41 = vmul.f32 %v6666_v6, %v12041_v24  ;;  %v6746_v26 = vmul.f32 %v6672_v31, %v12052_v20 }
 0x3cf   :  { %6782 = vst [vmem:[#allocation5 + $0x46] sm:$0x1] %v6734_v8  ;;  %v6739_v53 = vadd.f32 %v6738_v45, %v6737_v19  ;;  %v6742_v58 = vadd.f32 %v6741_v49, %v6740_v52  ;;  %v6748_v5 = vmul.f32 %v6674_v44, %v12057_v0  ;;  %v6750_v57 = vmul.f32 %v6677_v17, %v12067_v40 }
 0x3d0   :  { %6778 = vst [vmem:[#allocation5 + $0x36] sm:$0x1] %v6724_v4  ;;  %6780 = vst [vmem:[#allocation5 + $0x3e] sm:$0x1] %v6729_v16  ;;  %v6747_v25 = vadd.f32 %v6746_v26, %v6745_v41  ;;  %v6751_v18 = vmul.f32 %v6683_v33, %v12071_v7  ;;  %v6753_v14 = vmul.f32 %v6689_v3, %v12077_v9  ;;  %v6866_v3 = vshll.u32 %v12565_v55, 30 }
 0x3d1   :  { %v6755_v43 = vmul.f32 %v6680_v23, %v12067_v40  ;;  %6784 = vst [vmem:[#allocation5 + $0x4e] sm:$0x1] %v6739_v53  ;;  %v6744_v24 = vadd.f32 %v6743_v61, %v6742_v58  ;;  %v6756_v20 = vmul.f32 %v6686_v30, %v12071_v7  ;;  %v6758_v2 = vmul.f32 %v6692_v13, %v12077_v9 }
 0x3d2   :  { %v6760_v27 = vmul.f32 %v6666_v6, %v12067_v40  ;;  %v6749_v0 = vadd.f32 %v6748_v5, %v6747_v25  ;;  %v6752_v46 = vadd.f32 %v6751_v18, %v6750_v57  ;;  %v6761_v17 = vmul.f32 %v6672_v31, %v12071_v7 }
 0x3d3   :  { %v6763_v11 = vmul.f32 %v6674_v44, %v12077_v9  ;;  %6786 = vst [vmem:[#allocation5 + $0x56] sm:$0x1] %v6744_v24  ;;  %v6757_v33 = vadd.f32 %v6756_v20, %v6755_v43  ;;  %v7066_v30 = vmul.u32 %v12475_v36, %v12569_v42  ;;  %v7069_v7 = vadd.s32 1, %v12578_v37 }
 0x3d4   :  { %6788 = vst [vmem:[#allocation5 + $0x5e] sm:$0x1] %v6749_v0  ;;  %v6754_v23 = vadd.f32 %v6753_v14, %v6752_v46  ;;  %v6762_v12 = vadd.f32 %v6761_v17, %v6760_v27  ;;  %v8030_v9 = vadd.s32 4294967169, %v12596_v22  ;;  %v12642_v44 = vsub.s32 %v12516_v60, %v6866_v3 }
 0x3d5   :  { %v6759_v15 = vadd.f32 %v6758_v2, %v6757_v33  ;;  %v7070_v13 = vsel %vm7068_vm0, %v7069_v7, %v12578_v37  ;;  %v7219_v47 = vand.u32 2147483647, %v12534_v59  ;;  %v7430_v52 = vand.u32 2139095040, %v12647_v54 }
 0x3d6   :  { %6790 = vst [vmem:[#allocation5 + $0x66] sm:$0x1] %v6754_v23  ;;  %v6764_v40 = vadd.f32 %v6763_v11, %v6762_v12  ;;  %v7229_v6 = vadd.s32 1, %v8030_v9  ;;  %v7071_v31 = vadd.s32 %v7070_v13, %v7066_v30  ;;  %v6869_v36 = vsub.s32 0, %v12642_v44 }
 0x3d7   :  { %6792 = vst [vmem:[#allocation5 + $0x6e] sm:$0x1] %v6759_v15  ;;  %v7226_v37 = vand.u32 8388607, %v7219_v47  ;;  %v7431_v18 = vshrl.u32 %v7430_v52, 23 }
 0x3d8   :  { %6794 = vst [vmem:[#allocation5 + $0x76] sm:$0x1] %v6764_v40  ;;  %vm7230_vm1 = vcmp.gt.s32.totalorder %v7229_v6, 0  ;;  %v7072_v42 = vadd.s32 536870912, %v7071_v31  ;;  %v8015_v60 = vmin.u32 %v6869_v36, %v12642_v44  ;;  %v7427_v52 = vand.u32 2147483647, %v12647_v54 }
 0x3d9   :  { %v7231_v34 = vsel %vm7230_vm1, %v7229_v6, 0  ;;  %v7227_v5 = vor.u32 8388608, %v7226_v37  ;;  %v8038_v17 = vadd.s32 4294967169, %v7431_v18 }
 0x3da   :  { %v7233_v29 = vand.u32 31, %v7231_v34  ;;  %v12649_v22 = vshrl.u32 %v7072_v42, 30  ;;  %v6871_v53 = vclz %v8015_v60  ;;  %v7232_v58 = vshrl.u32 %v7231_v34, 5 }
 0x3db   :  { %v7267_v46 = vshll.u32 %v7227_v5, 8  ;;  %v7437_v42 = vadd.s32 1, %v8038_v17 }
 0x3dc   :  { %v7234_v56 = vsub.s32 32, %v7233_v29  ;;  %v7074_v1 = vshll.u32 %v12649_v22, 30  ;;  %v7236_v45 = vshll.u32 %v13045_v28, %v7233_v29  ;;  %v7239_v49 = vshll.u32 %v13046_v48, %v7233_v29 }
 0x3dd   :  { %v7242_v4 = vshll.u32 %v13025_v63, %v7233_v29  ;;  %v7245_v41 = vshll.u32 %v13030_v39, %v7233_v29  ;;  %v7248_v57 = vshll.u32 %v13031_v10, %v7233_v29  ;;  %v8016_v0 = vadd.s32 4294967294, %v6871_v53 }
 0x3de   :  { %v12657_v8 = vsub.s32 %v7071_v31, %v7074_v1  ;;  %v7237_v19 = vshrl.u32 %v13046_v48, %v7234_v56  ;;  %v7240_v61 = vshrl.u32 %v13025_v63, %v7234_v56  ;;  %v7243_v16 = vshrl.u32 %v13030_v39, %v7234_v56 }
 0x3df   :  { %v7246_v26 = vshrl.u32 %v13031_v10, %v7234_v56  ;;  %v7249_v25 = vshrl.u32 %v13032_v35, %v7234_v56  ;;  %vm7251_vm5 = vcmp.lt.s32.totalorder %v7232_v58, 1  ;;  %vm7253_vm6 = vcmp.lt.s32.totalorder %v7232_v58, 3 }
 0x3e0   :  { %v7077_v14 = vsub.s32 0, %v12657_v8  ;;  %v7238_v43 = vor.u32 %v7237_v19, %v7236_v45  ;;  %v7241_v24 = vor.u32 %v7240_v61, %v7239_v49  ;;  %v7244_v20 = vor.u32 %v7243_v16, %v7242_v4 }
 0x3e1   :  { %v7247_v2 = vor.u32 %v7246_v26, %v7245_v41  ;;  %v7250_v27 = vor.u32 %v7249_v25, %v7248_v57  ;;  %vm7254_vm7 = vcmp.lt.s32.totalorder %v7232_v58, 4  ;;  %v7235_v33 = vshrl.u32 %v13045_v28, %v7234_v56 }
 0x3e2   :  { %v8023_v11 = vmin.u32 %v7077_v14, %v12657_v8  ;;  %vm7252_vm13 = vcmp.lt.s32.totalorder %v7232_v58, 2  ;;  %v7259_v3 = vsel %vm7251_vm5, %v7238_v43, %v7241_v24  ;;  %v7256_v23 = vsel %vm7254_vm7, %v7244_v20, 2102212464 }
 0x3e3   :  { %v7260_v12 = vsel %vm7254_vm7, %v7247_v2, 920167782  ;;  %v7263_v15 = vsel %vm7251_vm5, %v7241_v24, %v7244_v20  ;;  %v7264_v30 = vsel %vm7254_vm7, %v7250_v27, 1326507024  ;;  %vm8017_vm12 = vcmp.lt.s32.totalorder %v8016_v0, 0 }
 0x3e4   :  { %v7261_v40 = vsel %vm7253_vm6, %v7244_v20, %v7260_v12  ;;  %v7265_v7 = vsel %vm7253_vm6, %v7247_v2, %v7264_v30  ;;  %v7079_v6 = vclz %v8023_v11  ;;  %v7255_v31 = vsel %vm7251_vm5, %v7235_v33, %v7238_v43 }
 0x3e5   :  { %v7262_v9 = vsel %vm7252_vm13, %v7259_v3, %v7261_v40  ;;  %v7266_v13 = vsel %vm7252_vm13, %v7263_v15, %v7265_v7  ;;  %v7257_v36 = vsel %vm7253_vm6, %v7241_v24, %v7256_v23  ;;  %vm7438_vm10 = vcmp.gt.s32.totalorder %v7437_v42, 0 }
 0x3e6   :  { %v12679_v34 = vmul.u32.u64.low %v7267_v46, %v7266_v13  ;;  %v12680_v29 = vmul.u32.u64.high %v7267_v46, %v7266_v13, %v12679_v34  ;;  %v12682_v56 = vmul.u32.u64.low %v7267_v46, %v7262_v9  ;;  %v12683_v60 = vmul.u32.u64.high %v7267_v46, %v7262_v9, %v12682_v56 }
 0x3e7   :  { %v7258_v1 = vsel %vm7252_vm13, %v7255_v31, %v7257_v36  ;;  %v12687_v37 = vsel %vm8017_vm12, 0, %v8016_v0  ;;  %v8024_v45 = vadd.s32 4294967294, %v7079_v6  ;;  %v7439_v19 = vsel %vm7438_vm10, %v7437_v42, 0 }
 0x3e8   :  { %v7274_v49 = vmul.u32 %v7267_v46, %v7258_v1  ;;  %vm7276_vm2 = vc.u32 %v12680_v29, %v12682_v56  ;;  %v6879_v61 = vsub.s32 4294967266, %v12687_v37  ;;  %v7277_v4 = vadd.s32 1, %v12683_v60 }
 0x3e9   :  { %v7441_v16 = vand.u32 31, %v7439_v19  ;;  %v6859_v41 = vadd.s32 %v12453_v51, %v12461_v50  ;;  %v6875_v26 = vsub.s32 32, %v12687_v37  ;;  %vm8025_vm3 = vcmp.lt.s32.totalorder %v8024_v45, 0 }
 0x3ea   :  { %v7434_v53 = vand.u32 8388607, %v7427_v52  ;;  %v7278_v58 = vsel %vm7276_vm2, %v7277_v4, %v12683_v60  ;;  %v7440_v14 = vshrl.u32 %v7439_v19, 5  ;;  %v6880_v51 = vadd.s32 127, %v6879_v61 }
 0x3eb   :  { %v7442_v5 = vsub.s32 32, %v7441_v16  ;;  %v7444_v57 = vshll.u32 %v13045_v28, %v7441_v16  ;;  %v7447_v25 = vshll.u32 %v13046_v48, %v7441_v16  ;;  %v7279_v18 = vadd.s32 %v7278_v58, %v7274_v49 }
 0x3ec   :  { %v7450_v43 = vshll.u32 %v13025_v63, %v7441_v16  ;;  %v7453_v24 = vshll.u32 %v13030_v39, %v7441_v16  ;;  %v7082_v27 = vsel %vm8025_vm3, 0, %v8024_v45  ;;  %v7456_v17 = vshll.u32 %v13031_v10, %v7441_v16 }
 0x3ed   :  { %v7445_v50 = vshrl.u32 %v13046_v48, %v7442_v5  ;;  %v7448_v20 = vshrl.u32 %v13025_v63, %v7442_v5  ;;  %v7451_v2 = vshrl.u32 %v13030_v39, %v7442_v5  ;;  %v7280_v0 = vadd.s32 536870912, %v7279_v18 }
 0x3ee   :  { %v7454_v46 = vshrl.u32 %v13031_v10, %v7442_v5  ;;  %v7435_v11 = vor.u32 8388608, %v7434_v53  ;;  %v7457_v23 = vshrl.u32 %v13032_v35, %v7442_v5  ;;  %vm7459_vm4 = vcmp.lt.s32.totalorder %v7440_v14, 1 }
 0x3ef   :  { %v7446_v33 = vor.u32 %v7445_v50, %v7444_v57  ;;  %v7449_v3 = vor.u32 %v7448_v20, %v7447_v25  ;;  %v12710_v12 = vshrl.u32 %v7280_v0, 30  ;;  %v7452_v15 = vor.u32 %v7451_v2, %v7450_v43 }
 0x3f0   :  { %v7455_v30 = vor.u32 %v7454_v46, %v7453_v24  ;;  %v6876_v63 = vshll.u32 %v12642_v44, %v12687_v37  ;;  %v7087_v39 = vsub.s32 4294967266, %v7082_v27  ;;  %vm7461_vm8 = vcmp.lt.s32.totalorder %v7440_v14, 3 }
 0x3f1   :  { %vm7462_vm9 = vcmp.lt.s32.totalorder %v7440_v14, 4  ;;  %v7282_v48 = vshll.u32 %v12710_v12, 30  ;;  %v7443_v10 = vshrl.u32 %v13045_v28, %v7442_v5  ;;  %v7458_v40 = vor.u32 %v7457_v23, %v7456_v17 }
 0x3f2   :  { %vm7460_vm11 = vcmp.lt.s32.totalorder %v7440_v14, 2  ;;  %v6877_v7 = vshrl.u32 %v6859_v41, %v6875_v26  ;;  %v7467_v35 = vsel %vm7459_vm4, %v7446_v33, %v7449_v3  ;;  %v7468_v9 = vsel %vm7462_vm9, %v7455_v30, 920167782 }
 0x3f3   :  { %v7475_v13 = vshll.u32 %v7435_v11, 8  ;;  %v6881_v6 = vshll.u32 %v6880_v51, 23  ;;  %v7283_v31 = vsub.s32 %v7279_v18, %v7282_v48  ;;  %v7464_v36 = vsel %vm7462_vm9, %v7452_v15, 2102212464 }
 0x3f4   :  { %v7469_v44 = vsel %vm7461_vm8, %v7452_v15, %v7468_v9  ;;  %v7067_v42 = vadd.s32 %v12577_v38, %v12588_v32  ;;  %v7083_v34 = vsub.s32 32, %v7082_v27  ;;  %v7088_v60 = vadd.s32 127, %v7087_v39 }
 0x3f5   :  { %v7470_v28 = vsel %vm7460_vm11, %v7467_v35, %v7469_v44  ;;  %v7285_v1 = vsub.s32 0, %v7283_v31  ;;  %v7463_v37 = vsel %vm7459_vm4, %v7443_v10, %v7446_v33  ;;  %v7471_v45 = vsel %vm7459_vm4, %v7449_v3, %v7452_v15  ;;  %v12746_v35 = vld [vmem:[#allocation2 + $0x7] sm:$0x1] }
 0x3f6   :  { %v7472_v19 = vsel %vm7462_vm9, %v7458_v40, 1326507024  ;;  %v7465_v49 = vsel %vm7461_vm8, %v7449_v3, %v7464_v36  ;;  %v12728_v4 = vmul.u32.u64.low %v7475_v13, %v7470_v28  ;;  %v12729_v16 = vmul.u32.u64.high %v7475_v13, %v7470_v28, %v12728_v4 }
 0x3f7   :  { %v7473_v61 = vsel %vm7461_vm8, %v7455_v30, %v7472_v19  ;;  %v6878_v38 = vor.u32 %v6877_v7, %v6876_v63  ;;  %v6882_v32 = vor.u32 4788187, %v6881_v6  ;;  %v8031_v41 = vmin.u32 %v7285_v1, %v7283_v31 }
 0x3f8   :  { %v7084_v26 = vshll.u32 %v12657_v8, %v7082_v27  ;;  %v7085_v53 = vshrl.u32 %v7067_v42, %v7083_v34  ;;  %v7089_v58 = vshll.u32 %v7088_v60, 23  ;;  %v7474_v5 = vsel %vm7460_vm11, %v7471_v45, %v7473_v61 }
 0x3f9   :  { %v7287_v57 = vclz %v8031_v41  ;;  %v7466_v25 = vsel %vm7460_vm11, %v7463_v37, %v7465_v49  ;;  %v12735_v18 = vmul.u32.u64.low %v7475_v13, %v7474_v5  ;;  %v12736_v43 = vmul.u32.u64.high %v7475_v13, %v7474_v5, %v12735_v18 }
 0x3fa   :  { %v7485_v24 = vadd.s32 1, %v12729_v16  ;;  %v6883_v50 = vand.u32 2147483647, %v6882_v32  ;;  %v6885_v20 = vcvt.s32.f32 %v6878_v38  ;;  %v7086_v2 = vor.u32 %v7085_v53, %v7084_v26 }
 0x3fb   :  { %v8032_v51 = vadd.s32 4294967294, %v7287_v57  ;;  %v7482_v0 = vmul.u32 %v7475_v13, %v7466_v25  ;;  %v7090_v46 = vor.u32 4788187, %v7089_v58  ;;  %v7275_v8 = vadd.s32 %v12682_v56, %v12680_v29 }
 0x3fc   :  { %vm7484_vm15 = vc.u32 %v12736_v43, %v12728_v4  ;;  %v6886_v23 = vmul.f32 %v6885_v20, %v6883_v50  ;;  %v7093_v30 = vcvt.s32.f32 %v7086_v2  ;;  %vm6805_vm0 = vcmp.lt.s32.totalorder %v12746_v35, 0 }
 0x3fd   :  { %vm8033_vm14 = vcmp.lt.s32.totalorder %v8032_v51, 0  ;;  %v7486_v27 = vsel %vm7484_vm15, %v7485_v24, %v12729_v16  ;;  %v7091_v15 = vand.u32 2147483647, %v7090_v46  ;;  %v13191_v44 = vand.u32 2147483647, %v12281_v62 }
 0x3fe   :  { %v7290_v14 = vsel %vm8033_vm14, 0, %v8032_v51  ;;  %v7487_v3 = vadd.s32 %v7486_v27, %v7482_v0  ;;  %v6887_v56 = vxor.u32 2147483648, %v6886_v23  ;;  %v6889_v28 = vsub.s32 4, %v12565_v55 }
 0x3ff   :  { %v7291_v17 = vsub.s32 32, %v7290_v14  ;;  %v7292_v11 = vshll.u32 %v7283_v31, %v7290_v14  ;;  %v7295_v33 = vsub.s32 4294967266, %v7290_v14  ;;  %v7094_v7 = vmul.f32 %v7093_v30, %v7091_v15 }
 0x400   :  { %v7488_v48 = vadd.s32 536870912, %v7487_v3  ;;  %vm12752_vm1 = vcmp.le.f32.partialorder %v13191_v44, 0.7853982  ;;  %v6888_v34 = vsel %vm6805_vm0, %v6887_v56, %v6886_v23  ;;  %vm7013_vm5 = vcmp.lt.s32.totalorder %v12338_v21, 0 }
 0x401   :  { %v7293_v63 = vshrl.u32 %v7275_v8, %v7291_v17  ;;  %v7296_v39 = vadd.s32 127, %v7295_v33  ;;  %v7095_v60 = vxor.u32 2147483648, %v7094_v7  ;;  %v6891_v45 = vsel %vm12752_vm1, %v12746_v35, %v6888_v34 }
 0x402   :  { %v12744_v29 = vshrl.u32 %v7488_v48, 30  ;;  %vm7221_vm6 = vcmp.lt.s32.totalorder %v12534_v59, 0  ;;  %v13194_v49 = vand.u32 2147483647, %v12338_v21  ;;  %v7097_v38 = vsub.s32 4, %v12649_v22 }
 0x403   :  { %v7294_v10 = vor.u32 %v7293_v63, %v7292_v11  ;;  %v7297_v40 = vshll.u32 %v7296_v39, 23  ;;  %v7096_v16 = vsel %vm7013_vm5, %v7095_v60, %v7094_v7  ;;  %v6890_v32 = vsel %vm6805_vm0, %v6889_v28, %v12565_v55 }
 0x404   :  { %v7490_v6 = vshll.u32 %v12744_v29, 30  ;;  %vm12766_vm7 = vcmp.le.f32.partialorder %v13194_v49, 0.7853982  ;;  %8297 = vcosq.f32 %v6891_v45  ;;  %vm12778_vm13 = vcmp.le.f32.partialorder %v7219_v47, 0.7853982 }
 0x405   :  { %v7298_v9 = vor.u32 4788187, %v7297_v40  ;;  %v7301_v13 = vcvt.s32.f32 %v7294_v10  ;;  %8299 = vsinq.f32 %v6891_v45  ;;  %v7099_v58 = vsel %vm12766_vm7, %v12338_v21, %v7096_v16 }
 0x406   :  { %v7491_v36 = vsub.s32 %v7487_v3, %v7490_v6  ;;  %v6892_v55 = vsel %vm12752_vm1, 0, %v6890_v32  ;;  %v7098_v57 = vsel %vm7013_vm5, %v7097_v38, %v12649_v22  ;;  %v7305_v47 = vsub.s32 4, %v12710_v12 }
 0x407   :  { %v7299_v31 = vand.u32 2147483647, %v7298_v9  ;;  %v7483_v18 = vadd.s32 %v12728_v4, %v12736_v43  ;;  %8301 = vcosq.f32 %v7099_v58  ;;  %v6999_v2 = vadd.s32 3, %v6892_v55 }
 0x408   :  { %v7493_v37 = vsub.s32 0, %v7491_v36  ;;  %8303 = vsinq.f32 %v7099_v58  ;;  %v7100_v21 = vsel %vm12766_vm7, 0, %v7098_v57  ;;  %v7306_v22 = vsel %vm7221_vm6, %v7305_v47, %v12710_v12 }
 0x409   :  { %v7302_v1 = vmul.f32 %v7301_v13, %v7299_v31  ;;  %v12803_v4 = vand.u32 3, %v6892_v55  ;;  %v7207_v43 = vadd.s32 3, %v7100_v21  ;;  %v7000_v17 = vand.u32 3, %v6999_v2 }
 0x40a   :  { %v8039_v19 = vmin.u32 %v7493_v37, %v7491_v36  ;;  %v7308_v11 = vsel %vm12778_vm13, 0, %v7306_v22  ;;  %v12809_v12 = vand.u32 3, %v7100_v21  ;;  %v7513_v39 = vsub.s32 4, %v12744_v29 }
 0x40b   :  { %v7303_v62 = vxor.u32 2147483648, %v7302_v1  ;;  %vm6898_vm10 = vcmp.eq.s32.totalorder %v12803_v4, 0  ;;  %vm6901_vm2 = vcmp.eq.s32.totalorder %v12803_v4, 2  ;;  %v12811_v15 = vand.u32 3, %v7207_v43 }
 0x40c   :  { %v7495_v41 = vclz %v8039_v19  ;;  %v7415_v30 = vadd.s32 3, %v7308_v11  ;;  %vm7001_vm3 = vcmp.lt.s32.totalorder %v7000_v17, 2  ;;  %v7312_v56 = vand.u32 3, %v7308_v11 }
 0x40d   :  { %v7304_v53 = vsel %vm7221_vm6, %v7303_v62, %v7302_v1  ;;  %vm6897_vm4 = vcmp.lt.s32.totalorder %v12803_v4, 2  ;;  %vm7002_vm8 = vcmp.eq.s32.totalorder %v7000_v17, 0  ;;  %vm7005_vm9 = vcmp.eq.s32.totalorder %v7000_v17, 2 }
 0x40e   :  { %v8040_v5 = vadd.s32 4294967294, %v7495_v41  ;;  %v7307_v25 = vsel %vm12778_vm13, %v12534_v59, %v7304_v53  ;;  %v8298_v27 = vpop.eup %8297  ;;  %vm12817_vm11 = vcmp.le.f32.partialorder %v7427_v52, 0.7853982  ;;  %vm6895_vm14 = vweird.f32 %v12746_v35 }
 0x40f   :  { %8305 = vcosq.f32 %v7307_v25  ;;  %v8300_v33 = vpop.eup %8299  ;;  %v6902_v40 = vxor.u32 2147483648, %v8298_v27  ;;  %vm7106_vm0 = vcmp.eq.s32.totalorder %v12809_v12, 0  ;;  %vm7109_vm1 = vcmp.eq.s32.totalorder %v12809_v12, 2 }
 0x410   :  { %vm8041_vm12 = vcmp.lt.s32.totalorder %v8040_v5, 0  ;;  %8307 = vsinq.f32 %v7307_v25  ;;  %v6899_v10 = vxor.u32 2147483648, %v8300_v33  ;;  %vm7429_vm5 = vcmp.lt.s32.totalorder %v12647_v54, 0  ;;  %v8329_v25 = vld [vmem:[#allocation2 + $0x1f] sm:$0x1] }
 0x411   :  { %v7498_v24 = vsel %vm8041_vm12, 0, %v8040_v5  ;;  %v8302_v48 = vpop.eup %8301  ;;  %v7514_v44 = vsel %vm7429_vm5, %v7513_v39, %v12744_v29  ;;  %v7007_v34 = vsel %vm7005_vm9, %v6902_v40, %v8300_v33  ;;  %vm7210_vm7 = vcmp.eq.s32.totalorder %v12811_v15, 0 }
 0x412   :  { %v7499_v51 = vsub.s32 32, %v7498_v24  ;;  %v7500_v50 = vshll.u32 %v7491_v36, %v7498_v24  ;;  %v7503_v20 = vsub.s32 4294967266, %v7498_v24  ;;  %v8304_v7 = vpop.eup %8303  ;;  %v7416_v36 = vand.u32 3, %v7415_v30 }
 0x413   :  { %v7004_v42 = vsel %vm7002_vm8, %v8298_v27, %v6899_v10  ;;  %vm7314_vm13 = vcmp.eq.s32.totalorder %v7312_v56, 0  ;;  %v7107_v60 = vxor.u32 2147483648, %v8304_v7  ;;  %v7110_v28 = vxor.u32 2147483648, %v8302_v48 }
 0x414   :  { %v7501_v0 = vshrl.u32 %v7483_v18, %v7499_v51  ;;  %v7504_v46 = vadd.s32 127, %v7503_v20  ;;  %vm7317_vm12 = vcmp.eq.s32.totalorder %v7312_v56, 2  ;;  %v7516_v19 = vsel %vm12817_vm11, 0, %v7514_v44 }
 0x415   :  { %vm7213_vm6 = vcmp.eq.s32.totalorder %v12811_v15, 2  ;;  %vm7313_vm8 = vcmp.lt.s32.totalorder %v7312_v56, 2  ;;  %vm7418_vm9 = vcmp.eq.s32.totalorder %v7416_v36, 0  ;;  %vm7421_vm15 = vcmp.eq.s32.totalorder %v7416_v36, 2 }
 0x416   :  { %v7502_v8 = vor.u32 %v7501_v0, %v7500_v50  ;;  %v7505_v14 = vshll.u32 %v7504_v46, 23  ;;  %v6900_v61 = vsel %vm6898_vm10, %v8298_v27, %v6899_v10  ;;  %v6903_v16 = vsel %vm6901_vm2, %v6902_v40, %v8300_v33 }
 0x417   :  { %v7008_v38 = vsel %vm7001_vm3, %v7004_v42, %v7007_v34  ;;  %v7623_v32 = vadd.s32 3, %v7516_v19  ;;  %v7108_v41 = vsel %vm7106_vm0, %v8302_v48, %v7107_v60  ;;  %v7111_v26 = vsel %vm7109_vm1, %v7110_v28, %v8304_v7 }
 0x418   :  { %v7506_v3 = vor.u32 4788187, %v7505_v14  ;;  %v7509_v23 = vcvt.s32.f32 %v7502_v8  ;;  %v7212_v53 = vsel %vm7210_vm7, %v8302_v48, %v7107_v60  ;;  %v7215_v58 = vsel %vm7213_vm6, %v7110_v28, %v8304_v7 }
 0x419   :  { %v8306_v6 = vpop.eup %8305  ;;  %v6904_v47 = vsel %vm6897_vm4, %v6900_v61, %v6903_v16  ;;  %vm7103_vm10 = vweird.f32 %v8329_v25  ;;  %vm7311_vm2 = vweird.f32 %v12534_v59  ;;  %v7520_v18 = vand.u32 3, %v7516_v19  ;;  %v13203_v25 = vld [vmem:[#allocation33_spill] sm:$0xff] }
 0x41a   :  { %v7507_v63 = vand.u32 2147483647, %v7506_v3  ;;  %v8308_v31 = vpop.eup %8307  ;;  %v7318_v45 = vxor.u32 2147483648, %v8306_v6  ;;  %v7009_v24 = vsel %vm6895_vm14, nan, %v7008_v38  ;;  %vm13201_vm3 = vcmp.lt.s32.totalorder %v12809_v12, 2 }
 0x41b   :  { %v7315_v37 = vxor.u32 2147483648, %v8308_v31  ;;  %v7112_v51 = vsel %vm13201_vm3, %v7108_v41, %v7111_v26  ;;  %vm13202_vm0 = vcmp.lt.s32.totalorder %v12811_v15, 2  ;;  %v7624_v20 = vand.u32 3, %v7623_v32 }
 0x41c   :  { %v7510_v13 = vmul.f32 %v7509_v23, %v7507_v63  ;;  %v7319_v49 = vsel %vm7317_vm12, %v7318_v45, %v8308_v31  ;;  %v7423_v57 = vsel %vm7421_vm15, %v7318_v45, %v8308_v31  ;;  %v7216_v50 = vsel %vm13202_vm0, %v7212_v53, %v7215_v58 }
 0x41d   :  { %v7316_v29 = vsel %vm7314_vm13, %v8306_v6, %v7315_v37  ;;  %v7420_v55 = vsel %vm7418_vm9, %v8306_v6, %v7315_v37  ;;  %v6905_v22 = vsel %vm6895_vm14, nan, %v6904_v47  ;;  %vm7519_vm4 = vweird.f32 %v12647_v54 }
 0x41e   :  { %v7511_v52 = vxor.u32 2147483648, %v7510_v13  ;;  %v7320_v5 = vsel %vm7313_vm8, %v7316_v29, %v7319_v49  ;;  %v7113_v0 = vsel %vm7103_vm10, nan, %v7112_v51  ;;  %v7217_v59 = vsel %vm7103_vm10, nan, %v7216_v50  ;;  %v13204_v50 = vld [vmem:[#allocation34_spill] sm:$0xff] }
 0x41f   :  { %v7321_v2 = vsel %vm7311_vm2, nan, %v7320_v5  ;;  %vm7522_vm15 = vcmp.eq.s32.totalorder %v7520_v18, 0  ;;  %v7010_v46 = vsub.f32 0.0, %v7009_v24  ;;  %vm7525_vm1 = vcmp.eq.s32.totalorder %v7520_v18, 2 }
 0x420   :  { %v7512_v1 = vsel %vm7429_vm5, %v7511_v52, %v7510_v13  ;;  %vm7629_vm5 = vcmp.eq.s32.totalorder %v7624_v20, 2  ;;  %v7635_v8 = vmul.f32 %v7321_v2, %v7113_v0  ;;  %vm7626_vm6 = vcmp.eq.s32.totalorder %v7624_v20, 0 }
 0x421   :  { %v7515_v62 = vsel %vm12817_vm11, %v12647_v54, %v7512_v1  ;;  %vm7417_vm11 = vcmp.lt.s32.totalorder %v7416_v36, 2  ;;  %v7637_v11 = vmul.f32 %v7321_v2, %v7217_v59  ;;  %v7218_v33 = vsub.f32 0.0, %v7217_v59 }
 0x422   :  { %8309 = vcosq.f32 %v7515_v62  ;;  %v7424_v21 = vsel %vm7417_vm11, %v7420_v55, %v7423_v57  ;;  %vm7521_vm7 = vcmp.lt.s32.totalorder %v7520_v18, 2  ;;  %vm7625_vm14 = vcmp.lt.s32.totalorder %v7624_v20, 2 }
 0x423   :  { %8311 = vsinq.f32 %v7515_v62  ;;  %v7425_v43 = vsel %vm7311_vm2, nan, %v7424_v21  ;;  %v7653_v39 = vmul.f32 %v7635_v8, %v6905_v22  ;;  %v7659_v40 = vmul.f32 %v7637_v11, %v6905_v22 }
 0x424   :  { %v7426_v27 = vsub.f32 0.0, %v7425_v43  ;;  %v7636_v12 = vmul.f32 %v7425_v43, %v7113_v0  ;;  %v7638_v15 = vmul.f32 %v7425_v43, %v7217_v59  ;;  %v7656_v13 = vmul.f32 %v7635_v8, %v7010_v46  ;;  %v13206_v43 = vld [vmem:[#allocation36_spill] sm:$0xff] }
 0x425   :  { %v7662_v45 = vmul.f32 %v7637_v11, %v7010_v46 }
 0x426   :  { %v7665_v56 = vmul.f32 %v7426_v27, %v6905_v22  ;;  %v7668_v6 = vmul.f32 %v7426_v27, %v7010_v46 }
 0x42c   :  { %v8310_v4 = vpop.eup %8309 }
 0x42d   :  { %v8312_v14 = vpop.eup %8311  ;;  %v7526_v17 = vxor.u32 2147483648, %v8310_v4 }
 0x42e   :  { %v7523_v35 = vxor.u32 2147483648, %v8312_v14 }
 0x42f   :  { %v7527_v3 = vsel %vm7525_vm1, %v7526_v17, %v8312_v14  ;;  %v7631_v23 = vsel %vm7629_vm5, %v7526_v17, %v8312_v14  ;;  %v13207_v14 = vld [vmem:[#allocation37_spill] sm:$0xff] }
 0x430   :  { %v7524_v30 = vsel %vm7522_vm15, %v8310_v4, %v7523_v35  ;;  %v7628_v63 = vsel %vm7626_vm6, %v8310_v4, %v7523_v35 }
 0x431   :  { %v7528_v48 = vsel %vm7521_vm7, %v7524_v30, %v7527_v3  ;;  %v7632_v10 = vsel %vm7625_vm14, %v7628_v63, %v7631_v23 }
 0x432   :  { %v7529_v7 = vsel %vm7519_vm4, nan, %v7528_v48  ;;  %v7633_v9 = vsel %vm7519_vm4, nan, %v7632_v10 }
 0x433   :  { %v7639_v31 = vmul.f32 %v7529_v7, %v7218_v33  ;;  %v7640_v36 = vmul.f32 %v7636_v12, %v7633_v9  ;;  %v7645_v52 = vmul.f32 %v7529_v7, %v7113_v0  ;;  %v7646_v44 = vmul.f32 %v7638_v15, %v7633_v9 }
 0x434   :  { %v7651_v42 = vmul.f32 %v7633_v9, %v7321_v2  ;;  %v7634_v34 = vsub.f32 0.0, %v7633_v9  ;;  %v7643_v60 = vmul.f32 %v7636_v12, %v7529_v7  ;;  %v7649_v28 = vmul.f32 %v7638_v15, %v7529_v7  ;;  %v13209_v9 = vld [vmem:[#allocation39_spill] sm:$0xff] }
 0x435   :  { %v7641_v1 = vadd.f32 %v7640_v36, %v7639_v31  ;;  %v7647_v37 = vadd.f32 %v7646_v44, %v7645_v52  ;;  %v7652_v62 = vmul.f32 %v7529_v7, %v7321_v2  ;;  %v13205_v2 = vld [vmem:[#allocation35_spill] sm:$0xff]  ;;  %v13210_v31 = vld [vmem:[#allocation40_spill] sm:$0xff]  ;;  %v13211_v52 = vld [vmem:[#allocation41_spill] sm:$0xff] }
 0x436   :  { %v7666_v19 = vmul.f32 %v7651_v42, %v7009_v24  ;;  %v7669_v29 = vmul.f32 %v7651_v42, %v6905_v22  ;;  %v7642_v49 = vmul.f32 %v7634_v34, %v7218_v33  ;;  %v7648_v61 = vmul.f32 %v7634_v34, %v7113_v0  ;;  %v13208_v33 = vld [vmem:[#allocation38_spill] sm:$0xff] }
 0x437   :  { %v7654_v54 = vmul.f32 %v7641_v1, %v7009_v24  ;;  %v7660_v16 = vmul.f32 %v7647_v37, %v7009_v24  ;;  %v7657_v38 = vmul.f32 %v7641_v1, %v6905_v22  ;;  %v7663_v32 = vmul.f32 %v7647_v37, %v6905_v22 }
 0x438   :  { %v7667_v41 = vadd.f32 %v7666_v19, %v7665_v56  ;;  %v7670_v26 = vadd.f32 %v7669_v29, %v7668_v6  ;;  %v7644_v53 = vadd.f32 %v7643_v60, %v7642_v49  ;;  %v7650_v58 = vadd.f32 %v7649_v28, %v7648_v61 }
 0x439   :  { %v7655_v5 = vadd.f32 %v7654_v54, %v7653_v39  ;;  %v7661_v55 = vadd.f32 %v7660_v16, %v7659_v40  ;;  %v7658_v57 = vadd.f32 %v7657_v38, %v7656_v13  ;;  %v7664_v47 = vadd.f32 %v7663_v32, %v7662_v45 }
 0x43a   :  { %v7701_v18 = vmul.f32 %v7667_v41, %v13203_v25  ;;  %v7706_v51 = vmul.f32 %v7670_v26, %v13203_v25  ;;  %v7708_v20 = vmul.f32 %v7644_v53, %v13204_v50  ;;  %v7709_v21 = vmul.f32 %v7650_v58, %v13205_v2 }
 0x43b   :  { %v7698_v24 = vmul.f32 %v7655_v5, %v13204_v50  ;;  %v7699_v22 = vmul.f32 %v7661_v55, %v13205_v2  ;;  %v7703_v0 = vmul.f32 %v7658_v57, %v13204_v50  ;;  %v7704_v59 = vmul.f32 %v7664_v47, %v13205_v2 }
 0x43c   :  { %v7710_v46 = vadd.f32 %v7709_v21, %v7708_v20  ;;  %v7711_v4 = vmul.f32 %v7652_v62, %v13203_v25  ;;  %v7713_v8 = vmul.f32 %v7655_v5, %v13206_v43  ;;  %v7714_v27 = vmul.f32 %v7661_v55, %v13207_v14 }
 0x43d   :  { %v7700_v17 = vadd.f32 %v7699_v22, %v7698_v24  ;;  %v7705_v11 = vadd.f32 %v7704_v59, %v7703_v0  ;;  %v7716_v35 = vmul.f32 %v7667_v41, %v13208_v33  ;;  %v7718_v3 = vmul.f32 %v7658_v57, %v13206_v43 }
 0x43e   :  { %v7712_v23 = vadd.f32 %v7711_v4, %v7710_v46  ;;  %v7715_v12 = vadd.f32 %v7714_v27, %v7713_v8  ;;  %v7719_v15 = vmul.f32 %v7664_v47, %v13207_v14  ;;  %v7721_v30 = vmul.f32 %v7670_v26, %v13208_v33 }
 0x43f   :  { %v7702_v63 = vadd.f32 %v7701_v18, %v7700_v17  ;;  %v7707_v39 = vadd.f32 %v7706_v51, %v7705_v11  ;;  %v7723_v48 = vmul.f32 %v7644_v53, %v13206_v43  ;;  %v7724_v10 = vmul.f32 %v7650_v58, %v13207_v14 }
 0x440   :  { %7760 = vst [vmem:[#allocation5 + $0x47] sm:$0x1] %v7712_v23  ;;  %v7717_v40 = vadd.f32 %v7716_v35, %v7715_v12  ;;  %v7720_v56 = vadd.f32 %v7719_v15, %v7718_v3  ;;  %v7726_v7 = vmul.f32 %v7652_v62, %v13208_v33  ;;  %v7728_v13 = vmul.f32 %v7655_v5, %v13209_v9 }
 0x441   :  { %7756 = vst [vmem:[#allocation5 + $0x37] sm:$0x1] %v7702_v63  ;;  %7758 = vst [vmem:[#allocation5 + $0x3f] sm:$0x1] %v7707_v39  ;;  %v7725_v6 = vadd.f32 %v7724_v10, %v7723_v48  ;;  %v7729_v36 = vmul.f32 %v7661_v55, %v13210_v31  ;;  %v7731_v44 = vmul.f32 %v7667_v41, %v13211_v52 }
 0x442   :  { %v7733_v42 = vmul.f32 %v7658_v57, %v13209_v9  ;;  %7762 = vst [vmem:[#allocation5 + $0x4f] sm:$0x1] %v7717_v40  ;;  %v7722_v34 = vadd.f32 %v7721_v30, %v7720_v56  ;;  %v7734_v60 = vmul.f32 %v7664_v47, %v13210_v31  ;;  %v7736_v28 = vmul.f32 %v7670_v26, %v13211_v52 }
 0x443   :  { %v7738_v1 = vmul.f32 %v7644_v53, %v13209_v9  ;;  %v7727_v37 = vadd.f32 %v7726_v7, %v7725_v6  ;;  %v7730_v45 = vadd.f32 %v7729_v36, %v7728_v13  ;;  %v7739_v19 = vmul.f32 %v7650_v58, %v13210_v31 }
 0x444   :  { %v7741_v29 = vmul.f32 %v7652_v62, %v13211_v52  ;;  %7764 = vst [vmem:[#allocation5 + $0x57] sm:$0x1] %v7722_v34  ;;  %v7735_v49 = vadd.f32 %v7734_v60, %v7733_v42 }
 0x445   :  { %7766 = vst [vmem:[#allocation5 + $0x5f] sm:$0x1] %v7727_v37  ;;  %v7732_v61 = vadd.f32 %v7731_v44, %v7730_v45  ;;  %v7740_v54 = vadd.f32 %v7739_v19, %v7738_v1 }
 0x446   :  { %v7737_v16 = vadd.f32 %v7736_v28, %v7735_v49 }
 0x447   :  { %7768 = vst [vmem:[#allocation5 + $0x67] sm:$0x1] %v7732_v61  ;;  %v7742_v38 = vadd.f32 %v7741_v29, %v7740_v54 }
 0x448   :  { %7770 = vst [vmem:[#allocation5 + $0x6f] sm:$0x1] %v7737_v16 }
 0x449   :  { %7772 = vst [vmem:[#allocation5 + $0x77] sm:$0x1] %v7742_v38 }
 0x44a   :  { %8363 = shalt.err (!%p8360_p12)
}
 0x44b   :  { %s8364_s24 = scalar_lea.hbm %s12907_s1, 1920 }
 0x44c   :  { %p8365_p13 = scmp.ne.s32.totalorder %s12907_s1, %s8364_s24  ;;  %p8368_p0 = scmp.lt.u32.totalorder %s8364_s24, %s12907_s1 }
 0x44e   :  { %p8370_p1 = pnand %p8368_p0, %p8365_p13 }
 0x450   :  { %8373 = shalt.err (!%p8370_p1)
}
 0x451   :  { %7784 = dma.vmem_to_hbm [thread:$0]  %s7779_s20, 1920, %s12907_s1, [#allocation4], %s8379_s16, %s8379_s16, %s8380_s17  }
 0x452   :  { %8376 = dma.done.wait [#allocation4], 1920  }
 0x453   :  { %8377 = vsyncadd [#allocation4], 4294965376 }
 0x454   :  { %7788 = vsyncpa [#allocation3], 1 }
 0x455   :  { %7789 = vsyncpa [#allocation4], 1 }

</bundles_post_ra>
